<compile_context>
chip_gen: v7x
topology: tpu7x:2x2x1
jax: 0.10.0
libtpu: 0.0.40
codegen_flags: <defaults>
</compile_context>

<pallas_src>
import functools
import math

import jax
import jax.numpy as jnp
from jax import lax
from jax.experimental import pallas as pl
from jax.experimental.pallas import tpu as pltpu

_VMEM_LIMIT = 64 * 1024 * 1024   # sized for v7x (64 MiB per TC); fine on v5e/v6e too


# --------------------------------------------------------------------------------------
# small helpers (wrapper-level, plain JAX)
# --------------------------------------------------------------------------------------
def _round_up(n, m):
    return ((n + m - 1) // m) * m


def _pad_rows(x, rows):
    return jnp.pad(x, ((0, rows - x.shape[0]), (0, 0)))


# --------------------------------------------------------------------------------------
# Fused TransformerConv kernel (heads=1, concat=True, root_weight=True, edge_dim given,
# aggr='mean').  Grid: edge tiles (reduction axis).  Per tile:
#   one packed bf16 matmul -> k|v|q, score, online segment softmax update into VMEM
#   scratch via a single fused scatter dot.  Finalize on the last tile: normalize, mean,
#   add the (precomputed) skip projection, outer ReLU.
# --------------------------------------------------------------------------------------
def _transformer_conv_kernel(xed_ref, dst_ref, skip_ref, wkvq_ref, bkvq_ref, o_ref,
                             m_ref, l_ref, cnt_ref, acc_ref, *, out_dim):
    t = pl.program_id(0)
    nd = o_ref.shape[0]
    C = out_dim

    @pl.when(t == 0)
    def _init():
        m_ref[...] = jnp.full(m_ref.shape, -1e30, jnp.float32)
        l_ref[...] = jnp.zeros(l_ref.shape, jnp.float32)
        cnt_ref[...] = jnp.zeros(cnt_ref.shape, jnp.float32)
        acc_ref[...] = jnp.zeros(acc_ref.shape, jnp.float32)

    # Fused q/k/v/edge projections: single bf16 MXU matmul, f32 accumulation.
    kvq = jnp.dot(xed_ref[...], wkvq_ref[...],
                  preferred_element_type=jnp.float32) + bkvq_ref[...]
    k_e = kvq[:, 0 * C:1 * C]          # key  + edge projection
    v_e = kvq[:, 1 * C:2 * C]          # value + edge projection
    q_e = kvq[:, 2 * C:3 * C]          # query (gathered destination rows)
    score = jnp.sum(q_e * k_e, axis=1, keepdims=True) * (1.0 / math.sqrt(C))  # (Et, 1)

    e_t = xed_ref.shape[0]
    dst = dst_ref[...]                                                # (Et, 1) int32
    valid = dst < nd                                                  # padded edges -> dst == nd
    score = jnp.where(valid, score, jnp.float32(-1e30))               # mask padded edges
    hit = dst == lax.broadcasted_iota(jnp.int32, (e_t, nd), 1)        # (Et, nd) bool
    onehot = hit.astype(jnp.float32)

    # --- online (streaming) segment softmax accumulated across edge tiles ------------
    tile_max = jnp.max(jnp.where(hit, score, jnp.float32(-1e30)),
                       axis=0, keepdims=True)                         # (1, nd)
    m_old = m_ref[...]
    m_new = jnp.maximum(m_old, tile_max)
    corr = jnp.exp(m_old - m_new)                                     # rescale old stats
    m_ref[...] = m_new

    # Gather running max back to edges with an MXU dot (A @ B^T form).
    m_e = lax.dot_general(onehot, m_new, (((1,), (1,)), ((), ())),
                          preferred_element_type=jnp.float32)         # (Et, 1)
    p = jnp.exp(score - m_e)                                          # (Et, 1); 0 for padded rows

    # Fused scatter: one MXU dot contracting the edge axis for [acc | l | cnt].
    cols = jnp.concatenate([v_e * p, p, jnp.ones_like(p)], axis=1)    # (Et, C+2)
    scat = lax.dot_general(cols, onehot, (((0,), (0,)), ((), ())),
                           preferred_element_type=jnp.float32)        # (C+2, nd)
    acc_ref[...] = acc_ref[...] * corr + scat[:C]
    l_ref[...] = l_ref[...] * corr + scat[C:C + 1]
    cnt_ref[...] = cnt_ref[...] + scat[C + 1:C + 2]

    @pl.when(t == pl.num_programs(0) - 1)
    def _finalize():
        inv_l = pl.reciprocal(l_ref[...] + 1e-16, approx=True)        # PyG softmax (+1e-16)
        inv_c = pl.reciprocal(jnp.maximum(cnt_ref[...], 1.0), approx=True)    # aggr='mean'
        out = jnp.transpose(acc_ref[...] * inv_l * inv_c) + skip_ref[...]     # (nd, C)
        o_ref[...] = jnp.maximum(out, 0.0).astype(o_ref.dtype)        # outer ReLU (Identity norm)


def transformer_conv(p, x_src, x_dst, edge_attr, src_idx, dst_idx, *, edge_tile=256):
    n_dst, c_dst = x_dst.shape
    _, c_src = x_src.shape
    e, c_edge = edge_attr.shape
    c_out = p["q_w"].shape[1]

    # ---- pack the q/k/v/edge projections into one bf16 weight slab ------------------
    zsrc = jnp.zeros((c_src, c_out), jnp.float32)
    zdst = jnp.zeros((c_dst, c_out), jnp.float32)
    zedg = jnp.zeros((c_edge, c_out), jnp.float32)
    w_k = jnp.concatenate([p["k_w"], zdst, p["e_w"]], axis=0)
    w_v = jnp.concatenate([p["v_w"], zdst, p["e_w"]], axis=0)
    w_q = jnp.concatenate([zsrc, p["q_w"], zedg], axis=0)
    w_kvq = jnp.concatenate([w_k, w_v, w_q], axis=1).astype(jnp.bfloat16)
    b_kvq = jnp.concatenate([p["k_b"], p["v_b"], p["q_b"]], axis=1)   # lin_edge has no bias (f32)

    # ---- per-edge gathered inputs (lane-dense XLA row gather), rows padded -----------
    src_idx = src_idx.astype(jnp.int32)
    dst_idx = dst_idx.astype(jnp.int32)
    xed = jnp.concatenate([x_src[src_idx], x_dst[dst_idx], edge_attr], axis=1)

    e_pad = _round_up(e, edge_tile)
    nd_pad = _round_up(n_dst, 8)
    xed = _pad_rows(xed, e_pad).astype(jnp.bfloat16)
    # padded edges point at destination `nd_pad` (out of one-hot range) -> masked in kernel
    dst_col = jnp.full((e_pad, 1), nd_pad, jnp.int32).at[:e, 0].set(dst_idx)

    # skip projection hoisted out of the reduction kernel (only needed in the finalize)
    skip = jnp.dot(x_dst, p["skip_w"]) + p["skip_b"]                  # (n_dst, C) plain XLA
    skip = _pad_rows(skip, nd_pad)
    c_in = xed.shape[1]

    out = pl.pallas_call(
        functools.partial(_transformer_conv_kernel, out_dim=c_out),
        out_shape=jax.ShapeDtypeStruct((nd_pad, c_out), jnp.float32),
        grid=(e_pad // edge_tile,),
        in_specs=[
            pl.BlockSpec((edge_tile, c_in), lambda i: (i, 0)),        # gathered per-edge inputs
            pl.BlockSpec((edge_tile, 1), lambda i: (i, 0)),           # destination indices
            pl.BlockSpec((nd_pad, c_out), lambda i: (0, 0)),          # precomputed skip proj
            pl.BlockSpec((c_in, 3 * c_out), lambda i: (0, 0)),        # packed k|v|q weights (bf16)
            pl.BlockSpec((1, 3 * c_out), lambda i: (0, 0)),           # packed biases (f32)
        ],
        out_specs=pl.BlockSpec((nd_pad, c_out), lambda i: (0, 0)),
        scratch_shapes=[
            pltpu.VMEM((1, nd_pad), jnp.float32),                     # running per-dst max
            pltpu.VMEM((1, nd_pad), jnp.float32),                     # running softmax denom
            pltpu.VMEM((1, nd_pad), jnp.float32),                     # per-dst edge counts
            pltpu.VMEM((c_out, nd_pad), jnp.float32),                 # running weighted msg sum
        ],
        compiler_params=pltpu.CompilerParams(
            dimension_semantics=("arbitrary",),                       # reduction over edge tiles
            vmem_limit_bytes=_VMEM_LIMIT),
    )(xed, dst_col, skip, w_kvq, b_kvq)
    return out[:n_dst]


# --------------------------------------------------------------------------------------
# Fused EdgeUpdater kernel: block-diagonal var/con compress MLPs + edge MLP, per edge
# tile (purely row-wise -> "parallel" grid axis, shards across megacore TCs).  Output is
# emitted transposed (c_out, edge_tile) so the store is lane-dense.
# --------------------------------------------------------------------------------------
def _edge_mlp_kernel(vc_ref, ed_ref, w0_ref, b0_ref, w1_ref, b1_ref,
                     we0e_ref, we0vc_ref, be0_ref, we1_ref, be1_ref, o_ref):
    h = jnp.maximum(jnp.dot(vc_ref[...], w0_ref[...],
                            preferred_element_type=jnp.float32) + b0_ref[...], 0.0)
    h = jnp.maximum(jnp.dot(h.astype(jnp.bfloat16), w1_ref[...],
                            preferred_element_type=jnp.float32) + b1_ref[...], 0.0)
    z = (jnp.dot(ed_ref[...], we0e_ref[...], preferred_element_type=jnp.float32)
         + jnp.dot(h.astype(jnp.bfloat16), we0vc_ref[...], preferred_element_type=jnp.float32)
         + be0_ref[...])
    z = jnp.maximum(z, 0.0)
    out = jnp.dot(z.astype(jnp.bfloat16), we1_ref[...],
                  preferred_element_type=jnp.float32) + be1_ref[...]
    # outer ReLU (Identity norm); lane-dense store of the transposed (c_out, edge_tile) block
    o_ref[...] = jnp.transpose(jnp.maximum(out, 0.0)).astype(o_ref.dtype)


def edge_updater_forward(p, var_f, con_f, edge_f, src_idx, dst_idx, *, edge_tile=256):
    e, ce = edge_f.shape
    cv = var_f.shape[1]
    cc = con_f.shape[1]
    hid = p["var_w0"].shape[1]
    c_out = p["edge_w1"].shape[1]

    # block-diagonal packing of the var/con compress MLPs -> two wide matmuls per tile
    w0 = jnp.concatenate([
        jnp.concatenate([p["var_w0"], jnp.zeros((cv, hid), jnp.float32)], axis=1),
        jnp.concatenate([jnp.zeros((cc, hid), jnp.float32), p["con_w0"]], axis=1)],
        axis=0).astype(jnp.bfloat16)
    b0 = jnp.concatenate([p["var_b0"], p["con_b0"]], axis=1)
    w1 = jnp.concatenate([
        jnp.concatenate([p["var_w1"], jnp.zeros((hid, hid), jnp.float32)], axis=1),
        jnp.concatenate([jnp.zeros((hid, hid), jnp.float32), p["con_w1"]], axis=1)],
        axis=0).astype(jnp.bfloat16)
    b1 = jnp.concatenate([p["var_b1"], p["con_b1"]], axis=1)
    # edge MLP first layer split by input block order: [edge | var_h | con_h]
    we0e = p["edge_w0"][:ce].astype(jnp.bfloat16)
    we0vc = p["edge_w0"][ce:].astype(jnp.bfloat16)
    be0 = p["edge_b0"]
    we1 = p["edge_w1"].astype(jnp.bfloat16)
    be1 = p["edge_b1"]

    src_idx = src_idx.astype(jnp.int32)
    dst_idx = dst_idx.astype(jnp.int32)
    vc = jnp.concatenate([var_f[src_idx], con_f[dst_idx]], axis=1)    # (E, cv+cc)

    e_pad = _round_up(e, edge_tile)
    vc = _pad_rows(vc, e_pad).astype(jnp.bfloat16)
    ed = _pad_rows(edge_f, e_pad).astype(jnp.bfloat16)

    out_t = pl.pallas_call(
        _edge_mlp_kernel,
        out_shape=jax.ShapeDtypeStruct((c_out, e_pad), jnp.float32),
        grid=(e_pad // edge_tile,),
        in_specs=[
            pl.BlockSpec((edge_tile, cv + cc), lambda i: (i, 0)),
            pl.BlockSpec((edge_tile, ce), lambda i: (i, 0)),
            pl.BlockSpec((cv + cc, 2 * hid), lambda i: (0, 0)),
            pl.BlockSpec((1, 2 * hid), lambda i: (0, 0)),
            pl.BlockSpec((2 * hid, 2 * hid), lambda i: (0, 0)),
            pl.BlockSpec((1, 2 * hid), lambda i: (0, 0)),
            pl.BlockSpec((ce, hid), lambda i: (0, 0)),
            pl.BlockSpec((2 * hid, hid), lambda i: (0, 0)),
            pl.BlockSpec((1, hid), lambda i: (0, 0)),
            pl.BlockSpec((hid, c_out), lambda i: (0, 0)),
            pl.BlockSpec((1, c_out), lambda i: (0, 0)),
        ],
        out_specs=pl.BlockSpec((c_out, edge_tile), lambda i: (0, i)),
        compiler_params=pltpu.CompilerParams(
            dimension_semantics=("parallel",),                        # independent edge tiles
            vmem_limit_bytes=_VMEM_LIMIT),
    )(vc, ed, w0, b0, w1, b1, we0e, we0vc, be0, we1, be1)
    return jnp.transpose(out_t)[:e]                                   # back to (E, c_out)


# --------------------------------------------------------------------------------------
# FeatureExtractorLayer forward (3 pallas_calls total)
# --------------------------------------------------------------------------------------
def feature_extractor_layer_forward(params, var_learned_f, var_lp_f, con_learned_f, con_lp_f,
                                    edge_learned_f, solver_state, edge_lp_f_wo_ss,
                                    edge_index_var_con):
    var_comb = jnp.concatenate([var_learned_f, var_lp_f], axis=1)
    con_comb = jnp.concatenate([con_learned_f, con_lp_f], axis=1)
    # use_solver_costs=True, use_net_solver_costs=False, use_def_mm=True
    edge_comb = jnp.concatenate(
        [edge_learned_f,
         solver_state["lo_costs"][:, None],
         solver_state["hi_costs"][:, None],
         solver_state["def_mm"][:, None],
         edge_lp_f_wo_ss], axis=1)

    src = edge_index_var_con[0]     # variable indices (edge source)
    dst = edge_index_var_con[1]     # constraint indices (edge destination)

    # con_updater: messages var -> con
    con_learned_new = transformer_conv(params["con_updater"], var_comb, con_comb,
                                       edge_comb, src, dst)
    con_comb2 = jnp.concatenate([con_learned_new, con_lp_f], axis=1)

    # var_updater: flipped edge index -> messages con -> var
    var_learned_new = transformer_conv(params["var_updater"], con_comb2, var_comb,
                                       edge_comb, dst, src)
    var_comb2 = jnp.concatenate([var_learned_new, var_lp_f], axis=1)

    edge_learned_new = edge_updater_forward(params["edge_updater"], var_comb2, con_comb2,
                                            edge_comb, src, dst)
    return var_learned_new, con_learned_new, edge_learned_new


# --------------------------------------------------------------------------------------
# Deterministic parameter initialization (PyTorch Linear-style uniform bounds)
# --------------------------------------------------------------------------------------
def _init_linear(key, in_dim, out_dim, bias=True):
    kw, kb = jax.random.split(key)
    bound = 1.0 / math.sqrt(in_dim)
    w = jax.random.uniform(kw, (in_dim, out_dim), jnp.float32, -bound, bound)
    if bias:
        b = jax.random.uniform(kb, (1, out_dim), jnp.float32, -bound, bound)
    else:
        b = jnp.zeros((1, out_dim), jnp.float32)
    return w, b


def init_transformer_conv(key, in_src, in_dst, out_dim, edge_dim):
    ks = jax.random.split(key, 5)
    q_w, q_b = _init_linear(ks[0], in_dst, out_dim)
    k_w, k_b = _init_linear(ks[1], in_src, out_dim)
    v_w, v_b = _init_linear(ks[2], in_src, out_dim)
    e_w, _ = _init_linear(ks[3], edge_dim, out_dim, bias=False)       # lin_edge: bias=False
    skip_w, skip_b = _init_linear(ks[4], in_dst, out_dim)
    return dict(q_w=q_w, q_b=q_b, k_w=k_w, k_b=k_b, v_w=v_w, v_b=v_b,
                e_w=e_w, skip_w=skip_w, skip_b=skip_b)


def init_edge_updater(key, in_edge, hidden, out_edge, var_ch, con_ch):
    ks = jax.random.split(key, 6)
    var_w0, var_b0 = _init_linear(ks[0], var_ch, hidden)
    var_w1, var_b1 = _init_linear(ks[1], hidden, hidden)
    con_w0, con_b0 = _init_linear(ks[2], con_ch, hidden)
    con_w1, con_b1 = _init_linear(ks[3], hidden, hidden)
    edge_w0, edge_b0 = _init_linear(ks[4], in_edge + 2 * hidden, hidden)
    edge_w1, edge_b1 = _init_linear(ks[5], hidden, out_edge)
    return dict(var_w0=var_w0, var_b0=var_b0, var_w1=var_w1, var_b1=var_b1,
                con_w0=con_w0, con_b0=con_b0, con_w1=con_w1, con_b1=con_b1,
                edge_w0=edge_w0, edge_b0=edge_b0, edge_w1=edge_w1, edge_b1=edge_b1)


if __name__ == "__main__":
    # --- module hyper-parameters (small, consistent with the forward) ---
    NUM_VAR_LP_F, IN_VAR_DIM, OUT_VAR_DIM = 4, 8, 16
    NUM_CON_LP_F, IN_CON_DIM, OUT_CON_DIM = 4, 8, 16
    EDGE_LP_WO_SS = 3
    NUM_EDGE_LP_F_WITH_SS = EDGE_LP_WO_SS + 3          # lo_costs, hi_costs, def_mm
    IN_EDGE_DIM, OUT_EDGE_DIM = 8, 16
    N_VAR, N_CON, N_EDGE = 8, 6, 14                    # N_CON, N_EDGE exercise row padding

    var_in = NUM_VAR_LP_F + IN_VAR_DIM                 # 12
    con_in = NUM_CON_LP_F + IN_CON_DIM                 # 12
    edge_dim = NUM_EDGE_LP_F_WITH_SS + IN_EDGE_DIM     # 14

    # --- deterministic parameters ---
    pkey = jax.random.PRNGKey(42)
    k_con, k_var, k_edge = jax.random.split(pkey, 3)
    params = {
        "con_updater": init_transformer_conv(k_con, var_in, con_in, OUT_CON_DIM, edge_dim),
        "var_updater": init_transformer_conv(k_var, OUT_CON_DIM + NUM_CON_LP_F, var_in,
                                             OUT_VAR_DIM, edge_dim),
        "edge_updater": init_edge_updater(k_edge, edge_dim, OUT_EDGE_DIM, OUT_EDGE_DIM,
                                          OUT_VAR_DIM + NUM_VAR_LP_F,
                                          OUT_CON_DIM + NUM_CON_LP_F),
    }

    # --- deterministic example inputs ---
    key = jax.random.PRNGKey(0)
    ks = jax.random.split(key, 10)
    var_learned_f = jax.random.normal(ks[0], (N_VAR, IN_VAR_DIM), jnp.float32)
    var_lp_f = jax.random.normal(ks[1], (N_VAR, NUM_VAR_LP_F), jnp.float32)
    con_learned_f = jax.random.normal(ks[2], (N_CON, IN_CON_DIM), jnp.float32)
    con_lp_f = jax.random.normal(ks[3], (N_CON, NUM_CON_LP_F), jnp.float32)
    edge_learned_f = jax.random.normal(ks[4], (N_EDGE, IN_EDGE_DIM), jnp.float32)
    edge_lp_f_wo_ss = jax.random.normal(ks[5], (N_EDGE, EDGE_LP_WO_SS), jnp.float32)
    solver_state = {
        "lo_costs": jax.random.normal(ks[6], (N_EDGE,), jnp.float32),
        "hi_costs": jax.random.normal(ks[7], (N_EDGE,), jnp.float32),
        "def_mm": jax.random.normal(ks[8], (N_EDGE,), jnp.float32),
    }
    k_src, k_dst = jax.random.split(ks[9])
    edge_index_var_con = jnp.stack(
        [jax.random.randint(k_src, (N_EDGE,), 0, N_VAR, jnp.int32),
         jax.random.randint(k_dst, (N_EDGE,), 0, N_CON, jnp.int32)], axis=0)

    fwd = jax.jit(feature_extractor_layer_forward)
    var_out, con_out, edge_out = fwd(params, var_learned_f, var_lp_f, con_learned_f, con_lp_f,
                                     edge_learned_f, solver_state, edge_lp_f_wo_ss,
                                     edge_index_var_con)
    jax.block_until_ready((var_out, con_out, edge_out))

    assert var_out.shape == (N_VAR, OUT_VAR_DIM)
    assert con_out.shape == (N_CON, OUT_CON_DIM)
    assert edge_out.shape == (N_EDGE, OUT_EDGE_DIM)
    assert bool(jnp.all(jnp.isfinite(var_out)))
    assert bool(jnp.all(jnp.isfinite(con_out)))
    assert bool(jnp.all(jnp.isfinite(edge_out)))
    print("KERNEL_OK")
</pallas_src>

<mosaic_0001>
module attributes {stable_mosaic.version = 11 : i64} {
  func.func @_transformer_conv_kernel(%arg0: i32, %arg1: memref<256x38xbf16, #tpu.memory_space<vmem>>, %arg2: memref<256x1xi32, #tpu.memory_space<vmem>>, %arg3: memref<8x16xf32, #tpu.memory_space<vmem>>, %arg4: memref<38x48xbf16, #tpu.memory_space<vmem>>, %arg5: memref<1x48xf32, #tpu.memory_space<vmem>>, %arg6: memref<8x16xf32, #tpu.memory_space<vmem>>, %arg7: memref<1x8xf32, #tpu.memory_space<vmem>>, %arg8: memref<1x8xf32, #tpu.memory_space<vmem>>, %arg9: memref<1x8xf32, #tpu.memory_space<vmem>>, %arg10: memref<16x8xf32, #tpu.memory_space<vmem>>) attributes {dimension_semantics = [#tpu.dimension_semantics<arbitrary>], iteration_bounds = array<i64: 1>, scalar_prefetch = 0 : i64, scratch_operands = 4 : i64, tpu.core_type = #tpu.core_type<tc>, window_params = [{transform_indices = @transform_0, window_bounds = array<i64: 256, 38>}, {transform_indices = @transform_1, window_bounds = array<i64: 256, 1>}, {pipeline_mode = #tpu.pipeline_mode<synchronous>, transform_indices = @transform_2, window_bounds = array<i64: 8, 16>}, {pipeline_mode = #tpu.pipeline_mode<synchronous>, transform_indices = @transform_3, window_bounds = array<i64: 38, 48>}, {pipeline_mode = #tpu.pipeline_mode<synchronous>, transform_indices = @transform_4, window_bounds = array<i64: 1, 48>}, {pipeline_mode = #tpu.pipeline_mode<synchronous>, transform_indices = @transform_5, window_bounds = array<i64: 8, 16>}]} {
    %c0_i32 = arith.constant 0 : i32
    %0 = arith.cmpi eq, %arg0, %c0_i32 : i32
    %1 = arith.extui %0 : i1 to i32
    %c0_i32_0 = arith.constant 0 : i32
    %2 = arith.cmpi ne, %1, %c0_i32_0 : i32
    scf.if %2 {
      %cst_34 = arith.constant -1.000000e+30 : f32
      %64 = vector.broadcast %cst_34 : f32 to vector<1x8xf32>
      %c0_35 = arith.constant 0 : index
      %c0_36 = arith.constant 0 : index
      %65 = vector.load %arg7[%c0_35, %c0_36] : memref<1x8xf32, #tpu.memory_space<vmem>>, vector<1x8xf32>
      tpu.vector_store %arg7[%c0_35, %c0_36], %64 {strides = array<i32>} : memref<1x8xf32, #tpu.memory_space<vmem>>, vector<1x8xf32>,
      %cst_37 = arith.constant 0.000000e+00 : f32
      %66 = vector.broadcast %cst_37 : f32 to vector<1x8xf32>
      %c0_38 = arith.constant 0 : index
      %c0_39 = arith.constant 0 : index
      %67 = vector.load %arg8[%c0_38, %c0_39] : memref<1x8xf32, #tpu.memory_space<vmem>>, vector<1x8xf32>
      tpu.vector_store %arg8[%c0_38, %c0_39], %66 {strides = array<i32>} : memref<1x8xf32, #tpu.memory_space<vmem>>, vector<1x8xf32>,
      %cst_40 = arith.constant 0.000000e+00 : f32
      %68 = vector.broadcast %cst_40 : f32 to vector<1x8xf32>
      %c0_41 = arith.constant 0 : index
      %c0_42 = arith.constant 0 : index
      %69 = vector.load %arg9[%c0_41, %c0_42] : memref<1x8xf32, #tpu.memory_space<vmem>>, vector<1x8xf32>
      tpu.vector_store %arg9[%c0_41, %c0_42], %68 {strides = array<i32>} : memref<1x8xf32, #tpu.memory_space<vmem>>, vector<1x8xf32>,
      %cst_43 = arith.constant 0.000000e+00 : f32
      %70 = vector.broadcast %cst_43 : f32 to vector<16x8xf32>
      %c0_44 = arith.constant 0 : index
      %c0_45 = arith.constant 0 : index
      %71 = vector.load %arg10[%c0_44, %c0_45] : memref<16x8xf32, #tpu.memory_space<vmem>>, vector<16x8xf32>
      tpu.vector_store %arg10[%c0_44, %c0_45], %70 {strides = array<i32>} : memref<16x8xf32, #tpu.memory_space<vmem>>, vector<16x8xf32>,
    } else {
    }
    %c0 = arith.constant 0 : index
    %c0_1 = arith.constant 0 : index
    %3 = vector.load %arg1[%c0, %c0_1] : memref<256x38xbf16, #tpu.memory_space<vmem>>, vector<256x38xbf16>
    %c0_2 = arith.constant 0 : index
    %c0_3 = arith.constant 0 : index
    %4 = vector.load %arg4[%c0_2, %c0_3] : memref<38x48xbf16, #tpu.memory_space<vmem>>, vector<38x48xbf16>
    %cst = arith.constant dense<0.000000e+00> : vector<256x48xf32>
    %5 = tpu.matmul %3, %4, %cst {dimension_numbers = #tpu.dot_dimension_numbers<[1], [0], [0], [1], [0, 0, 1, 1], [], []>} : vector<256x38xbf16>, vector<38x48xbf16>, vector<256x48xf32> -> vector<256x48xf32>
    %c0_4 = arith.constant 0 : index
    %c0_5 = arith.constant 0 : index
    %6 = vector.load %arg5[%c0_4, %c0_5] : memref<1x48xf32, #tpu.memory_space<vmem>>, vector<1x48xf32>
    %7 = vector.broadcast %6 : vector<1x48xf32> to vector<256x48xf32>
    %8 = arith.addf %5, %7 : vector<256x48xf32>
    %9 = vector.extract_strided_slice %8 {offsets = [0, 0], sizes = [256, 16], strides = [1, 1]} : vector<256x48xf32> to vector<256x16xf32>
    %10 = vector.extract_strided_slice %8 {offsets = [0, 16], sizes = [256, 16], strides = [1, 1]} : vector<256x48xf32> to vector<256x16xf32>
    %11 = vector.extract_strided_slice %8 {offsets = [0, 32], sizes = [256, 16], strides = [1, 1]} : vector<256x48xf32> to vector<256x16xf32>
    %12 = arith.mulf %11, %9 : vector<256x16xf32>
    %cst_6 = arith.constant dense<0.000000e+00> : vector<256xf32>
    %13 = vector.multi_reduction <add>, %12, %cst_6 [1] : vector<256x16xf32> to vector<256xf32>
    %14 = vector.shape_cast %13 : vector<256xf32> to vector<256x1xf32>
    %cst_7 = arith.constant 2.500000e-01 : f32
    %15 = vector.broadcast %cst_7 : f32 to vector<256x1xf32>
    %16 = arith.mulf %14, %15 : vector<256x1xf32>
    %c0_8 = arith.constant 0 : index
    %c0_9 = arith.constant 0 : index
    %17 = vector.load %arg2[%c0_8, %c0_9] : memref<256x1xi32, #tpu.memory_space<vmem>>, vector<256x1xi32>
    %c8_i32 = arith.constant 8 : i32
    %18 = vector.broadcast %c8_i32 : i32 to vector<256x1xi32>
    %19 = arith.cmpi slt, %17, %18 : vector<256x1xi32>
    %cst_10 = arith.constant -1.000000e+30 : f32
    %20 = vector.broadcast %cst_10 : f32 to vector<256x1xf32>
    %21 = arith.select %19, %16, %20 : vector<256x1xi1>, vector<256x1xf32>
    %22 = tpu.iota {dimensions = array<i32: 1>} : vector<256x8xi32>
    %23 = vector.broadcast %17 : vector<256x1xi32> to vector<256x8xi32>
    %24 = arith.cmpi eq, %23, %22 : vector<256x8xi32>
    %25 = arith.extui %24 : vector<256x8xi1> to vector<256x8xi32>
    %26 = arith.sitofp %25 : vector<256x8xi32> to vector<256x8xf32>
    %cst_11 = arith.constant -1.000000e+30 : f32
    %27 = vector.shape_cast %21 : vector<256x1xf32> to vector<256x1xf32>
    %28 = vector.broadcast %27 : vector<256x1xf32> to vector<256x8xf32>
    %29 = vector.broadcast %cst_11 : f32 to vector<256x8xf32>
    %30 = arith.select %24, %28, %29 : vector<256x8xi1>, vector<256x8xf32>
    %cst_12 = arith.constant dense<0xFF800000> : vector<8xf32>
    %31 = vector.multi_reduction <maximumf>, %30, %cst_12 [0] : vector<256x8xf32> to vector<8xf32>
    %32 = vector.shape_cast %31 : vector<8xf32> to vector<1x8xf32>
    %c0_13 = arith.constant 0 : index
    %c0_14 = arith.constant 0 : index
    %33 = vector.load %arg7[%c0_13, %c0_14] : memref<1x8xf32, #tpu.memory_space<vmem>>, vector<1x8xf32>
    %34 = arith.maximumf %33, %32 : vector<1x8xf32>
    %35 = arith.subf %33, %34 : vector<1x8xf32>
    %36 = math.exp %35 : vector<1x8xf32>
    %c0_15 = arith.constant 0 : index
    %c0_16 = arith.constant 0 : index
    %37 = vector.load %arg7[%c0_15, %c0_16] : memref<1x8xf32, #tpu.memory_space<vmem>>, vector<1x8xf32>
    tpu.vector_store %arg7[%c0_15, %c0_16], %34 {strides = array<i32>} : memref<1x8xf32, #tpu.memory_space<vmem>>, vector<1x8xf32>,
    %cst_17 = arith.constant dense<0.000000e+00> : vector<256x1xf32>
    %38 = tpu.matmul %26, %34, %cst_17 {dimension_numbers = #tpu.dot_dimension_numbers<[1], [1], [0], [0], [0, 0, 1, 0], [], []>} : vector<256x8xf32>, vector<1x8xf32>, vector<256x1xf32> -> vector<256x1xf32>
    %39 = arith.subf %21, %38 : vector<256x1xf32>
    %40 = math.exp %39 : vector<256x1xf32>
    %41 = vector.broadcast %40 : vector<256x1xf32> to vector<256x16xf32>
    %42 = arith.mulf %10, %41 : vector<256x16xf32>
    %cst_18 = arith.constant 1.000000e+00 : f32
    %43 = vector.broadcast %cst_18 : f32 to vector<256x1xf32>
    %44 = tpu.concatenate %42, %40, %43 in 1 : vector<256x16xf32>, vector<256x1xf32>, vector<256x1xf32> -> vector<256x18xf32>
    %cst_19 = arith.constant dense<0.000000e+00> : vector<18x8xf32>
    %45 = tpu.matmul %44, %26, %cst_19 {dimension_numbers = #tpu.dot_dimension_numbers<[0], [0], [1], [1], [0, 1, 1, 1], [], []>} : vector<256x18xf32>, vector<256x8xf32>, vector<18x8xf32> -> vector<18x8xf32>
    %c0_20 = arith.constant 0 : index
    %c0_21 = arith.constant 0 : index
    %46 = vector.load %arg10[%c0_20, %c0_21] : memref<16x8xf32, #tpu.memory_space<vmem>>, vector<16x8xf32>
    %47 = vector.broadcast %36 : vector<1x8xf32> to vector<16x8xf32>
    %48 = arith.mulf %46, %47 : vector<16x8xf32>
    %49 = vector.extract_strided_slice %45 {offsets = [0, 0], sizes = [16, 8], strides = [1, 1]} : vector<18x8xf32> to vector<16x8xf32>
    %50 = arith.addf %48, %49 : vector<16x8xf32>
    %c0_22 = arith.constant 0 : index
    %c0_23 = arith.constant 0 : index
    %51 = vector.load %arg10[%c0_22, %c0_23] : memref<16x8xf32, #tpu.memory_space<vmem>>, vector<16x8xf32>
    tpu.vector_store %arg10[%c0_22, %c0_23], %50 {strides = array<i32>} : memref<16x8xf32, #tpu.memory_space<vmem>>, vector<16x8xf32>,
    %c0_24 = arith.constant 0 : index
    %c0_25 = arith.constant 0 : index
    %52 = vector.load %arg8[%c0_24, %c0_25] : memref<1x8xf32, #tpu.memory_space<vmem>>, vector<1x8xf32>
    %53 = arith.mulf %52, %36 : vector<1x8xf32>
    %54 = vector.extract_strided_slice %45 {offsets = [16, 0], sizes = [1, 8], strides = [1, 1]} : vector<18x8xf32> to vector<1x8xf32>
    %55 = arith.addf %53, %54 : vector<1x8xf32>
    %c0_26 = arith.constant 0 : index
    %c0_27 = arith.constant 0 : index
    %56 = vector.load %arg8[%c0_26, %c0_27] : memref<1x8xf32, #tpu.memory_space<vmem>>, vector<1x8xf32>
    tpu.vector_store %arg8[%c0_26, %c0_27], %55 {strides = array<i32>} : memref<1x8xf32, #tpu.memory_space<vmem>>, vector<1x8xf32>,
    %c0_28 = arith.constant 0 : index
    %c0_29 = arith.constant 0 : index
    %57 = vector.load %arg9[%c0_28, %c0_29] : memref<1x8xf32, #tpu.memory_space<vmem>>, vector<1x8xf32>
    %58 = vector.extract_strided_slice %45 {offsets = [17, 0], sizes = [1, 8], strides = [1, 1]} : vector<18x8xf32> to vector<1x8xf32>
    %59 = arith.addf %57, %58 : vector<1x8xf32>
    %c0_30 = arith.constant 0 : index
    %c0_31 = arith.constant 0 : index
    %60 = vector.load %arg9[%c0_30, %c0_31] : memref<1x8xf32, #tpu.memory_space<vmem>>, vector<1x8xf32>
    tpu.vector_store %arg9[%c0_30, %c0_31], %59 {strides = array<i32>} : memref<1x8xf32, #tpu.memory_space<vmem>>, vector<1x8xf32>,
    %c0_i32_32 = arith.constant 0 : i32
    %61 = arith.cmpi eq, %arg0, %c0_i32_32 : i32
    %62 = arith.extui %61 : i1 to i32
    %c0_i32_33 = arith.constant 0 : i32
    %63 = arith.cmpi ne, %62, %c0_i32_33 : i32
    scf.if %63 {
      %c0_34 = arith.constant 0 : index
      %c0_35 = arith.constant 0 : index
      %64 = vector.load %arg8[%c0_34, %c0_35] : memref<1x8xf32, #tpu.memory_space<vmem>>, vector<1x8xf32>
      %cst_36 = arith.constant 1.000000e-16 : f32
      %65 = vector.broadcast %cst_36 : f32 to vector<1x8xf32>
      %66 = arith.addf %64, %65 : vector<1x8xf32>
      %67 = tpu.reciprocal %66 {approx = true} : vector<1x8xf32> -> vector<1x8xf32>
      %c0_37 = arith.constant 0 : index
      %c0_38 = arith.constant 0 : index
      %68 = vector.load %arg9[%c0_37, %c0_38] : memref<1x8xf32, #tpu.memory_space<vmem>>, vector<1x8xf32>
      %cst_39 = arith.constant 1.000000e+00 : f32
      %69 = vector.broadcast %cst_39 : f32 to vector<1x8xf32>
      %70 = arith.maximumf %68, %69 : vector<1x8xf32>
      %71 = tpu.reciprocal %70 {approx = true} : vector<1x8xf32> -> vector<1x8xf32>
      %c0_40 = arith.constant 0 : index
      %c0_41 = arith.constant 0 : index
      %72 = vector.load %arg10[%c0_40, %c0_41] : memref<16x8xf32, #tpu.memory_space<vmem>>, vector<16x8xf32>
      %73 = vector.broadcast %67 : vector<1x8xf32> to vector<16x8xf32>
      %74 = arith.mulf %72, %73 : vector<16x8xf32>
      %75 = vector.broadcast %71 : vector<1x8xf32> to vector<16x8xf32>
      %76 = arith.mulf %74, %75 : vector<16x8xf32>
      %77 = tpu.transpose %76, [1, 0] : vector<16x8xf32> -> vector<8x16xf32>
      %c0_42 = arith.constant 0 : index
      %c0_43 = arith.constant 0 : index
      %78 = vector.load %arg3[%c0_42, %c0_43] : memref<8x16xf32, #tpu.memory_space<vmem>>, vector<8x16xf32>
      %79 = arith.addf %77, %78 : vector<8x16xf32>
      %cst_44 = arith.constant 0.000000e+00 : f32
      %80 = vector.broadcast %cst_44 : f32 to vector<8x16xf32>
      %81 = arith.maximumf %79, %80 : vector<8x16xf32>
      %c0_45 = arith.constant 0 : index
      %c0_46 = arith.constant 0 : index
      %82 = vector.load %arg6[%c0_45, %c0_46] : memref<8x16xf32, #tpu.memory_space<vmem>>, vector<8x16xf32>
      tpu.vector_store %arg6[%c0_45, %c0_46], %81 {strides = array<i32>} : memref<8x16xf32, #tpu.memory_space<vmem>>, vector<8x16xf32>,
    } else {
    }
    return
  }
  func.func @transform_0(%arg0: i32) -> (i32, i32) {
    %c0_i32 = arith.constant 0 : i32
    %c0_i32_0 = arith.constant 0 : i32
    return %arg0, %c0_i32 : i32, i32
  }
  func.func @transform_1(%arg0: i32) -> (i32, i32) {
    %c0_i32 = arith.constant 0 : i32
    %c0_i32_0 = arith.constant 0 : i32
    return %arg0, %c0_i32 : i32, i32
  }
  func.func @transform_2(%arg0: i32) -> (i32, i32) {
    %c0_i32 = arith.constant 0 : i32
    %c0_i32_0 = arith.constant 0 : i32
    %c0_i32_1 = arith.constant 0 : i32
    return %c0_i32, %c0_i32_0 : i32, i32
  }
  func.func @transform_3(%arg0: i32) -> (i32, i32) {
    %c0_i32 = arith.constant 0 : i32
    %c0_i32_0 = arith.constant 0 : i32
    %c0_i32_1 = arith.constant 0 : i32
    return %c0_i32, %c0_i32_0 : i32, i32
  }
  func.func @transform_4(%arg0: i32) -> (i32, i32) {
    %c0_i32 = arith.constant 0 : i32
    %c0_i32_0 = arith.constant 0 : i32
    %c0_i32_1 = arith.constant 0 : i32
    return %c0_i32, %c0_i32_0 : i32, i32
  }
  func.func @transform_5(%arg0: i32) -> (i32, i32) {
    %c0_i32 = arith.constant 0 : i32
    %c0_i32_0 = arith.constant 0 : i32
    %c0_i32_1 = arith.constant 0 : i32
    return %c0_i32, %c0_i32_0 : i32, i32
  }
}

module attributes {stable_mosaic.version = 11 : i64} {
  func.func @_edge_mlp_kernel(%arg0: i32, %arg1: memref<256x40xbf16, #tpu.memory_space<vmem>>, %arg2: memref<256x14xbf16, #tpu.memory_space<vmem>>, %arg3: memref<40x32xbf16, #tpu.memory_space<vmem>>, %arg4: memref<1x32xf32, #tpu.memory_space<vmem>>, %arg5: memref<32x32xbf16, #tpu.memory_space<vmem>>, %arg6: memref<1x32xf32, #tpu.memory_space<vmem>>, %arg7: memref<14x16xbf16, #tpu.memory_space<vmem>>, %arg8: memref<32x16xbf16, #tpu.memory_space<vmem>>, %arg9: memref<1x16xf32, #tpu.memory_space<vmem>>, %arg10: memref<16x16xbf16, #tpu.memory_space<vmem>>, %arg11: memref<1x16xf32, #tpu.memory_space<vmem>>, %arg12: memref<16x256xf32, #tpu.memory_space<vmem>>) attributes {dimension_semantics = [#tpu.dimension_semantics<parallel>], iteration_bounds = array<i64: 1>, scalar_prefetch = 0 : i64, scratch_operands = 0 : i64, tpu.core_type = #tpu.core_type<tc>, window_params = [{transform_indices = @transform_0, window_bounds = array<i64: 256, 40>}, {transform_indices = @transform_1, window_bounds = array<i64: 256, 14>}, {pipeline_mode = #tpu.pipeline_mode<synchronous>, transform_indices = @transform_2, window_bounds = array<i64: 40, 32>}, {pipeline_mode = #tpu.pipeline_mode<synchronous>, transform_indices = @transform_3, window_bounds = array<i64: 1, 32>}, {pipeline_mode = #tpu.pipeline_mode<synchronous>, transform_indices = @transform_4, window_bounds = array<i64: 32, 32>}, {pipeline_mode = #tpu.pipeline_mode<synchronous>, transform_indices = @transform_5, window_bounds = array<i64: 1, 32>}, {pipeline_mode = #tpu.pipeline_mode<synchronous>, transform_indices = @transform_6, window_bounds = array<i64: 14, 16>}, {pipeline_mode = #tpu.pipeline_mode<synchronous>, transform_indices = @transform_7, window_bounds = array<i64: 32, 16>}, {pipeline_mode = #tpu.pipeline_mode<synchronous>, transform_indices = @transform_8, window_bounds = array<i64: 1, 16>}, {pipeline_mode = #tpu.pipeline_mode<synchronous>, transform_indices = @transform_9, window_bounds = array<i64: 16, 16>}, {pipeline_mode = #tpu.pipeline_mode<synchronous>, transform_indices = @transform_10, window_bounds = array<i64: 1, 16>}, {transform_indices = @transform_11, window_bounds = array<i64: 16, 256>}]} {
    %c0 = arith.constant 0 : index
    %c0_0 = arith.constant 0 : index
    %0 = vector.load %arg1[%c0, %c0_0] : memref<256x40xbf16, #tpu.memory_space<vmem>>, vector<256x40xbf16>
    %c0_1 = arith.constant 0 : index
    %c0_2 = arith.constant 0 : index
    %1 = vector.load %arg3[%c0_1, %c0_2] : memref<40x32xbf16, #tpu.memory_space<vmem>>, vector<40x32xbf16>
    %cst = arith.constant dense<0.000000e+00> : vector<256x32xf32>
    %2 = tpu.matmul %0, %1, %cst {dimension_numbers = #tpu.dot_dimension_numbers<[1], [0], [0], [1], [0, 0, 1, 1], [], []>} : vector<256x40xbf16>, vector<40x32xbf16>, vector<256x32xf32> -> vector<256x32xf32>
    %c0_3 = arith.constant 0 : index
    %c0_4 = arith.constant 0 : index
    %3 = vector.load %arg4[%c0_3, %c0_4] : memref<1x32xf32, #tpu.memory_space<vmem>>, vector<1x32xf32>
    %4 = vector.broadcast %3 : vector<1x32xf32> to vector<256x32xf32>
    %5 = arith.addf %2, %4 : vector<256x32xf32>
    %cst_5 = arith.constant 0.000000e+00 : f32
    %6 = vector.broadcast %cst_5 : f32 to vector<256x32xf32>
    %7 = arith.maximumf %5, %6 : vector<256x32xf32>
    %8 = arith.truncf %7 : vector<256x32xf32> to vector<256x32xbf16>
    %c0_6 = arith.constant 0 : index
    %c0_7 = arith.constant 0 : index
    %9 = vector.load %arg5[%c0_6, %c0_7] : memref<32x32xbf16, #tpu.memory_space<vmem>>, vector<32x32xbf16>
    %cst_8 = arith.constant dense<0.000000e+00> : vector<256x32xf32>
    %10 = tpu.matmul %8, %9, %cst_8 {dimension_numbers = #tpu.dot_dimension_numbers<[1], [0], [0], [1], [0, 0, 1, 1], [], []>} : vector<256x32xbf16>, vector<32x32xbf16>, vector<256x32xf32> -> vector<256x32xf32>
    %c0_9 = arith.constant 0 : index
    %c0_10 = arith.constant 0 : index
    %11 = vector.load %arg6[%c0_9, %c0_10] : memref<1x32xf32, #tpu.memory_space<vmem>>, vector<1x32xf32>
    %12 = vector.broadcast %11 : vector<1x32xf32> to vector<256x32xf32>
    %13 = arith.addf %10, %12 : vector<256x32xf32>
    %cst_11 = arith.constant 0.000000e+00 : f32
    %14 = vector.broadcast %cst_11 : f32 to vector<256x32xf32>
    %15 = arith.maximumf %13, %14 : vector<256x32xf32>
    %c0_12 = arith.constant 0 : index
    %c0_13 = arith.constant 0 : index
    %16 = vector.load %arg2[%c0_12, %c0_13] : memref<256x14xbf16, #tpu.memory_space<vmem>>, vector<256x14xbf16>
    %c0_14 = arith.constant 0 : index
    %c0_15 = arith.constant 0 : index
    %17 = vector.load %arg7[%c0_14, %c0_15] : memref<14x16xbf16, #tpu.memory_space<vmem>>, vector<14x16xbf16>
    %cst_16 = arith.constant dense<0.000000e+00> : vector<256x16xf32>
    %18 = tpu.matmul %16, %17, %cst_16 {dimension_numbers = #tpu.dot_dimension_numbers<[1], [0], [0], [1], [0, 0, 1, 1], [], []>} : vector<256x14xbf16>, vector<14x16xbf16>, vector<256x16xf32> -> vector<256x16xf32>
    %19 = arith.truncf %15 : vector<256x32xf32> to vector<256x32xbf16>
    %c0_17 = arith.constant 0 : index
    %c0_18 = arith.constant 0 : index
    %20 = vector.load %arg8[%c0_17, %c0_18] : memref<32x16xbf16, #tpu.memory_space<vmem>>, vector<32x16xbf16>
    %cst_19 = arith.constant dense<0.000000e+00> : vector<256x16xf32>
    %21 = tpu.matmul %19, %20, %cst_19 {dimension_numbers = #tpu.dot_dimension_numbers<[1], [0], [0], [1], [0, 0, 1, 1], [], []>} : vector<256x32xbf16>, vector<32x16xbf16>, vector<256x16xf32> -> vector<256x16xf32>
    %22 = arith.addf %18, %21 : vector<256x16xf32>
    %c0_20 = arith.constant 0 : index
    %c0_21 = arith.constant 0 : index
    %23 = vector.load %arg9[%c0_20, %c0_21] : memref<1x16xf32, #tpu.memory_space<vmem>>, vector<1x16xf32>
    %24 = vector.broadcast %23 : vector<1x16xf32> to vector<256x16xf32>
    %25 = arith.addf %22, %24 : vector<256x16xf32>
    %cst_22 = arith.constant 0.000000e+00 : f32
    %26 = vector.broadcast %cst_22 : f32 to vector<256x16xf32>
    %27 = arith.maximumf %25, %26 : vector<256x16xf32>
    %28 = arith.truncf %27 : vector<256x16xf32> to vector<256x16xbf16>
    %c0_23 = arith.constant 0 : index
    %c0_24 = arith.constant 0 : index
    %29 = vector.load %arg10[%c0_23, %c0_24] : memref<16x16xbf16, #tpu.memory_space<vmem>>, vector<16x16xbf16>
    %cst_25 = arith.constant dense<0.000000e+00> : vector<256x16xf32>
    %30 = tpu.matmul %28, %29, %cst_25 {dimension_numbers = #tpu.dot_dimension_numbers<[1], [0], [0], [1], [0, 0, 1, 1], [], []>} : vector<256x16xbf16>, vector<16x16xbf16>, vector<256x16xf32> -> vector<256x16xf32>
    %c0_26 = arith.constant 0 : index
    %c0_27 = arith.constant 0 : index
    %31 = vector.load %arg11[%c0_26, %c0_27] : memref<1x16xf32, #tpu.memory_space<vmem>>, vector<1x16xf32>
    %32 = vector.broadcast %31 : vector<1x16xf32> to vector<256x16xf32>
    %33 = arith.addf %30, %32 : vector<256x16xf32>
    %cst_28 = arith.constant 0.000000e+00 : f32
    %34 = vector.broadcast %cst_28 : f32 to vector<256x16xf32>
    %35 = arith.maximumf %33, %34 : vector<256x16xf32>
    %36 = tpu.transpose %35, [1, 0] : vector<256x16xf32> -> vector<16x256xf32>
    %c0_29 = arith.constant 0 : index
    %c0_30 = arith.constant 0 : index
    %37 = vector.load %arg12[%c0_29, %c0_30] : memref<16x256xf32, #tpu.memory_space<vmem>>, vector<16x256xf32>
    tpu.vector_store %arg12[%c0_29, %c0_30], %36 {strides = array<i32>} : memref<16x256xf32, #tpu.memory_space<vmem>>, vector<16x256xf32>,
    return
  }
  func.func @transform_0(%arg0: i32) -> (i32, i32) {
    %c0_i32 = arith.constant 0 : i32
    %c0_i32_0 = arith.constant 0 : i32
    return %arg0, %c0_i32 : i32, i32
  }
  func.func @transform_1(%arg0: i32) -> (i32, i32) {
    %c0_i32 = arith.constant 0 : i32
    %c0_i32_0 = arith.constant 0 : i32
    return %arg0, %c0_i32 : i32, i32
  }
  func.func @transform_2(%arg0: i32) -> (i32, i32) {
    %c0_i32 = arith.constant 0 : i32
    %c0_i32_0 = arith.constant 0 : i32
    %c0_i32_1 = arith.constant 0 : i32
    return %c0_i32, %c0_i32_0 : i32, i32
  }
  func.func @transform_3(%arg0: i32) -> (i32, i32) {
    %c0_i32 = arith.constant 0 : i32
    %c0_i32_0 = arith.constant 0 : i32
    %c0_i32_1 = arith.constant 0 : i32
    return %c0_i32, %c0_i32_0 : i32, i32
  }
  func.func @transform_4(%arg0: i32) -> (i32, i32) {
    %c0_i32 = arith.constant 0 : i32
    %c0_i32_0 = arith.constant 0 : i32
    %c0_i32_1 = arith.constant 0 : i32
    return %c0_i32, %c0_i32_0 : i32, i32
  }
  func.func @transform_5(%arg0: i32) -> (i32, i32) {
    %c0_i32 = arith.constant 0 : i32
    %c0_i32_0 = arith.constant 0 : i32
    %c0_i32_1 = arith.constant 0 : i32
    return %c0_i32, %c0_i32_0 : i32, i32
  }
  func.func @transform_6(%arg0: i32) -> (i32, i32) {
    %c0_i32 = arith.constant 0 : i32
    %c0_i32_0 = arith.constant 0 : i32
    %c0_i32_1 = arith.constant 0 : i32
    return %c0_i32, %c0_i32_0 : i32, i32
  }
  func.func @transform_7(%arg0: i32) -> (i32, i32) {
    %c0_i32 = arith.constant 0 : i32
    %c0_i32_0 = arith.constant 0 : i32
    %c0_i32_1 = arith.constant 0 : i32
    return %c0_i32, %c0_i32_0 : i32, i32
  }
  func.func @transform_8(%arg0: i32) -> (i32, i32) {
    %c0_i32 = arith.constant 0 : i32
    %c0_i32_0 = arith.constant 0 : i32
    %c0_i32_1 = arith.constant 0 : i32
    return %c0_i32, %c0_i32_0 : i32, i32
  }
  func.func @transform_9(%arg0: i32) -> (i32, i32) {
    %c0_i32 = arith.constant 0 : i32
    %c0_i32_0 = arith.constant 0 : i32
    %c0_i32_1 = arith.constant 0 : i32
    return %c0_i32, %c0_i32_0 : i32, i32
  }
  func.func @transform_10(%arg0: i32) -> (i32, i32) {
    %c0_i32 = arith.constant 0 : i32
    %c0_i32_0 = arith.constant 0 : i32
    %c0_i32_1 = arith.constant 0 : i32
    return %c0_i32, %c0_i32_0 : i32, i32
  }
  func.func @transform_11(%arg0: i32) -> (i32, i32) {
    %c0_i32 = arith.constant 0 : i32
    %c0_i32_0 = arith.constant 0 : i32
    return %c0_i32, %arg0 : i32, i32
  }
}

module attributes {stable_mosaic.version = 11 : i64} {
  func.func @_transformer_conv_kernel(%arg0: i32, %arg1: memref<256x46xbf16, #tpu.memory_space<vmem>>, %arg2: memref<256x1xi32, #tpu.memory_space<vmem>>, %arg3: memref<8x16xf32, #tpu.memory_space<vmem>>, %arg4: memref<46x48xbf16, #tpu.memory_space<vmem>>, %arg5: memref<1x48xf32, #tpu.memory_space<vmem>>, %arg6: memref<8x16xf32, #tpu.memory_space<vmem>>, %arg7: memref<1x8xf32, #tpu.memory_space<vmem>>, %arg8: memref<1x8xf32, #tpu.memory_space<vmem>>, %arg9: memref<1x8xf32, #tpu.memory_space<vmem>>, %arg10: memref<16x8xf32, #tpu.memory_space<vmem>>) attributes {dimension_semantics = [#tpu.dimension_semantics<arbitrary>], iteration_bounds = array<i64: 1>, scalar_prefetch = 0 : i64, scratch_operands = 4 : i64, tpu.core_type = #tpu.core_type<tc>, window_params = [{transform_indices = @transform_0, window_bounds = array<i64: 256, 46>}, {transform_indices = @transform_1, window_bounds = array<i64: 256, 1>}, {pipeline_mode = #tpu.pipeline_mode<synchronous>, transform_indices = @transform_2, window_bounds = array<i64: 8, 16>}, {pipeline_mode = #tpu.pipeline_mode<synchronous>, transform_indices = @transform_3, window_bounds = array<i64: 46, 48>}, {pipeline_mode = #tpu.pipeline_mode<synchronous>, transform_indices = @transform_4, window_bounds = array<i64: 1, 48>}, {pipeline_mode = #tpu.pipeline_mode<synchronous>, transform_indices = @transform_5, window_bounds = array<i64: 8, 16>}]} {
    %c0_i32 = arith.constant 0 : i32
    %0 = arith.cmpi eq, %arg0, %c0_i32 : i32
    %1 = arith.extui %0 : i1 to i32
    %c0_i32_0 = arith.constant 0 : i32
    %2 = arith.cmpi ne, %1, %c0_i32_0 : i32
    scf.if %2 {
      %cst_34 = arith.constant -1.000000e+30 : f32
      %64 = vector.broadcast %cst_34 : f32 to vector<1x8xf32>
      %c0_35 = arith.constant 0 : index
      %c0_36 = arith.constant 0 : index
      %65 = vector.load %arg7[%c0_35, %c0_36] : memref<1x8xf32, #tpu.memory_space<vmem>>, vector<1x8xf32>
      tpu.vector_store %arg7[%c0_35, %c0_36], %64 {strides = array<i32>} : memref<1x8xf32, #tpu.memory_space<vmem>>, vector<1x8xf32>,
      %cst_37 = arith.constant 0.000000e+00 : f32
      %66 = vector.broadcast %cst_37 : f32 to vector<1x8xf32>
      %c0_38 = arith.constant 0 : index
      %c0_39 = arith.constant 0 : index
      %67 = vector.load %arg8[%c0_38, %c0_39] : memref<1x8xf32, #tpu.memory_space<vmem>>, vector<1x8xf32>
      tpu.vector_store %arg8[%c0_38, %c0_39], %66 {strides = array<i32>} : memref<1x8xf32, #tpu.memory_space<vmem>>, vector<1x8xf32>,
      %cst_40 = arith.constant 0.000000e+00 : f32
      %68 = vector.broadcast %cst_40 : f32 to vector<1x8xf32>
      %c0_41 = arith.constant 0 : index
      %c0_42 = arith.constant 0 : index
      %69 = vector.load %arg9[%c0_41, %c0_42] : memref<1x8xf32, #tpu.memory_space<vmem>>, vector<1x8xf32>
      tpu.vector_store %arg9[%c0_41, %c0_42], %68 {strides = array<i32>} : memref<1x8xf32, #tpu.memory_space<vmem>>, vector<1x8xf32>,
      %cst_43 = arith.constant 0.000000e+00 : f32
      %70 = vector.broadcast %cst_43 : f32 to vector<16x8xf32>
      %c0_44 = arith.constant 0 : index
      %c0_45 = arith.constant 0 : index
      %71 = vector.load %arg10[%c0_44, %c0_45] : memref<16x8xf32, #tpu.memory_space<vmem>>, vector<16x8xf32>
      tpu.vector_store %arg10[%c0_44, %c0_45], %70 {strides = array<i32>} : memref<16x8xf32, #tpu.memory_space<vmem>>, vector<16x8xf32>,
    } else {
    }
    %c0 = arith.constant 0 : index
    %c0_1 = arith.constant 0 : index
    %3 = vector.load %arg1[%c0, %c0_1] : memref<256x46xbf16, #tpu.memory_space<vmem>>, vector<256x46xbf16>
    %c0_2 = arith.constant 0 : index
    %c0_3 = arith.constant 0 : index
    %4 = vector.load %arg4[%c0_2, %c0_3] : memref<46x48xbf16, #tpu.memory_space<vmem>>, vector<46x48xbf16>
    %cst = arith.constant dense<0.000000e+00> : vector<256x48xf32>
    %5 = tpu.matmul %3, %4, %cst {dimension_numbers = #tpu.dot_dimension_numbers<[1], [0], [0], [1], [0, 0, 1, 1], [], []>} : vector<256x46xbf16>, vector<46x48xbf16>, vector<256x48xf32> -> vector<256x48xf32>
    %c0_4 = arith.constant 0 : index
    %c0_5 = arith.constant 0 : index
    %6 = vector.load %arg5[%c0_4, %c0_5] : memref<1x48xf32, #tpu.memory_space<vmem>>, vector<1x48xf32>
    %7 = vector.broadcast %6 : vector<1x48xf32> to vector<256x48xf32>
    %8 = arith.addf %5, %7 : vector<256x48xf32>
    %9 = vector.extract_strided_slice %8 {offsets = [0, 0], sizes = [256, 16], strides = [1, 1]} : vector<256x48xf32> to vector<256x16xf32>
    %10 = vector.extract_strided_slice %8 {offsets = [0, 16], sizes = [256, 16], strides = [1, 1]} : vector<256x48xf32> to vector<256x16xf32>
    %11 = vector.extract_strided_slice %8 {offsets = [0, 32], sizes = [256, 16], strides = [1, 1]} : vector<256x48xf32> to vector<256x16xf32>
    %12 = arith.mulf %11, %9 : vector<256x16xf32>
    %cst_6 = arith.constant dense<0.000000e+00> : vector<256xf32>
    %13 = vector.multi_reduction <add>, %12, %cst_6 [1] : vector<256x16xf32> to vector<256xf32>
    %14 = vector.shape_cast %13 : vector<256xf32> to vector<256x1xf32>
    %cst_7 = arith.constant 2.500000e-01 : f32
    %15 = vector.broadcast %cst_7 : f32 to vector<256x1xf32>
    %16 = arith.mulf %14, %15 : vector<256x1xf32>
    %c0_8 = arith.constant 0 : index
    %c0_9 = arith.constant 0 : index
    %17 = vector.load %arg2[%c0_8, %c0_9] : memref<256x1xi32, #tpu.memory_space<vmem>>, vector<256x1xi32>
    %c8_i32 = arith.constant 8 : i32
    %18 = vector.broadcast %c8_i32 : i32 to vector<256x1xi32>
    %19 = arith.cmpi slt, %17, %18 : vector<256x1xi32>
    %cst_10 = arith.constant -1.000000e+30 : f32
    %20 = vector.broadcast %cst_10 : f32 to vector<256x1xf32>
    %21 = arith.select %19, %16, %20 : vector<256x1xi1>, vector<256x1xf32>
    %22 = tpu.iota {dimensions = array<i32: 1>} : vector<256x8xi32>
    %23 = vector.broadcast %17 : vector<256x1xi32> to vector<256x8xi32>
    %24 = arith.cmpi eq, %23, %22 : vector<256x8xi32>
    %25 = arith.extui %24 : vector<256x8xi1> to vector<256x8xi32>
    %26 = arith.sitofp %25 : vector<256x8xi32> to vector<256x8xf32>
    %cst_11 = arith.constant -1.000000e+30 : f32
    %27 = vector.shape_cast %21 : vector<256x1xf32> to vector<256x1xf32>
    %28 = vector.broadcast %27 : vector<256x1xf32> to vector<256x8xf32>
    %29 = vector.broadcast %cst_11 : f32 to vector<256x8xf32>
    %30 = arith.select %24, %28, %29 : vector<256x8xi1>, vector<256x8xf32>
    %cst_12 = arith.constant dense<0xFF800000> : vector<8xf32>
    %31 = vector.multi_reduction <maximumf>, %30, %cst_12 [0] : vector<256x8xf32> to vector<8xf32>
    %32 = vector.shape_cast %31 : vector<8xf32> to vector<1x8xf32>
    %c0_13 = arith.constant 0 : index
    %c0_14 = arith.constant 0 : index
    %33 = vector.load %arg7[%c0_13, %c0_14] : memref<1x8xf32, #tpu.memory_space<vmem>>, vector<1x8xf32>
    %34 = arith.maximumf %33, %32 : vector<1x8xf32>
    %35 = arith.subf %33, %34 : vector<1x8xf32>
    %36 = math.exp %35 : vector<1x8xf32>
    %c0_15 = arith.constant 0 : index
    %c0_16 = arith.constant 0 : index
    %37 = vector.load %arg7[%c0_15, %c0_16] : memref<1x8xf32, #tpu.memory_space<vmem>>, vector<1x8xf32>
    tpu.vector_store %arg7[%c0_15, %c0_16], %34 {strides = array<i32>} : memref<1x8xf32, #tpu.memory_space<vmem>>, vector<1x8xf32>,
    %cst_17 = arith.constant dense<0.000000e+00> : vector<256x1xf32>
    %38 = tpu.matmul %26, %34, %cst_17 {dimension_numbers = #tpu.dot_dimension_numbers<[1], [1], [0], [0], [0, 0, 1, 0], [], []>} : vector<256x8xf32>, vector<1x8xf32>, vector<256x1xf32> -> vector<256x1xf32>
    %39 = arith.subf %21, %38 : vector<256x1xf32>
    %40 = math.exp %39 : vector<256x1xf32>
    %41 = vector.broadcast %40 : vector<256x1xf32> to vector<256x16xf32>
    %42 = arith.mulf %10, %41 : vector<256x16xf32>
    %cst_18 = arith.constant 1.000000e+00 : f32
    %43 = vector.broadcast %cst_18 : f32 to vector<256x1xf32>
    %44 = tpu.concatenate %42, %40, %43 in 1 : vector<256x16xf32>, vector<256x1xf32>, vector<256x1xf32> -> vector<256x18xf32>
    %cst_19 = arith.constant dense<0.000000e+00> : vector<18x8xf32>
    %45 = tpu.matmul %44, %26, %cst_19 {dimension_numbers = #tpu.dot_dimension_numbers<[0], [0], [1], [1], [0, 1, 1, 1], [], []>} : vector<256x18xf32>, vector<256x8xf32>, vector<18x8xf32> -> vector<18x8xf32>
    %c0_20 = arith.constant 0 : index
    %c0_21 = arith.constant 0 : index
    %46 = vector.load %arg10[%c0_20, %c0_21] : memref<16x8xf32, #tpu.memory_space<vmem>>, vector<16x8xf32>
    %47 = vector.broadcast %36 : vector<1x8xf32> to vector<16x8xf32>
    %48 = arith.mulf %46, %47 : vector<16x8xf32>
    %49 = vector.extract_strided_slice %45 {offsets = [0, 0], sizes = [16, 8], strides = [1, 1]} : vector<18x8xf32> to vector<16x8xf32>
    %50 = arith.addf %48, %49 : vector<16x8xf32>
    %c0_22 = arith.constant 0 : index
    %c0_23 = arith.constant 0 : index
    %51 = vector.load %arg10[%c0_22, %c0_23] : memref<16x8xf32, #tpu.memory_space<vmem>>, vector<16x8xf32>
    tpu.vector_store %arg10[%c0_22, %c0_23], %50 {strides = array<i32>} : memref<16x8xf32, #tpu.memory_space<vmem>>, vector<16x8xf32>,
    %c0_24 = arith.constant 0 : index
    %c0_25 = arith.constant 0 : index
    %52 = vector.load %arg8[%c0_24, %c0_25] : memref<1x8xf32, #tpu.memory_space<vmem>>, vector<1x8xf32>
    %53 = arith.mulf %52, %36 : vector<1x8xf32>
    %54 = vector.extract_strided_slice %45 {offsets = [16, 0], sizes = [1, 8], strides = [1, 1]} : vector<18x8xf32> to vector<1x8xf32>
    %55 = arith.addf %53, %54 : vector<1x8xf32>
    %c0_26 = arith.constant 0 : index
    %c0_27 = arith.constant 0 : index
    %56 = vector.load %arg8[%c0_26, %c0_27] : memref<1x8xf32, #tpu.memory_space<vmem>>, vector<1x8xf32>
    tpu.vector_store %arg8[%c0_26, %c0_27], %55 {strides = array<i32>} : memref<1x8xf32, #tpu.memory_space<vmem>>, vector<1x8xf32>,
    %c0_28 = arith.constant 0 : index
    %c0_29 = arith.constant 0 : index
    %57 = vector.load %arg9[%c0_28, %c0_29] : memref<1x8xf32, #tpu.memory_space<vmem>>, vector<1x8xf32>
    %58 = vector.extract_strided_slice %45 {offsets = [17, 0], sizes = [1, 8], strides = [1, 1]} : vector<18x8xf32> to vector<1x8xf32>
    %59 = arith.addf %57, %58 : vector<1x8xf32>
    %c0_30 = arith.constant 0 : index
    %c0_31 = arith.constant 0 : index
    %60 = vector.load %arg9[%c0_30, %c0_31] : memref<1x8xf32, #tpu.memory_space<vmem>>, vector<1x8xf32>
    tpu.vector_store %arg9[%c0_30, %c0_31], %59 {strides = array<i32>} : memref<1x8xf32, #tpu.memory_space<vmem>>, vector<1x8xf32>,
    %c0_i32_32 = arith.constant 0 : i32
    %61 = arith.cmpi eq, %arg0, %c0_i32_32 : i32
    %62 = arith.extui %61 : i1 to i32
    %c0_i32_33 = arith.constant 0 : i32
    %63 = arith.cmpi ne, %62, %c0_i32_33 : i32
    scf.if %63 {
      %c0_34 = arith.constant 0 : index
      %c0_35 = arith.constant 0 : index
      %64 = vector.load %arg8[%c0_34, %c0_35] : memref<1x8xf32, #tpu.memory_space<vmem>>, vector<1x8xf32>
      %cst_36 = arith.constant 1.000000e-16 : f32
      %65 = vector.broadcast %cst_36 : f32 to vector<1x8xf32>
      %66 = arith.addf %64, %65 : vector<1x8xf32>
      %67 = tpu.reciprocal %66 {approx = true} : vector<1x8xf32> -> vector<1x8xf32>
      %c0_37 = arith.constant 0 : index
      %c0_38 = arith.constant 0 : index
      %68 = vector.load %arg9[%c0_37, %c0_38] : memref<1x8xf32, #tpu.memory_space<vmem>>, vector<1x8xf32>
      %cst_39 = arith.constant 1.000000e+00 : f32
      %69 = vector.broadcast %cst_39 : f32 to vector<1x8xf32>
      %70 = arith.maximumf %68, %69 : vector<1x8xf32>
      %71 = tpu.reciprocal %70 {approx = true} : vector<1x8xf32> -> vector<1x8xf32>
      %c0_40 = arith.constant 0 : index
      %c0_41 = arith.constant 0 : index
      %72 = vector.load %arg10[%c0_40, %c0_41] : memref<16x8xf32, #tpu.memory_space<vmem>>, vector<16x8xf32>
      %73 = vector.broadcast %67 : vector<1x8xf32> to vector<16x8xf32>
      %74 = arith.mulf %72, %73 : vector<16x8xf32>
      %75 = vector.broadcast %71 : vector<1x8xf32> to vector<16x8xf32>
      %76 = arith.mulf %74, %75 : vector<16x8xf32>
      %77 = tpu.transpose %76, [1, 0] : vector<16x8xf32> -> vector<8x16xf32>
      %c0_42 = arith.constant 0 : index
      %c0_43 = arith.constant 0 : index
      %78 = vector.load %arg3[%c0_42, %c0_43] : memref<8x16xf32, #tpu.memory_space<vmem>>, vector<8x16xf32>
      %79 = arith.addf %77, %78 : vector<8x16xf32>
      %cst_44 = arith.constant 0.000000e+00 : f32
      %80 = vector.broadcast %cst_44 : f32 to vector<8x16xf32>
      %81 = arith.maximumf %79, %80 : vector<8x16xf32>
      %c0_45 = arith.constant 0 : index
      %c0_46 = arith.constant 0 : index
      %82 = vector.load %arg6[%c0_45, %c0_46] : memref<8x16xf32, #tpu.memory_space<vmem>>, vector<8x16xf32>
      tpu.vector_store %arg6[%c0_45, %c0_46], %81 {strides = array<i32>} : memref<8x16xf32, #tpu.memory_space<vmem>>, vector<8x16xf32>,
    } else {
    }
    return
  }
  func.func @transform_0(%arg0: i32) -> (i32, i32) {
    %c0_i32 = arith.constant 0 : i32
    %c0_i32_0 = arith.constant 0 : i32
    return %arg0, %c0_i32 : i32, i32
  }
  func.func @transform_1(%arg0: i32) -> (i32, i32) {
    %c0_i32 = arith.constant 0 : i32
    %c0_i32_0 = arith.constant 0 : i32
    return %arg0, %c0_i32 : i32, i32
  }
  func.func @transform_2(%arg0: i32) -> (i32, i32) {
    %c0_i32 = arith.constant 0 : i32
    %c0_i32_0 = arith.constant 0 : i32
    %c0_i32_1 = arith.constant 0 : i32
    return %c0_i32, %c0_i32_0 : i32, i32
  }
  func.func @transform_3(%arg0: i32) -> (i32, i32) {
    %c0_i32 = arith.constant 0 : i32
    %c0_i32_0 = arith.constant 0 : i32
    %c0_i32_1 = arith.constant 0 : i32
    return %c0_i32, %c0_i32_0 : i32, i32
  }
  func.func @transform_4(%arg0: i32) -> (i32, i32) {
    %c0_i32 = arith.constant 0 : i32
    %c0_i32_0 = arith.constant 0 : i32
    %c0_i32_1 = arith.constant 0 : i32
    return %c0_i32, %c0_i32_0 : i32, i32
  }
  func.func @transform_5(%arg0: i32) -> (i32, i32) {
    %c0_i32 = arith.constant 0 : i32
    %c0_i32_0 = arith.constant 0 : i32
    %c0_i32_1 = arith.constant 0 : i32
    return %c0_i32, %c0_i32_0 : i32, i32
  }
}

</mosaic_0001>

<bundles_post_ra>
// kernel: feature_extractor_layer_forward.5
= control target key start
LH: loop header
LB: loop body
LE: loop exit
PB: predicated region body
PF: predicated region fallthrough
CT: control target
= control target key end

     0   :  { %16 = vsyncpa [#allocation3], 0  ;;  %s3113_s0 = inlined_call_operand.hbm [shape: bf16[256,40], index: 0, kind: input, shape index: {}]   ;;  %s3114_s1 = inlined_call_operand.hbm [shape: bf16[256,14], index: 1, kind: input, shape index: {}]   ;;  %s3115_s2 = inlined_call_operand.hbm [shape: bf16[40,32], index: 2, kind: input, shape index: {}]   ;;  %s3116_s3 = inlined_call_operand.hbm [shape: f32[1,32], index: 3, kind: input, shape index: {}]   ;;  %s3117_s4 = inlined_call_operand.hbm [shape: bf16[32,32], index: 4, kind: input, shape index: {}]   ;;  %s3118_s5 = inlined_call_operand.hbm [shape: f32[1,32], index: 5, kind: input, shape index: {}]   ;;  %s3119_s6 = inlined_call_operand.hbm [shape: bf16[14,16], index: 6, kind: input, shape index: {}]   ;;  %s3120_s7 = inlined_call_operand.hbm [shape: bf16[32,16], index: 7, kind: input, shape index: {}]   ;;  %s3121_s8 = inlined_call_operand.hbm [shape: f32[1,16], index: 8, kind: input, shape index: {}]   ;;  %s3122_s9 = inlined_call_operand.hbm [shape: bf16[16,16], index: 9, kind: input, shape index: {}]   ;;  %s3123_s10 = inlined_call_operand.hbm [shape: f32[1,16], index: 10, kind: input, shape index: {}]   ;;  %s3124_s11 = inlined_call_operand.hbm [shape: f32[16,256], index: 11, kind: output, shape index: {}]  }
   0x1   :  { %17 = vsyncpa [#allocation6], 0 }
   0x2   :  { %18 = vsyncpa [#allocation9], 0 }
   0x3   :  { %19 = vsyncpa [#allocation12], 0 }
   0x4   :  { %20 = vsyncpa [#allocation15], 0 }
   0x5   :  { %21 = vsyncpa [#allocation18], 0 }
   0x6   :  { %22 = vsyncpa [#allocation4], 0  ;;  %s2620_s17 = smov [#allocation5]   ;;  %s2621_s19 = smov [#allocation8]  }
   0x7   :  { %s40_s18 = sshll.u32 %s2620_s17, 4  ;;  %s65_s20 = sshll.u32 %s2621_s19, 4  ;;  %s41_s18 = int_to_ptr.vmem [resolvable:$true] %s40_s18  ;;  %s2696_s20 = int_to_ptr.vmem [resolvable:$true] %s65_s20 }
   0x8   :  { %s2342_s23 = scalar_lea.hbm %s3114_s1, 2048 }
   0x9   :  { %p2343_p0 = scmp.ne.s32.totalorder %s3114_s1, %s2342_s23  ;;  %p2346_p1 = scmp.lt.u32.totalorder %s2342_s23, %s3114_s1 }
   0xb   :  { %p2348_p2 = pnand %p2346_p1, %p2343_p0 }
   0xd   :  { %2351 = shalt.err (!%p2348_p2)
}
   0xe   :  { %s2352_s28 = scalar_lea.vmem %s41_s18, 2048  ;;  %p2357_p4 = scmp.lt.s32.totalorder %s41_s18, %s41_s18 }
   0xf   :  { %p2353_p3 = scmp.ne.s32.totalorder %s41_s18, %s2352_s28  ;;  %p2358_p5 = scmp.lt.s32.totalorder %s2352_s28, %s2352_s28 }
  0x11   :  { %p2359_p6 = por %p2358_p5, %p2357_p4 }
  0x13   :  { %p2360_p7 = pnand %p2359_p6, %p2353_p3 }
  0x15   :  { %2363 = shalt.err (!%p2360_p7)
}
  0x16   :  { %s2622_s29 = smov 64   ;;  %s2623_s30 = smov 4  }
  0x17   :  { %46 = dma.hbm_to_vmem [thread:$0]  %s3114_s1, 2048, %s41_s18, [#allocation6], %s2622_s29, %s2622_s29, %s2623_s30  }
  0x18   :  { %s2364_s16 = scalar_lea.hbm %s3116_s3, 16 }
  0x19   :  { %p2365_p8 = scmp.ne.s32.totalorder %s3116_s3, %s2364_s16  ;;  %p2368_p9 = scmp.lt.u32.totalorder %s2364_s16, %s3116_s3 }
  0x1b   :  { %p2370_p10 = pnand %p2368_p9, %p2365_p8 }
  0x1d   :  { %2373 = shalt.err (!%p2370_p10)
}
  0x1e   :  { %s2374_s23 = scalar_lea.vmem %s2696_s20, 16  ;;  %s2378_s1 = scalar_lea.vmem %s2696_s20, 32 }
  0x1f   :  { %p2375_p11 = scmp.ne.s32.totalorder %s2696_s20, %s2374_s23  ;;  %p2379_p12 = scmp.lt.s32.totalorder %s2696_s20, %s2696_s20 }
  0x20   :  { %p2380_p13 = scmp.lt.s32.totalorder %s2378_s1, %s2374_s23 }
  0x22   :  { %p2381_p0 = por %p2380_p13, %p2379_p12 }
  0x24   :  { %p2382_p1 = pnand %p2381_p0, %p2375_p11 }
  0x26   :  { %2385 = shalt.err (!%p2382_p1)
}
  0x27   :  { %68 = dma.hbm_to_vmem [thread:$0]  %s3116_s3, 16, %s2696_s20, [#allocation9]  }
  0x28   :  { %s2624_s25 = smov [#allocation11]   ;;  %s2625_s27 = smov [#allocation14]  }
  0x29   :  { %s87_s26 = sshll.u32 %s2624_s25, 4  ;;  %s108_s28 = sshll.u32 %s2625_s27, 4  ;;  %s88_s26 = int_to_ptr.vmem [resolvable:$true] %s87_s26  ;;  %s2731_s28 = int_to_ptr.vmem [resolvable:$true] %s108_s28 }
  0x2a   :  { %s2386_s14 = scalar_lea.hbm %s3118_s5, 16 }
  0x2b   :  { %p2387_p2 = scmp.ne.s32.totalorder %s3118_s5, %s2386_s14  ;;  %p2390_p3 = scmp.lt.u32.totalorder %s2386_s14, %s3118_s5 }
  0x2d   :  { %p2392_p4 = pnand %p2390_p3, %p2387_p2 }
  0x2f   :  { %2395 = shalt.err (!%p2392_p4)
}
  0x30   :  { %s2396_s3 = scalar_lea.vmem %s88_s26, 16  ;;  %s2400_s20 = scalar_lea.vmem %s88_s26, 32 }
  0x31   :  { %p2397_p5 = scmp.ne.s32.totalorder %s88_s26, %s2396_s3  ;;  %p2401_p6 = scmp.lt.s32.totalorder %s88_s26, %s88_s26 }
  0x32   :  { %p2402_p7 = scmp.lt.s32.totalorder %s2400_s20, %s2396_s3 }
  0x34   :  { %p2403_p8 = por %p2402_p7, %p2401_p6 }
  0x36   :  { %p2404_p9 = pnand %p2403_p8, %p2397_p5 }
  0x38   :  { %2407 = shalt.err (!%p2404_p9)
}
  0x39   :  { %90 = dma.hbm_to_vmem [thread:$0]  %s3118_s5, 16, %s88_s26, [#allocation12]  }
  0x3a   :  { %s2408_s18 = scalar_lea.hbm %s3120_s7, 256 }
  0x3b   :  { %p2409_p10 = scmp.ne.s32.totalorder %s3120_s7, %s2408_s18  ;;  %p2412_p11 = scmp.lt.u32.totalorder %s2408_s18, %s3120_s7 }
  0x3d   :  { %p2414_p12 = pnand %p2412_p11, %p2409_p10 }
  0x3f   :  { %2417 = shalt.err (!%p2414_p12)
}
  0x40   :  { %s2418_s13 = scalar_lea.vmem %s2731_s28, 256  ;;  %p2423_p0 = scmp.lt.s32.totalorder %s2731_s28, %s2731_s28 }
  0x41   :  { %p2419_p13 = scmp.ne.s32.totalorder %s2731_s28, %s2418_s13  ;;  %p2424_p1 = scmp.lt.s32.totalorder %s2418_s13, %s2418_s13 }
  0x43   :  { %p2425_p2 = por %p2424_p1, %p2423_p0 }
  0x45   :  { %p2426_p3 = pnand %p2425_p2, %p2419_p13 }
  0x47   :  { %2429 = shalt.err (!%p2426_p3)
}
  0x48   :  { %114 = dma.hbm_to_vmem [thread:$0]  %s3120_s7, 256, %s2731_s28, [#allocation15], %s2622_s29, %s2622_s29, %s2623_s30  }
  0x49   :  { %s2626_s14 = smov [#allocation17]   ;;  %s2627_s16 = smov [#allocation2]  }
  0x4a   :  { %s130_s15 = sshll.u32 %s2626_s14, 4  ;;  %s28_s17 = sshll.u32 %s2627_s16, 4  ;;  %s131_s15 = int_to_ptr.vmem [resolvable:$true] %s130_s15  ;;  %s2765_s17 = int_to_ptr.vmem [resolvable:$true] %s28_s17 }
  0x4b   :  { %s2430_s20 = scalar_lea.hbm %s3122_s9, 128 }
  0x4c   :  { %p2431_p4 = scmp.ne.s32.totalorder %s3122_s9, %s2430_s20  ;;  %p2434_p5 = scmp.lt.u32.totalorder %s2430_s20, %s3122_s9 }
  0x4e   :  { %p2436_p6 = pnand %p2434_p5, %p2431_p4 }
  0x50   :  { %2439 = shalt.err (!%p2436_p6)
}
  0x51   :  { %s2440_s7 = scalar_lea.vmem %s131_s15, 128  ;;  %p2445_p8 = scmp.lt.s32.totalorder %s131_s15, %s131_s15 }
  0x52   :  { %p2441_p7 = scmp.ne.s32.totalorder %s131_s15, %s2440_s7  ;;  %p2446_p9 = scmp.lt.s32.totalorder %s2440_s7, %s2440_s7 }
  0x54   :  { %p2447_p10 = por %p2446_p9, %p2445_p8 }
  0x56   :  { %p2448_p11 = pnand %p2447_p10, %p2441_p7 }
  0x58   :  { %2451 = shalt.err (!%p2448_p11)
}
  0x59   :  { %136 = dma.hbm_to_vmem [thread:$0]  %s3122_s9, 128, %s131_s15, [#allocation18], %s2622_s29, %s2622_s29, %s2623_s30  }
  0x5a   :  { %s2452_s27 = scalar_lea.hbm %s3113_s0, 2048 }
  0x5b   :  { %p2453_p12 = scmp.ne.s32.totalorder %s3113_s0, %s2452_s27  ;;  %p2456_p13 = scmp.lt.u32.totalorder %s2452_s27, %s3113_s0 }
  0x5d   :  { %p2458_p0 = pnand %p2456_p13, %p2453_p12 }
  0x5f   :  { %2461 = shalt.err (!%p2458_p0)
}
  0x60   :  { %s2462_s14 = scalar_lea.vmem %s2765_s17, 2048  ;;  %p2467_p2 = scmp.lt.s32.totalorder %s2765_s17, %s2765_s17 }
  0x61   :  { %p2463_p1 = scmp.ne.s32.totalorder %s2765_s17, %s2462_s14  ;;  %p2468_p3 = scmp.lt.s32.totalorder %s2462_s14, %s2462_s14 }
  0x63   :  { %p2469_p4 = por %p2468_p3, %p2467_p2 }
  0x65   :  { %p2470_p5 = pnand %p2469_p4, %p2463_p1 }
  0x67   :  { %2473 = shalt.err (!%p2470_p5)
}
  0x68   :  { %34 = dma.hbm_to_vmem [thread:$0]  %s3113_s0, 2048, %s2765_s17, [#allocation3], %s2622_s29, %s2622_s29, %s2623_s30  }
  0x69   :  { %s2628_s16 = smov [#allocation7]   ;;  %s2629_s3 = smov [#allocation10]  }
  0x6a   :  { %s52_s19 = sshll.u32 %s2628_s16, 4  ;;  %s74_s20 = sshll.u32 %s2629_s3, 4  ;;  %s53_s19 = int_to_ptr.vmem [resolvable:$true] %s52_s19  ;;  %s2802_s20 = int_to_ptr.vmem [resolvable:$true] %s74_s20 }
  0x6b   :  { %s2474_s23 = scalar_lea.hbm %s3115_s2, 320 }
  0x6c   :  { %p2475_p6 = scmp.ne.s32.totalorder %s3115_s2, %s2474_s23  ;;  %p2478_p7 = scmp.lt.u32.totalorder %s2474_s23, %s3115_s2 }
  0x6e   :  { %p2480_p8 = pnand %p2478_p7, %p2475_p6 }
  0x70   :  { %2483 = shalt.err (!%p2480_p8)
}
  0x71   :  { %s2484_s0 = scalar_lea.vmem %s53_s19, 320  ;;  %p2489_p10 = scmp.lt.s32.totalorder %s53_s19, %s53_s19 }
  0x72   :  { %p2485_p9 = scmp.ne.s32.totalorder %s53_s19, %s2484_s0  ;;  %p2490_p11 = scmp.lt.s32.totalorder %s2484_s0, %s2484_s0 }
  0x74   :  { %p2491_p12 = por %p2490_p11, %p2489_p10 }
  0x76   :  { %p2492_p13 = pnand %p2491_p12, %p2485_p9 }
  0x78   :  { %2495 = shalt.err (!%p2492_p13)
}
  0x79   :  { %58 = dma.hbm_to_vmem [thread:$0]  %s3115_s2, 320, %s53_s19, [#allocation6], %s2622_s29, %s2622_s29, %s2623_s30  }
  0x7a   :  { %s2496_s12 = scalar_lea.hbm %s3117_s4, 256 }
  0x7b   :  { %p2497_p0 = scmp.ne.s32.totalorder %s3117_s4, %s2496_s12  ;;  %p2500_p1 = scmp.lt.u32.totalorder %s2496_s12, %s3117_s4 }
  0x7d   :  { %p2502_p2 = pnand %p2500_p1, %p2497_p0 }
  0x7f   :  { %2505 = shalt.err (!%p2502_p2)
}
  0x80   :  { %s2506_s9 = scalar_lea.vmem %s2802_s20, 256  ;;  %p2511_p4 = scmp.lt.s32.totalorder %s2802_s20, %s2802_s20 }
  0x81   :  { %p2507_p3 = scmp.ne.s32.totalorder %s2802_s20, %s2506_s9  ;;  %p2512_p5 = scmp.lt.s32.totalorder %s2506_s9, %s2506_s9 }
  0x83   :  { %p2513_p6 = por %p2512_p5, %p2511_p4 }
  0x85   :  { %p2514_p7 = pnand %p2513_p6, %p2507_p3 }
  0x87   :  { %2517 = shalt.err (!%p2514_p7)
}
  0x88   :  { %80 = dma.hbm_to_vmem [thread:$0]  %s3117_s4, 256, %s2802_s20, [#allocation9], %s2622_s29, %s2622_s29, %s2623_s30  }
  0x89   :  { %s2630_s16 = smov [#allocation13]   ;;  %s2631_s3 = smov [#allocation16]  }
  0x8a   :  { %s96_s19 = sshll.u32 %s2630_s16, 4  ;;  %s121_s21 = sshll.u32 %s2631_s3, 4  ;;  %s97_s19 = int_to_ptr.vmem [resolvable:$true] %s96_s19  ;;  %s122_s21 = int_to_ptr.vmem [resolvable:$true] %s121_s21 }
  0x8b   :  { %s2518_s1 = scalar_lea.hbm %s3119_s6, 128 }
  0x8c   :  { %p2519_p8 = scmp.ne.s32.totalorder %s3119_s6, %s2518_s1  ;;  %p2522_p9 = scmp.lt.u32.totalorder %s2518_s1, %s3119_s6 }
  0x8e   :  { %p2524_p10 = pnand %p2522_p9, %p2519_p8 }
  0x90   :  { %2527 = shalt.err (!%p2524_p10)
}
  0x91   :  { %s2528_s4 = scalar_lea.vmem %s97_s19, 128  ;;  %p2533_p12 = scmp.lt.s32.totalorder %s97_s19, %s97_s19 }
  0x92   :  { %p2529_p11 = scmp.ne.s32.totalorder %s97_s19, %s2528_s4  ;;  %p2534_p13 = scmp.lt.s32.totalorder %s2528_s4, %s2528_s4 }
  0x94   :  { %p2535_p0 = por %p2534_p13, %p2533_p12 }
  0x96   :  { %p2536_p1 = pnand %p2535_p0, %p2529_p11 }
  0x98   :  { %2539 = shalt.err (!%p2536_p1)
}
  0x99   :  { %102 = dma.hbm_to_vmem [thread:$0]  %s3119_s6, 128, %s97_s19, [#allocation12], %s2622_s29, %s2622_s29, %s2623_s30  }
  0x9a   :  { %s2540_s27 = scalar_lea.hbm %s3121_s8, 16 }
  0x9b   :  { %p2541_p2 = scmp.ne.s32.totalorder %s3121_s8, %s2540_s27  ;;  %p2544_p3 = scmp.lt.u32.totalorder %s2540_s27, %s3121_s8 }
  0x9d   :  { %p2546_p4 = pnand %p2544_p3, %p2541_p2 }
  0x9f   :  { %2549 = shalt.err (!%p2546_p4)
}
  0xa0   :  { %s2550_s14 = scalar_lea.vmem %s122_s21, 16  ;;  %s2554_s9 = scalar_lea.vmem %s122_s21, 32 }
  0xa1   :  { %p2551_p5 = scmp.ne.s32.totalorder %s122_s21, %s2550_s14  ;;  %p2555_p6 = scmp.lt.s32.totalorder %s122_s21, %s122_s21 }
  0xa2   :  { %p2556_p7 = scmp.lt.s32.totalorder %s2554_s9, %s2550_s14 }
  0xa4   :  { %p2557_p8 = por %p2556_p7, %p2555_p6 }
  0xa6   :  { %p2558_p9 = pnand %p2557_p8, %p2551_p5 }
  0xa8   :  { %2561 = shalt.err (!%p2558_p9)
}
  0xa9   :  { %124 = dma.hbm_to_vmem [thread:$0]  %s3121_s8, 16, %s122_s21, [#allocation15]  }
  0xaa   :  { %s2632_s30 = smov [#allocation19]   ;;  %s2562_s19 = scalar_lea.hbm %s3123_s10, 16 }
  0xab   :  { %s143_s2 = sshll.u32 %s2632_s30, 4  ;;  %p2563_p10 = scmp.ne.s32.totalorder %s3123_s10, %s2562_s19  ;;  %s144_s2 = int_to_ptr.vmem [resolvable:$true] %s143_s2 }
  0xac   :  { %p2566_p11 = scmp.lt.u32.totalorder %s2562_s19, %s3123_s10 }
  0xae   :  { %p2568_p12 = pnand %p2566_p11, %p2563_p10 }
  0xb0   :  { %2571 = shalt.err (!%p2568_p12)
}
  0xb1   :  { %s2572_s7 = scalar_lea.vmem %s144_s2, 16  ;;  %s2576_s8 = scalar_lea.vmem %s144_s2, 32 }
  0xb2   :  { %p2573_p13 = scmp.ne.s32.totalorder %s144_s2, %s2572_s7  ;;  %p2577_p0 = scmp.lt.s32.totalorder %s144_s2, %s144_s2 }
  0xb3   :  { %p2578_p1 = scmp.lt.s32.totalorder %s2576_s8, %s2572_s7 }
  0xb5   :  { %p2579_p2 = por %p2578_p1, %p2577_p0 }
  0xb7   :  { %p2580_p3 = pnand %p2579_p2, %p2573_p13 }
  0xb9   :  { %2583 = shalt.err (!%p2580_p3)
}
  0xba   :  { %146 = dma.hbm_to_vmem [thread:$0]  %s3123_s10, 16, %s144_s2, [#allocation18]  }
  0xbb   :  { %2606 = dma.done.wait [#allocation3], 2048  }
  0xbc   :  { %2607 = vsyncadd [#allocation3], 4294965248 }
  0xbd   :  { %2608 = dma.done.wait [#allocation6], 2368  }
  0xbe   :  { %2609 = vsyncadd [#allocation6], 4294964928 }
  0xbf   :  { %2610 = dma.done.wait [#allocation9], 272  }
  0xc0   :  { %2611 = vsyncadd [#allocation9], 4294967024 }
  0xc1   :  { %2612 = dma.done.wait [#allocation12], 144  }
  0xc2   :  { %2613 = vsyncadd [#allocation12], 4294967152 }
  0xc3   :  { %2614 = dma.done.wait [#allocation15], 272  }
  0xc4   :  { %2615 = vsyncadd [#allocation15], 4294967024 }
  0xc5   :  { %2616 = dma.done.wait [#allocation18], 144  }
  0xc6   :  { %2617 = vsyncadd [#allocation18], 4294967152  ;;  %v2301_v0 = vld [vmem:[#allocation7] sm:$0xff]   ;;  %v2302_v1 = vld [vmem:[#allocation7 + $0x8] sm:$0xff]   ;;  %vm320_vm0 = vcmask 326656   ;;  %vm369_vm1 = vcmask 1043456  }
  0xc7   :  { %2069 = vmatprep.subr.bf16.mxu0 %v2301_v0  ;;  %v2304_v2 = vld [vmem:[#allocation2] sm:$0xff]   ;;  %v2303_v3 = vld [vmem:[#allocation7 + $0x10] ss:$0 sps:$4 sm:$0xff]   ;;  %v2305_v5 = vld [vmem:[#allocation2 + $0x8] sm:$0xff]   ;;  %vm605_vm2 = vcmask 261120   ;;  %vm1256_vm3 = vcmask 1046528  }
  0xc8   :  { %2070 = vmatpush3.bf16.msra.mxu0 %v2301_v0  ;;  %2075 = vmatprep.mubr.msk.bf16.mxu0 %vm320_vm0, %v2304_v2  ;;  %v371_v4 = vsel %vm369_vm1, %v2303_v3, 0  ;;  %v2306_v6 = vld [vmem:[#allocation2 + $0x10] sm:$0xff]   ;;  %v2307_v7 = vld [vmem:[#allocation2 + $0x18] sm:$0xff]   ;;  %v2308_v8 = vld [vmem:[#allocation2 + $0x20] sm:$0xff]   ;;  %vm1207_vm4 = vcmask 113664   ;;  %vm1523_vm5 = vcmask 130048  }
  0xc9   :  { %2071 = vmatprep.subr.bf16.mxu0 %v2302_v1  ;;  %v2320_v9 = vld [vmem:[#allocation10] sm:$0xff]   ;;  %v2321_v10 = vld [vmem:[#allocation10 + $0x8] sm:$0xff]   ;;  %v2309_v11 = vld [vmem:[#allocation2 + $0x28] sm:$0xff]   ;;  %s2633_s10 = smov [#allocation20]  }
  0xca   :  { %2247 = vmatprep.subr.bf16.mxu1 %v2320_v9  ;;  %v2310_v12 = vld [vmem:[#allocation2 + $0x30] sm:$0xff]   ;;  %v2311_v13 = vld [vmem:[#allocation2 + $0x38] sm:$0xff]   ;;  %v2312_v14 = vld [vmem:[#allocation2 + $0x40] sm:$0xff]   ;;  %s1838_s18 = sshll.u32 %s2633_s10, 4  ;;  %s1839_s18 = int_to_ptr.vmem [resolvable:$true] %s1838_s18 }
  0xcb   :  { %2249 = vmatpush3.bf16.msra.mxu1 %v2320_v9  ;;  %v2313_v15 = vld [vmem:[#allocation2 + $0x48] sm:$0xff]   ;;  %v2314_v16 = vld [vmem:[#allocation2 + $0x50] sm:$0xff]   ;;  %v2315_v17 = vld [vmem:[#allocation2 + $0x58] sm:$0xff]   ;;  %s2584_s0 = scalar_lea.vmem %s1839_s18, 512  ;;  %p2589_p5 = scmp.lt.s32.totalorder %s1839_s18, %s1839_s18 }
  0xcc   :  { %2072 = vmatpush3.bf16.msra.mxu0 %v2302_v1  ;;  %2248 = vmatprep.subr.bf16.mxu1 %v2321_v10  ;;  %v2316_v18 = vld [vmem:[#allocation2 + $0x60] sm:$0xff]   ;;  %v2317_v19 = vld [vmem:[#allocation2 + $0x68] sm:$0xff]   ;;  %v2318_v20 = vld [vmem:[#allocation2 + $0x70] sm:$0xff]   ;;  %p2585_p4 = scmp.ne.s32.totalorder %s1839_s18, %s2584_s0  ;;  %p2590_p6 = scmp.lt.s32.totalorder %s2584_s0, %s2584_s0 }
  0xcd   :  { %2283 = vmatprep.subr.msk.bf16.mxu0 %vm369_vm1, %v2303_v3  ;;  %v2319_v21 = vld [vmem:[#allocation2 + $0x78] sm:$0xff]   ;;  %v2894_v22 = vld [vmem:[#allocation14] sm:$0xff]  }
  0xce   :  { %v2897_v23 = vld [vmem:[#allocation8] ss:$0 sm:$0xff]  ;;  %p2591_p7 = por %p2590_p6, %p2589_p5 }
  0xcf   :  { %2250 = vmatpush3.bf16.msra.mxu1 %v2321_v10 }
  0xd0   :  { %2074 = vmatpush3.bf16.msra.mxu0 %v371_v4  ;;  %2143 = vmatprep.subr.bf16.mxu1 %v2894_v22  ;;  %p2592_p8 = pnand %p2591_p7, %p2585_p4 }
  0xd1   :  { %2107 = vmatprep.subr.bf16.mxu0 %v2320_v9 }
  0xd3   :  { %2076 = vmatmul.mubr.msk.bf16.vlgmr.msra.gmra.mrb[0].mxu0 %vm320_vm0, %v2305_v5 }
  0xd4   :  { %2079 = vmatprep.mubr.msk.bf16.mxu0 %vm320_vm0, %v2306_v6  ;;  %2108 = vmatpush3.bf16.msra.mxu0 %v2320_v9 }
  0xd5   :  { %2109 = vmatprep.subr.bf16.mxu0 %v2321_v10 }
  0xd8   :  { %2110 = vmatpush3.bf16.msra.mxu0 %v2321_v10 }
  0xdb   :  { %2080 = vmatmul.mubr.msk.bf16.gmra.mrb[4].mxu0 %vm320_vm0, %v2307_v7 }
  0xdc   :  { %2083 = vmatprep.mubr.msk.bf16.mxu0 %vm320_vm0, %v2308_v8 }
  0xe3   :  { %2084 = vmatmul.mubr.msk.bf16.gmra.mrb[8].mxu0 %vm320_vm0, %v2309_v11 }
  0xe4   :  { %2087 = vmatprep.mubr.msk.bf16.mxu0 %vm320_vm0, %v2310_v12 }
  0xeb   :  { %2088 = vmatmul.mubr.msk.bf16.gmra.mrb[12].mxu0 %vm320_vm0, %v2311_v13 }
  0xec   :  { %2091 = vmatprep.mubr.msk.bf16.mxu0 %vm320_vm0, %v2312_v14 }
  0xf3   :  { %2092 = vmatmul.mubr.msk.bf16.gmra.mrb[16].mxu0 %vm320_vm0, %v2313_v15 }
  0xf4   :  { %2095 = vmatprep.mubr.msk.bf16.mxu0 %vm320_vm0, %v2314_v16 }
  0xfb   :  { %2096 = vmatmul.mubr.msk.bf16.gmra.mrb[20].mxu0 %vm320_vm0, %v2315_v17 }
  0xfc   :  { %2099 = vmatprep.mubr.msk.bf16.mxu0 %vm320_vm0, %v2316_v18 }
 0x103   :  { %2100 = vmatmul.mubr.msk.bf16.gmra.mrb[24].mxu0 %vm320_vm0, %v2317_v19  ;;  %v2323_v19 = vld [vmem:[#allocation14 + $0x8] sm:$0xff]  }
 0x104   :  { %2103 = vmatprep.mubr.msk.bf16.mxu0 %vm320_vm0, %v2318_v20 }
 0x10b   :  { %2104 = vmatmul.mubr.msk.bf16.gmra.mrb[28].mxu0 %vm320_vm0, %v2319_v21 }
 0x1a6   :  { %v2077_v24 = vpop.f32.mrb[0].mxu0 }
 0x1a7   :  { %v416_v25 = vadd.f32 %v2077_v24, %v2897_v23  ;;  %v407_v26 = vpop.f32.mrb[1].mxu0 }
 0x1a8   :  { %v408_v27 = vadd.f32 %v2897_v23, %v407_v26  ;;  %v2078_v28 = vpop.f32.mrb[2].mxu0 }
 0x1a9   :  { %v419_v29 = vadd.f32 %v2078_v28, %v2897_v23  ;;  %v410_v30 = vpop.f32.mrb[3].mxu0  ;;  %v536_v32 = vmax.f32 %v416_v25, 0.0 }
 0x1aa   :  { %v411_v31 = vadd.f32 %v2897_v23, %v410_v30  ;;  %v534_v34 = vmax.f32 %v408_v27, 0.0 }
 0x1ab   :  { %v537_v33 = vmax.f32 %v419_v29, 0.0 }
 0x1ac   :  { %v535_v35 = vmax.f32 %v411_v31, 0.0 }
 0x1ad   :  { %v567_v36 = vpack.c.bf16 %v537_v33, %v536_v32 }
 0x1ae   :  { %v566_v37 = vpack.c.bf16 %v535_v35, %v534_v34  ;;  %v2081_v38 = vpop.f32.mrb[4].mxu0 }
 0x1af   :  { %v432_v39 = vadd.f32 %v2081_v38, %v2897_v23  ;;  %v423_v40 = vpop.f32.mrb[5].mxu0 }
 0x1b0   :  { %v424_v41 = vadd.f32 %v2897_v23, %v423_v40  ;;  %v2082_v42 = vpop.f32.mrb[6].mxu0  ;;  %2111 = vmatprep.mubr.msk.bf16.mxu0 %vm605_vm2, %v566_v37 }
 0x1b1   :  { %v435_v43 = vadd.f32 %v2082_v42, %v2897_v23  ;;  %v426_v44 = vpop.f32.mrb[7].mxu0  ;;  %2112 = vmatmul.mubr.msk.bf16.vlgmr.msra.gmra.mrb[32].mxu0 %vm605_vm2, %v567_v36  ;;  %v540_v46 = vmax.f32 %v432_v39, 0.0 }
 0x1b2   :  { %v427_v45 = vadd.f32 %v2897_v23, %v426_v44  ;;  %v538_v48 = vmax.f32 %v424_v41, 0.0 }
 0x1b3   :  { %v541_v47 = vmax.f32 %v435_v43, 0.0 }
 0x1b4   :  { %v539_v49 = vmax.f32 %v427_v45, 0.0 }
 0x1b5   :  { %v569_v50 = vpack.c.bf16 %v541_v47, %v540_v46 }
 0x1b6   :  { %v568_v51 = vpack.c.bf16 %v539_v49, %v538_v48  ;;  %v2085_v52 = vpop.f32.mrb[8].mxu0 }
 0x1b7   :  { %v448_v53 = vadd.f32 %v2085_v52, %v2897_v23  ;;  %v439_v54 = vpop.f32.mrb[9].mxu0 }
 0x1b8   :  { %v440_v55 = vadd.f32 %v2897_v23, %v439_v54  ;;  %v2086_v56 = vpop.f32.mrb[10].mxu0  ;;  %2115 = vmatprep.mubr.msk.bf16.mxu0 %vm605_vm2, %v568_v51 }
 0x1b9   :  { %v451_v57 = vadd.f32 %v2086_v56, %v2897_v23  ;;  %v442_v58 = vpop.f32.mrb[11].mxu0  ;;  %2116 = vmatmul.mubr.msk.bf16.gmra.mrb[36].mxu0 %vm605_vm2, %v569_v50  ;;  %v544_v60 = vmax.f32 %v448_v53, 0.0 }
 0x1ba   :  { %v443_v59 = vadd.f32 %v2897_v23, %v442_v58  ;;  %v542_v62 = vmax.f32 %v440_v55, 0.0 }
 0x1bb   :  { %v545_v61 = vmax.f32 %v451_v57, 0.0 }
 0x1bc   :  { %v543_v63 = vmax.f32 %v443_v59, 0.0 }
 0x1bd   :  { %v571_v0 = vpack.c.bf16 %v545_v61, %v544_v60 }
 0x1be   :  { %v570_v1 = vpack.c.bf16 %v543_v63, %v542_v62  ;;  %v2089_v2 = vpop.f32.mrb[12].mxu0 }
 0x1bf   :  { %v464_v3 = vadd.f32 %v2089_v2, %v2897_v23  ;;  %v455_v4 = vpop.f32.mrb[13].mxu0 }
 0x1c0   :  { %v456_v5 = vadd.f32 %v2897_v23, %v455_v4  ;;  %v2090_v6 = vpop.f32.mrb[14].mxu0  ;;  %2119 = vmatprep.mubr.msk.bf16.mxu0 %vm605_vm2, %v570_v1 }
 0x1c1   :  { %v467_v7 = vadd.f32 %v2090_v6, %v2897_v23  ;;  %v458_v8 = vpop.f32.mrb[15].mxu0  ;;  %2120 = vmatmul.mubr.msk.bf16.gmra.mrb[40].mxu0 %vm605_vm2, %v571_v0  ;;  %v548_v10 = vmax.f32 %v464_v3, 0.0 }
 0x1c2   :  { %v459_v9 = vadd.f32 %v2897_v23, %v458_v8  ;;  %v546_v12 = vmax.f32 %v456_v5, 0.0 }
 0x1c3   :  { %v549_v11 = vmax.f32 %v467_v7, 0.0 }
 0x1c4   :  { %v547_v13 = vmax.f32 %v459_v9, 0.0 }
 0x1c5   :  { %v573_v14 = vpack.c.bf16 %v549_v11, %v548_v10  ;;  %v2324_v10 = vld [vmem:[#allocation13] sm:$0x7f]  }
 0x1c6   :  { %v2093_v15 = vpop.f32.mrb[16].mxu0  ;;  %v572_v16 = vpack.c.bf16 %v547_v13, %v546_v12  ;;  %v1258_v11 = vsel %vm1256_vm3, %v2324_v10, 0  ;;  %v2948_v12 = vld [vmem:[#allocation11] ss:$0 sm:$0xff] }
 0x1c7   :  { %v480_v17 = vadd.f32 %v2093_v15, %v2897_v23  ;;  %v471_v18 = vpop.f32.mrb[17].mxu0 }
 0x1c8   :  { %v472_v20 = vadd.f32 %v2897_v23, %v471_v18  ;;  %v2094_v21 = vpop.f32.mrb[18].mxu0  ;;  %2123 = vmatprep.mubr.msk.bf16.mxu1 %vm605_vm2, %v572_v16 }
 0x1c9   :  { %v483_v24 = vadd.f32 %v2094_v21, %v2897_v23  ;;  %v474_v25 = vpop.f32.mrb[19].mxu0  ;;  %2124 = vmatmul.mubr.msk.bf16.vlgmr.msra.gmra.mrb[0].mxu1 %vm605_vm2, %v573_v14  ;;  %v552_v27 = vmax.f32 %v480_v17, 0.0 }
 0x1ca   :  { %v475_v26 = vadd.f32 %v2897_v23, %v474_v25  ;;  %2144 = vmatpush3.bf16.msra.mxu1 %v2894_v22  ;;  %v550_v29 = vmax.f32 %v472_v20, 0.0 }
 0x1cb   :  { %v553_v28 = vmax.f32 %v483_v24, 0.0  ;;  %2145 = vmatprep.subr.bf16.mxu1 %v2323_v19 }
 0x1cc   :  { %v551_v30 = vmax.f32 %v475_v26, 0.0 }
 0x1cd   :  { %v575_v31 = vpack.c.bf16 %v553_v28, %v552_v27 }
 0x1ce   :  { %v574_v32 = vpack.c.bf16 %v551_v30, %v550_v29  ;;  %v2097_v33 = vpop.f32.mrb[20].mxu0  ;;  %2146 = vmatpush3.bf16.msra.mxu1 %v2323_v19  ;;  %v2341_v19 = vld [vmem:[#allocation17] sm:$0xff]  }
 0x1cf   :  { %v496_v34 = vadd.f32 %v2097_v33, %v2897_v23  ;;  %v487_v35 = vpop.f32.mrb[21].mxu0  ;;  %2284 = vmatprep.subr.msk.bf16.mxu1 %vm1256_vm3, %v2324_v10  ;;  %2213 = vmatprep.subr.bf16.mxu0 %v2341_v19 }
 0x1d0   :  { %v488_v36 = vadd.f32 %v2897_v23, %v487_v35  ;;  %v2098_v37 = vpop.f32.mrb[22].mxu0  ;;  %2127 = vmatprep.mubr.msk.bf16.mxu1 %vm605_vm2, %v574_v32  ;;  %2214 = vmatpush3.bf16.msra.mxu0 %v2341_v19 }
 0x1d1   :  { %v499_v38 = vadd.f32 %v2098_v37, %v2897_v23  ;;  %v490_v22 = vpop.f32.mrb[23].mxu0  ;;  %2128 = vmatmul.mubr.msk.bf16.gmra.mrb[4].mxu1 %vm605_vm2, %v575_v31  ;;  %v556_v40 = vmax.f32 %v496_v34, 0.0 }
 0x1d2   :  { %v491_v39 = vadd.f32 %v2897_v23, %v490_v22  ;;  %v554_v42 = vmax.f32 %v488_v36, 0.0 }
 0x1d3   :  { %v557_v41 = vmax.f32 %v499_v38, 0.0 }
 0x1d4   :  { %v555_v43 = vmax.f32 %v491_v39, 0.0 }
 0x1d5   :  { %v577_v44 = vpack.c.bf16 %v557_v41, %v556_v40 }
 0x1d6   :  { %v576_v45 = vpack.c.bf16 %v555_v43, %v554_v42  ;;  %v2101_v46 = vpop.f32.mrb[24].mxu0 }
 0x1d7   :  { %v512_v47 = vadd.f32 %v2101_v46, %v2897_v23  ;;  %v503_v48 = vpop.f32.mrb[25].mxu0 }
 0x1d8   :  { %v504_v49 = vadd.f32 %v2897_v23, %v503_v48  ;;  %v2102_v50 = vpop.f32.mrb[26].mxu0  ;;  %2131 = vmatprep.mubr.msk.bf16.mxu1 %vm605_vm2, %v576_v45 }
 0x1d9   :  { %v515_v51 = vadd.f32 %v2102_v50, %v2897_v23  ;;  %v506_v52 = vpop.f32.mrb[27].mxu0  ;;  %2132 = vmatmul.mubr.msk.bf16.gmra.mrb[8].mxu1 %vm605_vm2, %v577_v44  ;;  %v560_v54 = vmax.f32 %v512_v47, 0.0 }
 0x1da   :  { %v507_v53 = vadd.f32 %v2897_v23, %v506_v52  ;;  %v558_v56 = vmax.f32 %v504_v49, 0.0 }
 0x1db   :  { %v561_v55 = vmax.f32 %v515_v51, 0.0 }
 0x1dc   :  { %v559_v57 = vmax.f32 %v507_v53, 0.0 }
 0x1dd   :  { %v579_v58 = vpack.c.bf16 %v561_v55, %v560_v54 }
 0x1de   :  { %v578_v59 = vpack.c.bf16 %v559_v57, %v558_v56  ;;  %v2105_v60 = vpop.f32.mrb[28].mxu0 }
 0x1df   :  { %v528_v61 = vadd.f32 %v2105_v60, %v2897_v23  ;;  %v519_v62 = vpop.f32.mrb[29].mxu0 }
 0x1e0   :  { %v520_v63 = vadd.f32 %v2897_v23, %v519_v62  ;;  %v2106_v0 = vpop.f32.mrb[30].mxu0  ;;  %2135 = vmatprep.mubr.msk.bf16.mxu1 %vm605_vm2, %v578_v59 }
 0x1e1   :  { %v531_v1 = vadd.f32 %v2106_v0, %v2897_v23  ;;  %v522_v2 = vpop.f32.mrb[31].mxu0  ;;  %2136 = vmatmul.mubr.msk.bf16.gmra.mrb[12].mxu1 %vm605_vm2, %v579_v58  ;;  %v564_v4 = vmax.f32 %v528_v61, 0.0 }
 0x1e2   :  { %v523_v3 = vadd.f32 %v2897_v23, %v522_v2  ;;  %v562_v6 = vmax.f32 %v520_v63, 0.0 }
 0x1e3   :  { %v565_v5 = vmax.f32 %v531_v1, 0.0 }
 0x1e4   :  { %v563_v7 = vmax.f32 %v523_v3, 0.0 }
 0x1e5   :  { %v581_v8 = vpack.c.bf16 %v565_v5, %v564_v4 }
 0x1e6   :  { %v580_v9 = vpack.c.bf16 %v563_v7, %v562_v6 }
 0x1e8   :  { %2139 = vmatprep.mubr.msk.bf16.mxu1 %vm605_vm2, %v580_v9 }
 0x1e9   :  { %2140 = vmatmul.mubr.msk.bf16.gmra.mrb[16].mxu1 %vm605_vm2, %v581_v8 }
 0x284   :  { %v2113_v13 = vpop.f32.mrb[32].mxu0 }
 0x285   :  { %v697_v14 = vadd.f32 %v2113_v13, %v2948_v12  ;;  %v688_v23 = vpop.f32.mrb[33].mxu0 }
 0x286   :  { %v689_v15 = vadd.f32 %v2948_v12, %v688_v23  ;;  %v2114_v16 = vpop.f32.mrb[34].mxu0 }
 0x287   :  { %v700_v17 = vadd.f32 %v2114_v16, %v2948_v12  ;;  %v691_v18 = vpop.f32.mrb[35].mxu0  ;;  %v817_v21 = vmax.f32 %v697_v14, 0.0 }
 0x288   :  { %v692_v20 = vadd.f32 %v2948_v12, %v691_v18  ;;  %v815_v25 = vmax.f32 %v689_v15, 0.0 }
 0x289   :  { %v818_v24 = vmax.f32 %v700_v17, 0.0 }
 0x28a   :  { %v816_v26 = vmax.f32 %v692_v20, 0.0 }
 0x28b   :  { %v882_v27 = vpack.c.bf16 %v818_v24, %v817_v21 }
 0x28c   :  { %v881_v28 = vpack.c.bf16 %v816_v26, %v815_v25  ;;  %v2117_v29 = vpop.f32.mrb[36].mxu0 }
 0x28d   :  { %v713_v30 = vadd.f32 %v2117_v29, %v2948_v12  ;;  %v704_v31 = vpop.f32.mrb[37].mxu0 }
 0x28e   :  { %v705_v32 = vadd.f32 %v2948_v12, %v704_v31  ;;  %v2118_v33 = vpop.f32.mrb[38].mxu0  ;;  %2147 = vmatprep.mubr.msk.bf16.mxu1 %vm605_vm2, %v881_v28 }
 0x28f   :  { %v716_v34 = vadd.f32 %v2118_v33, %v2948_v12  ;;  %v707_v35 = vpop.f32.mrb[39].mxu0  ;;  %2148 = vmatmul.mubr.msk.bf16.vlgmr.msra.gmra.mrb[20].mxu1 %vm605_vm2, %v882_v27  ;;  %v821_v37 = vmax.f32 %v713_v30, 0.0 }
 0x290   :  { %v708_v36 = vadd.f32 %v2948_v12, %v707_v35  ;;  %2180 = vmatpush3.bf16.msra.mxu1 %v1258_v11  ;;  %v819_v22 = vmax.f32 %v705_v32, 0.0 }
 0x291   :  { %v822_v38 = vmax.f32 %v716_v34, 0.0 }
 0x292   :  { %v820_v39 = vmax.f32 %v708_v36, 0.0 }
 0x293   :  { %v884_v40 = vpack.c.bf16 %v822_v38, %v821_v37 }
 0x294   :  { %v883_v41 = vpack.c.bf16 %v820_v39, %v819_v22  ;;  %v2121_v42 = vpop.f32.mrb[40].mxu0 }
 0x295   :  { %v729_v43 = vadd.f32 %v2121_v42, %v2948_v12  ;;  %v720_v44 = vpop.f32.mrb[41].mxu0 }
 0x296   :  { %v721_v45 = vadd.f32 %v2948_v12, %v720_v44  ;;  %v2122_v46 = vpop.f32.mrb[42].mxu0  ;;  %2151 = vmatprep.mubr.msk.bf16.mxu1 %vm605_vm2, %v883_v41 }
 0x297   :  { %v732_v47 = vadd.f32 %v2122_v46, %v2948_v12  ;;  %v723_v48 = vpop.f32.mrb[43].mxu0  ;;  %2152 = vmatmul.mubr.msk.bf16.gmra.mrb[24].mxu1 %vm605_vm2, %v884_v40  ;;  %v825_v50 = vmax.f32 %v729_v43, 0.0 }
 0x298   :  { %v724_v49 = vadd.f32 %v2948_v12, %v723_v48  ;;  %v823_v52 = vmax.f32 %v721_v45, 0.0 }
 0x299   :  { %v826_v51 = vmax.f32 %v732_v47, 0.0 }
 0x29a   :  { %v824_v53 = vmax.f32 %v724_v49, 0.0 }
 0x29b   :  { %v886_v54 = vpack.c.bf16 %v826_v51, %v825_v50 }
 0x29c   :  { %v885_v55 = vpack.c.bf16 %v824_v53, %v823_v52  ;;  %v2125_v56 = vpop.f32.mrb[0].mxu1 }
 0x29d   :  { %v745_v57 = vadd.f32 %v2125_v56, %v2948_v12  ;;  %v736_v58 = vpop.f32.mrb[1].mxu1 }
 0x29e   :  { %v737_v59 = vadd.f32 %v2948_v12, %v736_v58  ;;  %v2126_v60 = vpop.f32.mrb[2].mxu1  ;;  %2155 = vmatprep.mubr.msk.bf16.mxu1 %vm605_vm2, %v885_v55 }
 0x29f   :  { %v748_v61 = vadd.f32 %v2126_v60, %v2948_v12  ;;  %v739_v62 = vpop.f32.mrb[3].mxu1  ;;  %2156 = vmatmul.mubr.msk.bf16.gmra.mrb[28].mxu1 %vm605_vm2, %v886_v54  ;;  %v829_v0 = vmax.f32 %v745_v57, 0.0 }
 0x2a0   :  { %v740_v63 = vadd.f32 %v2948_v12, %v739_v62  ;;  %v827_v2 = vmax.f32 %v737_v59, 0.0 }
 0x2a1   :  { %v830_v1 = vmax.f32 %v748_v61, 0.0 }
 0x2a2   :  { %v828_v3 = vmax.f32 %v740_v63, 0.0  ;;  %v2325_v63 = vld [vmem:[#allocation5] sm:$0xff]  }
 0x2a3   :  { %v888_v4 = vpack.c.bf16 %v830_v1, %v829_v0  ;;  %v2326_v0 = vld [vmem:[#allocation5 + $0x8] sm:$0xff]   ;;  %v2327_v1 = vld [vmem:[#allocation5 + $0x10] sm:$0xff]  }
 0x2a4   :  { %v887_v5 = vpack.c.bf16 %v828_v3, %v827_v2  ;;  %v2129_v6 = vpop.f32.mrb[4].mxu1  ;;  %v2329_v2 = vld [vmem:[#allocation5 + $0x20] sm:$0xff]   ;;  %v2330_v3 = vld [vmem:[#allocation5 + $0x28] sm:$0xff]  }
 0x2a5   :  { %v761_v7 = vadd.f32 %v2129_v6, %v2948_v12  ;;  %v752_v8 = vpop.f32.mrb[5].mxu1  ;;  %v2333_v6 = vld [vmem:[#allocation5 + $0x40] sm:$0xff]  }
 0x2a6   :  { %v753_v9 = vadd.f32 %v2948_v12, %v752_v8  ;;  %v2130_v10 = vpop.f32.mrb[6].mxu1  ;;  %2159 = vmatprep.mubr.msk.bf16.mxu1 %vm605_vm2, %v887_v5  ;;  %v2332_v5 = vld [vmem:[#allocation5 + $0x38] sm:$0xff]   ;;  %v2335_v8 = vld [vmem:[#allocation5 + $0x50] sm:$0xff]  }
 0x2a7   :  { %v764_v11 = vadd.f32 %v2130_v10, %v2948_v12  ;;  %v755_v13 = vpop.f32.mrb[7].mxu1  ;;  %2160 = vmatmul.mubr.msk.bf16.gmra.mrb[32].mxu1 %vm605_vm2, %v888_v4  ;;  %v833_v23 = vmax.f32 %v761_v7, 0.0  ;;  %v2331_v4 = vld [vmem:[#allocation5 + $0x30] sm:$0xff]   ;;  %v2334_v7 = vld [vmem:[#allocation5 + $0x48] sm:$0xff]   ;;  %v2337_v10 = vld [vmem:[#allocation5 + $0x60] sm:$0xff]  }
 0x2a8   :  { %v756_v14 = vadd.f32 %v2948_v12, %v755_v13  ;;  %v831_v16 = vmax.f32 %v753_v9, 0.0  ;;  %v2336_v9 = vld [vmem:[#allocation5 + $0x58] sm:$0xff]   ;;  %v2339_v13 = vld [vmem:[#allocation5 + $0x70] sm:$0xff]  }
 0x2a9   :  { %v834_v15 = vmax.f32 %v764_v11, 0.0  ;;  %v2338_v11 = vld [vmem:[#allocation5 + $0x68] sm:$0xff]  }
 0x2aa   :  { %v832_v17 = vmax.f32 %v756_v14, 0.0  ;;  %v2340_v14 = vld [vmem:[#allocation5 + $0x78] sm:$0xff]  }
 0x2ab   :  { %v890_v18 = vpack.c.bf16 %v834_v15, %v833_v23  ;;  %v3014_v23 = vld [vmem:[#allocation16] ss:$0 sm:$0xff] }
 0x2ac   :  { %v889_v19 = vpack.c.bf16 %v832_v17, %v831_v16  ;;  %v2133_v20 = vpop.f32.mrb[8].mxu1 }
 0x2ad   :  { %v777_v21 = vadd.f32 %v2133_v20, %v2948_v12  ;;  %v768_v24 = vpop.f32.mrb[9].mxu1 }
 0x2ae   :  { %v769_v25 = vadd.f32 %v2948_v12, %v768_v24  ;;  %v2134_v26 = vpop.f32.mrb[10].mxu1  ;;  %2163 = vmatprep.mubr.msk.bf16.mxu1 %vm605_vm2, %v889_v19 }
 0x2af   :  { %v780_v27 = vadd.f32 %v2134_v26, %v2948_v12  ;;  %v771_v28 = vpop.f32.mrb[11].mxu1  ;;  %2164 = vmatmul.mubr.msk.bf16.gmra.mrb[36].mxu1 %vm605_vm2, %v890_v18  ;;  %v837_v30 = vmax.f32 %v777_v21, 0.0 }
 0x2b0   :  { %v772_v29 = vadd.f32 %v2948_v12, %v771_v28  ;;  %v835_v32 = vmax.f32 %v769_v25, 0.0 }
 0x2b1   :  { %v838_v31 = vmax.f32 %v780_v27, 0.0 }
 0x2b2   :  { %v836_v33 = vmax.f32 %v772_v29, 0.0 }
 0x2b3   :  { %v892_v34 = vpack.c.bf16 %v838_v31, %v837_v30 }
 0x2b4   :  { %v891_v35 = vpack.c.bf16 %v836_v33, %v835_v32  ;;  %v2137_v36 = vpop.f32.mrb[12].mxu1 }
 0x2b5   :  { %v793_v37 = vadd.f32 %v2137_v36, %v2948_v12  ;;  %v784_v38 = vpop.f32.mrb[13].mxu1 }
 0x2b6   :  { %v785_v22 = vadd.f32 %v2948_v12, %v784_v38  ;;  %v2138_v39 = vpop.f32.mrb[14].mxu1  ;;  %2167 = vmatprep.mubr.msk.bf16.mxu1 %vm605_vm2, %v891_v35 }
 0x2b7   :  { %v796_v40 = vadd.f32 %v2138_v39, %v2948_v12  ;;  %v787_v41 = vpop.f32.mrb[15].mxu1  ;;  %2168 = vmatmul.mubr.msk.bf16.gmra.mrb[40].mxu1 %vm605_vm2, %v892_v34  ;;  %v841_v43 = vmax.f32 %v793_v37, 0.0 }
 0x2b8   :  { %v788_v42 = vadd.f32 %v2948_v12, %v787_v41  ;;  %v839_v45 = vmax.f32 %v785_v22, 0.0 }
 0x2b9   :  { %v842_v44 = vmax.f32 %v796_v40, 0.0 }
 0x2ba   :  { %v840_v46 = vmax.f32 %v788_v42, 0.0 }
 0x2bb   :  { %v894_v47 = vpack.c.bf16 %v842_v44, %v841_v43 }
 0x2bc   :  { %v893_v48 = vpack.c.bf16 %v840_v46, %v839_v45  ;;  %v2141_v49 = vpop.f32.mrb[16].mxu1 }
 0x2bd   :  { %v809_v50 = vadd.f32 %v2141_v49, %v2948_v12  ;;  %v800_v51 = vpop.f32.mrb[17].mxu1 }
 0x2be   :  { %v801_v52 = vadd.f32 %v2948_v12, %v800_v51  ;;  %v2142_v53 = vpop.f32.mrb[18].mxu1  ;;  %2171 = vmatprep.mubr.msk.bf16.mxu1 %vm605_vm2, %v893_v48 }
 0x2bf   :  { %v812_v54 = vadd.f32 %v2142_v53, %v2948_v12  ;;  %v803_v55 = vpop.f32.mrb[19].mxu1  ;;  %2172 = vmatmul.mubr.msk.bf16.gmra.mrb[44].mxu1 %vm605_vm2, %v894_v47  ;;  %v845_v57 = vmax.f32 %v809_v50, 0.0 }
 0x2c0   :  { %v804_v56 = vadd.f32 %v2948_v12, %v803_v55  ;;  %v843_v59 = vmax.f32 %v801_v52, 0.0  ;;  %v2328_v12 = vld [vmem:[#allocation5 + $0x18] sm:$0xff]  }
 0x2c1   :  { %v846_v58 = vmax.f32 %v812_v54, 0.0 }
 0x2c2   :  { %v844_v60 = vmax.f32 %v804_v56, 0.0 }
 0x2c3   :  { %v896_v61 = vpack.c.bf16 %v846_v58, %v845_v57 }
 0x2c4   :  { %v895_v62 = vpack.c.bf16 %v844_v60, %v843_v59 }
 0x2c6   :  { %2175 = vmatprep.mubr.msk.bf16.mxu1 %vm605_vm2, %v895_v62 }
 0x2c7   :  { %2176 = vmatmul.mubr.msk.bf16.gmra.mrb[48].mxu1 %vm605_vm2, %v896_v61 }
 0x2c8   :  { %2181 = vmatprep.mubr.msk.bf16.mxu1 %vm1207_vm4, %v2325_v63 }
 0x2cf   :  { %2182 = vmatmul.mubr.msk.bf16.vlgmr.msra.gmra.mrb[20].mxu1 %vm1207_vm4, %v2326_v0 }
 0x2d0   :  { %2185 = vmatprep.mubr.msk.bf16.mxu1 %vm1207_vm4, %v2327_v1 }
 0x2d7   :  { %2186 = vmatmul.mubr.msk.bf16.gmra.mrb[24].mxu1 %vm1207_vm4, %v2328_v12 }
 0x2d8   :  { %2189 = vmatprep.mubr.msk.bf16.mxu1 %vm1207_vm4, %v2329_v2 }
 0x2df   :  { %2190 = vmatmul.mubr.msk.bf16.gmra.mrb[28].mxu1 %vm1207_vm4, %v2330_v3 }
 0x2e0   :  { %2193 = vmatprep.mubr.msk.bf16.mxu1 %vm1207_vm4, %v2331_v4 }
 0x2e7   :  { %2194 = vmatmul.mubr.msk.bf16.gmra.mrb[32].mxu1 %vm1207_vm4, %v2332_v5 }
 0x2e8   :  { %2197 = vmatprep.mubr.msk.bf16.mxu1 %vm1207_vm4, %v2333_v6 }
 0x2ef   :  { %2198 = vmatmul.mubr.msk.bf16.gmra.mrb[36].mxu1 %vm1207_vm4, %v2334_v7 }
 0x2f0   :  { %2201 = vmatprep.mubr.msk.bf16.mxu1 %vm1207_vm4, %v2335_v8 }
 0x2f7   :  { %2202 = vmatmul.mubr.msk.bf16.gmra.mrb[40].mxu1 %vm1207_vm4, %v2336_v9 }
 0x2f8   :  { %2205 = vmatprep.mubr.msk.bf16.mxu1 %vm1207_vm4, %v2337_v10 }
 0x2ff   :  { %2206 = vmatmul.mubr.msk.bf16.gmra.mrb[44].mxu1 %vm1207_vm4, %v2338_v11 }
 0x300   :  { %2209 = vmatprep.mubr.msk.bf16.mxu1 %vm1207_vm4, %v2339_v13 }
 0x307   :  { %2210 = vmatmul.mubr.msk.bf16.gmra.mrb[48].mxu1 %vm1207_vm4, %v2340_v14 }
 0x3a2   :  { %v2183_v15 = vpop.f32.mrb[20].mxu1 }
 0x3a3   :  { %v1430_v16 = vadd.f32 %v2183_v15, %v3014_v23  ;;  %v1294_v17 = vpop.f32.mrb[21].mxu1 }
 0x3a4   :  { %v1428_v18 = vadd.f32 %v3014_v23, %v1294_v17  ;;  %v2184_v19 = vpop.f32.mrb[22].mxu1 }
 0x3a5   :  { %v1431_v20 = vadd.f32 %v2184_v19, %v3014_v23  ;;  %v1297_v21 = vpop.f32.mrb[23].mxu1  ;;  %v1462_v25 = vmax.f32 %v1430_v16, 0.0 }
 0x3a6   :  { %v1429_v24 = vadd.f32 %v3014_v23, %v1297_v21  ;;  %v1460_v27 = vmax.f32 %v1428_v18, 0.0 }
 0x3a7   :  { %v1463_v26 = vmax.f32 %v1431_v20, 0.0 }
 0x3a8   :  { %v1461_v28 = vmax.f32 %v1429_v24, 0.0 }
 0x3a9   :  { %v1493_v29 = vpack.c.bf16 %v1463_v26, %v1462_v25 }
 0x3aa   :  { %v1492_v30 = vpack.c.bf16 %v1461_v28, %v1460_v27  ;;  %v2187_v31 = vpop.f32.mrb[24].mxu1 }
 0x3ab   :  { %v1434_v32 = vadd.f32 %v2187_v31, %v3014_v23  ;;  %v1310_v33 = vpop.f32.mrb[25].mxu1 }
 0x3ac   :  { %v1432_v34 = vadd.f32 %v3014_v23, %v1310_v33  ;;  %v2188_v35 = vpop.f32.mrb[26].mxu1  ;;  %2215 = vmatprep.mubr.msk.bf16.mxu0 %vm1523_vm5, %v1492_v30 }
 0x3ad   :  { %v1435_v36 = vadd.f32 %v2188_v35, %v3014_v23  ;;  %v1313_v37 = vpop.f32.mrb[27].mxu1  ;;  %2216 = vmatmul.mubr.msk.bf16.vlgmr.msra.gmra.mrb[44].mxu0 %vm1523_vm5, %v1493_v29  ;;  %v1466_v22 = vmax.f32 %v1434_v32, 0.0 }
 0x3ae   :  { %v1433_v38 = vadd.f32 %v3014_v23, %v1313_v37  ;;  %v1464_v40 = vmax.f32 %v1432_v34, 0.0 }
 0x3af   :  { %v1467_v39 = vmax.f32 %v1435_v36, 0.0 }
 0x3b0   :  { %v1465_v41 = vmax.f32 %v1433_v38, 0.0 }
 0x3b1   :  { %v1495_v42 = vpack.c.bf16 %v1467_v39, %v1466_v22 }
 0x3b2   :  { %v1494_v43 = vpack.c.bf16 %v1465_v41, %v1464_v40  ;;  %v2191_v44 = vpop.f32.mrb[28].mxu1 }
 0x3b3   :  { %v1438_v45 = vadd.f32 %v2191_v44, %v3014_v23  ;;  %v1326_v46 = vpop.f32.mrb[29].mxu1 }
 0x3b4   :  { %v1436_v47 = vadd.f32 %v3014_v23, %v1326_v46  ;;  %v2192_v48 = vpop.f32.mrb[30].mxu1  ;;  %2219 = vmatprep.mubr.msk.bf16.mxu0 %vm1523_vm5, %v1494_v43 }
 0x3b5   :  { %v1439_v49 = vadd.f32 %v2192_v48, %v3014_v23  ;;  %v1329_v50 = vpop.f32.mrb[31].mxu1  ;;  %2220 = vmatmul.mubr.msk.bf16.gmra.mrb[48].mxu0 %vm1523_vm5, %v1495_v42  ;;  %v1470_v52 = vmax.f32 %v1438_v45, 0.0 }
 0x3b6   :  { %v1437_v51 = vadd.f32 %v3014_v23, %v1329_v50  ;;  %v1468_v54 = vmax.f32 %v1436_v47, 0.0 }
 0x3b7   :  { %v1471_v53 = vmax.f32 %v1439_v49, 0.0 }
 0x3b8   :  { %v1469_v55 = vmax.f32 %v1437_v51, 0.0 }
 0x3b9   :  { %v1497_v56 = vpack.c.bf16 %v1471_v53, %v1470_v52 }
 0x3ba   :  { %v1496_v57 = vpack.c.bf16 %v1469_v55, %v1468_v54  ;;  %v2195_v58 = vpop.f32.mrb[32].mxu1 }
 0x3bb   :  { %v1442_v59 = vadd.f32 %v2195_v58, %v3014_v23  ;;  %v1342_v60 = vpop.f32.mrb[33].mxu1 }
 0x3bc   :  { %v1440_v61 = vadd.f32 %v3014_v23, %v1342_v60  ;;  %v2196_v62 = vpop.f32.mrb[34].mxu1  ;;  %2223 = vmatprep.mubr.msk.bf16.mxu0 %vm1523_vm5, %v1496_v57 }
 0x3bd   :  { %v1443_v63 = vadd.f32 %v2196_v62, %v3014_v23  ;;  %v1345_v0 = vpop.f32.mrb[35].mxu1  ;;  %2224 = vmatmul.mubr.msk.bf16.gmra.mrb[52].mxu0 %vm1523_vm5, %v1497_v56  ;;  %v1474_v12 = vmax.f32 %v1442_v59, 0.0 }
 0x3be   :  { %v1441_v1 = vadd.f32 %v3014_v23, %v1345_v0  ;;  %v1472_v3 = vmax.f32 %v1440_v61, 0.0 }
 0x3bf   :  { %v1475_v2 = vmax.f32 %v1443_v63, 0.0 }
 0x3c0   :  { %v1473_v4 = vmax.f32 %v1441_v1, 0.0  ;;  %v3064_v1 = vld [vmem:[#allocation19] ss:$0 sm:$0xff] }
 0x3c1   :  { %v1499_v5 = vpack.c.bf16 %v1475_v2, %v1474_v12 }
 0x3c2   :  { %v1498_v6 = vpack.c.bf16 %v1473_v4, %v1472_v3  ;;  %v2199_v7 = vpop.f32.mrb[36].mxu1 }
 0x3c3   :  { %v1446_v8 = vadd.f32 %v2199_v7, %v3014_v23  ;;  %v1358_v9 = vpop.f32.mrb[37].mxu1 }
 0x3c4   :  { %v1444_v10 = vadd.f32 %v3014_v23, %v1358_v9  ;;  %v2200_v11 = vpop.f32.mrb[38].mxu1  ;;  %2227 = vmatprep.mubr.msk.bf16.mxu0 %vm1523_vm5, %v1498_v6 }
 0x3c5   :  { %v1447_v13 = vadd.f32 %v2200_v11, %v3014_v23  ;;  %v1361_v14 = vpop.f32.mrb[39].mxu1  ;;  %2228 = vmatmul.mubr.msk.bf16.gmra.mrb[56].mxu0 %vm1523_vm5, %v1499_v5  ;;  %v1478_v16 = vmax.f32 %v1446_v8, 0.0 }
 0x3c6   :  { %v1445_v15 = vadd.f32 %v3014_v23, %v1361_v14  ;;  %v1476_v18 = vmax.f32 %v1444_v10, 0.0 }
 0x3c7   :  { %v1479_v17 = vmax.f32 %v1447_v13, 0.0 }
 0x3c8   :  { %v1477_v19 = vmax.f32 %v1445_v15, 0.0 }
 0x3c9   :  { %v1501_v20 = vpack.c.bf16 %v1479_v17, %v1478_v16 }
 0x3ca   :  { %v1500_v21 = vpack.c.bf16 %v1477_v19, %v1476_v18  ;;  %v2203_v24 = vpop.f32.mrb[40].mxu1 }
 0x3cb   :  { %v1450_v25 = vadd.f32 %v2203_v24, %v3014_v23  ;;  %v1374_v26 = vpop.f32.mrb[41].mxu1 }
 0x3cc   :  { %v1448_v27 = vadd.f32 %v3014_v23, %v1374_v26  ;;  %v2204_v28 = vpop.f32.mrb[42].mxu1  ;;  %2231 = vmatprep.mubr.msk.bf16.mxu0 %vm1523_vm5, %v1500_v21 }
 0x3cd   :  { %v1451_v29 = vadd.f32 %v2204_v28, %v3014_v23  ;;  %v1377_v30 = vpop.f32.mrb[43].mxu1  ;;  %2232 = vmatmul.mubr.msk.bf16.gmra.mrb[60].mxu0 %vm1523_vm5, %v1501_v20  ;;  %v1482_v32 = vmax.f32 %v1450_v25, 0.0 }
 0x3ce   :  { %v1449_v31 = vadd.f32 %v3014_v23, %v1377_v30  ;;  %v1480_v34 = vmax.f32 %v1448_v27, 0.0 }
 0x3cf   :  { %v1483_v33 = vmax.f32 %v1451_v29, 0.0 }
 0x3d0   :  { %v1481_v35 = vmax.f32 %v1449_v31, 0.0 }
 0x3d1   :  { %v1503_v36 = vpack.c.bf16 %v1483_v33, %v1482_v32 }
 0x3d2   :  { %v1502_v37 = vpack.c.bf16 %v1481_v35, %v1480_v34  ;;  %v2207_v38 = vpop.f32.mrb[44].mxu1 }
 0x3d3   :  { %v1454_v22 = vadd.f32 %v2207_v38, %v3014_v23  ;;  %v1390_v39 = vpop.f32.mrb[45].mxu1 }
 0x3d4   :  { %v1452_v40 = vadd.f32 %v3014_v23, %v1390_v39  ;;  %v2208_v41 = vpop.f32.mrb[46].mxu1  ;;  %2235 = vmatprep.mubr.msk.bf16.mxu0 %vm1523_vm5, %v1502_v37 }
 0x3d5   :  { %v1455_v42 = vadd.f32 %v2208_v41, %v3014_v23  ;;  %v1393_v43 = vpop.f32.mrb[47].mxu1  ;;  %2236 = vmatmul.mubr.msk.bf16.gmra.mrb[64].mxu0 %vm1523_vm5, %v1503_v36  ;;  %v1486_v45 = vmax.f32 %v1454_v22, 0.0 }
 0x3d6   :  { %v1453_v44 = vadd.f32 %v3014_v23, %v1393_v43  ;;  %v1484_v47 = vmax.f32 %v1452_v40, 0.0 }
 0x3d7   :  { %v1487_v46 = vmax.f32 %v1455_v42, 0.0 }
 0x3d8   :  { %v1485_v48 = vmax.f32 %v1453_v44, 0.0 }
 0x3d9   :  { %v1505_v49 = vpack.c.bf16 %v1487_v46, %v1486_v45 }
 0x3da   :  { %v1504_v50 = vpack.c.bf16 %v1485_v48, %v1484_v47  ;;  %v2211_v51 = vpop.f32.mrb[48].mxu1 }
 0x3db   :  { %v1458_v52 = vadd.f32 %v2211_v51, %v3014_v23  ;;  %v1406_v53 = vpop.f32.mrb[49].mxu1 }
 0x3dc   :  { %v1456_v54 = vadd.f32 %v3014_v23, %v1406_v53  ;;  %v2212_v55 = vpop.f32.mrb[50].mxu1  ;;  %2239 = vmatprep.mubr.msk.bf16.mxu0 %vm1523_vm5, %v1504_v50 }
 0x3dd   :  { %v1459_v56 = vadd.f32 %v2212_v55, %v3014_v23  ;;  %v1409_v57 = vpop.f32.mrb[51].mxu1  ;;  %2240 = vmatmul.mubr.msk.bf16.gmra.mrb[68].mxu0 %vm1523_vm5, %v1505_v49  ;;  %v1490_v59 = vmax.f32 %v1458_v52, 0.0 }
 0x3de   :  { %v1457_v58 = vadd.f32 %v3014_v23, %v1409_v57  ;;  %v1488_v61 = vmax.f32 %v1456_v54, 0.0 }
 0x3df   :  { %v1491_v60 = vmax.f32 %v1459_v56, 0.0 }
 0x3e0   :  { %v1489_v62 = vmax.f32 %v1457_v58, 0.0 }
 0x3e1   :  { %v1507_v63 = vpack.c.bf16 %v1491_v60, %v1490_v59 }
 0x3e2   :  { %v1506_v0 = vpack.c.bf16 %v1489_v62, %v1488_v61 }
 0x3e4   :  { %2243 = vmatprep.mubr.msk.bf16.mxu0 %vm1523_vm5, %v1506_v0 }
 0x3e5   :  { %2244 = vmatmul.mubr.msk.bf16.gmra.mrb[72].mxu0 %vm1523_vm5, %v1507_v63 }
 0x480   :  { %v2217_v12 = vpop.f32.mrb[44].mxu0 }
 0x481   :  { %v1606_v2 = vpop.f32.mrb[45].mxu0  ;;  %v1615_v7 = vadd.f32 %v2217_v12, %v3064_v1 }
 0x482   :  { %v2218_v3 = vpop.f32.mrb[46].mxu0  ;;  %v1607_v4 = vadd.f32 %v3064_v1, %v1606_v2 }
 0x483   :  { %v1609_v5 = vpop.f32.mrb[47].mxu0  ;;  %v1735_v14 = vmax.f32 %v1615_v7, 0.0  ;;  %v1618_v15 = vadd.f32 %v2218_v3, %v3064_v1 }
 0x484   :  { %v1610_v23 = vadd.f32 %v3064_v1, %v1609_v5  ;;  %v1733_v6 = vmax.f32 %v1607_v4, 0.0 }
 0x485   :  { %v1736_v16 = vmax.f32 %v1618_v15, 0.0 }
 0x486   :  { %1765 = vxpose.xlu0.b32.start [1/16] (narrow) %v1733_v6, 16  ;;  %v1734_v8 = vmax.f32 %v1610_v23, 0.0 }
 0x488   :  { %v2221_v9 = vpop.f32.mrb[48].mxu0 }
 0x489   :  { %v1622_v10 = vpop.f32.mrb[49].mxu0  ;;  %v1631_v26 = vadd.f32 %v2221_v9, %v3064_v1 }
 0x48a   :  { %1766 = vxpose.xlu0.b32.cont [2/16] (narrow) %v1734_v8, 16  ;;  %v2222_v11 = vpop.f32.mrb[50].mxu0  ;;  %v1623_v17 = vadd.f32 %v3064_v1, %v1622_v10 }
 0x48b   :  { %v1625_v13 = vpop.f32.mrb[51].mxu0  ;;  %v1739_v32 = vmax.f32 %v1631_v26, 0.0  ;;  %v1634_v33 = vadd.f32 %v2222_v11, %v3064_v1 }
 0x48c   :  { %v1737_v24 = vmax.f32 %v1623_v17, 0.0  ;;  %v1626_v25 = vadd.f32 %v3064_v1, %v1625_v13 }
 0x48d   :  { %v1740_v34 = vmax.f32 %v1634_v33, 0.0 }
 0x48e   :  { %1767 = vxpose.xlu0.b32.cont [3/16] (narrow) %v1735_v14, 16  ;;  %v1738_v27 = vmax.f32 %v1626_v25, 0.0 }
 0x490   :  { %v2225_v18 = vpop.f32.mrb[52].mxu0 }
 0x491   :  { %v1638_v19 = vpop.f32.mrb[53].mxu0  ;;  %v1647_v44 = vadd.f32 %v2225_v18, %v3064_v1 }
 0x492   :  { %1768 = vxpose.xlu0.b32.cont [4/16] (narrow) %v1736_v16, 16  ;;  %v2226_v20 = vpop.f32.mrb[54].mxu0  ;;  %v1639_v35 = vadd.f32 %v3064_v1, %v1638_v19 }
 0x493   :  { %v1641_v21 = vpop.f32.mrb[55].mxu0  ;;  %v1743_v52 = vmax.f32 %v1647_v44, 0.0  ;;  %v1650_v53 = vadd.f32 %v2226_v20, %v3064_v1 }
 0x494   :  { %v1741_v40 = vmax.f32 %v1639_v35, 0.0  ;;  %v1642_v41 = vadd.f32 %v3064_v1, %v1641_v21 }
 0x495   :  { %v1744_v57 = vmax.f32 %v1650_v53, 0.0 }
 0x496   :  { %1769 = vxpose.xlu0.b32.cont [5/16] (narrow) %v1737_v24, 16  ;;  %v1742_v45 = vmax.f32 %v1642_v41, 0.0 }
 0x498   :  { %v2229_v28 = vpop.f32.mrb[56].mxu0 }
 0x499   :  { %v1654_v29 = vpop.f32.mrb[57].mxu0  ;;  %v1663_v7 = vadd.f32 %v2229_v28, %v3064_v1 }
 0x49a   :  { %1770 = vxpose.xlu0.b32.cont [6/16] (narrow) %v1738_v27, 16  ;;  %v3073_v30 = vpop.f32.mrb[58].mxu0  ;;  %v1655_v56 = vadd.f32 %v3064_v1, %v1654_v29 }
 0x49b   :  { %v1657_v31 = vpop.f32.mrb[59].mxu0  ;;  %v1747_v17 = vmax.f32 %v1663_v7, 0.0  ;;  %v1666_v20 = vadd.f32 %v3073_v30, %v3064_v1 }
 0x49c   :  { %v1745_v12 = vmax.f32 %v1655_v56, 0.0  ;;  %v1658_v4 = vadd.f32 %v3064_v1, %v1657_v31 }
 0x49d   :  { %v1748_v26 = vmax.f32 %v1666_v20, 0.0 }
 0x49e   :  { %1771 = vxpose.xlu0.b32.cont [7/16] (narrow) %v1739_v32, 16  ;;  %v1746_v8 = vmax.f32 %v1658_v4, 0.0 }
 0x4a0   :  { %v2233_v36 = vpop.f32.mrb[60].mxu0 }
 0x4a1   :  { %v1670_v37 = vpop.f32.mrb[61].mxu0  ;;  %v1679_v46 = vadd.f32 %v2233_v36, %v3064_v1 }
 0x4a2   :  { %1772 = vxpose.xlu0.b32.cont [8/16] (narrow) %v1740_v34, 16  ;;  %v2234_v38 = vpop.f32.mrb[62].mxu0  ;;  %v1671_v22 = vadd.f32 %v3064_v1, %v1670_v37 }
 0x4a3   :  { %v1673_v39 = vpop.f32.mrb[63].mxu0  ;;  %v1751_v54 = vmax.f32 %v1679_v46, 0.0  ;;  %v1682_v55 = vadd.f32 %v2234_v38, %v3064_v1 }
 0x4a4   :  { %v1674_v42 = vadd.f32 %v3064_v1, %v1673_v39  ;;  %v1749_v43 = vmax.f32 %v1671_v22, 0.0 }
 0x4a5   :  { %v1752_v58 = vmax.f32 %v1682_v55, 0.0 }
 0x4a6   :  { %1773 = vxpose.xlu0.b32.cont [9/16] (narrow) %v1741_v40, 16  ;;  %1797 = vxpose.xlu1.b32.start [1/16] (narrow) %v1749_v43, 16  ;;  %v1750_v47 = vmax.f32 %v1674_v42, 0.0 }
 0x4a8   :  { %v2237_v48 = vpop.f32.mrb[64].mxu0 }
 0x4a9   :  { %v1686_v49 = vpop.f32.mrb[65].mxu0  ;;  %v1695_v9 = vadd.f32 %v2237_v48, %v3064_v1 }
 0x4aa   :  { %1774 = vxpose.xlu0.b32.cont [10/16] (narrow) %v1742_v45, 16  ;;  %1798 = vxpose.xlu1.b32.cont [2/16] (narrow) %v1750_v47, 16  ;;  %v2238_v50 = vpop.f32.mrb[66].mxu0  ;;  %v1687_v59 = vadd.f32 %v3064_v1, %v1686_v49 }
 0x4ab   :  { %v1689_v51 = vpop.f32.mrb[67].mxu0  ;;  %v1755_v21 = vmax.f32 %v1695_v9, 0.0  ;;  %v1698_v24 = vadd.f32 %v2238_v50, %v3064_v1 }
 0x4ac   :  { %v1753_v5 = vmax.f32 %v1687_v59, 0.0  ;;  %v1690_v23 = vadd.f32 %v3064_v1, %v1689_v51 }
 0x4ad   :  { %v1756_v27 = vmax.f32 %v1698_v24, 0.0 }
 0x4ae   :  { %1775 = vxpose.xlu0.b32.cont [11/16] (narrow) %v1743_v52, 16  ;;  %1799 = vxpose.xlu1.b32.cont [3/16] (narrow) %v1751_v54, 16  ;;  %v1754_v10 = vmax.f32 %v1690_v23, 0.0 }
 0x4b0   :  { %v2241_v60 = vpop.f32.mrb[68].mxu0 }
 0x4b1   :  { %v1711_v61 = vadd.f32 %v2241_v60, %v3064_v1  ;;  %v1702_v62 = vpop.f32.mrb[69].mxu0 }
 0x4b2   :  { %v1703_v63 = vadd.f32 %v3064_v1, %v1702_v62  ;;  %1776 = vxpose.xlu0.b32.cont [12/16] (narrow) %v1744_v57, 16  ;;  %1800 = vxpose.xlu1.b32.cont [4/16] (narrow) %v1752_v58, 16  ;;  %v2242_v0 = vpop.f32.mrb[70].mxu0 }
 0x4b3   :  { %v1714_v2 = vadd.f32 %v2242_v0, %v3064_v1  ;;  %v1705_v3 = vpop.f32.mrb[71].mxu0  ;;  %v1759_v31 = vmax.f32 %v1711_v61, 0.0 }
 0x4b4   :  { %v1706_v6 = vadd.f32 %v3064_v1, %v1705_v3  ;;  %v1757_v28 = vmax.f32 %v1703_v63, 0.0 }
 0x4b5   :  { %v1760_v32 = vmax.f32 %v1714_v2, 0.0 }
 0x4b6   :  { %1777 = vxpose.xlu0.b32.cont [13/16] (narrow) %v1745_v12, 16  ;;  %1801 = vxpose.xlu1.b32.cont [5/16] (narrow) %v1753_v5, 16  ;;  %v1758_v29 = vmax.f32 %v1706_v6, 0.0 }
 0x4b8   :  { %v2245_v11 = vpop.f32.mrb[72].mxu0 }
 0x4b9   :  { %v1727_v13 = vadd.f32 %v2245_v11, %v3064_v1  ;;  %v1718_v14 = vpop.f32.mrb[73].mxu0 }
 0x4ba   :  { %v1719_v15 = vadd.f32 %v3064_v1, %v1718_v14  ;;  %1778 = vxpose.xlu0.b32.cont [14/16] (narrow) %v1746_v8, 16  ;;  %1802 = vxpose.xlu1.b32.cont [6/16] (narrow) %v1754_v10, 16  ;;  %v2246_v16 = vpop.f32.mrb[74].mxu0 }
 0x4bb   :  { %v1730_v18 = vadd.f32 %v2246_v16, %v3064_v1  ;;  %v1721_v19 = vpop.f32.mrb[75].mxu0  ;;  %v1763_v34 = vmax.f32 %v1727_v13, 0.0 }
 0x4bc   :  { %v1722_v25 = vadd.f32 %v3064_v1, %v1721_v19  ;;  %v1761_v30 = vmax.f32 %v1719_v15, 0.0 }
 0x4bd   :  { %v1764_v1 = vmax.f32 %v1730_v18, 0.0 }
 0x4be   :  { %1779 = vxpose.xlu0.b32.cont [15/16] (narrow) %v1747_v17, 16  ;;  %1803 = vxpose.xlu1.b32.cont [7/16] (narrow) %v1755_v21, 16  ;;  %v1762_v33 = vmax.f32 %v1722_v25, 0.0 }
 0x4c2   :  { %1780 = vxpose.xlu0.b32.end [16/16] (narrow) %v1748_v26, 16  ;;  %1804 = vxpose.xlu1.b32.cont [8/16] (narrow) %v1756_v27, 16 }
 0x4c6   :  { %1805 = vxpose.xlu1.b32.cont [9/16] (narrow) %v1757_v28, 16 }
 0x4ca   :  { %1806 = vxpose.xlu1.b32.cont [10/16] (narrow) %v1758_v29, 16 }
 0x4ce   :  { %1807 = vxpose.xlu1.b32.cont [11/16] (narrow) %v1759_v31, 16 }
 0x4d2   :  { %1808 = vxpose.xlu1.b32.cont [12/16] (narrow) %v1760_v32, 16 }
 0x4d6   :  { %1809 = vxpose.xlu1.b32.cont [13/16] (narrow) %v1761_v30, 16 }
 0x4da   :  { %1810 = vxpose.xlu1.b32.cont [14/16] (narrow) %v1762_v33, 16 }
 0x4de   :  { %1811 = vxpose.xlu1.b32.cont [15/16] (narrow) %v1763_v34, 16 }
 0x4e2   :  { %1812 = vxpose.xlu1.b32.end [16/16] (narrow) %v1764_v1, 16 }
 0x506   :  { %v1781_v35 = vpop.trf.xlu0 }
 0x507   :  { %1829 = vst [vmem:[#allocation20] sm:$0xff] %v1781_v35 }
 0x50a   :  { %v1782_v36 = vpop.trf.xlu0 }
 0x50b   :  { %1831 = vst [vmem:[#allocation20 + $0x10] sm:$0xff] %v1782_v36 }
 0x526   :  { %v1813_v37 = vpop.trf.xlu1 }
 0x527   :  { %1830 = vst [vmem:[#allocation20 + $0x8] sm:$0xff] %v1813_v37 }
 0x52a   :  { %v1814_v38 = vpop.trf.xlu1 }
 0x52b   :  { %1832 = vst [vmem:[#allocation20 + $0x18] sm:$0xff] %v1814_v38 }
 0x52c   :  { %2595 = shalt.err (!%p2592_p8)
}
 0x52d   :  { %s2596_s17 = scalar_lea.hbm %s3124_s11, 512 }
 0x52e   :  { %p2597_p9 = scmp.ne.s32.totalorder %s3124_s11, %s2596_s17  ;;  %p2600_p10 = scmp.lt.u32.totalorder %s2596_s17, %s3124_s11 }
 0x530   :  { %p2602_p11 = pnand %p2600_p10, %p2597_p9 }
 0x532   :  { %2605 = shalt.err (!%p2602_p11)
}
 0x533   :  { %s2634_s13 = smov 256   ;;  %s2635_s5 = smov 16  }
 0x534   :  { %1844 = dma.vmem_to_hbm [thread:$0]  %s1839_s18, 512, %s3124_s11, [#allocation4], %s2634_s13, %s2634_s13, %s2635_s5  }
 0x535   :  { %2618 = dma.done.wait [#allocation4], 512  }
 0x536   :  { %2619 = vsyncadd [#allocation4], 4294966784 }
 0x537   :  { %1848 = vsyncpa [#allocation3], 1 }
 0x538   :  { %1849 = vsyncpa [#allocation6], 1 }
 0x539   :  { %1850 = vsyncpa [#allocation9], 1 }
 0x53a   :  { %1851 = vsyncpa [#allocation12], 1 }
 0x53b   :  { %1852 = vsyncpa [#allocation15], 1 }
 0x53c   :  { %1853 = vsyncpa [#allocation18], 1 }
 0x53d   :  { %1854 = vsyncpa [#allocation4], 1 }

// kernel: feature_extractor_layer_forward.3
= control target key start
LH: loop header
LB: loop body
LE: loop exit
PB: predicated region body
PF: predicated region fallthrough
CT: control target
= control target key end

     0   :  { %10 = vsyncpa [#allocation7], 0  ;;  %s4521_s0 = inlined_call_operand.hbm [shape: bf16[256,38], index: 0, kind: input, shape index: {}]   ;;  %s4522_s1 = inlined_call_operand.hbm [shape: s32[256,1], index: 1, kind: input, shape index: {}]   ;;  %s4523_s2 = inlined_call_operand.hbm [shape: f32[8,16], index: 2, kind: input, shape index: {}]   ;;  %s4524_s3 = inlined_call_operand.hbm [shape: bf16[38,48], index: 3, kind: input, shape index: {}]   ;;  %s4525_s4 = inlined_call_operand.hbm [shape: f32[1,48], index: 4, kind: input, shape index: {}]   ;;  %s4526_s5 = inlined_call_operand.hbm [shape: f32[8,16], index: 5, kind: output, shape index: {}]  }
   0x1   :  { %11 = vsyncpa [#allocation10], 0 }
   0x2   :  { %12 = vsyncpa [#allocation13], 0 }
   0x3   :  { %13 = vsyncpa [#allocation8], 0  ;;  %s3104_s18 = smov [#allocation9]   ;;  %s2964_s22 = scalar_lea.hbm %s4522_s1, 4096 }
   0x4   :  { %s31_s19 = sshll.u32 %s3104_s18, 4  ;;  %p2965_p0 = scmp.ne.s32.totalorder %s4522_s1, %s2964_s22  ;;  %s32_s19 = int_to_ptr.vmem [resolvable:$true] %s31_s19 }
   0x5   :  { %p2968_p1 = scmp.lt.u32.totalorder %s2964_s22, %s4522_s1 }
   0x7   :  { %p2970_p2 = pnand %p2968_p1, %p2965_p0 }
   0x9   :  { %2973 = shalt.err (!%p2970_p2)
}
   0xa   :  { %s2974_s27 = scalar_lea.vmem %s32_s19, 4096  ;;  %p2979_p4 = scmp.lt.s32.totalorder %s32_s19, %s32_s19 }
   0xb   :  { %p2975_p3 = scmp.ne.s32.totalorder %s32_s19, %s2974_s27  ;;  %p2980_p5 = scmp.lt.s32.totalorder %s2974_s27, %s2974_s27 }
   0xd   :  { %p2981_p6 = por %p2980_p5, %p2979_p4 }
   0xf   :  { %p2982_p7 = pnand %p2981_p6, %p2975_p3 }
  0x11   :  { %2985 = shalt.err (!%p2982_p7)
}
  0x12   :  { %s3105_s28 = smov 128   ;;  %s3106_s29 = smov 8  }
  0x13   :  { %37 = dma.hbm_to_vmem [thread:$0]  %s4522_s1, 4096, %s32_s19, [#allocation10], %s3105_s28, %s3105_s28, %s3106_s29  }
  0x14   :  { %s3107_s7 = smov [#allocation12]   ;;  %s3108_s9 = smov [#allocation6]  }
  0x15   :  { %s53_s8 = sshll.u32 %s3107_s7, 4  ;;  %s19_s10 = sshll.u32 %s3108_s9, 4  ;;  %s54_s8 = int_to_ptr.vmem [resolvable:$true] %s53_s8  ;;  %s20_s10 = int_to_ptr.vmem [resolvable:$true] %s19_s10 }
  0x16   :  { %s2986_s13 = scalar_lea.hbm %s4524_s3, 320 }
  0x17   :  { %p2987_p8 = scmp.ne.s32.totalorder %s4524_s3, %s2986_s13  ;;  %p2990_p9 = scmp.lt.u32.totalorder %s2986_s13, %s4524_s3 }
  0x19   :  { %p2992_p10 = pnand %p2990_p9, %p2987_p8 }
  0x1b   :  { %2995 = shalt.err (!%p2992_p10)
}
  0x1c   :  { %s2996_s1 = scalar_lea.vmem %s54_s8, 320  ;;  %p3001_p12 = scmp.lt.s32.totalorder %s54_s8, %s54_s8 }
  0x1d   :  { %p2997_p11 = scmp.ne.s32.totalorder %s54_s8, %s2996_s1  ;;  %p3002_p13 = scmp.lt.s32.totalorder %s2996_s1, %s2996_s1 }
  0x1f   :  { %p3003_p0 = por %p3002_p13, %p3001_p12 }
  0x21   :  { %p3004_p1 = pnand %p3003_p0, %p2997_p11 }
  0x23   :  { %3007 = shalt.err (!%p3004_p1)
}
  0x24   :  { %s3109_s18 = smov 64   ;;  %s3110_s19 = smov 4  }
  0x25   :  { %59 = dma.hbm_to_vmem [thread:$0]  %s4524_s3, 320, %s54_s8, [#allocation13], %s3109_s18, %s3109_s18, %s3110_s19  }
  0x26   :  { %s3008_s24 = scalar_lea.hbm %s4521_s0, 2048 }
  0x27   :  { %p3009_p2 = scmp.ne.s32.totalorder %s4521_s0, %s3008_s24  ;;  %p3012_p3 = scmp.lt.u32.totalorder %s3008_s24, %s4521_s0 }
  0x29   :  { %p3014_p4 = pnand %p3012_p3, %p3009_p2 }
  0x2b   :  { %3017 = shalt.err (!%p3014_p4)
}
  0x2c   :  { %s3018_s29 = scalar_lea.vmem %s20_s10, 2048  ;;  %p3023_p6 = scmp.lt.s32.totalorder %s20_s10, %s20_s10 }
  0x2d   :  { %p3019_p5 = scmp.ne.s32.totalorder %s20_s10, %s3018_s29  ;;  %p3024_p7 = scmp.lt.s32.totalorder %s3018_s29, %s3018_s29 }
  0x2f   :  { %p3025_p8 = por %p3024_p7, %p3023_p6 }
  0x31   :  { %p3026_p9 = pnand %p3025_p8, %p3019_p5 }
  0x33   :  { %3029 = shalt.err (!%p3026_p9)
}
  0x34   :  { %25 = dma.hbm_to_vmem [thread:$0]  %s4521_s0, 2048, %s20_s10, [#allocation7], %s3109_s18, %s3109_s18, %s3110_s19  }
  0x35   :  { %s3111_s6 = smov [#allocation11]   ;;  %s3112_s8 = smov [#allocation14]  }
  0x36   :  { %s44_s7 = sshll.u32 %s3111_s6, 4  ;;  %s66_s9 = sshll.u32 %s3112_s8, 4  ;;  %s45_s7 = int_to_ptr.vmem [resolvable:$true] %s44_s7  ;;  %s67_s9 = int_to_ptr.vmem [resolvable:$true] %s66_s9 }
  0x37   :  { %s3030_s13 = scalar_lea.hbm %s4523_s2, 128 }
  0x38   :  { %p3031_p10 = scmp.ne.s32.totalorder %s4523_s2, %s3030_s13  ;;  %p3034_p11 = scmp.lt.u32.totalorder %s3030_s13, %s4523_s2 }
  0x3a   :  { %p3036_p12 = pnand %p3034_p11, %p3031_p10 }
  0x3c   :  { %3039 = shalt.err (!%p3036_p12)
}
  0x3d   :  { %s3040_s0 = scalar_lea.vmem %s45_s7, 128  ;;  %p3045_p0 = scmp.lt.s32.totalorder %s45_s7, %s45_s7 }
  0x3e   :  { %p3041_p13 = scmp.ne.s32.totalorder %s45_s7, %s3040_s0  ;;  %p3046_p1 = scmp.lt.s32.totalorder %s3040_s0, %s3040_s0 }
  0x40   :  { %p3047_p2 = por %p3046_p1, %p3045_p0 }
  0x42   :  { %p3048_p3 = pnand %p3047_p2, %p3041_p13 }
  0x44   :  { %3051 = shalt.err (!%p3048_p3)
}
  0x45   :  { %47 = dma.hbm_to_vmem [thread:$0]  %s4523_s2, 128, %s45_s7, [#allocation10]  }
  0x46   :  { %s3052_s20 = scalar_lea.hbm %s4525_s4, 16 }
  0x47   :  { %p3053_p4 = scmp.ne.s32.totalorder %s4525_s4, %s3052_s20  ;;  %p3056_p5 = scmp.lt.u32.totalorder %s3052_s20, %s4525_s4 }
  0x49   :  { %p3058_p6 = pnand %p3056_p5, %p3053_p4 }
  0x4b   :  { %3061 = shalt.err (!%p3058_p6)
}
  0x4c   :  { %s3062_s25 = scalar_lea.vmem %s67_s9, 16  ;;  %s3066_s26 = scalar_lea.vmem %s67_s9, 32 }
  0x4d   :  { %p3063_p7 = scmp.ne.s32.totalorder %s67_s9, %s3062_s25  ;;  %p3067_p8 = scmp.lt.s32.totalorder %s67_s9, %s67_s9 }
  0x4e   :  { %p3068_p9 = scmp.lt.s32.totalorder %s3066_s26, %s3062_s25 }
  0x50   :  { %p3069_p10 = por %p3068_p9, %p3067_p8 }
  0x52   :  { %p3070_p11 = pnand %p3069_p10, %p3063_p7 }
  0x54   :  { %3073 = shalt.err (!%p3070_p11)
}
  0x55   :  { %69 = dma.hbm_to_vmem [thread:$0]  %s4525_s4, 16, %s67_s9, [#allocation13]  }
  0x56   :  { %3096 = dma.done.wait [#allocation7], 2048  }
  0x57   :  { %3097 = vsyncadd [#allocation7], 4294965248 }
  0x58   :  { %3098 = dma.done.wait [#allocation10], 4224  }
  0x59   :  { %3099 = vsyncadd [#allocation10], 4294963072 }
  0x5a   :  { %3100 = dma.done.wait [#allocation13], 336  }
  0x5b   :  { %3101 = vsyncadd [#allocation13], 4294966960  ;;  %v3113_v0 = vmov 0   ;;  %v2858_v1 = vld [vmem:[#allocation12] sm:$0xff]   ;;  %v2859_v2 = vld [vmem:[#allocation12 + $0x8] sm:$0xff]   ;;  %vm236_vm0 = vcmask 310272  }
  0x5c   :  { %2649 = vset.pattern.permute.xlu1 %v3113_v0  ;;  %2650 = vset.pattern.permute.xlu0 %v3113_v0  ;;  %v2860_v3 = vld [vmem:[#allocation12 + $0x10] ss:$0 sps:$4 sm:$0x77]   ;;  %v2861_v4 = vld [vmem:[#allocation6] sm:$0xff]   ;;  %vm285_vm1 = vcmask 1042432   ;;  %v2862_v6 = vld [vmem:[#allocation6 + $0x8] sm:$0xff]  }
  0x5d   :  { %2559 = vmatprep.subr.bf16.mxu0 %v2858_v1  ;;  %2565 = vmatprep.mubr.msk.bf16.mxu0 %vm236_vm0, %v2861_v4  ;;  %v287_v5 = vsel %vm285_vm1, %v2860_v3, 0  ;;  %v2863_v7 = vld [vmem:[#allocation6 + $0x10] sm:$0xff]   ;;  %v3216_v8 = vld [vmem:[#allocation9] sm:$0xff]  ;;  %v2864_v9 = vld [vmem:[#allocation6 + $0x18] sm:$0xff]   ;;  %s3115_s4 = smov 32   ;;  %s3116_s28 = smov 96  }
  0x5e   :  { %2560 = vmatpush3.bf16.msra.mxu0 %v2858_v1  ;;  %966 = vperm.xlu1 %2649, %v3216_v8   ;;  %v3219_v10 = vld [vmem:[#allocation9 + $0x10] sm:$0xff]  ;;  %v2865_v11 = vld [vmem:[#allocation6 + $0x20] sm:$0xff]   ;;  %v3221_v12 = vld [vmem:[#allocation9 + $0x8] sm:$0xff]  ;;  %s3119_s29 = smov 16   ;;  %s3120_s3 = smov 112  }
  0x5f   :  { %2561 = vmatprep.subr.bf16.mxu0 %v2859_v2  ;;  %969 = vperm.xlu0 %2650, %v3221_v12   ;;  %v3226_v13 = vld [vmem:[#allocation9 + $0x18] sm:$0xff]  ;;  %v875_v14 = vld [vmem:[#allocation9 + $0x40] sm:$0xff]  ;;  %v2866_v15 = vld [vmem:[#allocation6 + $0x28] sm:$0xff]   ;;  %s3122_s30 = smov [#allocation15]  }
  0x60   :  { %v3230_v16 = vld [vmem:[#allocation9 + $0x20] sm:$0xff]  ;;  %v3232_v17 = vld [vmem:[#allocation9 + $0x50] sm:$0xff]  ;;  %v3237_v19 = vld [vmem:[#allocation9 + $0x28] sm:$0xff]  ;;  %s2388_s6 = sshll.u32 %s3122_s30, 4  ;;  %s2389_s6 = int_to_ptr.vmem [resolvable:$true] %s2388_s6 }
  0x61   :  { %v2867_v18 = vld [vmem:[#allocation6 + $0x30] sm:$0xff]   ;;  %v879_v20 = vld [vmem:[#allocation9 + $0x60] sm:$0xff]  ;;  %v2868_v21 = vld [vmem:[#allocation6 + $0x38] sm:$0xff]   ;;  %s3074_s7 = scalar_lea.vmem %s2389_s6, 128  ;;  %p3079_p13 = scmp.lt.s32.totalorder %s2389_s6, %s2389_s6 }
  0x62   :  { %2562 = vmatpush3.bf16.msra.mxu0 %v2859_v2  ;;  %972 = vperm.xlu1 %2649, %v3219_v10   ;;  %v3241_v22 = vld [vmem:[#allocation9 + $0x30] sm:$0xff]  ;;  %v2869_v24 = vld [vmem:[#allocation6 + $0x40] sm:$0xff]   ;;  %v3245_v25 = vld [vmem:[#allocation9 + $0x38] sm:$0xff]  ;;  %p3075_p12 = scmp.ne.s32.totalorder %s2389_s6, %s3074_s7  ;;  %p3080_p0 = scmp.lt.s32.totalorder %s3074_s7, %s3074_s7 }
  0x63   :  { %2629 = vmatprep.subr.msk.bf16.mxu0 %vm285_vm1, %v2860_v3  ;;  %990 = vperm.xlu0 %2650, %v875_v14   ;;  %v881_v23 = vld [vmem:[#allocation9 + $0x70] sm:$0xff]  ;;  %v883_v26 = vld [vmem:[#allocation9 + $0x80] sm:$0xff]  ;;  %v2870_v27 = vld [vmem:[#allocation6 + $0x48] sm:$0xff]  }
  0x64   :  { %v3249_v28 = vld [vmem:[#allocation9 + $0x48] sm:$0xff]  ;;  %v885_v29 = vld [vmem:[#allocation9 + $0x90] sm:$0xff]  ;;  %v3253_v31 = vld [vmem:[#allocation9 + $0x58] sm:$0xff]  ;;  %p3081_p1 = por %p3080_p0, %p3079_p13 }
  0x65   :  { %v2871_v30 = vld [vmem:[#allocation6 + $0x50] sm:$0xff]   ;;  %v887_v32 = vld [vmem:[#allocation9 + $0xa0] sm:$0xff]  ;;  %v2872_v33 = vld [vmem:[#allocation6 + $0x58] sm:$0xff]  }
  0x66   :  { %2564 = vmatpush3.bf16.msra.mxu0 %v287_v5  ;;  %975 = vperm.xlu1 %2649, %v3226_v13   ;;  %v3257_v34 = vld [vmem:[#allocation9 + $0x68] sm:$0xff]  ;;  %v889_v35 = vld [vmem:[#allocation9 + $0xb0] sm:$0xff]  ;;  %v2873_v36 = vld [vmem:[#allocation6 + $0x60] sm:$0xff]   ;;  %v4546_v5 = vlaneseq  ;;  %p3082_p2 = pnand %p3081_p1, %p3075_p12 }
  0x67   :  { %996 = vperm.xlu0 %2650, %v3232_v17   ;;  %v3261_v37 = vld [vmem:[#allocation9 + $0x78] sm:$0xff]  ;;  %v891_v38 = vld [vmem:[#allocation9 + $0xc0] sm:$0xff]  ;;  %v2874_v39 = vld [vmem:[#allocation6 + $0x68] sm:$0xff]  }
  0x68   :  { %v884_v40 = vld [vmem:[#allocation9 + $0x88] sm:$0xff]  ;;  %v893_v41 = vld [vmem:[#allocation9 + $0xd0] sm:$0xff]  ;;  %v3266_v43 = vld [vmem:[#allocation9 + $0x98] sm:$0xff] }
  0x69   :  { %2566 = vmatmul.mubr.msk.bf16.vlgmr.msra.gmra.mrb[0].mxu0 %vm236_vm0, %v2862_v6  ;;  %v2875_v42 = vld [vmem:[#allocation6 + $0x70] sm:$0xff]   ;;  %v895_v44 = vld [vmem:[#allocation9 + $0xe0] sm:$0xff]  ;;  %v2876_v45 = vld [vmem:[#allocation6 + $0x78] sm:$0xff]  }
  0x6a   :  { %2569 = vmatprep.mubr.msk.bf16.mxu0 %vm236_vm0, %v2863_v7  ;;  %978 = vperm.xlu1 %2649, %v3230_v16   ;;  %v888_v46 = vld [vmem:[#allocation9 + $0xa8] sm:$0xff]  ;;  %v897_v47 = vld [vmem:[#allocation9 + $0xf0] sm:$0xff]  ;;  %v3271_v48 = vld [vmem:[#allocation9 + $0xb8] sm:$0xff]  ;;  %v3309_v7 = vand.u32 127, %v4546_v5 }
  0x6b   :  { %1002 = vperm.xlu0 %2650, %v879_v20   ;;  %v892_v49 = vld [vmem:[#allocation9 + $0xc8] sm:$0xff]  ;;  %v894_v50 = vld [vmem:[#allocation9 + $0xd8] sm:$0xff] }
  0x6c   :  { %v896_v51 = vld [vmem:[#allocation9 + $0xe8] sm:$0xff]  ;;  %v898_v52 = vld [vmem:[#allocation9 + $0xf8] sm:$0xff] }
  0x6e   :  { %981 = vperm.xlu1 %2649, %v3237_v19  }
  0x6f   :  { %1008 = vperm.xlu0 %2650, %v881_v23  }
  0x71   :  { %2570 = vmatmul.mubr.msk.bf16.gmra.mrb[4].mxu0 %vm236_vm0, %v2864_v9 }
  0x72   :  { %2573 = vmatprep.mubr.msk.bf16.mxu0 %vm236_vm0, %v2865_v11  ;;  %984 = vperm.xlu1 %2649, %v3241_v22  }
  0x73   :  { %1014 = vperm.xlu0 %2650, %v883_v26  }
  0x76   :  { %987 = vperm.xlu1 %2649, %v3245_v25  }
  0x77   :  { %1020 = vperm.xlu0 %2650, %v885_v29  }
  0x79   :  { %2574 = vmatmul.mubr.msk.bf16.gmra.mrb[8].mxu0 %vm236_vm0, %v2866_v15 }
  0x7a   :  { %2577 = vmatprep.mubr.msk.bf16.mxu0 %vm236_vm0, %v2867_v18  ;;  %993 = vperm.xlu1 %2649, %v3249_v28   ;;  %v3114_v18 = vmov 1.0|1.0  }
  0x7b   :  { %1026 = vperm.xlu0 %2650, %v887_v32  }
  0x7e   :  { %999 = vperm.xlu1 %2649, %v3253_v31  }
  0x7f   :  { %1032 = vperm.xlu0 %2650, %v889_v35  }
  0x81   :  { %2578 = vmatmul.mubr.msk.bf16.gmra.mrb[12].mxu0 %vm236_vm0, %v2868_v21 }
  0x82   :  { %2581 = vmatprep.mubr.msk.bf16.mxu0 %vm236_vm0, %v2869_v24  ;;  %1005 = vperm.xlu1 %2649, %v3257_v34  }
  0x83   :  { %1038 = vperm.xlu0 %2650, %v891_v38  }
  0x86   :  { %1011 = vperm.xlu1 %2649, %v3261_v37  }
  0x87   :  { %1044 = vperm.xlu0 %2650, %v893_v41  }
  0x89   :  { %2582 = vmatmul.mubr.msk.bf16.gmra.mrb[16].mxu0 %vm236_vm0, %v2870_v27 }
  0x8a   :  { %2585 = vmatprep.mubr.msk.bf16.mxu0 %vm236_vm0, %v2871_v30  ;;  %1017 = vperm.xlu1 %2649, %v884_v40  }
  0x8b   :  { %1050 = vperm.xlu0 %2650, %v895_v44  }
  0x8e   :  { %1023 = vperm.xlu1 %2649, %v3266_v43  }
  0x8f   :  { %1056 = vperm.xlu0 %2650, %v897_v47  }
  0x91   :  { %2586 = vmatmul.mubr.msk.bf16.gmra.mrb[20].mxu0 %vm236_vm0, %v2872_v33 }
  0x92   :  { %2589 = vmatprep.mubr.msk.bf16.mxu0 %vm236_vm0, %v2873_v36  ;;  %1029 = vperm.xlu1 %2649, %v888_v46   ;;  %v3517_v36 = vld [vmem:[#allocation14] ss:$0 sm:$0xff] }
  0x96   :  { %1035 = vperm.xlu1 %2649, %v3271_v48  }
  0x99   :  { %2590 = vmatmul.mubr.msk.bf16.gmra.mrb[24].mxu0 %vm236_vm0, %v2874_v39 }
  0x9a   :  { %2593 = vmatprep.mubr.msk.bf16.mxu0 %vm236_vm0, %v2875_v42  ;;  %1041 = vperm.xlu1 %2649, %v892_v49  }
  0x9e   :  { %1047 = vperm.xlu1 %2649, %v894_v50  }
  0xa1   :  { %2594 = vmatmul.mubr.msk.bf16.gmra.mrb[28].mxu0 %vm236_vm0, %v2876_v45 }
  0xa2   :  { %1053 = vperm.xlu1 %2649, %v896_v51  }
  0xa6   :  { %1059 = vperm.xlu1 %2649, %v898_v52  }
  0xdd   :  { %v3274_v53 = vpop.permute.xlu1 %966 }
  0xde   :  { %v3278_v55 = vpop.permute.xlu0 %969  ;;  %vm1061_vm2 = vcmp.eq.s32.totalorder %v3274_v53, %v3309_v7 }
  0xdf   :  { %4666 = vst [vmem:[#allocation20_spill] sm:$0xff] %v3278_v55  ;;  %vm4533_vm3 = vcmp.eq.s32.totalorder %v3278_v55, %v3309_v7 }
  0xe0   :  { %vm2599_vm6 = vmpackc.low %vm4533_vm3, %vm1061_vm2 }
  0xe1   :  { %v3276_v54 = vpop.permute.xlu1 %972 }
  0xe2   :  { %v3282_v57 = vpop.permute.xlu0 %990  ;;  %vm1063_vm7 = vcmp.eq.s32.totalorder %v3276_v54, %v3309_v7 }
  0xe3   :  { %4667 = vst [vmem:[#allocation21_spill] sm:$0xff] %v3282_v57 }
  0xe5   :  { %v3280_v56 = vpop.permute.xlu1 %975 }
  0xe6   :  { %v3286_v59 = vpop.permute.xlu0 %996  ;;  %vm1064_vm8 = vcmp.eq.s32.totalorder %v3280_v56, %v3309_v7 }
  0xe7   :  { %4668 = vst [vmem:[#allocation22_spill] sm:$0xff] %v3286_v59  ;;  %vm2603_vm12 = vmpackc.low %vm1064_vm8, %vm1063_vm7 }
  0xe9   :  { %v3284_v58 = vpop.permute.xlu1 %978 }
  0xea   :  { %v3290_v61 = vpop.permute.xlu0 %1002  ;;  %vm1065_vm13 = vcmp.eq.s32.totalorder %v3284_v58, %v3309_v7 }
  0xeb   :  { %4670 = vst [vmem:[#allocation24_spill] sm:$0xff] %v3290_v61 }
  0xed   :  { %v3288_v60 = vpop.permute.xlu1 %981 }
  0xee   :  { %4669 = vst [vmem:[#allocation23_spill] sm:$0xff] %v3288_v60  ;;  %v3294_v63 = vpop.permute.xlu0 %1008  ;;  %vm1066_vm14 = vcmp.eq.s32.totalorder %v3288_v60, %v3309_v7 }
  0xef   :  { %4671 = vst [vmem:[#allocation25_spill] sm:$0xff] %v3294_v63 }
  0xf1   :  { %v3292_v62 = vpop.permute.xlu1 %984 }
  0xf2   :  { %v3298_v1 = vpop.permute.xlu0 %1014 }
  0xf3   :  { %4672 = vst [vmem:[#allocation26_spill] sm:$0xff] %v3298_v1  ;;  %vm4528_vm4 = vcmp.eq.s32.totalorder %v3298_v1, %v3309_v7 }
  0xf5   :  { %v3296_v0 = vpop.permute.xlu1 %987 }
  0xf6   :  { %v3304_v4 = vpop.permute.xlu0 %1020 }
  0xf7   :  { %4675 = vst [vmem:[#allocation29_spill] sm:$0xff] %v3304_v4  ;;  %vm4532_vm10 = vcmp.eq.s32.totalorder %v3304_v4, %v3309_v7 }
  0xf9   :  { %v3300_v2 = vpop.permute.xlu1 %993 }
  0xfa   :  { %4673 = vst [vmem:[#allocation27_spill] sm:$0xff] %v3300_v2  ;;  %v3311_v9 = vpop.permute.xlu0 %1026 }
  0xfb   :  { %4677 = vst [vmem:[#allocation31_spill] sm:$0xff] %v3311_v9  ;;  %vm4530_vm0 = vcmp.eq.s32.totalorder %v3311_v9, %v3309_v7 }
  0xfd   :  { %v3302_v3 = vpop.permute.xlu1 %999 }
  0xfe   :  { %4674 = vst [vmem:[#allocation28_spill] sm:$0xff] %v3302_v3  ;;  %v3323_v15 = vpop.permute.xlu0 %1032 }
  0xff   :  { %4680 = vst [vmem:[#allocation34_spill] sm:$0xff] %v3323_v15 }
 0x101   :  { %v3306_v6 = vpop.permute.xlu1 %1005 }
 0x102   :  { %4676 = vst [vmem:[#allocation30_spill] sm:$0xff] %v3306_v6  ;;  %v3367_v21 = vpop.permute.xlu0 %1038 }
 0x103   :  { %4682 = vst [vmem:[#allocation36_spill] sm:$0xff] %v3367_v21 }
 0x105   :  { %v3313_v11 = vpop.permute.xlu1 %1011 }
 0x106   :  { %4678 = vst [vmem:[#allocation32_spill] sm:$0xff] %v3313_v11  ;;  %v3399_v26 = vpop.permute.xlu0 %1044 }
 0x107   :  { %4685 = vst [vmem:[#allocation39_spill] sm:$0xff] %v3399_v26 }
 0x109   :  { %v3321_v14 = vpop.permute.xlu1 %1017 }
 0x10a   :  { %4679 = vst [vmem:[#allocation33_spill] sm:$0xff] %v3321_v14  ;;  %vm4527_vm5 = vcmp.eq.s32.totalorder %v3321_v14, %v3309_v7  ;;  %v3443_v29 = vpop.permute.xlu0 %1050 }
 0x10b   :  { %vm2597_vm9 = vmpackc.low %vm4527_vm5, %vm4528_vm4  ;;  %vm4535_vm5 = vcmp.eq.s32.totalorder %v3323_v15, %v3309_v7  ;;  %4687 = vst [vmem:[#allocation41_spill] sm:$0xff] %v3443_v29 }
 0x10c   :  { %2598 = vmatprep.subr.msk.bf16.mxu1 %vm2597_vm9, %v3114_v18  ;;  %vm1067_vm9 = vcmp.eq.s32.totalorder %v3292_v62, %v3309_v7 }
 0x10d   :  { %2600 = vmatpush3.bf16.msk.msra.mxu1 %vm2599_vm6, %v3114_v18  ;;  %v3347_v20 = vpop.permute.xlu1 %1023  ;;  %vm2607_vm6 = vmpackc.low %vm1066_vm14, %vm1065_vm13 }
 0x10e   :  { %4681 = vst [vmem:[#allocation35_spill] sm:$0xff] %v3347_v20  ;;  %vm4531_vm11 = vcmp.eq.s32.totalorder %v3347_v20, %v3309_v7  ;;  %v3475_v33 = vpop.permute.xlu0 %1056 }
 0x10f   :  { %vm2601_vm15 = vmpackc.low %vm4531_vm11, %vm4532_vm10  ;;  %vm4538_vm11 = vcmp.eq.s32.totalorder %v3367_v21, %v3309_v7  ;;  %4690 = vst [vmem:[#allocation44_spill] sm:$0xff] %v3475_v33 }
 0x110   :  { %2602 = vmatprep.subr.msk.bf16.mxu1 %vm2601_vm15, %v3114_v18  ;;  %vm1068_vm15 = vcmp.eq.s32.totalorder %v3296_v0, %v3309_v7 }
 0x111   :  { %2604 = vmatpush3.bf16.msk.msra.mxu1 %vm2603_vm12, %v3114_v18  ;;  %v3373_v23 = vpop.permute.xlu1 %1029 }
 0x112   :  { %4683 = vst [vmem:[#allocation37_spill] sm:$0xff] %v3373_v23  ;;  %vm4529_vm1 = vcmp.eq.s32.totalorder %v3373_v23, %v3309_v7 }
 0x113   :  { %vm2605_vm12 = vmpackc.low %vm4529_vm1, %vm4530_vm0 }
 0x114   :  { %2606 = vmatprep.subr.msk.bf16.mxu1 %vm2605_vm12, %v3114_v18  ;;  %vm2611_vm1 = vmpackc.low %vm1068_vm15, %vm1067_vm9  ;;  %vm4539_vm12 = vcmp.eq.s32.totalorder %v3282_v57, %v3309_v7 }
 0x115   :  { %2608 = vmatpush3.bf16.msk.msra.mxu1 %vm2607_vm6, %v3114_v18  ;;  %v3397_v24 = vpop.permute.xlu1 %1035  ;;  %vm4536_vm6 = vcmp.eq.s32.totalorder %v3300_v2, %v3309_v7 }
 0x116   :  { %4684 = vst [vmem:[#allocation38_spill] sm:$0xff] %v3397_v24  ;;  %vm4534_vm4 = vcmp.eq.s32.totalorder %v3397_v24, %v3309_v7  ;;  %vm2615_vm3 = vmpackc.low %vm4536_vm6, %vm4539_vm12  ;;  %vm4605_vm12 = vcmp.eq.s32.totalorder %v3443_v29, %v3309_v7 }
 0x117   :  { %vm2609_vm0 = vmpackc.low %vm4534_vm4, %vm4535_vm5  ;;  %vm4540_vm4 = vcmp.eq.s32.totalorder %v3302_v3, %v3309_v7  ;;  %vm4542_vm5 = vcmp.eq.s32.totalorder %v3399_v26, %v3309_v7 }
 0x118   :  { %2610 = vmatprep.subr.msk.bf16.mxu1 %vm2609_vm0, %v3114_v18  ;;  %vm4543_vm0 = vcmp.eq.s32.totalorder %v3286_v59, %v3309_v7 }
 0x119   :  { %2612 = vmatpush3.bf16.msk.msra.mxu1 %vm2611_vm1, %v3114_v18  ;;  %v3423_v27 = vpop.permute.xlu1 %1041 }
 0x11a   :  { %4686 = vst [vmem:[#allocation40_spill] sm:$0xff] %v3423_v27  ;;  %vm4537_vm10 = vcmp.eq.s32.totalorder %v3423_v27, %v3309_v7 }
 0x11b   :  { %vm2613_vm1 = vmpackc.low %vm4537_vm10, %vm4538_vm11  ;;  %vm4544_vm11 = vcmp.eq.s32.totalorder %v3306_v6, %v3309_v7 }
 0x11c   :  { %2614 = vmatprep.subr.msk.bf16.mxu1 %vm2613_vm1, %v3114_v18  ;;  %vm2619_vm10 = vmpackc.low %vm4540_vm4, %vm4543_vm0  ;;  %vm4545_vm1 = vcmp.eq.s32.totalorder %v3290_v61, %v3309_v7  ;;  %vm4602_vm0 = vcmp.eq.s32.totalorder %v3475_v33, %v3309_v7 }
 0x11d   :  { %2616 = vmatpush3.bf16.msk.msra.mxu1 %vm2615_vm3, %v3114_v18  ;;  %v3449_v30 = vpop.permute.xlu1 %1047 }
 0x11e   :  { %4688 = vst [vmem:[#allocation42_spill] sm:$0xff] %v3449_v30  ;;  %vm4541_vm6 = vcmp.eq.s32.totalorder %v3449_v30, %v3309_v7 }
 0x11f   :  { %vm2617_vm3 = vmpackc.low %vm4541_vm6, %vm4542_vm5 }
 0x120   :  { %2618 = vmatprep.subr.msk.bf16.mxu1 %vm2617_vm3, %v3114_v18  ;;  %vm2623_vm6 = vmpackc.low %vm4544_vm11, %vm4545_vm1  ;;  %vm1075_vm3 = vcmp.eq.s32.totalorder %v3294_v63, %v3309_v7 }
 0x121   :  { %2620 = vmatpush3.bf16.msk.msra.mxu1 %vm2619_vm10, %v3114_v18  ;;  %v3473_v32 = vpop.permute.xlu1 %1053  ;;  %vm4658_vm10 = vcmp.eq.s32.totalorder %v3313_v11, %v3309_v7 }
 0x122   :  { %4689 = vst [vmem:[#allocation43_spill] sm:$0xff] %v3473_v32  ;;  %vm1090_vm4 = vcmp.eq.s32.totalorder %v3473_v32, %v3309_v7  ;;  %vm2627_vm1 = vmpackc.low %vm4658_vm10, %vm1075_vm3 }
 0x123   :  { %vm2621_vm5 = vmpackc.low %vm1090_vm4, %vm4605_vm12  ;;  %vm906_vm12 = vcmp.lt.s32.totalorder %v3245_v25, 8 }
 0x124   :  { %2622 = vmatprep.subr.msk.bf16.mxu1 %vm2621_vm5, %v3114_v18 }
 0x125   :  { %2624 = vmatpush3.bf16.msk.msra.mxu1 %vm2623_vm6, %v3114_v18  ;;  %v3499_v35 = vpop.permute.xlu1 %1059  ;;  %vm4603_vm6 = vcmask 130048  }
 0x126   :  { %4691 = vst [vmem:[#allocation45_spill] sm:$0xff] %v3499_v35  ;;  %vm4604_vm11 = vcmp.eq.s32.totalorder %v3499_v35, %v3309_v7 }
 0x127   :  { %vm2625_vm5 = vmpackc.low %vm4604_vm11, %vm4602_vm0  ;;  %vm899_vm0 = vcmp.lt.s32.totalorder %v3216_v8, 8  ;;  %vm900_vm11 = vcmp.lt.s32.totalorder %v3221_v12, 8 }
 0x128   :  { %2626 = vmatprep.subr.msk.bf16.mxu1 %vm2625_vm5, %v3114_v18  ;;  %vm901_vm5 = vcmp.lt.s32.totalorder %v3219_v10, 8 }
 0x129   :  { %2628 = vmatpush3.bf16.msk.msra.mxu1 %vm2627_vm1, %v3114_v18  ;;  %vm94_vm1 = vcmask 64512  }
 0x13c   :  { %v2567_v38 = vpop.f32.mrb[0].mxu0 }
 0x13d   :  { %v3520_v39 = vadd.f32 %v2567_v38, %v3517_v36  ;;  %v323_v40 = vpop.f32.mrb[1].mxu0 }
 0x13e   :  { %v3523_v41 = vadd.f32 %v3517_v36, %v323_v40  ;;  %v2568_v42 = vpop.f32.mrb[2].mxu0 }
 0x13f   :  { %4692 = vst [vmem:[#allocation46_spill] sm:$0xff] %v3520_v39  ;;  %486 = vrot.lane.b32.xlu1 %v3520_v39, %s3115_s4  ;;  %v326_v44 = vpop.f32.mrb[3].mxu0  ;;  %v3530_v45 = vadd.f32 %v2568_v42, %v3517_v36 }
 0x140   :  { %4693 = vst [vmem:[#allocation47_spill] sm:$0xff] %v3523_v41  ;;  %482 = vrot.lane.b32.xlu0 %v3523_v41, %s3115_s4  ;;  %v3533_v46 = vadd.f32 %v3517_v36, %v326_v44 }
 0x141   :  { %4694 = vst [vmem:[#allocation48_spill] sm:$0xff] %v3530_v45 }
 0x142   :  { %4695 = vst [vmem:[#allocation49_spill] sm:$0xff] %v3533_v46 }
 0x143   :  { %488 = vrot.lane.b32.xlu1 %v3530_v45, %s3115_s4 }
 0x144   :  { %v2571_v47 = vpop.f32.mrb[4].mxu0  ;;  %484 = vrot.lane.b32.xlu0 %v3533_v46, %s3115_s4 }
 0x145   :  { %v3540_v49 = vadd.f32 %v2571_v47, %v3517_v36  ;;  %v339_v50 = vpop.f32.mrb[5].mxu0 }
 0x146   :  { %v2572_v51 = vpop.f32.mrb[6].mxu0  ;;  %v3550_v38 = vadd.f32 %v3517_v36, %v339_v50 }
 0x147   :  { %4696 = vst [vmem:[#allocation50_spill] sm:$0xff] %v3540_v49  ;;  %v3543_v52 = vadd.f32 %v2572_v51, %v3517_v36  ;;  %v342_v18 = vpop.f32.mrb[7].mxu0 }
 0x148   :  { %494 = vrot.lane.b32.xlu0 %v3540_v49, %s3115_s4  ;;  %4698 = vst [vmem:[#allocation52_spill] sm:$0xff] %v3550_v38  ;;  %v3553_v40 = vadd.f32 %v3517_v36, %v342_v18 }
 0x149   :  { %4697 = vst [vmem:[#allocation51_spill] sm:$0xff] %v3543_v52  ;;  %496 = vrot.lane.b32.xlu1 %v3543_v52, %s3115_s4 }
 0x14a   :  { %4699 = vst [vmem:[#allocation53_spill] sm:$0xff] %v3553_v40 }
 0x14c   :  { %v2575_v42 = vpop.f32.mrb[8].mxu0  ;;  %490 = vrot.lane.b32.xlu0 %v3550_v38, %s3115_s4 }
 0x14d   :  { %v3558_v44 = vadd.f32 %v2575_v42, %v3517_v36  ;;  %v355_v47 = vpop.f32.mrb[9].mxu0  ;;  %492 = vrot.lane.b32.xlu1 %v3553_v40, %s3115_s4 }
 0x14e   :  { %v2576_v51 = vpop.f32.mrb[10].mxu0  ;;  %v3570_v18 = vadd.f32 %v3517_v36, %v355_v47 }
 0x14f   :  { %4700 = vst [vmem:[#allocation54_spill] sm:$0xff] %v3558_v44  ;;  %v3563_v5 = vadd.f32 %v2576_v51, %v3517_v36  ;;  %v358_v50 = vpop.f32.mrb[11].mxu0 }
 0x150   :  { %502 = vrot.lane.b32.xlu0 %v3558_v44, %s3115_s4  ;;  %4702 = vst [vmem:[#allocation56_spill] sm:$0xff] %v3570_v18  ;;  %v3573_v42 = vadd.f32 %v3517_v36, %v358_v50 }
 0x151   :  { %4701 = vst [vmem:[#allocation55_spill] sm:$0xff] %v3563_v5  ;;  %504 = vrot.lane.b32.xlu1 %v3563_v5, %s3115_s4 }
 0x152   :  { %4703 = vst [vmem:[#allocation57_spill] sm:$0xff] %v3573_v42 }
 0x154   :  { %v2579_v33 = vpop.f32.mrb[12].mxu0  ;;  %498 = vrot.lane.b32.xlu0 %v3570_v18, %s3115_s4 }
 0x155   :  { %v3578_v51 = vadd.f32 %v2579_v33, %v3517_v36  ;;  %v371_v35 = vpop.f32.mrb[13].mxu0  ;;  %500 = vrot.lane.b32.xlu1 %v3573_v42, %s3115_s4 }
 0x156   :  { %v2580_v29 = vpop.f32.mrb[14].mxu0  ;;  %v3590_v50 = vadd.f32 %v3517_v36, %v371_v35 }
 0x157   :  { %4704 = vst [vmem:[#allocation58_spill] sm:$0xff] %v3578_v51  ;;  %v3583_v32 = vadd.f32 %v2580_v29, %v3517_v36  ;;  %v374_v47 = vpop.f32.mrb[15].mxu0 }
 0x158   :  { %510 = vrot.lane.b32.xlu0 %v3578_v51, %s3115_s4  ;;  %4706 = vst [vmem:[#allocation60_spill] sm:$0xff] %v3590_v50  ;;  %v3593_v33 = vadd.f32 %v3517_v36, %v374_v47 }
 0x159   :  { %4705 = vst [vmem:[#allocation59_spill] sm:$0xff] %v3583_v32  ;;  %512 = vrot.lane.b32.xlu1 %v3583_v32, %s3115_s4 }
 0x15a   :  { %4707 = vst [vmem:[#allocation61_spill] sm:$0xff] %v3593_v33 }
 0x15c   :  { %v2583_v30 = vpop.f32.mrb[16].mxu0  ;;  %506 = vrot.lane.b32.xlu0 %v3590_v50, %s3115_s4 }
 0x15d   :  { %v3598_v29 = vadd.f32 %v2583_v30, %v3517_v36  ;;  %v387_v27 = vpop.f32.mrb[17].mxu0  ;;  %508 = vrot.lane.b32.xlu1 %v3593_v33, %s3115_s4 }
 0x15e   :  { %v2584_v21 = vpop.f32.mrb[18].mxu0  ;;  %v3610_v47 = vadd.f32 %v3517_v36, %v387_v27 }
 0x15f   :  { %4708 = vst [vmem:[#allocation62_spill] sm:$0xff] %v3598_v29  ;;  %v3603_v26 = vadd.f32 %v2584_v21, %v3517_v36  ;;  %v390_v35 = vpop.f32.mrb[19].mxu0 }
 0x160   :  { %518 = vrot.lane.b32.xlu0 %v3598_v29, %s3115_s4  ;;  %4710 = vst [vmem:[#allocation64_spill] sm:$0xff] %v3610_v47  ;;  %v3613_v30 = vadd.f32 %v3517_v36, %v390_v35 }
 0x161   :  { %4709 = vst [vmem:[#allocation63_spill] sm:$0xff] %v3603_v26  ;;  %520 = vrot.lane.b32.xlu1 %v3603_v26, %s3115_s4 }
 0x162   :  { %4711 = vst [vmem:[#allocation65_spill] sm:$0xff] %v3613_v30 }
 0x164   :  { %v2587_v24 = vpop.f32.mrb[20].mxu0  ;;  %514 = vrot.lane.b32.xlu0 %v3610_v47, %s3115_s4 }
 0x165   :  { %v3618_v21 = vadd.f32 %v2587_v24, %v3517_v36  ;;  %v403_v15 = vpop.f32.mrb[21].mxu0  ;;  %516 = vrot.lane.b32.xlu1 %v3613_v30, %s3115_s4 }
 0x166   :  { %v2588_v23 = vpop.f32.mrb[22].mxu0  ;;  %v3630_v35 = vadd.f32 %v3517_v36, %v403_v15 }
 0x167   :  { %4712 = vst [vmem:[#allocation66_spill] sm:$0xff] %v3618_v21  ;;  %v3623_v9 = vadd.f32 %v2588_v23, %v3517_v36  ;;  %v406_v27 = vpop.f32.mrb[23].mxu0 }
 0x168   :  { %526 = vrot.lane.b32.xlu0 %v3618_v21, %s3115_s4  ;;  %4714 = vst [vmem:[#allocation68_spill] sm:$0xff] %v3630_v35  ;;  %v3633_v24 = vadd.f32 %v3517_v36, %v406_v27 }
 0x169   :  { %4713 = vst [vmem:[#allocation67_spill] sm:$0xff] %v3623_v9  ;;  %528 = vrot.lane.b32.xlu1 %v3623_v9, %s3115_s4 }
 0x16a   :  { %4715 = vst [vmem:[#allocation69_spill] sm:$0xff] %v3633_v24 }
 0x16c   :  { %v2591_v14 = vpop.f32.mrb[24].mxu0  ;;  %522 = vrot.lane.b32.xlu0 %v3630_v35, %s3115_s4 }
 0x16d   :  { %v3638_v23 = vadd.f32 %v2591_v14, %v3517_v36  ;;  %v419_v1 = vpop.f32.mrb[25].mxu0  ;;  %524 = vrot.lane.b32.xlu1 %v3633_v24, %s3115_s4 }
 0x16e   :  { %v2592_v20 = vpop.f32.mrb[26].mxu0  ;;  %v3650_v27 = vadd.f32 %v3517_v36, %v419_v1 }
 0x16f   :  { %4716 = vst [vmem:[#allocation70_spill] sm:$0xff] %v3638_v23  ;;  %v3643_v4 = vadd.f32 %v2592_v20, %v3517_v36  ;;  %v422_v15 = vpop.f32.mrb[27].mxu0 }
 0x170   :  { %534 = vrot.lane.b32.xlu0 %v3638_v23, %s3115_s4  ;;  %4718 = vst [vmem:[#allocation72_spill] sm:$0xff] %v3650_v27  ;;  %v3653_v14 = vadd.f32 %v3517_v36, %v422_v15 }
 0x171   :  { %4717 = vst [vmem:[#allocation71_spill] sm:$0xff] %v3643_v4  ;;  %536 = vrot.lane.b32.xlu1 %v3643_v4, %s3115_s4 }
 0x172   :  { %4719 = vst [vmem:[#allocation73_spill] sm:$0xff] %v3653_v14 }
 0x174   :  { %v2595_v6 = vpop.f32.mrb[28].mxu0  ;;  %530 = vrot.lane.b32.xlu0 %v3650_v27, %s3115_s4 }
 0x175   :  { %v3658_v20 = vadd.f32 %v2595_v6, %v3517_v36  ;;  %v435_v61 = vpop.f32.mrb[29].mxu0  ;;  %532 = vrot.lane.b32.xlu1 %v3653_v14, %s3115_s4 }
 0x176   :  { %v2596_v11 = vpop.f32.mrb[30].mxu0  ;;  %v3670_v15 = vadd.f32 %v3517_v36, %v435_v61 }
 0x177   :  { %4720 = vst [vmem:[#allocation74_spill] sm:$0xff] %v3658_v20  ;;  %v3663_v63 = vadd.f32 %v2596_v11, %v3517_v36  ;;  %v438_v1 = vpop.f32.mrb[31].mxu0 }
 0x178   :  { %542 = vrot.lane.b32.xlu0 %v3658_v20, %s3115_s4  ;;  %4722 = vst [vmem:[#allocation76_spill] sm:$0xff] %v3670_v15  ;;  %v3673_v6 = vadd.f32 %v3517_v36, %v438_v1 }
 0x179   :  { %4721 = vst [vmem:[#allocation75_spill] sm:$0xff] %v3663_v63  ;;  %544 = vrot.lane.b32.xlu1 %v3663_v63, %s3115_s4 }
 0x17a   :  { %4723 = vst [vmem:[#allocation77_spill] sm:$0xff] %v3673_v6 }
 0x17c   :  { %538 = vrot.lane.b32.xlu0 %v3670_v15, %s3115_s4 }
 0x17d   :  { %540 = vrot.lane.b32.xlu1 %v3673_v6, %s3115_s4 }
 0x1b1   :  { %v487_v11 = vpop.permute.xlu1 %486 }
 0x1b2   :  { %v580_v2 = vmul.f32 %v487_v11, %v3520_v39  ;;  %v483_v57 = vpop.permute.xlu0 %482 }
 0x1b3   :  { %v578_v61 = vmul.f32 %v483_v57, %v3523_v41 }
 0x1b4   :  { %646 = vrot.lane.b32.xlu0 %v580_v2, %s3116_s28 }
 0x1b5   :  { %v489_v55 = vpop.permute.xlu1 %488 }
 0x1b6   :  { %v581_v3 = vmul.f32 %v489_v55, %v3530_v45  ;;  %v485_v36 = vpop.permute.xlu0 %484 }
 0x1b7   :  { %v579_v1 = vmul.f32 %v485_v36, %v3533_v46 }
 0x1b8   :  { %648 = vrot.lane.b32.xlu1 %v581_v3, %s3116_s28  ;;  %642 = vrot.lane.b32.xlu0 %v578_v61, %s3116_s28 }
 0x1ba   :  { %v495_v59 = vpop.permute.xlu0 %494 }
 0x1bb   :  { %v584_v60 = vmul.f32 %v495_v59, %v3540_v49  ;;  %v497_v11 = vpop.permute.xlu1 %496 }
 0x1bc   :  { %644 = vrot.lane.b32.xlu1 %v579_v1, %s3116_s28  ;;  %v585_v2 = vmul.f32 %v497_v11, %v3543_v52 }
 0x1bd   :  { %654 = vrot.lane.b32.xlu0 %v584_v60, %s3116_s28 }
 0x1be   :  { %v491_v57 = vpop.permute.xlu0 %490 }
 0x1bf   :  { %v582_v55 = vmul.f32 %v491_v57, %v3550_v38  ;;  %v493_v45 = vpop.permute.xlu1 %492 }
 0x1c0   :  { %656 = vrot.lane.b32.xlu1 %v585_v2, %s3116_s28  ;;  %v583_v3 = vmul.f32 %v493_v45, %v3553_v40 }
 0x1c1   :  { %650 = vrot.lane.b32.xlu0 %v582_v55, %s3116_s28 }
 0x1c2   :  { %v503_v61 = vpop.permute.xlu0 %502 }
 0x1c3   :  { %v588_v59 = vmul.f32 %v503_v61, %v3558_v44  ;;  %v505_v36 = vpop.permute.xlu1 %504 }
 0x1c4   :  { %652 = vrot.lane.b32.xlu1 %v583_v3, %s3116_s28  ;;  %v589_v60 = vmul.f32 %v505_v36, %v3563_v5 }
 0x1c5   :  { %662 = vrot.lane.b32.xlu0 %v588_v59, %s3116_s28 }
 0x1c6   :  { %v499_v1 = vpop.permute.xlu0 %498 }
 0x1c7   :  { %v586_v11 = vmul.f32 %v499_v1, %v3570_v18  ;;  %v501_v57 = vpop.permute.xlu1 %500 }
 0x1c8   :  { %664 = vrot.lane.b32.xlu1 %v589_v60, %s3116_s28  ;;  %v587_v45 = vmul.f32 %v501_v57, %v3573_v42 }
 0x1c9   :  { %658 = vrot.lane.b32.xlu0 %v586_v11, %s3116_s28 }
 0x1ca   :  { %v511_v2 = vpop.permute.xlu0 %510 }
 0x1cb   :  { %v592_v55 = vmul.f32 %v511_v2, %v3578_v51  ;;  %v513_v61 = vpop.permute.xlu1 %512 }
 0x1cc   :  { %660 = vrot.lane.b32.xlu1 %v587_v45, %s3116_s28  ;;  %v593_v3 = vmul.f32 %v513_v61, %v3583_v32 }
 0x1cd   :  { %670 = vrot.lane.b32.xlu0 %v592_v55, %s3116_s28 }
 0x1ce   :  { %v507_v59 = vpop.permute.xlu0 %506 }
 0x1cf   :  { %v590_v36 = vmul.f32 %v507_v59, %v3590_v50  ;;  %v509_v1 = vpop.permute.xlu1 %508 }
 0x1d0   :  { %672 = vrot.lane.b32.xlu1 %v593_v3, %s3116_s28  ;;  %v591_v60 = vmul.f32 %v509_v1, %v3593_v33 }
 0x1d1   :  { %666 = vrot.lane.b32.xlu0 %v590_v36, %s3116_s28 }
 0x1d2   :  { %v519_v11 = vpop.permute.xlu0 %518 }
 0x1d3   :  { %v596_v57 = vmul.f32 %v519_v11, %v3598_v29  ;;  %v521_v2 = vpop.permute.xlu1 %520 }
 0x1d4   :  { %668 = vrot.lane.b32.xlu1 %v591_v60, %s3116_s28  ;;  %v597_v45 = vmul.f32 %v521_v2, %v3603_v26 }
 0x1d5   :  { %678 = vrot.lane.b32.xlu0 %v596_v57, %s3116_s28 }
 0x1d6   :  { %v515_v55 = vpop.permute.xlu0 %514 }
 0x1d7   :  { %v594_v61 = vmul.f32 %v515_v55, %v3610_v47  ;;  %v517_v59 = vpop.permute.xlu1 %516 }
 0x1d8   :  { %680 = vrot.lane.b32.xlu1 %v597_v45, %s3116_s28  ;;  %v595_v3 = vmul.f32 %v517_v59, %v3613_v30 }
 0x1d9   :  { %674 = vrot.lane.b32.xlu0 %v594_v61, %s3116_s28 }
 0x1da   :  { %v527_v36 = vpop.permute.xlu0 %526 }
 0x1db   :  { %v600_v1 = vmul.f32 %v527_v36, %v3618_v21  ;;  %v529_v11 = vpop.permute.xlu1 %528 }
 0x1dc   :  { %676 = vrot.lane.b32.xlu1 %v595_v3, %s3116_s28  ;;  %v601_v60 = vmul.f32 %v529_v11, %v3623_v9 }
 0x1dd   :  { %686 = vrot.lane.b32.xlu0 %v600_v1, %s3116_s28 }
 0x1de   :  { %v523_v57 = vpop.permute.xlu0 %522 }
 0x1df   :  { %v598_v2 = vmul.f32 %v523_v57, %v3630_v35  ;;  %v525_v55 = vpop.permute.xlu1 %524 }
 0x1e0   :  { %688 = vrot.lane.b32.xlu1 %v601_v60, %s3116_s28  ;;  %v599_v45 = vmul.f32 %v525_v55, %v3633_v24 }
 0x1e1   :  { %682 = vrot.lane.b32.xlu0 %v598_v2, %s3116_s28 }
 0x1e2   :  { %v535_v61 = vpop.permute.xlu0 %534 }
 0x1e3   :  { %v604_v59 = vmul.f32 %v535_v61, %v3638_v23  ;;  %v537_v36 = vpop.permute.xlu1 %536  ;;  %v2961_v23 = vld [vmem:[#allocation9 + $0xe8] sm:$0xff] }
 0x1e4   :  { %684 = vrot.lane.b32.xlu1 %v599_v45, %s3116_s28  ;;  %v605_v3 = vmul.f32 %v537_v36, %v3643_v4 }
 0x1e5   :  { %694 = vrot.lane.b32.xlu0 %v604_v59, %s3116_s28 }
 0x1e6   :  { %v531_v1 = vpop.permute.xlu0 %530 }
 0x1e7   :  { %v602_v11 = vmul.f32 %v531_v1, %v3650_v27  ;;  %v533_v57 = vpop.permute.xlu1 %532  ;;  %v2962_v27 = vld [vmem:[#allocation9 + $0xf0] sm:$0xff] }
 0x1e8   :  { %696 = vrot.lane.b32.xlu1 %v605_v3, %s3116_s28  ;;  %v603_v60 = vmul.f32 %v533_v57, %v3653_v14 }
 0x1e9   :  { %690 = vrot.lane.b32.xlu0 %v602_v11, %s3116_s28 }
 0x1ea   :  { %v543_v2 = vpop.permute.xlu0 %542 }
 0x1eb   :  { %v608_v55 = vmul.f32 %v543_v2, %v3658_v20  ;;  %v545_v61 = vpop.permute.xlu1 %544 }
 0x1ec   :  { %692 = vrot.lane.b32.xlu1 %v603_v60, %s3116_s28  ;;  %v609_v45 = vmul.f32 %v545_v61, %v3663_v63 }
 0x1ed   :  { %702 = vrot.lane.b32.xlu0 %v608_v55, %s3116_s28 }
 0x1ee   :  { %v539_v59 = vpop.permute.xlu0 %538 }
 0x1ef   :  { %v606_v36 = vmul.f32 %v539_v59, %v3670_v15  ;;  %v541_v1 = vpop.permute.xlu1 %540 }
 0x1f0   :  { %704 = vrot.lane.b32.xlu1 %v609_v45, %s3116_s28  ;;  %v607_v3 = vmul.f32 %v541_v1, %v3673_v6 }
 0x1f1   :  { %698 = vrot.lane.b32.xlu0 %v606_v36, %s3116_s28 }
 0x1f4   :  { %700 = vrot.lane.b32.xlu1 %v607_v3, %s3116_s28 }
 0x226   :  { %v647_v11 = vpop.permute.xlu0 %646 }
 0x227   :  { %v745_v57 = vsel %vm4603_vm6, %v647_v11, 0.0 }
 0x228   :  { %746 = vadd.xlane.f32.xlu0 %v745_v57 }
 0x22a   :  { %v649_v60 = vpop.permute.xlu1 %648  ;;  %v643_v2 = vpop.permute.xlu0 %642 }
 0x22b   :  { %v739_v55 = vsel %vm4603_vm6, %v643_v2, 0.0  ;;  %v748_v36 = vsel %vm4603_vm6, %v649_v60, 0.0 }
 0x22c   :  { %740 = vadd.xlane.f32.xlu0 %v739_v55 }
 0x22e   :  { %v645_v61 = vpop.permute.xlu1 %644 }
 0x22f   :  { %v655_v59 = vpop.permute.xlu0 %654  ;;  %v742_v45 = vsel %vm4603_vm6, %v645_v61, 0.0 }
 0x230   :  { %743 = vadd.xlane.f32.xlu1 %v742_v45  ;;  %749 = vadd.xlane.f32.xlu0 %v748_v36  ;;  %v757_v11 = vsel %vm4603_vm6, %v655_v59, 0.0 }
 0x232   :  { %v657_v1 = vpop.permute.xlu1 %656 }
 0x233   :  { %v651_v3 = vpop.permute.xlu0 %650  ;;  %v760_v32 = vsel %vm4603_vm6, %v657_v1, 0.0 }
 0x234   :  { %761 = vadd.xlane.f32.xlu0 %v760_v32  ;;  %758 = vadd.xlane.f32.xlu1 %v757_v11  ;;  %v751_v55 = vsel %vm4603_vm6, %v651_v3, 0.0 }
 0x236   :  { %v653_v57 = vpop.permute.xlu1 %652 }
 0x237   :  { %v663_v63 = vpop.permute.xlu0 %662  ;;  %v754_v2 = vsel %vm4603_vm6, %v653_v57, 0.0 }
 0x238   :  { %755 = vadd.xlane.f32.xlu0 %v754_v2  ;;  %752 = vadd.xlane.f32.xlu1 %v751_v55  ;;  %v769_v36 = vsel %vm4603_vm6, %v663_v63, 0.0 }
 0x23a   :  { %v665_v61 = vpop.permute.xlu1 %664 }
 0x23b   :  { %v659_v60 = vpop.permute.xlu0 %658  ;;  %v772_v45 = vsel %vm4603_vm6, %v665_v61, 0.0 }
 0x23c   :  { %773 = vadd.xlane.f32.xlu0 %v772_v45  ;;  %770 = vadd.xlane.f32.xlu1 %v769_v36  ;;  %v763_v11 = vsel %vm4603_vm6, %v659_v60, 0.0 }
 0x23e   :  { %v661_v1 = vpop.permute.xlu1 %660 }
 0x23f   :  { %v671_v59 = vpop.permute.xlu0 %670  ;;  %v766_v32 = vsel %vm4603_vm6, %v661_v1, 0.0 }
 0x240   :  { %767 = vadd.xlane.f32.xlu0 %v766_v32  ;;  %764 = vadd.xlane.f32.xlu1 %v763_v11  ;;  %v781_v55 = vsel %vm4603_vm6, %v671_v59, 0.0 }
 0x242   :  { %v673_v57 = vpop.permute.xlu1 %672 }
 0x243   :  { %v667_v3 = vpop.permute.xlu0 %666  ;;  %v784_v2 = vsel %vm4603_vm6, %v673_v57, 0.0 }
 0x244   :  { %785 = vadd.xlane.f32.xlu0 %v784_v2  ;;  %782 = vadd.xlane.f32.xlu1 %v781_v55  ;;  %v775_v36 = vsel %vm4603_vm6, %v667_v3, 0.0 }
 0x246   :  { %v669_v61 = vpop.permute.xlu1 %668 }
 0x247   :  { %v679_v63 = vpop.permute.xlu0 %678  ;;  %v778_v45 = vsel %vm4603_vm6, %v669_v61, 0.0 }
 0x248   :  { %779 = vadd.xlane.f32.xlu0 %v778_v45  ;;  %776 = vadd.xlane.f32.xlu1 %v775_v36  ;;  %v793_v11 = vsel %vm4603_vm6, %v679_v63, 0.0 }
 0x24a   :  { %v681_v1 = vpop.permute.xlu1 %680 }
 0x24b   :  { %v675_v60 = vpop.permute.xlu0 %674  ;;  %v796_v32 = vsel %vm4603_vm6, %v681_v1, 0.0 }
 0x24c   :  { %797 = vadd.xlane.f32.xlu0 %v796_v32  ;;  %794 = vadd.xlane.f32.xlu1 %v793_v11  ;;  %v787_v55 = vsel %vm4603_vm6, %v675_v60, 0.0 }
 0x24e   :  { %v677_v57 = vpop.permute.xlu1 %676 }
 0x24f   :  { %v687_v59 = vpop.permute.xlu0 %686  ;;  %v790_v2 = vsel %vm4603_vm6, %v677_v57, 0.0 }
 0x250   :  { %791 = vadd.xlane.f32.xlu0 %v790_v2  ;;  %788 = vadd.xlane.f32.xlu1 %v787_v55  ;;  %v805_v36 = vsel %vm4603_vm6, %v687_v59, 0.0 }
 0x252   :  { %v689_v61 = vpop.permute.xlu1 %688 }
 0x253   :  { %v683_v3 = vpop.permute.xlu0 %682  ;;  %v808_v45 = vsel %vm4603_vm6, %v689_v61, 0.0 }
 0x254   :  { %809 = vadd.xlane.f32.xlu0 %v808_v45  ;;  %806 = vadd.xlane.f32.xlu1 %v805_v36  ;;  %v799_v11 = vsel %vm4603_vm6, %v683_v3, 0.0 }
 0x256   :  { %v685_v1 = vpop.permute.xlu1 %684 }
 0x257   :  { %v695_v63 = vpop.permute.xlu0 %694  ;;  %v802_v32 = vsel %vm4603_vm6, %v685_v1, 0.0 }
 0x258   :  { %803 = vadd.xlane.f32.xlu0 %v802_v32  ;;  %800 = vadd.xlane.f32.xlu1 %v799_v11  ;;  %v817_v55 = vsel %vm4603_vm6, %v695_v63, 0.0 }
 0x25a   :  { %v697_v57 = vpop.permute.xlu1 %696 }
 0x25b   :  { %v691_v60 = vpop.permute.xlu0 %690  ;;  %v820_v2 = vsel %vm4603_vm6, %v697_v57, 0.0 }
 0x25c   :  { %821 = vadd.xlane.f32.xlu0 %v820_v2  ;;  %818 = vadd.xlane.f32.xlu1 %v817_v55  ;;  %v811_v36 = vsel %vm4603_vm6, %v691_v60, 0.0  ;;  %v4606_v55 = vmov 0.0  }
 0x25d   :  { %95 = vst.msk [vmem:[#allocation5] sm:$0xff] %vm94_vm1, %v4606_v55  ;;  %96 = vst.msk [vmem:[#allocation5 + $0x8] sm:$0xff] %vm94_vm1, %v4606_v55 }
 0x25e   :  { %v693_v61 = vpop.permute.xlu1 %692 }
 0x25f   :  { %v703_v59 = vpop.permute.xlu0 %702  ;;  %v814_v45 = vsel %vm4603_vm6, %v693_v61, 0.0 }
 0x260   :  { %815 = vadd.xlane.f32.xlu0 %v814_v45  ;;  %812 = vadd.xlane.f32.xlu1 %v811_v36  ;;  %v829_v32 = vsel %vm4603_vm6, %v703_v59, 0.0 }
 0x262   :  { %v705_v1 = vpop.permute.xlu1 %704 }
 0x263   :  { %v832_v3 = vsel %vm4603_vm6, %v705_v1, 0.0  ;;  %v699_v11 = vpop.permute.xlu0 %698 }
 0x264   :  { %833 = vadd.xlane.f32.xlu0 %v832_v3  ;;  %830 = vadd.xlane.f32.xlu1 %v829_v32  ;;  %v823_v2 = vsel %vm4603_vm6, %v699_v11, 0.0 }
 0x266   :  { %v701_v57 = vpop.permute.xlu1 %700 }
 0x267   :  { %v826_v63 = vsel %vm4603_vm6, %v701_v57, 0.0  ;;  %vm902_vm6 = vcmp.lt.s32.totalorder %v3226_v13, 8 }
 0x268   :  { %827 = vadd.xlane.f32.xlu0 %v826_v63  ;;  %824 = vadd.xlane.f32.xlu1 %v823_v2 }
 0x2b5   :  { %v747_v60 = vpop.xlane.xlu0 %746 }
 0x2b6   :  { %v837_v61 = vmul.f32 0.25, %v747_v60 }
 0x2b8   :  { %v3780_v59 = vsel %vm901_vm5, %v837_v61, -1e+30  ;;  %vm905_vm5 = vcmp.lt.s32.totalorder %v3241_v22, 8 }
 0x2b9   :  { %4724 = vst [vmem:[#allocation78_spill] sm:$0xff] %v3780_v59  ;;  %1169 = vperm.xlu0 %2650, %v3780_v59   ;;  %v741_v45 = vpop.xlane.xlu0 %740 }
 0x2ba   :  { %v835_v36 = vmul.f32 0.25, %v741_v45 }
 0x2bc   :  { %v3784_v1 = vsel %vm899_vm0, %v835_v36, -1e+30  ;;  %vm903_vm0 = vcmp.lt.s32.totalorder %v3230_v16, 8 }
 0x2bd   :  { %v744_v3 = vpop.xlane.xlu1 %743  ;;  %1159 = vperm.xlu1 %2649, %v3784_v1   ;;  %v750_v32 = vpop.xlane.xlu0 %749 }
 0x2be   :  { %v838_v11 = vmul.f32 0.25, %v750_v32  ;;  %v836_v10 = vmul.f32 0.25, %v744_v3 }
 0x2c0   :  { %v3788_v57 = vsel %vm902_vm6, %v838_v11, -1e+30  ;;  %v3795_v13 = vsel %vm900_vm11, %v836_v10, -1e+30  ;;  %vm904_vm6 = vcmp.lt.s32.totalorder %v3237_v19, 8  ;;  %vm909_vm11 = vcmp.lt.s32.totalorder %v3232_v17, 8 }
 0x2c1   :  { %4725 = vst [vmem:[#allocation79_spill] sm:$0xff] %v3788_v57  ;;  %v759_v8 = vpop.xlane.xlu1 %758  ;;  %1174 = vperm.xlu1 %2649, %v3788_v57   ;;  %v762_v63 = vpop.xlane.xlu0 %761  ;;  %4727 = vst [vmem:[#allocation81_spill] sm:$0xff] %v3795_v13 }
 0x2c2   :  { %v841_v2 = vmul.f32 0.25, %v759_v8  ;;  %v842_v60 = vmul.f32 0.25, %v762_v63 }
 0x2c4   :  { %v3793_v61 = vsel %vm905_vm5, %v841_v2, -1e+30  ;;  %v3803_v32 = vsel %vm906_vm12, %v842_v60, -1e+30  ;;  %v2947_v2 = vld [vmem:[#allocation9 + $0x40] sm:$0xff]  ;;  %vm910_vm12 = vcmp.lt.s32.totalorder %v3253_v31, 8 }
 0x2c5   :  { %4726 = vst [vmem:[#allocation80_spill] sm:$0xff] %v3793_v61  ;;  %v753_v45 = vpop.xlane.xlu1 %752  ;;  %1189 = vperm.xlu0 %2650, %v3793_v61   ;;  %1164 = vperm.xlu1 %2649, %v3795_v13   ;;  %v756_v12 = vpop.xlane.xlu0 %755  ;;  %4729 = vst [vmem:[#allocation83_spill] sm:$0xff] %v3803_v32  ;;  %vm907_vm5 = vcmp.lt.s32.totalorder %v2947_v2, 8  ;;  %v4799_v13 = vld [vmem:[#allocation44_spill] sm:$0xff] }
 0x2c6   :  { %v839_v22 = vmul.f32 0.25, %v753_v45  ;;  %v840_v36 = vmul.f32 0.25, %v756_v12 }
 0x2c8   :  { %v3801_v3 = vsel %vm903_vm0, %v839_v22, -1e+30  ;;  %v3811_v63 = vsel %vm904_vm6, %v840_v36, -1e+30  ;;  %vm908_vm0 = vcmp.lt.s32.totalorder %v3249_v28, 8  ;;  %v2948_v36 = vld [vmem:[#allocation9 + $0x70] sm:$0xff] }
 0x2c9   :  { %4728 = vst [vmem:[#allocation82_spill] sm:$0xff] %v3801_v3  ;;  %v771_v11 = vpop.xlane.xlu1 %770  ;;  %1179 = vperm.xlu0 %2650, %v3801_v3   ;;  %1194 = vperm.xlu1 %2649, %v3803_v32   ;;  %v774_v16 = vpop.xlane.xlu0 %773  ;;  %4731 = vst [vmem:[#allocation85_spill] sm:$0xff] %v3811_v63  ;;  %vm913_vm6 = vcmp.lt.s32.totalorder %v2948_v36, 8  ;;  %v4782_v3 = vld [vmem:[#allocation34_spill] sm:$0xff] }
 0x2ca   :  { %v845_v25 = vmul.f32 0.25, %v771_v11  ;;  %v846_v10 = vmul.f32 0.25, %v774_v16 }
 0x2cc   :  { %v3809_v8 = vsel %vm909_vm11, %v845_v25, -1e+30  ;;  %v3818_v22 = vsel %vm910_vm12, %v846_v10, -1e+30  ;;  %vm912_vm12 = vcmp.lt.s32.totalorder %v3257_v34, 8 }
 0x2cd   :  { %4730 = vst [vmem:[#allocation84_spill] sm:$0xff] %v3809_v8  ;;  %v765_v60 = vpop.xlane.xlu1 %764  ;;  %1209 = vperm.xlu0 %2650, %v3809_v8   ;;  %1184 = vperm.xlu1 %2649, %v3811_v63   ;;  %v768_v17 = vpop.xlane.xlu0 %767  ;;  %4733 = vst [vmem:[#allocation87_spill] sm:$0xff] %v3818_v22  ;;  %v4758_v8 = vld [vmem:[#allocation20_spill] sm:$0xff]  ;;  %v4768_v63 = vld [vmem:[#allocation30_spill] sm:$0xff] }
 0x2ce   :  { %v843_v19 = vmul.f32 0.25, %v765_v60  ;;  %v844_v45 = vmul.f32 0.25, %v768_v17  ;;  %v2949_v17 = vld [vmem:[#allocation9 + $0x60] sm:$0xff] }
 0x2cf   :  { %vm911_vm11 = vcmp.lt.s32.totalorder %v2949_v17, 8 }
 0x2d0   :  { %v3816_v12 = vsel %vm907_vm5, %v843_v19, -1e+30  ;;  %v3825_v60 = vsel %vm908_vm0, %v844_v45, -1e+30  ;;  %vm914_vm5 = vcmp.lt.s32.totalorder %v3261_v37, 8  ;;  %v2950_v45 = vld [vmem:[#allocation9 + $0x90] sm:$0xff] }
 0x2d1   :  { %4732 = vst [vmem:[#allocation86_spill] sm:$0xff] %v3816_v12  ;;  %v783_v11 = vpop.xlane.xlu1 %782  ;;  %1199 = vperm.xlu0 %2650, %v3816_v12   ;;  %1214 = vperm.xlu1 %2649, %v3818_v22   ;;  %v786_v31 = vpop.xlane.xlu0 %785  ;;  %4735 = vst [vmem:[#allocation89_spill] sm:$0xff] %v3825_v60  ;;  %vm917_vm0 = vcmp.lt.s32.totalorder %v2950_v45, 8 }
 0x2d2   :  { %v849_v16 = vmul.f32 0.25, %v783_v11  ;;  %v850_v25 = vmul.f32 0.25, %v786_v31 }
 0x2d4   :  { %v3823_v2 = vsel %vm913_vm6, %v849_v16, -1e+30  ;;  %v3832_v11 = vsel %vm914_vm5, %v850_v25, -1e+30 }
 0x2d5   :  { %4734 = vst [vmem:[#allocation88_spill] sm:$0xff] %v3823_v2  ;;  %v777_v10 = vpop.xlane.xlu1 %776  ;;  %1229 = vperm.xlu0 %2650, %v3823_v2   ;;  %1204 = vperm.xlu1 %2649, %v3825_v60   ;;  %v780_v28 = vpop.xlane.xlu0 %779  ;;  %4737 = vst [vmem:[#allocation91_spill] sm:$0xff] %v3832_v11  ;;  %v4760_v60 = vld [vmem:[#allocation21_spill] sm:$0xff] }
 0x2d6   :  { %v847_v19 = vmul.f32 0.25, %v777_v10  ;;  %v848_v36 = vmul.f32 0.25, %v780_v28  ;;  %v2951_v28 = vld [vmem:[#allocation9 + $0x80] sm:$0xff] }
 0x2d7   :  { %vm915_vm6 = vcmp.lt.s32.totalorder %v2951_v28, 8 }
 0x2d8   :  { %v3830_v55 = vsel %vm911_vm11, %v847_v19, -1e+30  ;;  %v3839_v10 = vsel %vm912_vm12, %v848_v36, -1e+30  ;;  %vm918_vm11 = vcmp.lt.s32.totalorder %v3266_v43, 8  ;;  %v2953_v36 = vld [vmem:[#allocation9 + $0xb0] sm:$0xff] }
 0x2d9   :  { %4736 = vst [vmem:[#allocation90_spill] sm:$0xff] %v3830_v55  ;;  %v795_v31 = vpop.xlane.xlu1 %794  ;;  %1219 = vperm.xlu0 %2650, %v3830_v55   ;;  %1234 = vperm.xlu1 %2649, %v3832_v11   ;;  %v798_v37 = vpop.xlane.xlu0 %797  ;;  %4738 = vst [vmem:[#allocation92_spill] sm:$0xff] %v3839_v10  ;;  %vm921_vm12 = vcmp.lt.s32.totalorder %v2953_v36, 8  ;;  %v4756_v55 = vld [vmem:[#allocation28_spill] sm:$0xff] }
 0x2da   :  { %v853_v16 = vmul.f32 0.25, %v795_v31  ;;  %v854_v17 = vmul.f32 0.25, %v798_v37  ;;  %v2952_v37 = vld [vmem:[#allocation9 + $0x88] sm:$0xff] }
 0x2db   :  { %vm916_vm5 = vcmp.lt.s32.totalorder %v2952_v37, 8 }
 0x2dc   :  { %v3837_v51 = vsel %vm917_vm0, %v853_v16, -1e+30  ;;  %v3846_v31 = vsel %vm918_vm11, %v854_v17, -1e+30 }
 0x2dd   :  { %v789_v25 = vpop.xlane.xlu1 %788  ;;  %1249 = vperm.xlu0 %2650, %v3837_v51   ;;  %1224 = vperm.xlu1 %2649, %v3839_v10   ;;  %v792_v34 = vpop.xlane.xlu0 %791  ;;  %4739 = vst [vmem:[#allocation93_spill] sm:$0xff] %v3846_v31 }
 0x2de   :  { %v851_v19 = vmul.f32 0.25, %v789_v25  ;;  %v852_v45 = vmul.f32 0.25, %v792_v34  ;;  %v2954_v34 = vld [vmem:[#allocation9 + $0xa0] sm:$0xff] }
 0x2df   :  { %vm919_vm0 = vcmp.lt.s32.totalorder %v2954_v34, 8 }
 0x2e0   :  { %v3844_v20 = vsel %vm915_vm6, %v851_v19, -1e+30  ;;  %v3852_v25 = vsel %vm916_vm5, %v852_v45, -1e+30  ;;  %vm922_vm6 = vcmp.lt.s32.totalorder %v3271_v48, 8  ;;  %v2956_v45 = vld [vmem:[#allocation9 + $0xd0] sm:$0xff] }
 0x2e1   :  { %v807_v16 = vpop.xlane.xlu1 %806  ;;  %1239 = vperm.xlu0 %2650, %v3844_v20   ;;  %1254 = vperm.xlu1 %2649, %v3846_v31   ;;  %v810_v43 = vpop.xlane.xlu0 %809  ;;  %vm925_vm5 = vcmp.lt.s32.totalorder %v2956_v45, 8  ;;  %v4797_v31 = vld [vmem:[#allocation45_spill] sm:$0xff] }
 0x2e2   :  { %v857_v28 = vmul.f32 0.25, %v807_v16  ;;  %v858_v33 = vmul.f32 0.25, %v810_v43  ;;  %v2955_v43 = vld [vmem:[#allocation9 + $0xa8] sm:$0xff] }
 0x2e3   :  { %vm920_vm11 = vcmp.lt.s32.totalorder %v2955_v43, 8 }
 0x2e4   :  { %v3850_v6 = vsel %vm921_vm12, %v857_v28, -1e+30  ;;  %v3859_v16 = vsel %vm922_vm6, %v858_v33, -1e+30  ;;  %v2958_v33 = vld [vmem:[#allocation9 + $0xd8] sm:$0xff] }
 0x2e5   :  { %4740 = vst [vmem:[#allocation94_spill] sm:$0xff] %v3850_v6  ;;  %v801_v17 = vpop.xlane.xlu1 %800  ;;  %1269 = vperm.xlu0 %2650, %v3850_v6   ;;  %1244 = vperm.xlu1 %2649, %v3852_v25   ;;  %v804_v19 = vpop.xlane.xlu0 %803  ;;  %4742 = vst [vmem:[#allocation96_spill] sm:$0xff] %v3859_v16 }
 0x2e6   :  { %v855_v37 = vmul.f32 0.25, %v801_v17  ;;  %v856_v36 = vmul.f32 0.25, %v804_v19  ;;  %v2957_v19 = vld [vmem:[#allocation9 + $0xc0] sm:$0xff] }
 0x2e7   :  { %vm923_vm12 = vcmp.lt.s32.totalorder %v2957_v19, 8 }
 0x2e8   :  { %v3857_v50 = vsel %vm919_vm0, %v855_v37, -1e+30  ;;  %v3865_v17 = vsel %vm920_vm11, %v856_v36, -1e+30  ;;  %vm926_vm0 = vcmp.lt.s32.totalorder %v2958_v33, 8  ;;  %v2960_v33 = vld [vmem:[#allocation9 + $0xe0] sm:$0xff] }
 0x2e9   :  { %4741 = vst [vmem:[#allocation95_spill] sm:$0xff] %v3857_v50  ;;  %v819_v28 = vpop.xlane.xlu1 %818  ;;  %1259 = vperm.xlu0 %2650, %v3857_v50   ;;  %1274 = vperm.xlu1 %2649, %v3859_v16   ;;  %v822_v48 = vpop.xlane.xlu0 %821  ;;  %4744 = vst [vmem:[#allocation98_spill] sm:$0xff] %v3865_v17  ;;  %vm927_vm11 = vcmp.lt.s32.totalorder %v2960_v33, 8 }
 0x2ea   :  { %v861_v34 = vmul.f32 0.25, %v819_v28  ;;  %v862_v15 = vmul.f32 0.25, %v822_v48  ;;  %v2959_v48 = vld [vmem:[#allocation9 + $0xc8] sm:$0xff] }
 0x2eb   :  { %vm924_vm6 = vcmp.lt.s32.totalorder %v2959_v48, 8 }
 0x2ec   :  { %v3863_v5 = vsel %vm925_vm5, %v861_v34, -1e+30  ;;  %v3871_v28 = vsel %vm926_vm0, %v862_v15, -1e+30  ;;  %vm928_vm5 = vcmp.lt.s32.totalorder %v2961_v23, 8 }
 0x2ed   :  { %4743 = vst [vmem:[#allocation97_spill] sm:$0xff] %v3863_v5  ;;  %v813_v37 = vpop.xlane.xlu1 %812  ;;  %1289 = vperm.xlu0 %2650, %v3863_v5   ;;  %1264 = vperm.xlu1 %2649, %v3865_v17   ;;  %v816_v43 = vpop.xlane.xlu0 %815  ;;  %4746 = vst [vmem:[#allocation100_spill] sm:$0xff] %v3871_v28  ;;  %v4792_v17 = vld [vmem:[#allocation42_spill] sm:$0xff] }
 0x2ee   :  { %v859_v45 = vmul.f32 0.25, %v813_v37  ;;  %v860_v4 = vmul.f32 0.25, %v816_v43 }
 0x2f0   :  { %v3869_v44 = vsel %vm923_vm12, %v859_v45, -1e+30  ;;  %v3875_v19 = vsel %vm924_vm6, %v860_v4, -1e+30  ;;  %vm929_vm12 = vcmp.lt.s32.totalorder %v2962_v27, 8  ;;  %v2963_v4 = vld [vmem:[#allocation9 + $0xf8] sm:$0xff] }
 0x2f1   :  { %4745 = vst [vmem:[#allocation99_spill] sm:$0xff] %v3869_v44  ;;  %v831_v36 = vpop.xlane.xlu1 %830  ;;  %1279 = vperm.xlu0 %2650, %v3869_v44   ;;  %1294 = vperm.xlu1 %2649, %v3871_v28   ;;  %v834_v34 = vpop.xlane.xlu0 %833  ;;  %4747 = vst [vmem:[#allocation101_spill] sm:$0xff] %v3875_v19  ;;  %vm930_vm0 = vcmp.lt.s32.totalorder %v2963_v4, 8  ;;  %vm90_vm6 = vcmask 57344  }
 0x2f2   :  { %v865_v42 = vmul.f32 0.25, %v831_v36  ;;  %v866_v48 = vmul.f32 0.25, %v834_v34  ;;  %v3118_v36 = vmov -1e+30   ;;  %v4752_v34 = vmov 0.0  }
 0x2f3   :  { %91 = vst.msk [vmem:[#allocation2] sm:$0x1] %vm90_vm6, %v3118_v36  ;;  %92 = vst.msk [vmem:[#allocation3] sm:$0x1] %vm90_vm6, %v4752_v34  ;;  %v2438_v54 = vsel %vm1064_vm8, 1.0, %v4752_v34  ;;  %v2439_v56 = vsel %vm1065_vm13, 1.0, %v4752_v34 }
 0x2f4   :  { %v3884_v23 = vsel %vm929_vm12, %v865_v42, -1e+30  ;;  %v3886_v33 = vsel %vm930_vm0, %v866_v48, -1e+30  ;;  %93 = vst.msk [vmem:[#allocation4] sm:$0x1] %vm90_vm6, %v4752_v34  ;;  %vm4759_vm12 = vcmp.eq.s32.totalorder %v4758_v8, %v3309_v7  ;;  %vm4761_vm0 = vcmp.eq.s32.totalorder %v4760_v60, %v3309_v7 }
 0x2f5   :  { %v825_v37 = vpop.xlane.xlu1 %824  ;;  %1284 = vperm.xlu1 %2649, %v3875_v19   ;;  %v828_v43 = vpop.xlane.xlu0 %827  ;;  %4750 = vst [vmem:[#allocation104_spill] sm:$0xff] %v3884_v23  ;;  %4751 = vst [vmem:[#allocation105_spill] sm:$0xff] %v3886_v33  ;;  %v2440_v58 = vsel %vm1066_vm14, 1.0, %v4752_v34  ;;  %v2441_v10 = vsel %vm1067_vm9, 1.0, %v4752_v34  ;;  %v2442_v62 = vsel %vm1068_vm15, 1.0, %v4752_v34 }
 0x2f6   :  { %v863_v15 = vmul.f32 0.25, %v825_v37  ;;  %v864_v45 = vmul.f32 0.25, %v828_v43 }
 0x2f8   :  { %v3878_v14 = vsel %vm927_vm11, %v863_v15, -1e+30  ;;  %v3880_v18 = vsel %vm928_vm5, %v864_v45, -1e+30  ;;  %vm4757_vm5 = vcmp.eq.s32.totalorder %v4756_v55, %v3309_v7 }
 0x2f9   :  { %4748 = vst [vmem:[#allocation102_spill] sm:$0xff] %v3878_v14  ;;  %4749 = vst [vmem:[#allocation103_spill] sm:$0xff] %v3880_v18  ;;  %1299 = vperm.xlu0 %2650, %v3878_v14   ;;  %1304 = vperm.xlu1 %2649, %v3880_v18  }
 0x2fd   :  { %1309 = vperm.xlu0 %2650, %v3884_v23   ;;  %1314 = vperm.xlu1 %2649, %v3886_v33   ;;  %v4754_v23 = vld [vmem:[#allocation22_spill] sm:$0xff] }
 0x2fe   :  { %vm4755_vm11 = vcmp.eq.s32.totalorder %v4754_v23, %v3309_v7 }
 0x338   :  { %v1170_v37 = vpop.permute.xlu0 %1169 }
 0x339   :  { %v1319_v41 = vsel %vm1063_vm7, %v1170_v37, -1e+30 }
 0x33c   :  { %v1160_v27 = vpop.permute.xlu1 %1159 }
 0x33d   :  { %v1317_v47 = vsel %vm1061_vm2, %v1160_v27, -1e+30 }
 0x33e   :  { %v1350_v22 = vsel %vm94_vm1, %v1317_v47, -inf }
 0x340   :  { %v1175_v42 = vpop.permute.xlu1 %1174 }
 0x341   :  { %v1320_v11 = vsel %vm1064_vm8, %v1175_v42, -1e+30  ;;  %vm4809_vm8 = vcmp.eq.s32.totalorder %v4782_v3, %v3309_v7 }
 0x344   :  { %v1165_v43 = vpop.permute.xlu1 %1164  ;;  %v1190_v15 = vpop.permute.xlu0 %1189 }
 0x345   :  { %v1323_v29 = vsel %vm1067_vm9, %v1190_v15, -1e+30 }
 0x346   :  { %v1358_v15 = vsel %vm94_vm1, %v1323_v29, -inf  ;;  %v1352_v29 = vsel %vm94_vm1, %v1319_v41, -inf }
 0x347   :  { %v1359_v28 = vmax.f32 %v1352_v29, %v1358_v15 }
 0x348   :  { %v1195_v45 = vpop.permute.xlu1 %1194  ;;  %v1180_v48 = vpop.permute.xlu0 %1179 }
 0x349   :  { %v1324_v2 = vsel %vm1068_vm15, %v1195_v45, -1e+30  ;;  %v1321_v33 = vsel %vm1065_vm13, %v1180_v48, -1e+30  ;;  %v1353_v48 = vsel %vm94_vm1, %v1320_v11, -inf  ;;  %v4762_v11 = vld [vmem:[#allocation27_spill] sm:$0xff] }
 0x34a   :  { %v1360_v14 = vsel %vm94_vm1, %v1324_v2, -inf }
 0x34b   :  { %v1361_v12 = vmax.f32 %v1353_v48, %v1360_v14 }
 0x34c   :  { %v1185_v4 = vpop.permute.xlu1 %1184  ;;  %v1210_v52 = vpop.permute.xlu0 %1209 }
 0x34d   :  { %v1322_v37 = vsel %vm1066_vm14, %v1185_v4, -1e+30  ;;  %v1327_v27 = vsel %vm4755_vm11, %v1210_v52, -1e+30  ;;  %v1318_v4 = vsel %vm4759_vm12, %v1165_v43, -1e+30  ;;  %vm4763_vm11 = vcmp.eq.s32.totalorder %v4762_v11, %v3309_v7 }
 0x34e   :  { %v1354_v52 = vsel %vm94_vm1, %v1321_v33, -inf  ;;  %v1356_v5 = vsel %vm94_vm1, %v1322_v37, -inf  ;;  %v1366_v41 = vsel %vm94_vm1, %v1327_v27, -inf  ;;  %v4765_v33 = vld [vmem:[#allocation32_spill] sm:$0xff]  ;;  %vm4769_vm12 = vcmp.eq.s32.totalorder %v4768_v63, %v3309_v7 }
 0x34f   :  { %v1355_v32 = vmax.f32 %v1350_v22, %v1354_v52  ;;  %v1367_v48 = vmax.f32 %v1359_v28, %v1366_v41  ;;  %v4774_v28 = vld [vmem:[#allocation26_spill] sm:$0xff] }
 0x350   :  { %v1215_v9 = vpop.permute.xlu1 %1214  ;;  %v1200_v49 = vpop.permute.xlu0 %1199 }
 0x351   :  { %v1328_v42 = vsel %vm4757_vm5, %v1215_v9, -1e+30  ;;  %v1325_v9 = vsel %vm4761_vm0, %v1200_v49, -1e+30  ;;  %v4766_v49 = vld [vmem:[#allocation24_spill] sm:$0xff] }
 0x352   :  { %v1368_v47 = vsel %vm94_vm1, %v1328_v42, -inf  ;;  %vm4767_vm5 = vcmp.eq.s32.totalorder %v4766_v49, %v3309_v7  ;;  %v1351_v42 = vsel %vm94_vm1, %v1318_v4, -inf  ;;  %v4770_v4 = vld [vmem:[#allocation29_spill] sm:$0xff] }
 0x353   :  { %v1357_v14 = vmax.f32 %v1351_v42, %v1356_v5  ;;  %v1369_v44 = vmax.f32 %v1361_v12, %v1368_v47  ;;  %vm4771_vm0 = vcmp.eq.s32.totalorder %v4770_v4, %v3309_v7  ;;  %v4772_v5 = vld [vmem:[#allocation35_spill] sm:$0xff]  ;;  %v4776_v47 = vld [vmem:[#allocation33_spill] sm:$0xff] }
 0x354   :  { %v1205_v21 = vpop.permute.xlu1 %1204  ;;  %v1230_v40 = vpop.permute.xlu0 %1229 }
 0x355   :  { %v1326_v2 = vsel %vm4763_vm11, %v1205_v21, -1e+30  ;;  %v1331_v43 = vsel %vm1075_vm3, %v1230_v40, -1e+30  ;;  %v1362_v21 = vsel %vm94_vm1, %v1325_v9, -inf  ;;  %vm4773_vm11 = vcmp.eq.s32.totalorder %v4772_v5, %v3309_v7 }
 0x356   :  { %v1364_v40 = vsel %vm94_vm1, %v1326_v2, -inf  ;;  %v1374_v61 = vsel %vm94_vm1, %v1331_v43, -inf  ;;  %v1363_v6 = vmax.f32 %v1355_v32, %v1362_v21 }
 0x357   :  { %v1365_v41 = vmax.f32 %v1357_v14, %v1364_v40  ;;  %v1375_v43 = vmax.f32 %v1367_v48, %v1374_v61  ;;  %v4780_v14 = vld [vmem:[#allocation37_spill] sm:$0xff] }
 0x358   :  { %v1235_v36 = vpop.permute.xlu1 %1234  ;;  %v1220_v24 = vpop.permute.xlu0 %1219 }
 0x359   :  { %v1332_v15 = vsel %vm4658_vm10, %v1235_v36, -1e+30  ;;  %v1329_v37 = vsel %vm4767_vm5, %v1220_v24, -1e+30  ;;  %vm4775_vm5 = vcmp.eq.s32.totalorder %v4774_v28, %v3309_v7  ;;  %vm4777_vm10 = vcmp.eq.s32.totalorder %v4776_v47, %v3309_v7 }
 0x35a   :  { %v1376_v36 = vsel %vm94_vm1, %v1332_v15, -inf  ;;  %v1370_v16 = vsel %vm94_vm1, %v1329_v37, -inf }
 0x35b   :  { %v1371_v15 = vmax.f32 %v1363_v6, %v1370_v16  ;;  %v4784_v6 = vld [vmem:[#allocation38_spill] sm:$0xff] }
 0x35c   :  { %v1225_v38 = vpop.permute.xlu1 %1224  ;;  %v1250_v35 = vpop.permute.xlu0 %1249  ;;  %vm4810_vm13 = vcmp.eq.s32.totalorder %v4784_v6, %v3309_v7 }
 0x35d   :  { %v1330_v24 = vsel %vm4769_vm12, %v1225_v38, -1e+30  ;;  %v1335_v22 = vsel %vm4771_vm0, %v1250_v35, -1e+30  ;;  %v4778_v38 = vld [vmem:[#allocation31_spill] sm:$0xff]  ;;  %v1377_v35 = vmax.f32 %v1369_v44, %v1376_v36  ;;  %vm4781_vm0 = vcmp.eq.s32.totalorder %v4780_v14, %v3309_v7 }
 0x35e   :  { %vm4779_vm12 = vcmp.eq.s32.totalorder %v4778_v38, %v3309_v7  ;;  %v1372_v37 = vsel %vm94_vm1, %v1330_v24, -inf  ;;  %v1382_v42 = vsel %vm94_vm1, %v1335_v22, -inf  ;;  %v4786_v36 = vld [vmem:[#allocation39_spill] sm:$0xff]  ;;  %v4788_v22 = vld [vmem:[#allocation36_spill] sm:$0xff] }
 0x35f   :  { %v1373_v48 = vmax.f32 %v1365_v41, %v1372_v37  ;;  %vm4811_vm14 = vcmp.eq.s32.totalorder %v4788_v22, %v3309_v7  ;;  %vm4814_vm15 = vcmp.eq.s32.totalorder %v4786_v36, %v3309_v7 }
 0x360   :  { %v1255_v26 = vpop.permute.xlu1 %1254  ;;  %v1240_v39 = vpop.permute.xlu0 %1239 }
 0x361   :  { %v1336_v12 = vsel %vm4773_vm11, %v1255_v26, -1e+30  ;;  %v1333_v52 = vsel %vm4775_vm5, %v1240_v39, -1e+30  ;;  %vm4785_vm11 = vcmp.eq.s32.totalorder %v4784_v6, %v3309_v7  ;;  %vm4787_vm5 = vcmp.eq.s32.totalorder %v4786_v36, %v3309_v7 }
 0x362   :  { %v1384_v39 = vsel %vm94_vm1, %v1336_v12, -inf  ;;  %v1378_v21 = vsel %vm94_vm1, %v1333_v52, -inf  ;;  %v4790_v12 = vld [vmem:[#allocation40_spill] sm:$0xff]  ;;  %v1383_v52 = vmax.f32 %v1375_v43, %v1382_v42  ;;  %v2459_v6 = vsel %vm4811_vm14, 1.0, %v4752_v34 }
 0x363   :  { %vm4812_vm9 = vcmp.eq.s32.totalorder %v4790_v12, %v3309_v7  ;;  %vm4824_vm14 = vcmp.eq.s32.totalorder %v4765_v33, %v3309_v7 }
 0x364   :  { %v1245_v46 = vpop.permute.xlu1 %1244  ;;  %v1270_v30 = vpop.permute.xlu0 %1269 }
 0x365   :  { %v1334_v2 = vsel %vm4777_vm10, %v1245_v46, -1e+30  ;;  %vm4783_vm10 = vcmp.eq.s32.totalorder %v4782_v3, %v3309_v7  ;;  %v2458_v3 = vsel %vm4810_vm13, 1.0, %v4752_v34  ;;  %vm4823_vm13 = vcmp.eq.s32.totalorder %v4797_v31, %v3309_v7 }
 0x366   :  { %v1380_v40 = vsel %vm94_vm1, %v1334_v2, -inf  ;;  %v1339_v44 = vsel %vm4783_vm10, %v1270_v30, -1e+30  ;;  %v1379_v2 = vmax.f32 %v1371_v15, %v1378_v21  ;;  %vm4793_vm10 = vcmp.eq.s32.totalorder %v4792_v17, %v3309_v7 }
 0x367   :  { %v1381_v37 = vmax.f32 %v1373_v48, %v1380_v40 }
 0x368   :  { %v1275_v18 = vpop.permute.xlu1 %1274  ;;  %v1260_v45 = vpop.permute.xlu0 %1259 }
 0x369   :  { %v1337_v32 = vsel %vm4779_vm12, %v1260_v45, -1e+30  ;;  %v1340_v61 = vsel %vm4785_vm11, %v1275_v18, -1e+30  ;;  %vm4789_vm12 = vcmp.eq.s32.totalorder %v4788_v22, %v3309_v7  ;;  %v2460_v22 = vsel %vm4812_vm9, 1.0, %v4752_v34 }
 0x36a   :  { %v1386_v16 = vsel %vm94_vm1, %v1337_v32, -inf  ;;  %v1385_v32 = vmax.f32 %v1377_v35, %v1384_v39  ;;  %v1392_v57 = vsel %vm94_vm1, %v1340_v61, -inf  ;;  %v4795_v35 = vld [vmem:[#allocation41_spill] sm:$0xff]  ;;  %vm4885_vm9 = vcmask 130048  }
 0x36b   :  { %v1387_v50 = vmax.f32 %v1379_v2, %v1386_v16  ;;  %vm4796_vm11 = vcmp.eq.s32.totalorder %v4795_v35, %v3309_v7 }
 0x36c   :  { %v1265_v27 = vpop.permute.xlu1 %1264  ;;  %v1290_v29 = vpop.permute.xlu0 %1289 }
 0x36d   :  { %v1338_v46 = vsel %vm4781_vm0, %v1265_v27, -1e+30  ;;  %v1343_v24 = vsel %vm4787_vm5, %v1290_v29, -1e+30  ;;  %vm4791_vm0 = vcmp.eq.s32.totalorder %v4790_v12, %v3309_v7  ;;  %v1390_v29 = vsel %vm94_vm1, %v1339_v44, -inf }
 0x36e   :  { %v1388_v18 = vsel %vm94_vm1, %v1338_v46, -inf  ;;  %v1391_v40 = vmax.f32 %v1383_v52, %v1390_v29  ;;  %v1393_v44 = vmax.f32 %v1385_v32, %v1392_v57  ;;  %vm4798_vm5 = vcmp.eq.s32.totalorder %v4797_v31, %v3309_v7 }
 0x36f   :  { %v1389_v21 = vmax.f32 %v1381_v37, %v1388_v18  ;;  %v2461_v12 = vsel %vm4814_vm15, 1.0, %v4752_v34 }
 0x370   :  { %v1295_v9 = vpop.permute.xlu1 %1294  ;;  %v1280_v26 = vpop.permute.xlu0 %1279 }
 0x371   :  { %v1341_v27 = vsel %vm4789_vm12, %v1280_v26, -1e+30  ;;  %v1344_v41 = vsel %vm4793_vm10, %v1295_v9, -1e+30  ;;  %v1398_v26 = vsel %vm94_vm1, %v1343_v24, -inf  ;;  %vm4800_vm12 = vcmp.eq.s32.totalorder %v4799_v13, %v3309_v7 }
 0x372   :  { %v1394_v59 = vsel %vm94_vm1, %v1341_v27, -inf  ;;  %v1400_v46 = vsel %vm94_vm1, %v1344_v41, -inf  ;;  %v1399_v27 = vmax.f32 %v1391_v40, %v1398_v26  ;;  %vm4803_vm10 = vcmp.eq.s32.totalorder %v4776_v47, %v3309_v7 }
 0x373   :  { %v1395_v48 = vmax.f32 %v1387_v50, %v1394_v59 }
 0x374   :  { %v1285_v45 = vpop.permute.xlu1 %1284 }
 0x375   :  { %v1342_v30 = vsel %vm4791_vm0, %v1285_v45, -1e+30  ;;  %vm4802_vm0 = vcmp.eq.s32.totalorder %v4774_v28, %v3309_v7 }
 0x376   :  { %v1396_v43 = vsel %vm94_vm1, %v1342_v30, -inf  ;;  %v1401_v30 = vmax.f32 %v1393_v44, %v1400_v46 }
 0x377   :  { %v1397_v24 = vmax.f32 %v1389_v21, %v1396_v43 }
 0x378   :  { %v1305_v15 = vpop.permute.xlu1 %1304  ;;  %v1300_v42 = vpop.permute.xlu0 %1299 }
 0x379   :  { %v1346_v9 = vsel %vm1090_vm4, %v1305_v15, -1e+30  ;;  %v1345_v39 = vsel %vm4796_vm11, %v1300_v42, -1e+30  ;;  %vm4804_vm11 = vcmp.eq.s32.totalorder %v4770_v4, %v3309_v7 }
 0x37a   :  { %v1404_v61 = vsel %vm94_vm1, %v1346_v9, -inf  ;;  %v1402_v16 = vsel %vm94_vm1, %v1345_v39, -inf  ;;  %v4801_v9 = vlaneseq  ;;  %v2453_v53 = vsel %vm4804_vm11, 1.0, %v4752_v34 }
 0x37b   :  { %v1405_v41 = vmax.f32 %v1397_v24, %v1404_v61  ;;  %v1403_v37 = vmax.f32 %v1395_v48, %v1402_v16  ;;  %v4026_v61 = vld [vmem:[#allocation2] sm:$0x1]  ;;  %vm4816_vm11 = vcmp.eq.s32.totalorder %v4792_v17, %v3309_v7 }
 0x37c   :  { %v1315_v2 = vpop.permute.xlu1 %1314  ;;  %v1310_v18 = vpop.permute.xlu0 %1309  ;;  %v4024_v39 = vshrl.u32 %v4801_v9, 7  ;;  %v2462_v36 = vsel %vm4816_vm11, 1.0, %v4752_v34 }
 0x37d   :  { %v1348_v15 = vsel %vm4798_vm5, %v1315_v2, -1e+30  ;;  %v1347_v57 = vsel %vm4800_vm12, %v1310_v18, -1e+30  ;;  %v1410_v29 = vmax.f32 %v1403_v37, %v1405_v41  ;;  %v2435_v2 = vsel %vm1061_vm2, 1.0, %v4752_v34 }
 0x37e   :  { %v1408_v52 = vsel %vm94_vm1, %v1348_v15, -inf  ;;  %v1406_v32 = vsel %vm94_vm1, %v1347_v57, -inf  ;;  %v4029_v16 = vsub.s32 0, %v4024_v39  ;;  %v2451_v18 = vsel %vm4802_vm0, 1.0, %v4752_v34 }
 0x37f   :  { %v1409_v50 = vmax.f32 %v1401_v30, %v1408_v52  ;;  %v1407_v59 = vmax.f32 %v1399_v27, %v1406_v32  ;;  %v2452_v15 = vsel %vm4803_vm10, 1.0, %v4752_v34  ;;  %vm4805_vm2 = vcmp.eq.s32.totalorder %v4758_v8, %v3309_v7 }
 0x380   :  { %v2436_v47 = vsel %vm4805_vm2, 1.0, %v4752_v34  ;;  %vm4806_vm5 = vcmp.eq.s32.totalorder %v4772_v5, %v3309_v7  ;;  %v2437_v8 = vsel %vm1063_vm7, 1.0, %v4752_v34  ;;  %vm4807_vm12 = vcmp.eq.s32.totalorder %v4778_v38, %v3309_v7 }
 0x381   :  { %v1411_v26 = vmax.f32 %v1407_v59, %v1409_v50  ;;  %v2454_v4 = vsel %vm4806_vm5, 1.0, %v4752_v34  ;;  %v2455_v5 = vsel %vm4807_vm12, 1.0, %v4752_v34  ;;  %vm4808_vm7 = vcmp.eq.s32.totalorder %v4780_v14, %v3309_v7 }
 0x382   :  { %v2456_v38 = vsel %vm4808_vm7, 1.0, %v4752_v34  ;;  %v2457_v14 = vsel %vm4809_vm8, 1.0, %v4752_v34  ;;  %vm4813_vm0 = vcmp.eq.s32.totalorder %v4760_v60, %v3309_v7  ;;  %vm4815_vm10 = vcmp.eq.s32.totalorder %v4762_v11, %v3309_v7 }
 0x383   :  { %v1412_v43 = vmax.f32 %v1410_v29, %v1411_v26  ;;  %v2443_v0 = vsel %vm4813_vm0, 1.0, %v4752_v34  ;;  %v2444_v60 = vsel %vm4815_vm10, 1.0, %v4752_v34  ;;  %vm4817_vm2 = vcmp.eq.s32.totalorder %v4754_v23, %v3309_v7  ;;  %vm4886_vm0 = vmmov %vm4885_vm9 }
 0x384   :  { %v2445_v11 = vsel %vm4817_vm2, 1.0, %v4752_v34  ;;  %vm4818_vm5 = vcmp.eq.s32.totalorder %v4795_v35, %v3309_v7  ;;  %vm4819_vm12 = vcmp.eq.s32.totalorder %v4756_v55, %v3309_v7  ;;  %v2464_v35 = vsel %vm1090_vm4, 1.0, %v4752_v34  ;;  %vm4887_vm15 = vmmov %vm4886_vm0 }
 0x385   :  { %v1413_v42 = vrot.slane %v1412_v43, 4  ;;  %v2463_v17 = vsel %vm4818_vm5, 1.0, %v4752_v34  ;;  %v2446_v23 = vsel %vm4819_vm12, 1.0, %v4752_v34  ;;  %vm4820_vm7 = vcmp.eq.s32.totalorder %v4766_v49, %v3309_v7  ;;  %vm4888_vm10 = vmmov %vm4886_vm0 }
 0x386   :  { %v2447_v55 = vsel %vm4820_vm7, 1.0, %v4752_v34  ;;  %vm4821_vm8 = vcmp.eq.s32.totalorder %v4799_v13, %v3309_v7  ;;  %vm4822_vm4 = vcmp.eq.s32.totalorder %v4768_v63, %v3309_v7  ;;  %v2466_v13 = vsel %vm4823_vm13, 1.0, %v4752_v34  ;;  %vm4889_vm11 = vmmov %vm4886_vm0 }
 0x387   :  { %v1414_v21 = vmax.f32 %v1412_v43, %v1413_v42  ;;  %v2465_v45 = vsel %vm4821_vm8, 1.0, %v4752_v34  ;;  %v2448_v49 = vsel %vm4822_vm4, 1.0, %v4752_v34  ;;  %v2449_v63 = vsel %vm1075_vm3, 1.0, %v4752_v34  ;;  %vm4890_vm2 = vmmov %vm4886_vm0 }
 0x388   :  { %vm2104_vm3 = vcmask 138240   ;;  %vm4891_vm5 = vmmov %vm4886_vm0 }
 0x389   :  { %v1415_v46 = vrot.slane %v1414_v21, 2  ;;  %vm4892_vm12 = vmmov %vm4886_vm0 }
 0x38a   :  { %vm4893_vm7 = vmmov %vm4886_vm0 }
 0x38b   :  { %v1416_v40 = vmax.f32 %v1414_v21, %v1415_v46  ;;  %vm4894_vm8 = vmmov %vm4886_vm0 }
 0x38c   :  { %vm4895_vm4 = vmmov %vm4886_vm0 }
 0x38d   :  { %v1417_v44 = vrot.slane %v1416_v40, 1  ;;  %vm4896_vm13 = vmmov %vm4886_vm0 }
 0x38f   :  { %v1418_v48 = vmax.f32 %v1416_v40, %v1417_v44 }
 0x391   :  { %v4032_v24 = vmax.f32 %v4026_v61, %v1418_v48 }
 0x393   :  { %1425 = vst.msk [vmem:[#allocation2] sm:$0x1] %vm90_vm6, %v4032_v24  ;;  %v4038_v27 = vrot.slane %v4032_v24, %v4029_v16  ;;  %v1421_v30 = vsub.f32 %v4026_v61, %v4032_v24 }
 0x395   :  { %v1448_v41 = vmul.f32 %v2451_v18, %v4038_v27  ;;  %v1432_v37 = vmul.f32 %v2435_v2, %v4038_v27  ;;  %v1449_v28 = vmul.f32 %v2452_v15, %v4038_v27  ;;  %v1450_v32 = vmul.f32 %v2453_v53, %v4038_v27 }
 0x396   :  { %v1433_v29 = vmul.f32 %v2436_v47, %v4038_v27  ;;  %v1451_v26 = vmul.f32 %v2454_v4, %v4038_v27  ;;  %v1434_v21 = vmul.f32 %v2437_v8, %v4038_v27  ;;  %v1452_v46 = vmul.f32 %v2455_v5, %v4038_v27 }
 0x397   :  { %v1512_v57 = vsel %vm94_vm1, %v1448_v41, 0.0  ;;  %v1464_v52 = vsel %vm94_vm1, %v1432_v37, 0.0  ;;  %v1515_v50 = vsel %vm94_vm1, %v1449_v28, 0.0  ;;  %v1518_v59 = vsel %vm94_vm1, %v1450_v32, 0.0 }
 0x398   :  { %1513 = vadd.xlane.f32.xlu0 %v1512_v57  ;;  %1465 = vadd.xlane.f32.xlu1 %v1464_v52  ;;  %v1467_v43 = vsel %vm94_vm1, %v1433_v29, 0.0  ;;  %v1521_v42 = vsel %vm94_vm1, %v1451_v26, 0.0  ;;  %v1470_v9 = vsel %vm94_vm1, %v1434_v21, 0.0  ;;  %v1524_v40 = vsel %vm94_vm1, %v1452_v46, 0.0 }
 0x399   :  { %v1435_v44 = vmul.f32 %v2438_v54, %v4038_v27  ;;  %v1453_v48 = vmul.f32 %v2456_v38, %v4038_v27  ;;  %v1436_v41 = vmul.f32 %v2439_v56, %v4038_v27  ;;  %v1454_v37 = vmul.f32 %v2457_v14, %v4038_v27 }
 0x39a   :  { %v1437_v57 = vmul.f32 %v2440_v58, %v4038_v27  ;;  %v1455_v52 = vmul.f32 %v2458_v3, %v4038_v27  ;;  %v1438_v47 = vmul.f32 %v2441_v10, %v4038_v27  ;;  %v1456_v4 = vmul.f32 %v2459_v6, %v4038_v27 }
 0x39b   :  { %v1473_v2 = vsel %vm94_vm1, %v1435_v44, 0.0  ;;  %v1527_v18 = vsel %vm94_vm1, %v1453_v48, 0.0  ;;  %v1476_v15 = vsel %vm94_vm1, %v1436_v41, 0.0  ;;  %v1530_v53 = vsel %vm94_vm1, %v1454_v37, 0.0 }
 0x39c   :  { %1516 = vadd.xlane.f32.xlu0 %v1515_v50  ;;  %1519 = vadd.xlane.f32.xlu1 %v1518_v59  ;;  %v1479_v28 = vsel %vm94_vm1, %v1437_v57, 0.0  ;;  %v1533_v32 = vsel %vm94_vm1, %v1455_v52, 0.0  ;;  %v1482_v50 = vsel %vm94_vm1, %v1438_v47, 0.0  ;;  %v1536_v59 = vsel %vm94_vm1, %v1456_v4, 0.0 }
 0x39d   :  { %v1439_v29 = vmul.f32 %v2442_v62, %v4038_v27  ;;  %v1457_v26 = vmul.f32 %v2460_v22, %v4038_v27  ;;  %v1441_v54 = vmul.f32 %v2444_v60, %v4038_v27  ;;  %v1459_v38 = vmul.f32 %v2462_v36, %v4038_v27 }
 0x39e   :  { %v1442_v44 = vmul.f32 %v2445_v11, %v4038_v27  ;;  %v1460_v48 = vmul.f32 %v2463_v17, %v4038_v27  ;;  %v1444_v58 = vmul.f32 %v2447_v55, %v4038_v27  ;;  %v1462_v3 = vmul.f32 %v2465_v45, %v4038_v27 }
 0x39f   :  { %v1485_v8 = vsel %vm94_vm1, %v1439_v29, 0.0  ;;  %v1539_v5 = vsel %vm94_vm1, %v1457_v26, 0.0  ;;  %v1445_v57 = vmul.f32 %v2448_v49, %v4038_v27  ;;  %v1463_v52 = vmul.f32 %v2466_v13, %v4038_v27  ;;  %v4832_v49 = vld [vmem:[#allocation94_spill] sm:$0xff] }
 0x3a0   :  { %1468 = vadd.xlane.f32.xlu0 %v1467_v43  ;;  %1522 = vadd.xlane.f32.xlu1 %v1521_v42  ;;  %v1440_v43 = vmul.f32 %v2443_v0, %v4038_v27  ;;  %v1458_v42 = vmul.f32 %v2461_v12, %v4038_v27  ;;  %v1494_v56 = vsel %vm94_vm1, %v1442_v44, 0.0  ;;  %v1548_v14 = vsel %vm94_vm1, %v1460_v48, 0.0  ;;  %v4829_v48 = vld [vmem:[#allocation79_spill] sm:$0xff] }
 0x3a1   :  { %v1503_v10 = vsel %vm94_vm1, %v1445_v57, 0.0  ;;  %v1557_v31 = vsel %vm94_vm1, %v1463_v52, 0.0  ;;  %v1446_v6 = vmul.f32 %v2449_v63, %v4038_v27 }
 0x3a2   :  { %v1488_v21 = vsel %vm94_vm1, %v1440_v43, 0.0  ;;  %v1542_v46 = vsel %vm94_vm1, %v1458_v42, 0.0 }
 0x3a4   :  { %1471 = vadd.xlane.f32.xlu0 %v1470_v9  ;;  %1525 = vadd.xlane.f32.xlu1 %v1524_v40  ;;  %v1491_v9 = vsel %vm94_vm1, %v1441_v54, 0.0  ;;  %v1545_v40 = vsel %vm94_vm1, %v1459_v38, 0.0  ;;  %v4828_v54 = vld [vmem:[#allocation95_spill] sm:$0xff] }
 0x3a8   :  { %1474 = vadd.xlane.f32.xlu0 %v1473_v2  ;;  %1528 = vadd.xlane.f32.xlu1 %v1527_v18  ;;  %v1443_v2 = vmul.f32 %v2446_v23, %v4038_v27  ;;  %v1461_v18 = vmul.f32 %v2464_v35, %v4038_v27  ;;  %v4830_v35 = vld [vmem:[#allocation98_spill] sm:$0xff] }
 0x3aa   :  { %v1497_v41 = vsel %vm94_vm1, %v1443_v2, 0.0  ;;  %v1551_v37 = vsel %vm94_vm1, %v1461_v18, 0.0 }
 0x3ac   :  { %1477 = vadd.xlane.f32.xlu0 %v1476_v15  ;;  %1531 = vadd.xlane.f32.xlu1 %v1530_v53  ;;  %v1500_v15 = vsel %vm94_vm1, %v1444_v58, 0.0  ;;  %v1554_v53 = vsel %vm94_vm1, %v1462_v3, 0.0  ;;  %v4831_v58 = vld [vmem:[#allocation82_spill] sm:$0xff] }
 0x3b0   :  { %1480 = vadd.xlane.f32.xlu0 %v1479_v28  ;;  %1534 = vadd.xlane.f32.xlu1 %v1533_v32  ;;  %v2450_v28 = vsel %vm4824_vm14, 1.0, %v4752_v34  ;;  %v1506_v32 = vsel %vm94_vm1, %v1446_v6, 0.0  ;;  %v4833_v6 = vld [vmem:[#allocation85_spill] sm:$0xff]  ;;  %vm4897_vm14 = vmmov %vm4886_vm0 }
 0x3b1   :  { %v1447_v47 = vmul.f32 %v2450_v28, %v4038_v27 }
 0x3b3   :  { %v1509_v19 = vsel %vm94_vm1, %v1447_v47, 0.0 }
 0x3b4   :  { %1483 = vadd.xlane.f32.xlu0 %v1482_v50  ;;  %1537 = vadd.xlane.f32.xlu1 %v1536_v59 }
 0x3b8   :  { %1486 = vadd.xlane.f32.xlu0 %v1485_v8  ;;  %1540 = vadd.xlane.f32.xlu1 %v1539_v5  ;;  %v4825_v5 = vld [vmem:[#allocation81_spill] sm:$0xff] }
 0x3bc   :  { %1489 = vadd.xlane.f32.xlu0 %v1488_v21  ;;  %1543 = vadd.xlane.f32.xlu1 %v1542_v46  ;;  %v4827_v46 = vld [vmem:[#allocation78_spill] sm:$0xff] }
 0x3c0   :  { %1492 = vadd.xlane.f32.xlu0 %v1491_v9  ;;  %1546 = vadd.xlane.f32.xlu1 %v1545_v40 }
 0x3c4   :  { %1495 = vadd.xlane.f32.xlu0 %v1494_v56  ;;  %1549 = vadd.xlane.f32.xlu1 %v1548_v14 }
 0x3c8   :  { %1498 = vadd.xlane.f32.xlu0 %v1497_v41  ;;  %1552 = vadd.xlane.f32.xlu1 %v1551_v37 }
 0x3cc   :  { %1501 = vadd.xlane.f32.xlu0 %v1500_v15  ;;  %1555 = vadd.xlane.f32.xlu1 %v1554_v53 }
 0x3d0   :  { %1504 = vadd.xlane.f32.xlu0 %v1503_v10  ;;  %1558 = vadd.xlane.f32.xlu1 %v1557_v31 }
 0x3d4   :  { %1507 = vadd.xlane.f32.xlu0 %v1506_v32  ;;  %v4834_v32 = vld [vmem:[#allocation96_spill] sm:$0xff] }
 0x3d8   :  { %1510 = vadd.xlane.f32.xlu0 %v1509_v19 }
 0x425   :  { %v1514_v4 = vpop.xlane.xlu0 %1513  ;;  %v1466_v62 = vpop.xlane.xlu1 %1465 }
 0x426   :  { %v1576_v22 = vsub.f32 %v3844_v20, %v1514_v4  ;;  %v1560_v50 = vsub.f32 %v3784_v1, %v1466_v62  ;;  %v4826_v20 = vld [vmem:[#allocation93_spill] sm:$0xff] }
 0x428   :  { %v1624_v59 = vmul.f32 1.442695, %v1576_v22  ;;  %v1592_v29 = vmul.f32 1.442695, %v1560_v50 }
 0x429   :  { %v1517_v26 = vpop.xlane.xlu0 %1516  ;;  %v1520_v0 = vpop.xlane.xlu1 %1519 }
 0x42a   :  { %2877 = vpow2.f32 %v1624_v59  ;;  %v1577_v7 = vsub.f32 %v3852_v25, %v1517_v26  ;;  %v1578_v34 = vsub.f32 %v3837_v51, %v1520_v0  ;;  %v4835_v26 = vld [vmem:[#allocation80_spill] sm:$0xff] }
 0x42b   :  { %2879 = vpow2.f32 %v1592_v29 }
 0x42c   :  { %v1626_v33 = vmul.f32 1.442695, %v1577_v7  ;;  %v1628_v27 = vmul.f32 1.442695, %v1578_v34  ;;  %v4836_v7 = vld [vmem:[#allocation99_spill] sm:$0xff] }
 0x42d   :  { %v1469_v12 = vpop.xlane.xlu0 %1468  ;;  %v1523_v8 = vpop.xlane.xlu1 %1522 }
 0x42e   :  { %2881 = vpow2.f32 %v1626_v33  ;;  %v1561_v43 = vsub.f32 %v4825_v5, %v1469_v12  ;;  %v1579_v42 = vsub.f32 %v4826_v20, %v1523_v8 }
 0x42f   :  { %2883 = vpow2.f32 %v1628_v27 }
 0x430   :  { %v1594_v1 = vmul.f32 1.442695, %v1561_v43  ;;  %v1630_v60 = vmul.f32 1.442695, %v1579_v42  ;;  %v4837_v42 = vld [vmem:[#allocation83_spill] sm:$0xff] }
 0x431   :  { %v1472_v36 = vpop.xlane.xlu0 %1471  ;;  %v1526_v21 = vpop.xlane.xlu1 %1525 }
 0x432   :  { %2885 = vpow2.f32 %v1594_v1  ;;  %v1562_v25 = vsub.f32 %v4827_v46, %v1472_v36  ;;  %v1580_v51 = vsub.f32 %v4828_v54, %v1526_v21 }
 0x433   :  { %2887 = vpow2.f32 %v1630_v60  ;;  %v4838_v60 = vld [vmem:[#allocation101_spill] sm:$0xff] }
 0x434   :  { %v4242_v38 = vpop.eup %2877  ;;  %v1596_v11 = vmul.f32 1.442695, %v1562_v25  ;;  %v1632_v17 = vmul.f32 1.442695, %v1580_v51 }
 0x435   :  { %v4244_v9 = vpop.eup %2879  ;;  %v1475_v40 = vpop.xlane.xlu0 %1474  ;;  %1738 = vperm.xlu1 %2649, %v4242_v38  }
 0x436   :  { %v1529_v44 = vpop.xlane.xlu1 %1528  ;;  %2889 = vpow2.f32 %v1596_v11  ;;  %v1563_v23 = vsub.f32 %v4829_v48, %v1475_v40  ;;  %1658 = vperm.xlu0 %2650, %v4244_v9   ;;  %v2651_v14 = vpack.i.bf16 %v4244_v9, %v4242_v38  ;;  %v4839_v40 = vld [vmem:[#allocation86_spill] sm:$0xff]  ;;  %v4840_v48 = vld [vmem:[#allocation97_spill] sm:$0xff] }
 0x437   :  { %v1581_v56 = vsub.f32 %v4830_v35, %v1529_v44  ;;  %2891 = vpow2.f32 %v1632_v17 }
 0x438   :  { %v4252_v2 = vpop.eup %2881  ;;  %v1598_v18 = vmul.f32 1.442695, %v1563_v23 }
 0x439   :  { %v1634_v55 = vmul.f32 1.442695, %v1581_v56  ;;  %v4254_v45 = vpop.eup %2883  ;;  %v1478_v41 = vpop.xlane.xlu0 %1477  ;;  %1743 = vperm.xlu1 %2649, %v4252_v2  }
 0x43a   :  { %v1532_v37 = vpop.xlane.xlu1 %1531  ;;  %2893 = vpow2.f32 %v1598_v18  ;;  %v1564_v3 = vsub.f32 %v4831_v58, %v1478_v41  ;;  %1748 = vperm.xlu0 %2650, %v4254_v45  }
 0x43b   :  { %v1582_v13 = vsub.f32 %v4832_v49, %v1532_v37  ;;  %2895 = vpow2.f32 %v1634_v55 }
 0x43c   :  { %v4260_v15 = vpop.eup %2885  ;;  %v1600_v53 = vmul.f32 1.442695, %v1564_v3  ;;  %v4841_v3 = vld [vmem:[#allocation89_spill] sm:$0xff] }
 0x43d   :  { %v1636_v57 = vmul.f32 1.442695, %v1582_v13  ;;  %v4262_v52 = vpop.eup %2887  ;;  %v1481_v63 = vpop.xlane.xlu0 %1480  ;;  %1663 = vperm.xlu1 %2649, %v4260_v15   ;;  %v2656_v31 = vpack.i.bf16 %v4260_v15, %v4252_v2  ;;  %v4842_v13 = vld [vmem:[#allocation100_spill] sm:$0xff] }
 0x43e   :  { %v1535_v10 = vpop.xlane.xlu1 %1534  ;;  %2897 = vpow2.f32 %v1600_v53  ;;  %v1565_v28 = vsub.f32 %v4833_v6, %v1481_v63  ;;  %1753 = vperm.xlu0 %2650, %v4262_v52  }
 0x43f   :  { %v1583_v47 = vsub.f32 %v4834_v32, %v1535_v10  ;;  %2899 = vpow2.f32 %v1636_v57 }
 0x440   :  { %v4270_v19 = vpop.eup %2889  ;;  %v1602_v4 = vmul.f32 1.442695, %v1565_v28 }
 0x441   :  { %v1638_v62 = vmul.f32 1.442695, %v1583_v47  ;;  %v4272_v22 = vpop.eup %2891  ;;  %v1484_v50 = vpop.xlane.xlu0 %1483  ;;  %1668 = vperm.xlu1 %2649, %v4270_v19   ;;  %v2661_v29 = vpack.i.bf16 %v4270_v19, %v4254_v45  ;;  %v4854_v45 = vld [vmem:[#allocation47_spill] sm:$0xff] }
 0x442   :  { %v1538_v59 = vpop.xlane.xlu1 %1537  ;;  %2901 = vpow2.f32 %v1602_v4  ;;  %v1566_v0 = vsub.f32 %v4835_v26, %v1484_v50  ;;  %1758 = vperm.xlu0 %2650, %v4272_v22   ;;  %v4843_v4 = vld [vmem:[#allocation84_spill] sm:$0xff]  ;;  %v4844_v50 = vld [vmem:[#allocation102_spill] sm:$0xff] }
 0x443   :  { %v1584_v34 = vsub.f32 %v4836_v7, %v1538_v59  ;;  %2903 = vpow2.f32 %v1638_v62 }
 0x444   :  { %v4280_v33 = vpop.eup %2893  ;;  %v1604_v27 = vmul.f32 1.442695, %v1566_v0 }
 0x445   :  { %v1640_v12 = vmul.f32 1.442695, %v1584_v34  ;;  %v4282_v8 = vpop.eup %2895  ;;  %v1487_v5 = vpop.xlane.xlu0 %1486  ;;  %1673 = vperm.xlu1 %2649, %v4280_v33   ;;  %v2666_v20 = vpack.i.bf16 %v4280_v33, %v4262_v52 }
 0x446   :  { %v1541_v43 = vpop.xlane.xlu1 %1540  ;;  %2905 = vpow2.f32 %v1604_v27  ;;  %v1567_v1 = vsub.f32 %v4837_v42, %v1487_v5  ;;  %1763 = vperm.xlu0 %2650, %v4282_v8  }
 0x447   :  { %v1585_v36 = vsub.f32 %v4838_v60, %v1541_v43  ;;  %2907 = vpow2.f32 %v1640_v12  ;;  %v4845_v43 = vld [vmem:[#allocation87_spill] sm:$0xff] }
 0x448   :  { %v4290_v21 = vpop.eup %2897  ;;  %v1606_v46 = vmul.f32 1.442695, %v1567_v1  ;;  %v4846_v1 = vld [vmem:[#allocation103_spill] sm:$0xff] }
 0x449   :  { %v1642_v25 = vmul.f32 1.442695, %v1585_v36  ;;  %v4292_v54 = vpop.eup %2899  ;;  %v1490_v51 = vpop.xlane.xlu0 %1489  ;;  %1678 = vperm.xlu1 %2649, %v4290_v21   ;;  %v2671_v17 = vpack.i.bf16 %v4290_v21, %v4272_v22 }
 0x44a   :  { %v1544_v11 = vpop.xlane.xlu1 %1543  ;;  %2909 = vpow2.f32 %v1606_v46  ;;  %v1568_v44 = vsub.f32 %v4839_v40, %v1490_v51  ;;  %1768 = vperm.xlu0 %2650, %v4292_v54  }
 0x44b   :  { %v1586_v23 = vsub.f32 %v4840_v48, %v1544_v11  ;;  %2911 = vpow2.f32 %v1642_v25  ;;  %v4847_v48 = vld [vmem:[#allocation90_spill] sm:$0xff] }
 0x44c   :  { %v4300_v35 = vpop.eup %2901  ;;  %v1608_v56 = vmul.f32 1.442695, %v1568_v44 }
 0x44d   :  { %v1644_v18 = vmul.f32 1.442695, %v1586_v23  ;;  %v4302_v55 = vpop.eup %2903  ;;  %v1493_v41 = vpop.xlane.xlu0 %1492  ;;  %1683 = vperm.xlu1 %2649, %v4300_v35   ;;  %v2676_v58 = vpack.i.bf16 %v4300_v35, %v4282_v8  ;;  %v4857_v35 = vld [vmem:[#allocation62_spill] sm:$0xff] }
 0x44e   :  { %v1547_v37 = vpop.xlane.xlu1 %1546  ;;  %2913 = vpow2.f32 %v1608_v56  ;;  %v1569_v49 = vsub.f32 %v4841_v3, %v1493_v41  ;;  %1773 = vperm.xlu0 %2650, %v4302_v55   ;;  %v4848_v56 = vld [vmem:[#allocation104_spill] sm:$0xff] }
 0x44f   :  { %v1587_v53 = vsub.f32 %v4842_v13, %v1547_v37  ;;  %2915 = vpow2.f32 %v1644_v18 }
 0x450   :  { %v4310_v57 = vpop.eup %2905  ;;  %v1610_v63 = vmul.f32 1.442695, %v1569_v49 }
 0x451   :  { %v1646_v10 = vmul.f32 1.442695, %v1587_v53  ;;  %v4312_v6 = vpop.eup %2907  ;;  %v1496_v28 = vpop.xlane.xlu0 %1495  ;;  %1688 = vperm.xlu1 %2649, %v4310_v57   ;;  %v2681_v47 = vpack.i.bf16 %v4310_v57, %v4292_v54  ;;  %v4858_v57 = vld [vmem:[#allocation46_spill] sm:$0xff] }
 0x452   :  { %v1550_v32 = vpop.xlane.xlu1 %1549  ;;  %2917 = vpow2.f32 %v1610_v63  ;;  %v1570_v62 = vsub.f32 %v4843_v4, %v1496_v28  ;;  %1778 = vperm.xlu0 %2650, %v4312_v6  }
 0x453   :  { %v1588_v59 = vsub.f32 %v4844_v50, %v1550_v32  ;;  %2919 = vpow2.f32 %v1646_v10  ;;  %v4849_v10 = vld [vmem:[#allocation92_spill] sm:$0xff]  ;;  %v4850_v32 = vld [vmem:[#allocation105_spill] sm:$0xff] }
 0x454   :  { %v4320_v26 = vpop.eup %2909  ;;  %v1612_v0 = vmul.f32 1.442695, %v1570_v62 }
 0x455   :  { %v1648_v7 = vmul.f32 1.442695, %v1588_v59  ;;  %v4322_v34 = vpop.eup %2911  ;;  %v1499_v27 = vpop.xlane.xlu0 %1498  ;;  %1693 = vperm.xlu1 %2649, %v4320_v26   ;;  %v2686_v5 = vpack.i.bf16 %v4320_v26, %v4302_v55 }
 0x456   :  { %v1553_v12 = vpop.xlane.xlu1 %1552  ;;  %2921 = vpow2.f32 %v1612_v0  ;;  %v1571_v42 = vsub.f32 %v4845_v43, %v1499_v27  ;;  %1783 = vperm.xlu0 %2650, %v4322_v34  }
 0x457   :  { %v1589_v60 = vsub.f32 %v4846_v1, %v1553_v12  ;;  %2923 = vpow2.f32 %v1648_v7  ;;  %v4851_v12 = vld [vmem:[#allocation88_spill] sm:$0xff] }
 0x458   :  { %v4330_v36 = vpop.eup %2913  ;;  %v1614_v46 = vmul.f32 1.442695, %v1571_v42 }
 0x459   :  { %v1650_v25 = vmul.f32 1.442695, %v1589_v60  ;;  %v4332_v51 = vpop.eup %2915  ;;  %v1502_v11 = vpop.xlane.xlu0 %1501  ;;  %1698 = vperm.xlu1 %2649, %v4330_v36   ;;  %v2691_v44 = vpack.i.bf16 %v4330_v36, %v4312_v6 }
 0x45a   :  { %v1556_v40 = vpop.xlane.xlu1 %1555  ;;  %2925 = vpow2.f32 %v1614_v46  ;;  %v1572_v23 = vsub.f32 %v4847_v48, %v1502_v11  ;;  %1788 = vperm.xlu0 %2650, %v4332_v51  }
 0x45b   :  { %v1590_v18 = vsub.f32 %v4848_v56, %v1556_v40  ;;  %2927 = vpow2.f32 %v1650_v25  ;;  %v4852_v25 = vld [vmem:[#allocation91_spill] sm:$0xff] }
 0x45c   :  { %v2918_v41 = vpop.eup %2917  ;;  %v1616_v37 = vmul.f32 1.442695, %v1572_v23 }
 0x45d   :  { %v1652_v3 = vmul.f32 1.442695, %v1590_v18  ;;  %v2920_v49 = vpop.eup %2919  ;;  %v1505_v13 = vpop.xlane.xlu0 %1504  ;;  %1703 = vperm.xlu1 %2649, %v2918_v41   ;;  %v2696_v63 = vpack.i.bf16 %v2918_v41, %v4322_v34 }
 0x45e   :  { %v1559_v53 = vpop.xlane.xlu1 %1558  ;;  %2929 = vpow2.f32 %v1616_v37  ;;  %v1573_v28 = vsub.f32 %v4849_v10, %v1505_v13  ;;  %1793 = vperm.xlu0 %2650, %v2920_v49  }
 0x45f   :  { %v1591_v4 = vsub.f32 %v4850_v32, %v1559_v53  ;;  %2931 = vpow2.f32 %v1652_v3  ;;  %v4860_v53 = vld [vmem:[#allocation48_spill] sm:$0xff] }
 0x460   :  { %v2922_v62 = vpop.eup %2921  ;;  %v1618_v50 = vmul.f32 1.442695, %v1573_v28  ;;  %v4861_v32 = vld [vmem:[#allocation68_spill] sm:$0xff] }
 0x461   :  { %v1654_v59 = vmul.f32 1.442695, %v1591_v4  ;;  %v2924_v0 = vpop.eup %2923  ;;  %v1508_v7 = vpop.xlane.xlu0 %1507  ;;  %1708 = vperm.xlu1 %2649, %v2922_v62   ;;  %v2701_v27 = vpack.i.bf16 %v2922_v62, %v4332_v51 }
 0x462   :  { %2933 = vpow2.f32 %v1618_v50  ;;  %v1574_v43 = vsub.f32 %v4851_v12, %v1508_v7  ;;  %1798 = vperm.xlu0 %2650, %v2924_v0   ;;  %v4862_v50 = vld [vmem:[#allocation52_spill] sm:$0xff] }
 0x463   :  { %2935 = vpow2.f32 %v1654_v59 }
 0x464   :  { %v2926_v34 = vpop.eup %2925  ;;  %v1620_v42 = vmul.f32 1.442695, %v1574_v43 }
 0x465   :  { %v2928_v1 = vpop.eup %2927  ;;  %v1511_v60 = vpop.xlane.xlu0 %1510  ;;  %1713 = vperm.xlu1 %2649, %v2926_v34   ;;  %v2706_v46 = vpack.i.bf16 %v2926_v34, %v2920_v49  ;;  %v4864_v34 = vld [vmem:[#allocation53_spill] sm:$0xff] }
 0x466   :  { %2937 = vpow2.f32 %v1620_v42  ;;  %v1575_v11 = vsub.f32 %v4852_v25, %v1511_v60  ;;  %1803 = vperm.xlu0 %2650, %v2928_v1  }
 0x468   :  { %v2930_v40 = vpop.eup %2929  ;;  %v1622_v48 = vmul.f32 1.442695, %v1575_v11 }
 0x469   :  { %v2932_v23 = vpop.eup %2931  ;;  %1718 = vperm.xlu1 %2649, %v2930_v40   ;;  %v2711_v51 = vpack.i.bf16 %v2930_v40, %v2924_v0  ;;  %v4866_v40 = vld [vmem:[#allocation50_spill] sm:$0xff] }
 0x46a   :  { %2939 = vpow2.f32 %v1622_v48  ;;  %1808 = vperm.xlu0 %2650, %v2932_v23  }
 0x46c   :  { %v2934_v56 = vpop.eup %2933 }
 0x46d   :  { %v2936_v18 = vpop.eup %2935  ;;  %1723 = vperm.xlu1 %2649, %v2934_v56   ;;  %v2716_v41 = vpack.i.bf16 %v2934_v56, %v2928_v1  ;;  %v4867_v56 = vld [vmem:[#allocation67_spill] sm:$0xff] }
 0x46e   :  { %1813 = vperm.xlu0 %2650, %v2936_v18  }
 0x470   :  { %v2938_v37 = vpop.eup %2937 }
 0x471   :  { %1728 = vperm.xlu1 %2649, %v2938_v37   ;;  %v2721_v3 = vpack.i.bf16 %v2938_v37, %v2932_v23  ;;  %v4868_v37 = vld [vmem:[#allocation51_spill] sm:$0xff] }
 0x474   :  { %v2940_v49 = vpop.eup %2939 }
 0x475   :  { %1733 = vperm.xlu1 %2649, %v2940_v49   ;;  %v2726_v13 = vpack.i.bf16 %v2940_v49, %v2936_v18 }
 0x479   :  { %2652 = vrot.lane.b32.xlu1 %v2651_v14, %s3119_s29  ;;  %v4853_v14 = vld [vmem:[#allocation64_spill] sm:$0xff] }
 0x47d   :  { %2657 = vrot.lane.b32.xlu1 %v2656_v31, %s3119_s29 }
 0x481   :  { %2662 = vrot.lane.b32.xlu1 %v2661_v29, %s3119_s29  ;;  %v4855_v29 = vld [vmem:[#allocation65_spill] sm:$0xff] }
 0x485   :  { %2667 = vrot.lane.b32.xlu1 %v2666_v20, %s3119_s29  ;;  %v4856_v20 = vld [vmem:[#allocation49_spill] sm:$0xff] }
 0x489   :  { %2672 = vrot.lane.b32.xlu1 %v2671_v17, %s3119_s29 }
 0x48d   :  { %2677 = vrot.lane.b32.xlu1 %v2676_v58, %s3119_s29 }
 0x491   :  { %2682 = vrot.lane.b32.xlu1 %v2681_v47, %s3119_s29 }
 0x495   :  { %2687 = vrot.lane.b32.xlu1 %v2686_v5, %s3119_s29  ;;  %v4859_v5 = vld [vmem:[#allocation63_spill] sm:$0xff] }
 0x499   :  { %2692 = vrot.lane.b32.xlu1 %v2691_v44, %s3119_s29 }
 0x49d   :  { %2697 = vrot.lane.b32.xlu1 %v2696_v63, %s3119_s29 }
 0x4a1   :  { %2702 = vrot.lane.b32.xlu1 %v2701_v27, %s3119_s29  ;;  %v4863_v27 = vld [vmem:[#allocation69_spill] sm:$0xff] }
 0x4a5   :  { %2707 = vrot.lane.b32.xlu1 %v2706_v46, %s3119_s29  ;;  %v4865_v46 = vld [vmem:[#allocation66_spill] sm:$0xff] }
 0x4a9   :  { %2712 = vrot.lane.b32.xlu1 %v2711_v51, %s3119_s29 }
 0x4ad   :  { %2717 = vrot.lane.b32.xlu1 %v2716_v41, %s3119_s29 }
 0x4b1   :  { %2722 = vrot.lane.b32.xlu1 %v2721_v3, %s3119_s29 }
 0x4b4   :  { %v1739_v38 = vpop.permute.xlu1 %1738 }
 0x4b5   :  { %v1659_v9 = vpop.permute.xlu0 %1658  ;;  %v1832_v2 = vmul.f32 %v1739_v38, %v4853_v14  ;;  %2727 = vrot.lane.b32.xlu1 %v2726_v13, %s3119_s29  ;;  %v4869_v38 = vld [vmem:[#allocation72_spill] sm:$0xff] }
 0x4b6   :  { %v1816_v15 = vmul.f32 %v1659_v9, %v4854_v45 }
 0x4b8   :  { %v2731_v52 = vpack.i.bf16 %v1816_v15, %v1832_v2  ;;  %v1744_v31 = vpop.permute.xlu1 %1743  ;;  %v4870_v2 = vld [vmem:[#allocation56_spill] sm:$0xff] }
 0x4b9   :  { %v1749_v19 = vpop.permute.xlu0 %1748  ;;  %v1833_v33 = vmul.f32 %v1744_v31, %v4855_v29  ;;  %v4871_v31 = vld [vmem:[#allocation73_spill] sm:$0xff] }
 0x4ba   :  { %2732 = vrot.lane.b32.xlu0 %v2731_v52, %s3120_s3  ;;  %v1834_v55 = vmul.f32 %v1749_v19, %v4857_v35  ;;  %v4872_v29 = vld [vmem:[#allocation57_spill] sm:$0xff]  ;;  %v4874_v35 = vld [vmem:[#allocation54_spill] sm:$0xff] }
 0x4bc   :  { %v1664_v22 = vpop.permute.xlu1 %1663 }
 0x4bd   :  { %v1754_v8 = vpop.permute.xlu0 %1753  ;;  %v1817_v21 = vmul.f32 %v1664_v22, %v4856_v20 }
 0x4be   :  { %v1835_v36 = vmul.f32 %v1754_v8, %v4859_v5 }
 0x4bf   :  { %v2736_v54 = vpack.i.bf16 %v1817_v21, %v1833_v33  ;;  %v4873_v21 = vld [vmem:[#allocation70_spill] sm:$0xff] }
 0x4c0   :  { %v1669_v17 = vpop.permute.xlu1 %1668 }
 0x4c1   :  { %v1759_v58 = vpop.permute.xlu0 %1758  ;;  %v1818_v6 = vmul.f32 %v1669_v17, %v4858_v57  ;;  %2737 = vrot.lane.b32.xlu0 %v2736_v54, %s3120_s3 }
 0x4c2   :  { %v1836_v4 = vmul.f32 %v1759_v58, %v4861_v32 }
 0x4c3   :  { %v2741_v47 = vpack.i.bf16 %v1818_v6, %v1834_v55  ;;  %v4875_v6 = vld [vmem:[#allocation71_spill] sm:$0xff] }
 0x4c4   :  { %v1674_v26 = vpop.permute.xlu1 %1673 }
 0x4c5   :  { %v1764_v44 = vpop.permute.xlu0 %1763  ;;  %v1819_v63 = vmul.f32 %v1674_v26, %v4860_v53  ;;  %2742 = vrot.lane.b32.xlu0 %v2741_v47, %s3120_s3  ;;  %v4876_v26 = vld [vmem:[#allocation55_spill] sm:$0xff] }
 0x4c6   :  { %v1837_v12 = vmul.f32 %v1764_v44, %v4863_v27 }
 0x4c7   :  { %v2746_v10 = vpack.i.bf16 %v1819_v63, %v1835_v36  ;;  %v4877_v63 = vld [vmem:[#allocation76_spill] sm:$0xff] }
 0x4c8   :  { %v1679_v28 = vpop.permute.xlu1 %1678 }
 0x4c9   :  { %v1769_v62 = vpop.permute.xlu0 %1768  ;;  %v1820_v59 = vmul.f32 %v1679_v28, %v4862_v50  ;;  %2747 = vrot.lane.b32.xlu0 %v2746_v10, %s3120_s3  ;;  %v4878_v28 = vld [vmem:[#allocation60_spill] sm:$0xff] }
 0x4ca   :  { %v1838_v25 = vmul.f32 %v1769_v62, %v4865_v46 }
 0x4cb   :  { %v2751_v0 = vpack.i.bf16 %v1820_v59, %v1836_v4  ;;  %v4879_v59 = vld [vmem:[#allocation77_spill] sm:$0xff] }
 0x4cc   :  { %v1684_v7 = vpop.permute.xlu1 %1683 }
 0x4cd   :  { %v1774_v43 = vpop.permute.xlu0 %1773  ;;  %v1821_v42 = vmul.f32 %v1684_v7, %v4864_v34  ;;  %2752 = vrot.lane.b32.xlu0 %v2751_v0, %s3120_s3  ;;  %v4880_v7 = vld [vmem:[#allocation61_spill] sm:$0xff]  ;;  %v4881_v34 = vld [vmem:[#allocation74_spill] sm:$0xff] }
 0x4ce   :  { %v1839_v18 = vmul.f32 %v1774_v43, %v4867_v56 }
 0x4cf   :  { %v2756_v1 = vpack.i.bf16 %v1821_v42, %v1837_v12 }
 0x4d0   :  { %v1689_v60 = vpop.permute.xlu1 %1688 }
 0x4d1   :  { %v1779_v11 = vpop.permute.xlu0 %1778  ;;  %v1822_v48 = vmul.f32 %v1689_v60, %v4866_v40  ;;  %2757 = vrot.lane.b32.xlu0 %v2756_v1, %s3120_s3  ;;  %v4882_v1 = vld [vmem:[#allocation58_spill] sm:$0xff]  ;;  %v4883_v40 = vld [vmem:[#allocation75_spill] sm:$0xff] }
 0x4d2   :  { %v1840_v9 = vmul.f32 %v1779_v11, %v4869_v38 }
 0x4d3   :  { %v2761_v23 = vpack.i.bf16 %v1822_v48, %v1838_v25 }
 0x4d4   :  { %v1694_v51 = vpop.permute.xlu1 %1693 }
 0x4d5   :  { %v1784_v41 = vpop.permute.xlu0 %1783  ;;  %v1823_v3 = vmul.f32 %v1694_v51, %v4868_v37  ;;  %2762 = vrot.lane.b32.xlu0 %v2761_v23, %s3120_s3  ;;  %v4884_v23 = vld [vmem:[#allocation59_spill] sm:$0xff] }
 0x4d6   :  { %v1841_v19 = vmul.f32 %v1784_v41, %v4871_v31 }
 0x4d7   :  { %v2766_v49 = vpack.i.bf16 %v1823_v3, %v1839_v18 }
 0x4d8   :  { %v1699_v13 = vpop.permute.xlu1 %1698 }
 0x4d9   :  { %v1789_v14 = vpop.permute.xlu0 %1788  ;;  %v1824_v45 = vmul.f32 %v1699_v13, %v4870_v2  ;;  %2767 = vrot.lane.b32.xlu0 %v2766_v49, %s3120_s3 }
 0x4da   :  { %v1842_v54 = vmul.f32 %v1789_v14, %v4873_v21 }
 0x4db   :  { %v2771_v15 = vpack.i.bf16 %v1824_v45, %v1840_v9 }
 0x4dc   :  { %v1704_v52 = vpop.permute.xlu1 %1703 }
 0x4dd   :  { %v1794_v22 = vpop.permute.xlu0 %1793  ;;  %v1825_v33 = vmul.f32 %v1704_v52, %v4872_v29  ;;  %2772 = vrot.lane.b32.xlu0 %v2771_v15, %s3120_s3 }
 0x4de   :  { %v1843_v47 = vmul.f32 %v1794_v22, %v4875_v6 }
 0x4df   :  { %v2776_v8 = vpack.i.bf16 %v1825_v33, %v1841_v19 }
 0x4e0   :  { %v1709_v20 = vpop.permute.xlu1 %1708 }
 0x4e1   :  { %v1799_v17 = vpop.permute.xlu0 %1798  ;;  %v1826_v55 = vmul.f32 %v1709_v20, %v4874_v35  ;;  %2777 = vrot.lane.b32.xlu0 %v2776_v8, %s3120_s3 }
 0x4e2   :  { %v1844_v10 = vmul.f32 %v1799_v17, %v4877_v63 }
 0x4e3   :  { %v2781_v58 = vpack.i.bf16 %v1826_v55, %v1842_v54 }
 0x4e4   :  { %v1714_v57 = vpop.permute.xlu1 %1713 }
 0x4e5   :  { %v1827_v5 = vmul.f32 %v1714_v57, %v4876_v26  ;;  %2782 = vrot.lane.b32.xlu0 %v2781_v58, %s3120_s3  ;;  %v1804_v36 = vpop.permute.xlu0 %1803 }
 0x4e6   :  { %v1845_v0 = vmul.f32 %v1804_v36, %v4879_v59 }
 0x4e7   :  { %v2786_v44 = vpack.i.bf16 %v1827_v5, %v1843_v47 }
 0x4e8   :  { %v1719_v53 = vpop.permute.xlu1 %1718 }
 0x4e9   :  { %v1828_v32 = vmul.f32 %v1719_v53, %v4878_v28  ;;  %2787 = vrot.lane.b32.xlu0 %v2786_v44, %s3120_s3  ;;  %v1809_v62 = vpop.permute.xlu0 %1808 }
 0x4ea   :  { %v1846_v42 = vmul.f32 %v1809_v62, %v4881_v34 }
 0x4eb   :  { %v2791_v4 = vpack.i.bf16 %v1828_v32, %v1844_v10 }
 0x4ec   :  { %v1724_v50 = vpop.permute.xlu1 %1723 }
 0x4ed   :  { %v1829_v27 = vmul.f32 %v1724_v50, %v4880_v7  ;;  %2792 = vrot.lane.b32.xlu0 %v2791_v4, %s3120_s3  ;;  %v1814_v46 = vpop.permute.xlu0 %1813 }
 0x4ee   :  { %v1847_v48 = vmul.f32 %v1814_v46, %v4883_v40 }
 0x4ef   :  { %v2796_v12 = vpack.i.bf16 %v1829_v27, %v1845_v0 }
 0x4f0   :  { %v1729_v43 = vpop.permute.xlu1 %1728 }
 0x4f1   :  { %v1830_v60 = vmul.f32 %v1729_v43, %v4882_v1  ;;  %2797 = vrot.lane.b32.xlu0 %v2796_v12, %s3120_s3 }
 0x4f3   :  { %v2801_v25 = vpack.i.bf16 %v1830_v60, %v1846_v42 }
 0x4f4   :  { %v1734_v11 = vpop.permute.xlu1 %1733 }
 0x4f5   :  { %v1831_v51 = vmul.f32 %v1734_v11, %v4884_v23  ;;  %2802 = vrot.lane.b32.xlu0 %v2801_v25, %s3120_s3 }
 0x4f7   :  { %v2806_v56 = vpack.i.bf16 %v1831_v51, %v1847_v48 }
 0x4f8   :  { %v2653_v18 = vpop.permute.xlu1 %2652 }
 0x4f9   :  { %2807 = vrot.lane.b32.xlu0 %v2806_v56, %s3120_s3  ;;  %v2655_v9 = vunpack.i.h.bf16 %v2653_v18  ;;  %v2654_v14 = vunpack.i.l.bf16 %v2653_v18 }
 0x4fc   :  { %v2658_v41 = vpop.permute.xlu1 %2657 }
 0x4fd   :  { %v2660_v8 = vunpack.i.h.bf16 %v2658_v41  ;;  %v2659_v20 = vunpack.i.l.bf16 %v2658_v41 }
 0x500   :  { %v2663_v37 = vpop.permute.xlu1 %2662 }
 0x501   :  { %v2665_v55 = vunpack.i.h.bf16 %v2663_v37  ;;  %v2664_v47 = vunpack.i.l.bf16 %v2663_v37 }
 0x504   :  { %v2668_v3 = vpop.permute.xlu1 %2667 }
 0x505   :  { %v2670_v10 = vunpack.i.h.bf16 %v2668_v3  ;;  %v2669_v62 = vunpack.i.l.bf16 %v2668_v3 }
 0x508   :  { %v2673_v49 = vpop.permute.xlu1 %2672 }
 0x509   :  { %v2675_v43 = vunpack.i.h.bf16 %v2673_v49  ;;  %v2674_v60 = vunpack.i.l.bf16 %v2673_v49 }
 0x50c   :  { %v4421_v13 = vpop.permute.xlu1 %2677 }
 0x50d   :  { %v2680_v23 = vunpack.i.h.bf16 %v4421_v13  ;;  %v2679_v41 = vunpack.i.l.bf16 %v4421_v13 }
 0x510   :  { %v4427_v29 = vpop.permute.xlu1 %2682 }
 0x514   :  { %v4433_v26 = vpop.permute.xlu1 %2687 }
 0x518   :  { %v2693_v7 = vpop.permute.xlu1 %2692 }
 0x51c   :  { %v2698_v37 = vpop.permute.xlu1 %2697 }
 0x52c   :  { %v2733_v38 = vpop.permute.xlu0 %2732 }
 0x52d   :  { %v2735_v2 = vunpack.i.h.bf16 %v2733_v38  ;;  %v2734_v45 = vunpack.i.l.bf16 %v2733_v38 }
 0x52f   :  { %v2072_v15 = vsel %vm4885_vm9, %v2735_v2, %v2655_v9  ;;  %v2088_v52 = vsel %vm4886_vm0, %v2734_v45, %v2654_v14  ;;  %v2685_v2 = vunpack.i.h.bf16 %v4427_v29  ;;  %vm4898_vm9 = vmmov %vm4886_vm0 }
 0x530   :  { %v2105_v31 = vsel %vm2104_vm3, %v2072_v15, 1.0  ;;  %v2121_v19 = vsel %vm2104_vm3, %v2088_v52, 1.0 }
 0x531   :  { %v2811_v22 = vpack.i.bf16 %v2105_v31, %v2121_v19  ;;  %v2684_v31 = vunpack.i.l.bf16 %v4427_v29 }
 0x533   :  { %2812 = vxpose.xlu0.b32.start [1/16] (narrow) %v2811_v22, 24  ;;  %v2738_v33 = vpop.permute.xlu0 %2737 }
 0x534   :  { %v2740_v21 = vunpack.i.h.bf16 %v2738_v33  ;;  %v2739_v54 = vunpack.i.l.bf16 %v2738_v33  ;;  %v2703_v33 = vpop.permute.xlu1 %2702 }
 0x536   :  { %v2073_v17 = vsel %vm4887_vm15, %v2740_v21, %v2660_v8  ;;  %v2089_v35 = vsel %vm4888_vm10, %v2739_v54, %v2659_v20  ;;  %v2690_v21 = vunpack.i.h.bf16 %v4433_v26  ;;  %vm4899_vm15 = vmmov %vm4886_vm0 }
 0x537   :  { %v2106_v58 = vsel %vm2104_vm3, %v2073_v17, 1.0  ;;  %v2122_v57 = vsel %vm2104_vm3, %v2089_v35, 1.0  ;;  %v2743_v6 = vpop.permute.xlu0 %2742  ;;  %vm4900_vm10 = vmmov %vm4886_vm0 }
 0x538   :  { %v2745_v5 = vunpack.i.h.bf16 %v2743_v6  ;;  %v2744_v36 = vunpack.i.l.bf16 %v2743_v6  ;;  %v2813_v44 = vpack.i.bf16 %v2106_v58, %v2122_v57 }
 0x53a   :  { %v2074_v53 = vsel %vm4889_vm11, %v2745_v5, %v2665_v55  ;;  %v2090_v63 = vsel %vm4890_vm2, %v2744_v36, %v2664_v47  ;;  %2814 = vxpose.xlu0.b32.cont [2/16] (narrow) %v2813_v44, 24  ;;  %v2689_v55 = vunpack.i.l.bf16 %v4433_v26  ;;  %v2695_v5 = vunpack.i.h.bf16 %v2693_v7  ;;  %vm4901_vm11 = vmmov %vm4886_vm0 }
 0x53b   :  { %v2107_v28 = vsel %vm2104_vm3, %v2074_v53, 1.0  ;;  %v2123_v32 = vsel %vm2104_vm3, %v2090_v63, 1.0  ;;  %v2748_v4 = vpop.permute.xlu0 %2747  ;;  %v2694_v63 = vunpack.i.l.bf16 %v2693_v7  ;;  %vm4902_vm2 = vmmov %vm4886_vm0 }
 0x53c   :  { %v2750_v50 = vunpack.i.h.bf16 %v2748_v4  ;;  %v2749_v59 = vunpack.i.l.bf16 %v2748_v4  ;;  %v2815_v0 = vpack.i.bf16 %v2107_v28, %v2123_v32 }
 0x53e   :  { %v2075_v27 = vsel %vm4891_vm5, %v2750_v50, %v2670_v10  ;;  %v2091_v12 = vsel %vm4892_vm12, %v2749_v59, %v2669_v62  ;;  %2816 = vxpose.xlu0.b32.cont [3/16] (narrow) %v2815_v0, 24  ;;  %v2708_v10 = vpop.permute.xlu1 %2707  ;;  %v2700_v50 = vunpack.i.h.bf16 %v2698_v37  ;;  %vm4903_vm5 = vmmov %vm4886_vm0 }
 0x53f   :  { %v2108_v34 = vsel %vm2104_vm3, %v2075_v27, 1.0  ;;  %v2124_v42 = vsel %vm2104_vm3, %v2091_v12, 1.0  ;;  %v2753_v1 = vpop.permute.xlu0 %2752  ;;  %v2699_v12 = vunpack.i.l.bf16 %v2698_v37  ;;  %vm4904_vm12 = vmmov %vm4886_vm0  ;;  %v2710_v37 = vunpack.i.h.bf16 %v2708_v10 }
 0x540   :  { %v2755_v46 = vunpack.i.h.bf16 %v2753_v1  ;;  %v2754_v25 = vunpack.i.l.bf16 %v2753_v1  ;;  %v2817_v11 = vpack.i.bf16 %v2108_v34, %v2124_v42 }
 0x542   :  { %v2076_v40 = vsel %vm4893_vm7, %v2755_v46, %v2675_v43  ;;  %v2092_v48 = vsel %vm4894_vm8, %v2754_v25, %v2674_v60  ;;  %2818 = vxpose.xlu0.b32.cont [4/16] (narrow) %v2817_v11, 24  ;;  %v2713_v7 = vpop.permute.xlu1 %2712  ;;  %v2705_v46 = vunpack.i.h.bf16 %v2703_v33  ;;  %vm4905_vm7 = vmmov %vm4886_vm0 }
 0x543   :  { %v2109_v51 = vsel %vm2104_vm3, %v2076_v40, 1.0  ;;  %v2125_v56 = vsel %vm2104_vm3, %v2092_v48, 1.0  ;;  %v2758_v18 = vpop.permute.xlu0 %2757  ;;  %v2704_v48 = vunpack.i.l.bf16 %v2703_v33  ;;  %vm4906_vm8 = vmmov %vm4886_vm0 }
 0x544   :  { %v2760_v3 = vunpack.i.h.bf16 %v2758_v18  ;;  %v2759_v49 = vunpack.i.l.bf16 %v2758_v18  ;;  %v2819_v38 = vpack.i.bf16 %v2109_v51, %v2125_v56 }
 0x546   :  { %v2077_v9 = vsel %vm4895_vm4, %v2760_v3, %v2680_v23  ;;  %v2093_v14 = vsel %vm4896_vm13, %v2759_v49, %v2679_v41  ;;  %2820 = vxpose.xlu0.b32.cont [5/16] (narrow) %v2819_v38, 24  ;;  %vm4907_vm4 = vmmov %vm4886_vm0 }
 0x547   :  { %v2110_v45 = vsel %vm2104_vm3, %v2077_v9, 1.0  ;;  %v2126_v15 = vsel %vm2104_vm3, %v2093_v14, 1.0  ;;  %v2763_v52 = vpop.permute.xlu0 %2762  ;;  %v2709_v9 = vunpack.i.l.bf16 %v2708_v10  ;;  %v2718_v14 = vpop.permute.xlu1 %2717  ;;  %vm4908_vm13 = vmmov %vm4886_vm0 }
 0x548   :  { %v2765_v19 = vunpack.i.h.bf16 %v2763_v52  ;;  %v2764_v13 = vunpack.i.l.bf16 %v2763_v52  ;;  %v2821_v22 = vpack.i.bf16 %v2110_v45, %v2126_v15 }
 0x54a   :  { %v2078_v8 = vsel %vm4897_vm14, %v2765_v19, %v2685_v2  ;;  %v2094_v20 = vsel %vm4898_vm9, %v2764_v13, %v2684_v31  ;;  %2822 = vxpose.xlu0.b32.cont [6/16] (narrow) %v2821_v22, 24  ;;  %v2715_v19 = vunpack.i.h.bf16 %v2713_v7  ;;  %vm4909_vm14 = vmmov %vm4886_vm0 }
 0x54b   :  { %v2111_v54 = vsel %vm2104_vm3, %v2078_v8, 1.0  ;;  %v2127_v17 = vsel %vm2104_vm3, %v2094_v20, 1.0  ;;  %v2768_v35 = vpop.permute.xlu0 %2767  ;;  %v2714_v8 = vunpack.i.l.bf16 %v2713_v7  ;;  %vm4910_vm9 = vmmov %vm4886_vm0 }
 0x54c   :  { %v2770_v58 = vunpack.i.h.bf16 %v2768_v35  ;;  %v2769_v29 = vunpack.i.l.bf16 %v2768_v35  ;;  %v2823_v57 = vpack.i.bf16 %v2111_v54, %v2127_v17  ;;  %v2723_v17 = vpop.permute.xlu1 %2722 }
 0x54d   :  { %v2725_v10 = vunpack.i.h.bf16 %v2723_v17 }
 0x54e   :  { %v2079_v6 = vsel %vm4886_vm0, %v2770_v58, %v2690_v21  ;;  %v2095_v47 = vsel %vm4899_vm15, %v2769_v29, %v2689_v55  ;;  %2824 = vxpose.xlu0.b32.cont [7/16] (narrow) %v2823_v57, 24  ;;  %v2720_v58 = vunpack.i.h.bf16 %v2718_v14  ;;  %vm4911_vm15 = vmmov %vm4886_vm0 }
 0x54f   :  { %v2112_v36 = vsel %vm2104_vm3, %v2079_v6, 1.0  ;;  %v2128_v44 = vsel %vm2104_vm3, %v2095_v47, 1.0  ;;  %v2773_v53 = vpop.permute.xlu0 %2772  ;;  %v2719_v47 = vunpack.i.l.bf16 %v2718_v14 }
 0x550   :  { %v2775_v28 = vunpack.i.h.bf16 %v2773_v53  ;;  %v2774_v32 = vunpack.i.l.bf16 %v2773_v53  ;;  %v2825_v4 = vpack.i.bf16 %v2112_v36, %v2128_v44 }
 0x552   :  { %v2080_v26 = vsel %vm4900_vm10, %v2775_v28, %v2695_v5  ;;  %v2096_v62 = vsel %vm4901_vm11, %v2774_v32, %v2694_v63  ;;  %2826 = vxpose.xlu0.b32.cont [8/16] (narrow) %v2825_v4, 24  ;;  %vm4912_vm10 = vmmov %vm4886_vm0 }
 0x553   :  { %v2113_v59 = vsel %vm2104_vm3, %v2080_v26, 1.0  ;;  %v2129_v0 = vsel %vm2104_vm3, %v2096_v62, 1.0  ;;  %v2778_v27 = vpop.permute.xlu0 %2777  ;;  %v2724_v26 = vunpack.i.l.bf16 %v2723_v17  ;;  %v2728_v62 = vpop.permute.xlu1 %2727  ;;  %vm4913_vm11 = vmmov %vm4886_vm0 }
 0x554   :  { %v2780_v43 = vunpack.i.h.bf16 %v2778_v27  ;;  %v2779_v34 = vunpack.i.l.bf16 %v2778_v27  ;;  %v2827_v42 = vpack.i.bf16 %v2113_v59, %v2129_v0 }
 0x556   :  { %v2081_v1 = vsel %vm4902_vm2, %v2780_v43, %v2700_v50  ;;  %v2097_v60 = vsel %vm4903_vm5, %v2779_v34, %v2699_v12  ;;  %2828 = vxpose.xlu0.b32.cont [9/16] (narrow) %v2827_v42, 24  ;;  %v2730_v43 = vunpack.i.h.bf16 %v2728_v62  ;;  %vm4914_vm2 = vmmov %vm4886_vm0 }
 0x557   :  { %v2114_v25 = vsel %vm2104_vm3, %v2081_v1, 1.0  ;;  %v2130_v11 = vsel %vm2104_vm3, %v2097_v60, 1.0  ;;  %v2783_v40 = vpop.permute.xlu0 %2782  ;;  %v2729_v1 = vunpack.i.l.bf16 %v2728_v62 }
 0x558   :  { %v2785_v23 = vunpack.i.h.bf16 %v2783_v40  ;;  %v2784_v51 = vunpack.i.l.bf16 %v2783_v40  ;;  %v2829_v56 = vpack.i.bf16 %v2114_v25, %v2130_v11 }
 0x55a   :  { %v2082_v18 = vsel %vm4904_vm12, %v2785_v23, %v2705_v46  ;;  %v2098_v41 = vsel %vm4905_vm7, %v2784_v51, %v2704_v48  ;;  %2830 = vxpose.xlu0.b32.cont [10/16] (narrow) %v2829_v56, 24 }
 0x55b   :  { %v2115_v3 = vsel %vm2104_vm3, %v2082_v18, 1.0  ;;  %v2131_v49 = vsel %vm2104_vm3, %v2098_v41, 1.0  ;;  %v2788_v38 = vpop.permute.xlu0 %2787 }
 0x55c   :  { %v2790_v2 = vunpack.i.h.bf16 %v2788_v38  ;;  %v2789_v45 = vunpack.i.l.bf16 %v2788_v38  ;;  %v2831_v15 = vpack.i.bf16 %v2115_v3, %v2131_v49 }
 0x55e   :  { %v2083_v52 = vsel %vm4906_vm8, %v2790_v2, %v2710_v37  ;;  %v2099_v31 = vsel %vm4907_vm4, %v2789_v45, %v2709_v9  ;;  %2832 = vxpose.xlu0.b32.cont [11/16] (narrow) %v2831_v15, 24  ;;  %v1422_v2 = vmul.f32 1.442695, %v1421_v30  ;;  %v2295_v30 = vld [vmem:[#allocation3] sm:$0x1] }
 0x55f   :  { %v2116_v13 = vsel %vm2104_vm3, %v2083_v52, 1.0  ;;  %v2132_v22 = vsel %vm2104_vm3, %v2099_v31, 1.0  ;;  %v2793_v33 = vpop.permute.xlu0 %2792  ;;  %v2281_v52 = vld [vmem:[#allocation5] sm:$0xff] }
 0x560   :  { %v2795_v20 = vunpack.i.h.bf16 %v2793_v33  ;;  %v2794_v21 = vunpack.i.l.bf16 %v2793_v33  ;;  %v2833_v54 = vpack.i.bf16 %v2116_v13, %v2132_v22  ;;  %2941 = vpow2.f32 %v1422_v2 }
 0x562   :  { %v2084_v35 = vsel %vm4908_vm13, %v2795_v20, %v2715_v19  ;;  %v2100_v55 = vsel %vm4909_vm14, %v2794_v21, %v2714_v8  ;;  %2834 = vxpose.xlu0.b32.cont [12/16] (narrow) %v2833_v54, 24  ;;  %v3121_v19 = vmov 1966171168   ;;  %v2282_v20 = vld [vmem:[#allocation5 + $0x8] sm:$0xff] }
 0x563   :  { %v2117_v29 = vsel %vm2104_vm3, %v2084_v35, 1.0  ;;  %v2133_v57 = vsel %vm2104_vm3, %v2100_v55, 1.0  ;;  %v2798_v6 = vpop.permute.xlu0 %2797  ;;  %v2302_v13 = vunpack.c.l.s4 %v3121_v19 }
 0x564   :  { %v2800_v5 = vunpack.i.h.bf16 %v2798_v6  ;;  %v2799_v36 = vunpack.i.l.bf16 %v2798_v6  ;;  %v2835_v44 = vpack.i.bf16 %v2117_v29, %v2133_v57 }
 0x565   :  { %v2303_v17 = vunpack.c.0.s8 %v2302_v13 }
 0x566   :  { %v2085_v53 = vsel %vm4910_vm9, %v2800_v5, %v2720_v58  ;;  %v2101_v63 = vsel %vm4886_vm0, %v2799_v36, %v2719_v47  ;;  %2836 = vxpose.xlu0.b32.cont [13/16] (narrow) %v2835_v44, 24 }
 0x567   :  { %v2118_v28 = vsel %vm2104_vm3, %v2085_v53, 1.0  ;;  %v2134_v32 = vsel %vm2104_vm3, %v2101_v63, 1.0  ;;  %v2803_v4 = vpop.permute.xlu0 %2802  ;;  %v2306_v29 = vsub.s32 %v2303_v17, %v4024_v39  ;;  %v2299_v53 = vld [vmem:[#allocation4] sm:$0x1] }
 0x568   :  { %v2805_v50 = vunpack.i.h.bf16 %v2803_v4  ;;  %v2804_v59 = vunpack.i.l.bf16 %v2803_v4  ;;  %v2837_v0 = vpack.i.bf16 %v2118_v28, %v2134_v32 }
 0x56a   :  { %v2086_v27 = vsel %vm4911_vm15, %v2805_v50, %v2725_v10  ;;  %v2102_v12 = vsel %vm4912_vm10, %v2804_v59, %v2724_v26  ;;  %2838 = vxpose.xlu0.b32.cont [14/16] (narrow) %v2837_v0, 24  ;;  %v2942_v45 = vpop.eup %2941 }
 0x56b   :  { %v2119_v34 = vsel %vm2104_vm3, %v2086_v27, 1.0  ;;  %v2135_v42 = vsel %vm2104_vm3, %v2102_v12, 1.0  ;;  %v2808_v7 = vpop.permute.xlu0 %2807  ;;  %v2287_v15 = vrot.slane %v2942_v45, %v4029_v16  ;;  %v2296_v47 = vmul.f32 %v2942_v45, %v2295_v30 }
 0x56c   :  { %v2810_v60 = vunpack.i.h.bf16 %v2808_v7  ;;  %v2809_v46 = vunpack.i.l.bf16 %v2808_v7  ;;  %v2839_v25 = vpack.i.bf16 %v2119_v34, %v2135_v42  ;;  %v2378_v7 = vld [vmem:[#allocation11] sm:$0xff] }
 0x56d   :  { %v2289_v8 = vmul.f32 %v2287_v15, %v2281_v52  ;;  %v2290_v24 = vmul.f32 %v2287_v15, %v2282_v20 }
 0x56e   :  { %v2087_v11 = vsel %vm4913_vm11, %v2810_v60, %v2730_v43  ;;  %v2103_v40 = vsel %vm4914_vm2, %v2809_v46, %v2729_v1  ;;  %2840 = vxpose.xlu0.b32.cont [15/16] (narrow) %v2839_v25, 24 }
 0x56f   :  { %v2120_v48 = vsel %vm2104_vm3, %v2087_v11, 1.0  ;;  %v2136_v23 = vsel %vm2104_vm3, %v2103_v40, 1.0 }
 0x570   :  { %v2841_v51 = vpack.i.bf16 %v2120_v48, %v2136_v23 }
 0x572   :  { %2842 = vxpose.xlu0.b32.end [16/16] (narrow) %v2841_v51, 24 }
 0x5b6   :  { %v2843_v56 = vpop.trf.xlu0 }
 0x5b7   :  { %v2844_v18 = vunpack.i.l.bf16 %v2843_v56  ;;  %v2847_v41 = vunpack.i.h.bf16 %v2843_v56 }
 0x5b9   :  { %2265 = vmatprep.mubr.f32.mxu1 %v2844_v18 }
 0x5ba   :  { %v2848_v37 = vpop.trf.xlu0  ;;  %2266 = vmatmul.mubr.f32.vlgmr.msra.gmra.mrb[0].mxu1 %v2847_v41 }
 0x5bb   :  { %v2849_v3 = vunpack.i.l.bf16 %v2848_v37  ;;  %v2852_v49 = vunpack.i.h.bf16 %v2848_v37 }
 0x5bd   :  { %2270 = vmatprep.mubr.f32.mxu1 %v2849_v3 }
 0x5be   :  { %v2853_v38 = vpop.trf.xlu0  ;;  %2271 = vmatmul.mubr.f32.gmra.mrb[2].mxu1 %v2852_v49 }
 0x5bf   :  { %v2857_v9 = vunpack.i.h.bf16 %v2853_v38  ;;  %v2854_v14 = vunpack.i.l.bf16 %v2853_v38 }
 0x5c1   :  { %2275 = vmatprep.mubr.f32.mxu1 %v2854_v14 }
 0x5c2   :  { %2276 = vmatmul.mubr.f32.gmra.mrb[4].mxu1 %v2857_v9 }
 0x68d   :  { %v2550_v31 = vpop.f32.mrb[0].mxu1 }
 0x68e   :  { %v2551_v22 = vpop.f32.mrb[1].mxu1 }
 0x68f   :  { %v2552_v33 = vadd.f32 %v2551_v22, %v2550_v31 }
 0x691   :  { %v2291_v21 = vadd.f32 %v2552_v33, %v2289_v8  ;;  %v2553_v54 = vpop.f32.mrb[2].mxu1 }
 0x692   :  { %v2554_v35 = vpop.f32.mrb[3].mxu1 }
 0x693   :  { %2293 = vst.msk [vmem:[#allocation5] sm:$0xff] %vm94_vm1, %v2291_v21  ;;  %v2555_v61 = vadd.f32 %v2554_v35, %v2553_v54 }
 0x695   :  { %v2292_v55 = vadd.f32 %v2555_v61, %v2290_v24  ;;  %v2556_v58 = vpop.f32.mrb[4].mxu1 }
 0x696   :  { %v2557_v57 = vpop.f32.mrb[5].mxu1 }
 0x697   :  { %2294 = vst.msk [vmem:[#allocation5 + $0x8] sm:$0xff] %vm94_vm1, %v2292_v55  ;;  %v2558_v6 = vadd.f32 %v2557_v57, %v2556_v58  ;;  %vm4915_vm1 = vmmov %vm4886_vm0 }
 0x699   :  { %v2297_v5 = vadd.f32 %v2558_v6, %v2296_v47  ;;  %v2307_v36 = vrot.slane %v2558_v6, %v2306_v29 }
 0x69a   :  { %v2328_v59 = vld [vmem:[#allocation5] sm:$0xff] }
 0x69b   :  { %2298 = vst.msk [vmem:[#allocation3] sm:$0x1] %vm90_vm6, %v2297_v5  ;;  %v2308_v44 = vcombine.high %v2307_v36, %v2307_v36 }
 0x69d   :  { %v2315_v63 = vrot.slane %v2308_v44, %v2306_v29 }
 0x69e   :  { %v2329_v43 = vld [vmem:[#allocation5 + $0x8] sm:$0xff] }
 0x69f   :  { %v2317_v10 = vadd.f32 %v2315_v63, %v2299_v53 }
 0x6a1   :  { %2318 = vst.msk [vmem:[#allocation4] sm:$0x1] %vm90_vm6, %v2317_v10 }
 0x6a2   :  { %v2322_v28 = vld [vmem:[#allocation3] sm:$0x1] }
 0x6a3   :  { %v2323_v32 = vadd.f32 1e-16, %v2322_v28 }
 0x6a5   :  { %2943 = vrcp.f32 %v2323_v32 }
 0x6a8   :  { %v2325_v4 = vld [vmem:[#allocation4] sm:$0x1] }
 0x6a9   :  { %v2326_v39 = vmax.f32 %v2325_v4, 1.0 }
 0x6ab   :  { %2945 = vrcp.f32 %v2326_v39 }
 0x6af   :  { %v2944_v26 = vpop.eup %2943 }
 0x6b0   :  { %v2334_v62 = vrot.slane %v2944_v26, %v4029_v16 }
 0x6b2   :  { %v2336_v0 = vmul.f32 %v2334_v62, %v2328_v59  ;;  %v2337_v34 = vmul.f32 %v2334_v62, %v2329_v43 }
 0x6b5   :  { %v2946_v50 = vpop.eup %2945 }
 0x6b6   :  { %v2342_v27 = vrot.slane %v2946_v50, %v4029_v16 }
 0x6b8   :  { %v2344_v12 = vmul.f32 %v2342_v27, %v2336_v0  ;;  %v2345_v42 = vmul.f32 %v2342_v27, %v2337_v34 }
 0x6ba   :  { %2346 = vxpose.xlu1.b32.start [1/2] (short) (narrow) %v2344_v12, 8 }
 0x6be   :  { %2347 = vxpose.xlu1.b32.end [2/2] (short) (narrow) %v2345_v42, 8 }
 0x73a   :  { %v2362_v1 = vpop.trf.xlu1 }
 0x73b   :  { %v2379_v60 = vadd.f32 %v2378_v7, %v2362_v1 }
 0x73d   :  { %v2380_v46 = vmax.f32 %v2379_v60, 0.0 }
 0x73f   :  { %2381 = vst.msk [vmem:[#allocation15] sm:$0xff] %vm4915_vm1, %v2380_v46 }
 0x740   :  { %3085 = shalt.err (!%p3082_p2)
}
 0x741   :  { %s3086_s11 = scalar_lea.hbm %s4526_s5, 128 }
 0x742   :  { %p3087_p3 = scmp.ne.s32.totalorder %s4526_s5, %s3086_s11  ;;  %p3090_p4 = scmp.lt.u32.totalorder %s3086_s11, %s4526_s5 }
 0x744   :  { %p3092_p5 = pnand %p3090_p4, %p3087_p3 }
 0x746   :  { %3095 = shalt.err (!%p3092_p5)
}
 0x747   :  { %2391 = dma.vmem_to_hbm [thread:$0]  %s2389_s6, 128, %s4526_s5, [#allocation8]  }
 0x748   :  { %3102 = dma.done.wait [#allocation8], 128  }
 0x749   :  { %3103 = vsyncadd [#allocation8], 4294967168 }
 0x74a   :  { %2395 = vsyncpa [#allocation7], 1 }
 0x74b   :  { %2396 = vsyncpa [#allocation10], 1 }
 0x74c   :  { %2397 = vsyncpa [#allocation13], 1 }
 0x74d   :  { %2398 = vsyncpa [#allocation8], 1 }

// kernel: feature_extractor_layer_forward.4
= control target key start
LH: loop header
LB: loop body
LE: loop exit
PB: predicated region body
PF: predicated region fallthrough
CT: control target
= control target key end

     0   :  { %10 = vsyncpa [#allocation7], 0  ;;  %s4521_s0 = inlined_call_operand.hbm [shape: bf16[256,46], index: 0, kind: input, shape index: {}]   ;;  %s4522_s1 = inlined_call_operand.hbm [shape: s32[256,1], index: 1, kind: input, shape index: {}]   ;;  %s4523_s2 = inlined_call_operand.hbm [shape: f32[8,16], index: 2, kind: input, shape index: {}]   ;;  %s4524_s3 = inlined_call_operand.hbm [shape: bf16[46,48], index: 3, kind: input, shape index: {}]   ;;  %s4525_s4 = inlined_call_operand.hbm [shape: f32[1,48], index: 4, kind: input, shape index: {}]   ;;  %s4526_s5 = inlined_call_operand.hbm [shape: f32[8,16], index: 5, kind: output, shape index: {}]  }
   0x1   :  { %11 = vsyncpa [#allocation10], 0 }
   0x2   :  { %12 = vsyncpa [#allocation13], 0 }
   0x3   :  { %13 = vsyncpa [#allocation8], 0  ;;  %s3108_s18 = smov [#allocation9]   ;;  %s2968_s22 = scalar_lea.hbm %s4522_s1, 4096 }
   0x4   :  { %s31_s19 = sshll.u32 %s3108_s18, 4  ;;  %p2969_p0 = scmp.ne.s32.totalorder %s4522_s1, %s2968_s22  ;;  %s32_s19 = int_to_ptr.vmem [resolvable:$true] %s31_s19 }
   0x5   :  { %p2972_p1 = scmp.lt.u32.totalorder %s2968_s22, %s4522_s1 }
   0x7   :  { %p2974_p2 = pnand %p2972_p1, %p2969_p0 }
   0x9   :  { %2977 = shalt.err (!%p2974_p2)
}
   0xa   :  { %s2978_s27 = scalar_lea.vmem %s32_s19, 4096  ;;  %p2983_p4 = scmp.lt.s32.totalorder %s32_s19, %s32_s19 }
   0xb   :  { %p2979_p3 = scmp.ne.s32.totalorder %s32_s19, %s2978_s27  ;;  %p2984_p5 = scmp.lt.s32.totalorder %s2978_s27, %s2978_s27 }
   0xd   :  { %p2985_p6 = por %p2984_p5, %p2983_p4 }
   0xf   :  { %p2986_p7 = pnand %p2985_p6, %p2979_p3 }
  0x11   :  { %2989 = shalt.err (!%p2986_p7)
}
  0x12   :  { %s3109_s28 = smov 128   ;;  %s3110_s29 = smov 8  }
  0x13   :  { %37 = dma.hbm_to_vmem [thread:$0]  %s4522_s1, 4096, %s32_s19, [#allocation10], %s3109_s28, %s3109_s28, %s3110_s29  }
  0x14   :  { %s3111_s7 = smov [#allocation12]   ;;  %s3112_s9 = smov [#allocation6]  }
  0x15   :  { %s53_s8 = sshll.u32 %s3111_s7, 4  ;;  %s19_s10 = sshll.u32 %s3112_s9, 4  ;;  %s54_s8 = int_to_ptr.vmem [resolvable:$true] %s53_s8  ;;  %s20_s10 = int_to_ptr.vmem [resolvable:$true] %s19_s10 }
  0x16   :  { %s2990_s13 = scalar_lea.hbm %s4524_s3, 384 }
  0x17   :  { %p2991_p8 = scmp.ne.s32.totalorder %s4524_s3, %s2990_s13  ;;  %p2994_p9 = scmp.lt.u32.totalorder %s2990_s13, %s4524_s3 }
  0x19   :  { %p2996_p10 = pnand %p2994_p9, %p2991_p8 }
  0x1b   :  { %2999 = shalt.err (!%p2996_p10)
}
  0x1c   :  { %s3000_s1 = scalar_lea.vmem %s54_s8, 384  ;;  %p3005_p12 = scmp.lt.s32.totalorder %s54_s8, %s54_s8 }
  0x1d   :  { %p3001_p11 = scmp.ne.s32.totalorder %s54_s8, %s3000_s1  ;;  %p3006_p13 = scmp.lt.s32.totalorder %s3000_s1, %s3000_s1 }
  0x1f   :  { %p3007_p0 = por %p3006_p13, %p3005_p12 }
  0x21   :  { %p3008_p1 = pnand %p3007_p0, %p3001_p11 }
  0x23   :  { %3011 = shalt.err (!%p3008_p1)
}
  0x24   :  { %s3113_s18 = smov 64   ;;  %s3114_s19 = smov 4  }
  0x25   :  { %59 = dma.hbm_to_vmem [thread:$0]  %s4524_s3, 384, %s54_s8, [#allocation13], %s3113_s18, %s3113_s18, %s3114_s19  }
  0x26   :  { %s3012_s24 = scalar_lea.hbm %s4521_s0, 2048 }
  0x27   :  { %p3013_p2 = scmp.ne.s32.totalorder %s4521_s0, %s3012_s24  ;;  %p3016_p3 = scmp.lt.u32.totalorder %s3012_s24, %s4521_s0 }
  0x29   :  { %p3018_p4 = pnand %p3016_p3, %p3013_p2 }
  0x2b   :  { %3021 = shalt.err (!%p3018_p4)
}
  0x2c   :  { %s3022_s29 = scalar_lea.vmem %s20_s10, 2048  ;;  %p3027_p6 = scmp.lt.s32.totalorder %s20_s10, %s20_s10 }
  0x2d   :  { %p3023_p5 = scmp.ne.s32.totalorder %s20_s10, %s3022_s29  ;;  %p3028_p7 = scmp.lt.s32.totalorder %s3022_s29, %s3022_s29 }
  0x2f   :  { %p3029_p8 = por %p3028_p7, %p3027_p6 }
  0x31   :  { %p3030_p9 = pnand %p3029_p8, %p3023_p5 }
  0x33   :  { %3033 = shalt.err (!%p3030_p9)
}
  0x34   :  { %25 = dma.hbm_to_vmem [thread:$0]  %s4521_s0, 2048, %s20_s10, [#allocation7], %s3113_s18, %s3113_s18, %s3114_s19  }
  0x35   :  { %s3115_s6 = smov [#allocation11]   ;;  %s3116_s8 = smov [#allocation14]  }
  0x36   :  { %s44_s7 = sshll.u32 %s3115_s6, 4  ;;  %s66_s9 = sshll.u32 %s3116_s8, 4  ;;  %s45_s7 = int_to_ptr.vmem [resolvable:$true] %s44_s7  ;;  %s67_s9 = int_to_ptr.vmem [resolvable:$true] %s66_s9 }
  0x37   :  { %s3034_s13 = scalar_lea.hbm %s4523_s2, 128 }
  0x38   :  { %p3035_p10 = scmp.ne.s32.totalorder %s4523_s2, %s3034_s13  ;;  %p3038_p11 = scmp.lt.u32.totalorder %s3034_s13, %s4523_s2 }
  0x3a   :  { %p3040_p12 = pnand %p3038_p11, %p3035_p10 }
  0x3c   :  { %3043 = shalt.err (!%p3040_p12)
}
  0x3d   :  { %s3044_s0 = scalar_lea.vmem %s45_s7, 128  ;;  %p3049_p0 = scmp.lt.s32.totalorder %s45_s7, %s45_s7 }
  0x3e   :  { %p3045_p13 = scmp.ne.s32.totalorder %s45_s7, %s3044_s0  ;;  %p3050_p1 = scmp.lt.s32.totalorder %s3044_s0, %s3044_s0 }
  0x40   :  { %p3051_p2 = por %p3050_p1, %p3049_p0 }
  0x42   :  { %p3052_p3 = pnand %p3051_p2, %p3045_p13 }
  0x44   :  { %3055 = shalt.err (!%p3052_p3)
}
  0x45   :  { %47 = dma.hbm_to_vmem [thread:$0]  %s4523_s2, 128, %s45_s7, [#allocation10]  }
  0x46   :  { %s3056_s20 = scalar_lea.hbm %s4525_s4, 16 }
  0x47   :  { %p3057_p4 = scmp.ne.s32.totalorder %s4525_s4, %s3056_s20  ;;  %p3060_p5 = scmp.lt.u32.totalorder %s3056_s20, %s4525_s4 }
  0x49   :  { %p3062_p6 = pnand %p3060_p5, %p3057_p4 }
  0x4b   :  { %3065 = shalt.err (!%p3062_p6)
}
  0x4c   :  { %s3066_s25 = scalar_lea.vmem %s67_s9, 16  ;;  %s3070_s26 = scalar_lea.vmem %s67_s9, 32 }
  0x4d   :  { %p3067_p7 = scmp.ne.s32.totalorder %s67_s9, %s3066_s25  ;;  %p3071_p8 = scmp.lt.s32.totalorder %s67_s9, %s67_s9 }
  0x4e   :  { %p3072_p9 = scmp.lt.s32.totalorder %s3070_s26, %s3066_s25 }
  0x50   :  { %p3073_p10 = por %p3072_p9, %p3071_p8 }
  0x52   :  { %p3074_p11 = pnand %p3073_p10, %p3067_p7 }
  0x54   :  { %3077 = shalt.err (!%p3074_p11)
}
  0x55   :  { %69 = dma.hbm_to_vmem [thread:$0]  %s4525_s4, 16, %s67_s9, [#allocation13]  }
  0x56   :  { %3100 = dma.done.wait [#allocation7], 2048  }
  0x57   :  { %3101 = vsyncadd [#allocation7], 4294965248 }
  0x58   :  { %3102 = dma.done.wait [#allocation10], 4224  }
  0x59   :  { %3103 = vsyncadd [#allocation10], 4294963072 }
  0x5a   :  { %3104 = dma.done.wait [#allocation13], 400  }
  0x5b   :  { %3105 = vsyncadd [#allocation13], 4294966896  ;;  %v3117_v0 = vmov 0   ;;  %v2861_v1 = vld [vmem:[#allocation12] sm:$0xff]   ;;  %v2862_v2 = vld [vmem:[#allocation12 + $0x8] sm:$0xff]   ;;  %vm239_vm0 = vcmask 375808  }
  0x5c   :  { %2652 = vset.pattern.permute.xlu1 %v3117_v0  ;;  %2653 = vset.pattern.permute.xlu0 %v3117_v0  ;;  %v2864_v3 = vld [vmem:[#allocation6] sm:$0xff]   ;;  %v2863_v4 = vld [vmem:[#allocation12 + $0x10] sm:$0x7f]   ;;  %vm288_vm1 = vcmask 1046528   ;;  %v2865_v6 = vld [vmem:[#allocation6 + $0x8] sm:$0xff]   ;;  %s3119_s4 = smov 32  }
  0x5d   :  { %2562 = vmatprep.subr.bf16.mxu0 %v2861_v1  ;;  %2568 = vmatprep.mubr.msk.bf16.mxu0 %vm239_vm0, %v2864_v3  ;;  %v290_v5 = vsel %vm288_vm1, %v2863_v4, 0  ;;  %v2866_v7 = vld [vmem:[#allocation6 + $0x10] sm:$0xff]   ;;  %v3220_v8 = vld [vmem:[#allocation9] sm:$0xff]  ;;  %v2867_v9 = vld [vmem:[#allocation6 + $0x18] sm:$0xff]   ;;  %s3120_s28 = smov 96   ;;  %s3123_s29 = smov 16  }
  0x5e   :  { %2563 = vmatpush3.bf16.msra.mxu0 %v2861_v1  ;;  %969 = vperm.xlu1 %2652, %v3220_v8   ;;  %v2868_v10 = vld [vmem:[#allocation6 + $0x20] sm:$0xff]   ;;  %v3223_v11 = vld [vmem:[#allocation9 + $0x10] sm:$0xff]  ;;  %v3225_v12 = vld [vmem:[#allocation9 + $0x8] sm:$0xff]  ;;  %s3124_s3 = smov 112   ;;  %s3126_s30 = smov [#allocation15]  }
  0x5f   :  { %2564 = vmatprep.subr.bf16.mxu0 %v2862_v2  ;;  %v3230_v13 = vld [vmem:[#allocation9 + $0x18] sm:$0xff]  ;;  %972 = vperm.xlu0 %2653, %v3225_v12   ;;  %v878_v14 = vld [vmem:[#allocation9 + $0x40] sm:$0xff]  ;;  %v2869_v15 = vld [vmem:[#allocation6 + $0x28] sm:$0xff]   ;;  %s2391_s6 = sshll.u32 %s3126_s30, 4  ;;  %s2392_s6 = int_to_ptr.vmem [resolvable:$true] %s2391_s6 }
  0x60   :  { %v2870_v16 = vld [vmem:[#allocation6 + $0x30] sm:$0xff]   ;;  %v3234_v17 = vld [vmem:[#allocation9 + $0x20] sm:$0xff]  ;;  %v3241_v19 = vld [vmem:[#allocation9 + $0x28] sm:$0xff]  ;;  %s3078_s7 = scalar_lea.vmem %s2392_s6, 128  ;;  %p3083_p13 = scmp.lt.s32.totalorder %s2392_s6, %s2392_s6 }
  0x61   :  { %v3236_v18 = vld [vmem:[#allocation9 + $0x50] sm:$0xff]  ;;  %v882_v20 = vld [vmem:[#allocation9 + $0x60] sm:$0xff]  ;;  %v2871_v21 = vld [vmem:[#allocation6 + $0x38] sm:$0xff]   ;;  %p3079_p12 = scmp.ne.s32.totalorder %s2392_s6, %s3078_s7  ;;  %p3084_p0 = scmp.lt.s32.totalorder %s3078_s7, %s3078_s7 }
  0x62   :  { %2565 = vmatpush3.bf16.msra.mxu0 %v2862_v2  ;;  %975 = vperm.xlu1 %2652, %v3223_v11   ;;  %v2872_v22 = vld [vmem:[#allocation6 + $0x40] sm:$0xff]   ;;  %v3245_v23 = vld [vmem:[#allocation9 + $0x30] sm:$0xff]  ;;  %v3250_v25 = vld [vmem:[#allocation9 + $0x38] sm:$0xff] }
  0x63   :  { %2632 = vmatprep.subr.msk.bf16.mxu0 %vm288_vm1, %v2863_v4  ;;  %993 = vperm.xlu0 %2653, %v878_v14   ;;  %v884_v24 = vld [vmem:[#allocation9 + $0x70] sm:$0xff]  ;;  %v886_v26 = vld [vmem:[#allocation9 + $0x80] sm:$0xff]  ;;  %v2873_v27 = vld [vmem:[#allocation6 + $0x48] sm:$0xff]   ;;  %p3085_p1 = por %p3084_p0, %p3083_p13 }
  0x64   :  { %v2874_v28 = vld [vmem:[#allocation6 + $0x50] sm:$0xff]   ;;  %v3253_v29 = vld [vmem:[#allocation9 + $0x48] sm:$0xff]  ;;  %v3258_v31 = vld [vmem:[#allocation9 + $0x58] sm:$0xff] }
  0x65   :  { %v888_v30 = vld [vmem:[#allocation9 + $0x90] sm:$0xff]  ;;  %v890_v32 = vld [vmem:[#allocation9 + $0xa0] sm:$0xff]  ;;  %v2875_v33 = vld [vmem:[#allocation6 + $0x58] sm:$0xff]   ;;  %p3086_p2 = pnand %p3085_p1, %p3079_p12 }
  0x66   :  { %2567 = vmatpush3.bf16.msra.mxu0 %v290_v5  ;;  %978 = vperm.xlu1 %2652, %v3230_v13   ;;  %v2876_v34 = vld [vmem:[#allocation6 + $0x60] sm:$0xff]   ;;  %v3261_v35 = vld [vmem:[#allocation9 + $0x68] sm:$0xff]  ;;  %v892_v36 = vld [vmem:[#allocation9 + $0xb0] sm:$0xff]  ;;  %v4546_v5 = vlaneseq }
  0x67   :  { %999 = vperm.xlu0 %2653, %v3236_v18   ;;  %v3266_v37 = vld [vmem:[#allocation9 + $0x78] sm:$0xff]  ;;  %v894_v38 = vld [vmem:[#allocation9 + $0xc0] sm:$0xff]  ;;  %v2877_v39 = vld [vmem:[#allocation6 + $0x68] sm:$0xff]  }
  0x68   :  { %v2878_v40 = vld [vmem:[#allocation6 + $0x70] sm:$0xff]   ;;  %v887_v41 = vld [vmem:[#allocation9 + $0x88] sm:$0xff]  ;;  %v3271_v43 = vld [vmem:[#allocation9 + $0x98] sm:$0xff] }
  0x69   :  { %2569 = vmatmul.mubr.msk.bf16.vlgmr.msra.gmra.mrb[0].mxu0 %vm239_vm0, %v2865_v6  ;;  %v896_v42 = vld [vmem:[#allocation9 + $0xd0] sm:$0xff]  ;;  %v898_v44 = vld [vmem:[#allocation9 + $0xe0] sm:$0xff]  ;;  %v2879_v45 = vld [vmem:[#allocation6 + $0x78] sm:$0xff]  }
  0x6a   :  { %2572 = vmatprep.mubr.msk.bf16.mxu0 %vm239_vm0, %v2866_v7  ;;  %981 = vperm.xlu1 %2652, %v3234_v17   ;;  %v891_v46 = vld [vmem:[#allocation9 + $0xa8] sm:$0xff]  ;;  %v900_v47 = vld [vmem:[#allocation9 + $0xf0] sm:$0xff]  ;;  %v893_v48 = vld [vmem:[#allocation9 + $0xb8] sm:$0xff]  ;;  %v3310_v7 = vand.u32 127, %v4546_v5 }
  0x6b   :  { %1005 = vperm.xlu0 %2653, %v882_v20   ;;  %v895_v49 = vld [vmem:[#allocation9 + $0xc8] sm:$0xff]  ;;  %v897_v50 = vld [vmem:[#allocation9 + $0xd8] sm:$0xff] }
  0x6c   :  { %v899_v51 = vld [vmem:[#allocation9 + $0xe8] sm:$0xff]  ;;  %v901_v52 = vld [vmem:[#allocation9 + $0xf8] sm:$0xff] }
  0x6e   :  { %984 = vperm.xlu1 %2652, %v3241_v19  }
  0x6f   :  { %1011 = vperm.xlu0 %2653, %v884_v24  }
  0x71   :  { %2573 = vmatmul.mubr.msk.bf16.gmra.mrb[4].mxu0 %vm239_vm0, %v2867_v9 }
  0x72   :  { %2576 = vmatprep.mubr.msk.bf16.mxu0 %vm239_vm0, %v2868_v10  ;;  %987 = vperm.xlu1 %2652, %v3245_v23  }
  0x73   :  { %1017 = vperm.xlu0 %2653, %v886_v26  }
  0x76   :  { %990 = vperm.xlu1 %2652, %v3250_v25  }
  0x77   :  { %1023 = vperm.xlu0 %2653, %v888_v30  }
  0x79   :  { %2577 = vmatmul.mubr.msk.bf16.gmra.mrb[8].mxu0 %vm239_vm0, %v2869_v15 }
  0x7a   :  { %2580 = vmatprep.mubr.msk.bf16.mxu0 %vm239_vm0, %v2870_v16  ;;  %996 = vperm.xlu1 %2652, %v3253_v29   ;;  %v3118_v16 = vmov 1.0|1.0  }
  0x7b   :  { %1029 = vperm.xlu0 %2653, %v890_v32  }
  0x7e   :  { %1002 = vperm.xlu1 %2652, %v3258_v31  }
  0x7f   :  { %1035 = vperm.xlu0 %2653, %v892_v36   ;;  %v3518_v36 = vld [vmem:[#allocation14] ss:$0 sm:$0xff] }
  0x81   :  { %2581 = vmatmul.mubr.msk.bf16.gmra.mrb[12].mxu0 %vm239_vm0, %v2871_v21 }
  0x82   :  { %2584 = vmatprep.mubr.msk.bf16.mxu0 %vm239_vm0, %v2872_v22  ;;  %1008 = vperm.xlu1 %2652, %v3261_v35  }
  0x83   :  { %1041 = vperm.xlu0 %2653, %v894_v38  }
  0x86   :  { %1014 = vperm.xlu1 %2652, %v3266_v37  }
  0x87   :  { %1047 = vperm.xlu0 %2653, %v896_v42  }
  0x89   :  { %2585 = vmatmul.mubr.msk.bf16.gmra.mrb[16].mxu0 %vm239_vm0, %v2873_v27 }
  0x8a   :  { %2588 = vmatprep.mubr.msk.bf16.mxu0 %vm239_vm0, %v2874_v28  ;;  %1020 = vperm.xlu1 %2652, %v887_v41  }
  0x8b   :  { %1053 = vperm.xlu0 %2653, %v898_v44  }
  0x8e   :  { %1026 = vperm.xlu1 %2652, %v3271_v43  }
  0x8f   :  { %1059 = vperm.xlu0 %2653, %v900_v47  }
  0x91   :  { %2589 = vmatmul.mubr.msk.bf16.gmra.mrb[20].mxu0 %vm239_vm0, %v2875_v33 }
  0x92   :  { %2592 = vmatprep.mubr.msk.bf16.mxu0 %vm239_vm0, %v2876_v34  ;;  %1032 = vperm.xlu1 %2652, %v891_v46  }
  0x96   :  { %1038 = vperm.xlu1 %2652, %v893_v48  }
  0x99   :  { %2593 = vmatmul.mubr.msk.bf16.gmra.mrb[24].mxu0 %vm239_vm0, %v2877_v39 }
  0x9a   :  { %2596 = vmatprep.mubr.msk.bf16.mxu0 %vm239_vm0, %v2878_v40  ;;  %1044 = vperm.xlu1 %2652, %v895_v49  }
  0x9e   :  { %1050 = vperm.xlu1 %2652, %v897_v50  }
  0xa1   :  { %2597 = vmatmul.mubr.msk.bf16.gmra.mrb[28].mxu0 %vm239_vm0, %v2879_v45 }
  0xa2   :  { %1056 = vperm.xlu1 %2652, %v899_v51  }
  0xa6   :  { %1062 = vperm.xlu1 %2652, %v901_v52  }
  0xdd   :  { %v3275_v53 = vpop.permute.xlu1 %969 }
  0xde   :  { %v3279_v55 = vpop.permute.xlu0 %972  ;;  %vm1064_vm2 = vcmp.eq.s32.totalorder %v3275_v53, %v3310_v7 }
  0xdf   :  { %4664 = vst [vmem:[#allocation20_spill] sm:$0xff] %v3279_v55  ;;  %vm4533_vm3 = vcmp.eq.s32.totalorder %v3279_v55, %v3310_v7 }
  0xe0   :  { %vm2602_vm6 = vmpackc.low %vm4533_vm3, %vm1064_vm2 }
  0xe1   :  { %v3277_v54 = vpop.permute.xlu1 %975 }
  0xe2   :  { %v3283_v57 = vpop.permute.xlu0 %993  ;;  %vm1066_vm7 = vcmp.eq.s32.totalorder %v3277_v54, %v3310_v7 }
  0xe3   :  { %4665 = vst [vmem:[#allocation21_spill] sm:$0xff] %v3283_v57 }
  0xe5   :  { %v3281_v56 = vpop.permute.xlu1 %978 }
  0xe6   :  { %v3287_v59 = vpop.permute.xlu0 %999  ;;  %vm1067_vm8 = vcmp.eq.s32.totalorder %v3281_v56, %v3310_v7 }
  0xe7   :  { %4666 = vst [vmem:[#allocation22_spill] sm:$0xff] %v3287_v59  ;;  %vm2606_vm12 = vmpackc.low %vm1067_vm8, %vm1066_vm7 }
  0xe9   :  { %v3285_v58 = vpop.permute.xlu1 %981 }
  0xea   :  { %v3291_v61 = vpop.permute.xlu0 %1005  ;;  %vm1068_vm13 = vcmp.eq.s32.totalorder %v3285_v58, %v3310_v7 }
  0xeb   :  { %4667 = vst [vmem:[#allocation23_spill] sm:$0xff] %v3291_v61 }
  0xed   :  { %v3289_v60 = vpop.permute.xlu1 %984 }
  0xee   :  { %v3295_v63 = vpop.permute.xlu0 %1011  ;;  %vm1069_vm14 = vcmp.eq.s32.totalorder %v3289_v60, %v3310_v7 }
  0xef   :  { %4668 = vst [vmem:[#allocation24_spill] sm:$0xff] %v3295_v63 }
  0xf1   :  { %v3293_v62 = vpop.permute.xlu1 %987 }
  0xf2   :  { %v3299_v1 = vpop.permute.xlu0 %1017 }
  0xf3   :  { %4669 = vst [vmem:[#allocation25_spill] sm:$0xff] %v3299_v1  ;;  %vm4528_vm4 = vcmp.eq.s32.totalorder %v3299_v1, %v3310_v7 }
  0xf5   :  { %v3297_v0 = vpop.permute.xlu1 %990 }
  0xf6   :  { %v3305_v4 = vpop.permute.xlu0 %1023 }
  0xf7   :  { %4672 = vst [vmem:[#allocation28_spill] sm:$0xff] %v3305_v4  ;;  %vm4532_vm10 = vcmp.eq.s32.totalorder %v3305_v4, %v3310_v7 }
  0xf9   :  { %v3301_v2 = vpop.permute.xlu1 %996 }
  0xfa   :  { %4670 = vst [vmem:[#allocation26_spill] sm:$0xff] %v3301_v2  ;;  %v3312_v9 = vpop.permute.xlu0 %1029 }
  0xfb   :  { %4674 = vst [vmem:[#allocation30_spill] sm:$0xff] %v3312_v9  ;;  %vm4530_vm0 = vcmp.eq.s32.totalorder %v3312_v9, %v3310_v7 }
  0xfd   :  { %v3303_v3 = vpop.permute.xlu1 %1002 }
  0xfe   :  { %4671 = vst [vmem:[#allocation27_spill] sm:$0xff] %v3303_v3  ;;  %v3324_v15 = vpop.permute.xlu0 %1035 }
  0xff   :  { %4677 = vst [vmem:[#allocation33_spill] sm:$0xff] %v3324_v15 }
 0x101   :  { %v3307_v6 = vpop.permute.xlu1 %1008 }
 0x102   :  { %4673 = vst [vmem:[#allocation29_spill] sm:$0xff] %v3307_v6  ;;  %v3368_v21 = vpop.permute.xlu0 %1041 }
 0x103   :  { %4679 = vst [vmem:[#allocation35_spill] sm:$0xff] %v3368_v21 }
 0x105   :  { %v3314_v10 = vpop.permute.xlu1 %1014 }
 0x106   :  { %4675 = vst [vmem:[#allocation31_spill] sm:$0xff] %v3314_v10  ;;  %v3400_v26 = vpop.permute.xlu0 %1047 }
 0x107   :  { %4682 = vst [vmem:[#allocation38_spill] sm:$0xff] %v3400_v26 }
 0x109   :  { %v3322_v14 = vpop.permute.xlu1 %1020 }
 0x10a   :  { %4676 = vst [vmem:[#allocation32_spill] sm:$0xff] %v3322_v14  ;;  %vm4527_vm5 = vcmp.eq.s32.totalorder %v3322_v14, %v3310_v7  ;;  %v3444_v28 = vpop.permute.xlu0 %1053 }
 0x10b   :  { %vm2600_vm9 = vmpackc.low %vm4527_vm5, %vm4528_vm4  ;;  %vm4535_vm5 = vcmp.eq.s32.totalorder %v3324_v15, %v3310_v7  ;;  %4684 = vst [vmem:[#allocation40_spill] sm:$0xff] %v3444_v28 }
 0x10c   :  { %2601 = vmatprep.subr.msk.bf16.mxu1 %vm2600_vm9, %v3118_v16  ;;  %vm1070_vm9 = vcmp.eq.s32.totalorder %v3293_v62, %v3310_v7 }
 0x10d   :  { %2603 = vmatpush3.bf16.msk.msra.mxu1 %vm2602_vm6, %v3118_v16  ;;  %v3348_v20 = vpop.permute.xlu1 %1026  ;;  %vm2610_vm6 = vmpackc.low %vm1069_vm14, %vm1068_vm13 }
 0x10e   :  { %4678 = vst [vmem:[#allocation34_spill] sm:$0xff] %v3348_v20  ;;  %vm4531_vm11 = vcmp.eq.s32.totalorder %v3348_v20, %v3310_v7  ;;  %v3476_v33 = vpop.permute.xlu0 %1059 }
 0x10f   :  { %vm2604_vm15 = vmpackc.low %vm4531_vm11, %vm4532_vm10  ;;  %vm4538_vm11 = vcmp.eq.s32.totalorder %v3368_v21, %v3310_v7  ;;  %4687 = vst [vmem:[#allocation43_spill] sm:$0xff] %v3476_v33 }
 0x110   :  { %2605 = vmatprep.subr.msk.bf16.mxu1 %vm2604_vm15, %v3118_v16  ;;  %vm1071_vm15 = vcmp.eq.s32.totalorder %v3297_v0, %v3310_v7 }
 0x111   :  { %2607 = vmatpush3.bf16.msk.msra.mxu1 %vm2606_vm12, %v3118_v16  ;;  %v3374_v22 = vpop.permute.xlu1 %1032 }
 0x112   :  { %4680 = vst [vmem:[#allocation36_spill] sm:$0xff] %v3374_v22  ;;  %vm4529_vm1 = vcmp.eq.s32.totalorder %v3374_v22, %v3310_v7 }
 0x113   :  { %vm2608_vm12 = vmpackc.low %vm4529_vm1, %vm4530_vm0 }
 0x114   :  { %2609 = vmatprep.subr.msk.bf16.mxu1 %vm2608_vm12, %v3118_v16  ;;  %vm2614_vm1 = vmpackc.low %vm1071_vm15, %vm1070_vm9  ;;  %vm4539_vm12 = vcmp.eq.s32.totalorder %v3283_v57, %v3310_v7 }
 0x115   :  { %2611 = vmatpush3.bf16.msk.msra.mxu1 %vm2610_vm6, %v3118_v16  ;;  %v3398_v24 = vpop.permute.xlu1 %1038  ;;  %vm4536_vm6 = vcmp.eq.s32.totalorder %v3301_v2, %v3310_v7 }
 0x116   :  { %4681 = vst [vmem:[#allocation37_spill] sm:$0xff] %v3398_v24  ;;  %vm4534_vm4 = vcmp.eq.s32.totalorder %v3398_v24, %v3310_v7  ;;  %vm2618_vm3 = vmpackc.low %vm4536_vm6, %vm4539_vm12  ;;  %vm4603_vm12 = vcmp.eq.s32.totalorder %v3444_v28, %v3310_v7 }
 0x117   :  { %vm2612_vm0 = vmpackc.low %vm4534_vm4, %vm4535_vm5  ;;  %vm4540_vm4 = vcmp.eq.s32.totalorder %v3303_v3, %v3310_v7  ;;  %vm4542_vm5 = vcmp.eq.s32.totalorder %v3400_v26, %v3310_v7 }
 0x118   :  { %2613 = vmatprep.subr.msk.bf16.mxu1 %vm2612_vm0, %v3118_v16  ;;  %vm4543_vm0 = vcmp.eq.s32.totalorder %v3287_v59, %v3310_v7 }
 0x119   :  { %2615 = vmatpush3.bf16.msk.msra.mxu1 %vm2614_vm1, %v3118_v16  ;;  %v3424_v27 = vpop.permute.xlu1 %1044 }
 0x11a   :  { %4683 = vst [vmem:[#allocation39_spill] sm:$0xff] %v3424_v27  ;;  %vm4537_vm10 = vcmp.eq.s32.totalorder %v3424_v27, %v3310_v7 }
 0x11b   :  { %vm2616_vm1 = vmpackc.low %vm4537_vm10, %vm4538_vm11  ;;  %vm4544_vm11 = vcmp.eq.s32.totalorder %v3307_v6, %v3310_v7 }
 0x11c   :  { %2617 = vmatprep.subr.msk.bf16.mxu1 %vm2616_vm1, %v3118_v16  ;;  %vm2622_vm10 = vmpackc.low %vm4540_vm4, %vm4543_vm0  ;;  %vm4545_vm1 = vcmp.eq.s32.totalorder %v3291_v61, %v3310_v7  ;;  %vm4600_vm0 = vcmp.eq.s32.totalorder %v3476_v33, %v3310_v7 }
 0x11d   :  { %2619 = vmatpush3.bf16.msk.msra.mxu1 %vm2618_vm3, %v3118_v16  ;;  %v3450_v30 = vpop.permute.xlu1 %1050 }
 0x11e   :  { %4685 = vst [vmem:[#allocation41_spill] sm:$0xff] %v3450_v30  ;;  %vm4541_vm6 = vcmp.eq.s32.totalorder %v3450_v30, %v3310_v7 }
 0x11f   :  { %vm2620_vm3 = vmpackc.low %vm4541_vm6, %vm4542_vm5 }
 0x120   :  { %2621 = vmatprep.subr.msk.bf16.mxu1 %vm2620_vm3, %v3118_v16  ;;  %vm2626_vm6 = vmpackc.low %vm4544_vm11, %vm4545_vm1  ;;  %vm1078_vm3 = vcmp.eq.s32.totalorder %v3295_v63, %v3310_v7 }
 0x121   :  { %2623 = vmatpush3.bf16.msk.msra.mxu1 %vm2622_vm10, %v3118_v16  ;;  %v3474_v32 = vpop.permute.xlu1 %1056  ;;  %vm4656_vm10 = vcmp.eq.s32.totalorder %v3314_v10, %v3310_v7 }
 0x122   :  { %4686 = vst [vmem:[#allocation42_spill] sm:$0xff] %v3474_v32  ;;  %vm1093_vm4 = vcmp.eq.s32.totalorder %v3474_v32, %v3310_v7  ;;  %vm2630_vm1 = vmpackc.low %vm4656_vm10, %vm1078_vm3 }
 0x123   :  { %vm2624_vm5 = vmpackc.low %vm1093_vm4, %vm4603_vm12  ;;  %vm909_vm12 = vcmp.lt.s32.totalorder %v3250_v25, 8 }
 0x124   :  { %2625 = vmatprep.subr.msk.bf16.mxu1 %vm2624_vm5, %v3118_v16 }
 0x125   :  { %2627 = vmatpush3.bf16.msk.msra.mxu1 %vm2626_vm6, %v3118_v16  ;;  %v3500_v34 = vpop.permute.xlu1 %1062  ;;  %vm4601_vm6 = vcmask 130048  }
 0x126   :  { %4688 = vst [vmem:[#allocation44_spill] sm:$0xff] %v3500_v34  ;;  %vm4602_vm11 = vcmp.eq.s32.totalorder %v3500_v34, %v3310_v7 }
 0x127   :  { %vm2628_vm5 = vmpackc.low %vm4602_vm11, %vm4600_vm0  ;;  %vm902_vm0 = vcmp.lt.s32.totalorder %v3220_v8, 8  ;;  %vm903_vm11 = vcmp.lt.s32.totalorder %v3225_v12, 8 }
 0x128   :  { %2629 = vmatprep.subr.msk.bf16.mxu1 %vm2628_vm5, %v3118_v16  ;;  %vm904_vm5 = vcmp.lt.s32.totalorder %v3223_v11, 8 }
 0x129   :  { %2631 = vmatpush3.bf16.msk.msra.mxu1 %vm2630_vm1, %v3118_v16  ;;  %vm94_vm1 = vcmask 64512  }
 0x13c   :  { %v2570_v38 = vpop.f32.mrb[0].mxu0 }
 0x13d   :  { %v3521_v39 = vadd.f32 %v2570_v38, %v3518_v36  ;;  %v326_v40 = vpop.f32.mrb[1].mxu0 }
 0x13e   :  { %v3524_v41 = vadd.f32 %v3518_v36, %v326_v40  ;;  %v2571_v42 = vpop.f32.mrb[2].mxu0 }
 0x13f   :  { %4689 = vst [vmem:[#allocation45_spill] sm:$0xff] %v3521_v39  ;;  %489 = vrot.lane.b32.xlu1 %v3521_v39, %s3119_s4  ;;  %v329_v44 = vpop.f32.mrb[3].mxu0  ;;  %v3531_v45 = vadd.f32 %v2571_v42, %v3518_v36 }
 0x140   :  { %4690 = vst [vmem:[#allocation46_spill] sm:$0xff] %v3524_v41  ;;  %485 = vrot.lane.b32.xlu0 %v3524_v41, %s3119_s4  ;;  %v3534_v46 = vadd.f32 %v3518_v36, %v329_v44 }
 0x141   :  { %4691 = vst [vmem:[#allocation47_spill] sm:$0xff] %v3531_v45 }
 0x142   :  { %4692 = vst [vmem:[#allocation48_spill] sm:$0xff] %v3534_v46 }
 0x143   :  { %491 = vrot.lane.b32.xlu1 %v3531_v45, %s3119_s4 }
 0x144   :  { %v2574_v47 = vpop.f32.mrb[4].mxu0  ;;  %487 = vrot.lane.b32.xlu0 %v3534_v46, %s3119_s4 }
 0x145   :  { %v3541_v48 = vadd.f32 %v2574_v47, %v3518_v36  ;;  %v342_v49 = vpop.f32.mrb[5].mxu0 }
 0x146   :  { %v2575_v50 = vpop.f32.mrb[6].mxu0  ;;  %v3551_v16 = vadd.f32 %v3518_v36, %v342_v49 }
 0x147   :  { %4693 = vst [vmem:[#allocation49_spill] sm:$0xff] %v3541_v48  ;;  %v3544_v51 = vadd.f32 %v2575_v50, %v3518_v36  ;;  %v345_v52 = vpop.f32.mrb[7].mxu0 }
 0x148   :  { %497 = vrot.lane.b32.xlu0 %v3541_v48, %s3119_s4  ;;  %4695 = vst [vmem:[#allocation51_spill] sm:$0xff] %v3551_v16  ;;  %v3554_v38 = vadd.f32 %v3518_v36, %v345_v52 }
 0x149   :  { %4694 = vst [vmem:[#allocation50_spill] sm:$0xff] %v3544_v51  ;;  %499 = vrot.lane.b32.xlu1 %v3544_v51, %s3119_s4 }
 0x14a   :  { %4696 = vst [vmem:[#allocation52_spill] sm:$0xff] %v3554_v38 }
 0x14c   :  { %v2578_v40 = vpop.f32.mrb[8].mxu0  ;;  %493 = vrot.lane.b32.xlu0 %v3551_v16, %s3119_s4 }
 0x14d   :  { %v3559_v42 = vadd.f32 %v2578_v40, %v3518_v36  ;;  %v358_v44 = vpop.f32.mrb[9].mxu0  ;;  %495 = vrot.lane.b32.xlu1 %v3554_v38, %s3119_s4 }
 0x14e   :  { %v2579_v47 = vpop.f32.mrb[10].mxu0  ;;  %v3571_v52 = vadd.f32 %v3518_v36, %v358_v44 }
 0x14f   :  { %4697 = vst [vmem:[#allocation53_spill] sm:$0xff] %v3559_v42  ;;  %v3564_v50 = vadd.f32 %v2579_v47, %v3518_v36  ;;  %v361_v49 = vpop.f32.mrb[11].mxu0 }
 0x150   :  { %505 = vrot.lane.b32.xlu0 %v3559_v42, %s3119_s4  ;;  %4699 = vst [vmem:[#allocation55_spill] sm:$0xff] %v3571_v52  ;;  %v3574_v40 = vadd.f32 %v3518_v36, %v361_v49 }
 0x151   :  { %4698 = vst [vmem:[#allocation54_spill] sm:$0xff] %v3564_v50  ;;  %507 = vrot.lane.b32.xlu1 %v3564_v50, %s3119_s4 }
 0x152   :  { %4700 = vst [vmem:[#allocation56_spill] sm:$0xff] %v3574_v40 }
 0x154   :  { %v2582_v5 = vpop.f32.mrb[12].mxu0  ;;  %501 = vrot.lane.b32.xlu0 %v3571_v52, %s3119_s4 }
 0x155   :  { %v3579_v47 = vadd.f32 %v2582_v5, %v3518_v36  ;;  %v374_v33 = vpop.f32.mrb[13].mxu0  ;;  %503 = vrot.lane.b32.xlu1 %v3574_v40, %s3119_s4 }
 0x156   :  { %v2583_v34 = vpop.f32.mrb[14].mxu0  ;;  %v3591_v49 = vadd.f32 %v3518_v36, %v374_v33 }
 0x157   :  { %4701 = vst [vmem:[#allocation57_spill] sm:$0xff] %v3579_v47  ;;  %v3584_v28 = vadd.f32 %v2583_v34, %v3518_v36  ;;  %v377_v44 = vpop.f32.mrb[15].mxu0 }
 0x158   :  { %513 = vrot.lane.b32.xlu0 %v3579_v47, %s3119_s4  ;;  %4703 = vst [vmem:[#allocation59_spill] sm:$0xff] %v3591_v49  ;;  %v3594_v5 = vadd.f32 %v3518_v36, %v377_v44 }
 0x159   :  { %4702 = vst [vmem:[#allocation58_spill] sm:$0xff] %v3584_v28  ;;  %515 = vrot.lane.b32.xlu1 %v3584_v28, %s3119_s4 }
 0x15a   :  { %4704 = vst [vmem:[#allocation60_spill] sm:$0xff] %v3594_v5 }
 0x15c   :  { %v2586_v32 = vpop.f32.mrb[16].mxu0  ;;  %509 = vrot.lane.b32.xlu0 %v3591_v49, %s3119_s4 }
 0x15d   :  { %v3599_v34 = vadd.f32 %v2586_v32, %v3518_v36  ;;  %v390_v30 = vpop.f32.mrb[17].mxu0  ;;  %511 = vrot.lane.b32.xlu1 %v3594_v5, %s3119_s4 }
 0x15e   :  { %v2587_v27 = vpop.f32.mrb[18].mxu0  ;;  %v3611_v44 = vadd.f32 %v3518_v36, %v390_v30 }
 0x15f   :  { %4705 = vst [vmem:[#allocation61_spill] sm:$0xff] %v3599_v34  ;;  %v3604_v21 = vadd.f32 %v2587_v27, %v3518_v36  ;;  %v393_v33 = vpop.f32.mrb[19].mxu0 }
 0x160   :  { %521 = vrot.lane.b32.xlu0 %v3599_v34, %s3119_s4  ;;  %4707 = vst [vmem:[#allocation63_spill] sm:$0xff] %v3611_v44  ;;  %v3614_v32 = vadd.f32 %v3518_v36, %v393_v33 }
 0x161   :  { %4706 = vst [vmem:[#allocation62_spill] sm:$0xff] %v3604_v21  ;;  %523 = vrot.lane.b32.xlu1 %v3604_v21, %s3119_s4 }
 0x162   :  { %4708 = vst [vmem:[#allocation64_spill] sm:$0xff] %v3614_v32 }
 0x164   :  { %v2590_v26 = vpop.f32.mrb[20].mxu0  ;;  %517 = vrot.lane.b32.xlu0 %v3611_v44, %s3119_s4 }
 0x165   :  { %v3619_v27 = vadd.f32 %v2590_v26, %v3518_v36  ;;  %v406_v24 = vpop.f32.mrb[21].mxu0  ;;  %519 = vrot.lane.b32.xlu1 %v3614_v32, %s3119_s4 }
 0x166   :  { %v2591_v15 = vpop.f32.mrb[22].mxu0  ;;  %v3631_v33 = vadd.f32 %v3518_v36, %v406_v24 }
 0x167   :  { %4709 = vst [vmem:[#allocation65_spill] sm:$0xff] %v3619_v27  ;;  %v3624_v22 = vadd.f32 %v2591_v15, %v3518_v36  ;;  %v409_v30 = vpop.f32.mrb[23].mxu0 }
 0x168   :  { %529 = vrot.lane.b32.xlu0 %v3619_v27, %s3119_s4  ;;  %4711 = vst [vmem:[#allocation67_spill] sm:$0xff] %v3631_v33  ;;  %v3634_v26 = vadd.f32 %v3518_v36, %v409_v30 }
 0x169   :  { %4710 = vst [vmem:[#allocation66_spill] sm:$0xff] %v3624_v22  ;;  %531 = vrot.lane.b32.xlu1 %v3624_v22, %s3119_s4 }
 0x16a   :  { %4712 = vst [vmem:[#allocation68_spill] sm:$0xff] %v3634_v26 }
 0x16c   :  { %v2594_v9 = vpop.f32.mrb[24].mxu0  ;;  %525 = vrot.lane.b32.xlu0 %v3631_v33, %s3119_s4 }
 0x16d   :  { %v3639_v15 = vadd.f32 %v2594_v9, %v3518_v36  ;;  %v422_v14 = vpop.f32.mrb[25].mxu0  ;;  %527 = vrot.lane.b32.xlu1 %v3634_v26, %s3119_s4 }
 0x16e   :  { %v2595_v1 = vpop.f32.mrb[26].mxu0  ;;  %v3651_v30 = vadd.f32 %v3518_v36, %v422_v14 }
 0x16f   :  { %4713 = vst [vmem:[#allocation69_spill] sm:$0xff] %v3639_v15  ;;  %v3644_v20 = vadd.f32 %v2595_v1, %v3518_v36  ;;  %v425_v24 = vpop.f32.mrb[27].mxu0 }
 0x170   :  { %537 = vrot.lane.b32.xlu0 %v3639_v15, %s3119_s4  ;;  %4715 = vst [vmem:[#allocation71_spill] sm:$0xff] %v3651_v30  ;;  %v3654_v9 = vadd.f32 %v3518_v36, %v425_v24 }
 0x171   :  { %4714 = vst [vmem:[#allocation70_spill] sm:$0xff] %v3644_v20  ;;  %539 = vrot.lane.b32.xlu1 %v3644_v20, %s3119_s4 }
 0x172   :  { %4716 = vst [vmem:[#allocation72_spill] sm:$0xff] %v3654_v9 }
 0x174   :  { %v2598_v4 = vpop.f32.mrb[28].mxu0  ;;  %533 = vrot.lane.b32.xlu0 %v3651_v30, %s3119_s4 }
 0x175   :  { %v3659_v1 = vadd.f32 %v2598_v4, %v3518_v36  ;;  %v438_v6 = vpop.f32.mrb[29].mxu0  ;;  %535 = vrot.lane.b32.xlu1 %v3654_v9, %s3119_s4 }
 0x176   :  { %v2599_v61 = vpop.f32.mrb[30].mxu0  ;;  %v3671_v24 = vadd.f32 %v3518_v36, %v438_v6 }
 0x177   :  { %4717 = vst [vmem:[#allocation73_spill] sm:$0xff] %v3659_v1  ;;  %v3664_v10 = vadd.f32 %v2599_v61, %v3518_v36  ;;  %v441_v14 = vpop.f32.mrb[31].mxu0 }
 0x178   :  { %545 = vrot.lane.b32.xlu0 %v3659_v1, %s3119_s4  ;;  %4719 = vst [vmem:[#allocation75_spill] sm:$0xff] %v3671_v24  ;;  %v3674_v4 = vadd.f32 %v3518_v36, %v441_v14 }
 0x179   :  { %4718 = vst [vmem:[#allocation74_spill] sm:$0xff] %v3664_v10  ;;  %547 = vrot.lane.b32.xlu1 %v3664_v10, %s3119_s4 }
 0x17a   :  { %4720 = vst [vmem:[#allocation76_spill] sm:$0xff] %v3674_v4 }
 0x17c   :  { %541 = vrot.lane.b32.xlu0 %v3671_v24, %s3119_s4 }
 0x17d   :  { %543 = vrot.lane.b32.xlu1 %v3674_v4, %s3119_s4 }
 0x1b1   :  { %v490_v61 = vpop.permute.xlu1 %489 }
 0x1b2   :  { %v583_v63 = vmul.f32 %v490_v61, %v3521_v39  ;;  %v486_v2 = vpop.permute.xlu0 %485 }
 0x1b3   :  { %v581_v6 = vmul.f32 %v486_v2, %v3524_v41 }
 0x1b4   :  { %649 = vrot.lane.b32.xlu0 %v583_v63, %s3120_s28 }
 0x1b5   :  { %v492_v57 = vpop.permute.xlu1 %491 }
 0x1b6   :  { %v584_v55 = vmul.f32 %v492_v57, %v3531_v45  ;;  %v488_v36 = vpop.permute.xlu0 %487 }
 0x1b7   :  { %v582_v14 = vmul.f32 %v488_v36, %v3534_v46 }
 0x1b8   :  { %651 = vrot.lane.b32.xlu1 %v584_v55, %s3120_s28  ;;  %645 = vrot.lane.b32.xlu0 %v581_v6, %s3120_s28 }
 0x1ba   :  { %v498_v3 = vpop.permute.xlu0 %497 }
 0x1bb   :  { %v587_v59 = vmul.f32 %v498_v3, %v3541_v48  ;;  %v500_v61 = vpop.permute.xlu1 %499 }
 0x1bc   :  { %647 = vrot.lane.b32.xlu1 %v582_v14, %s3120_s28  ;;  %v588_v63 = vmul.f32 %v500_v61, %v3544_v51  ;;  %v2966_v51 = vld [vmem:[#allocation9 + $0xf0] sm:$0xff] }
 0x1bd   :  { %657 = vrot.lane.b32.xlu0 %v587_v59, %s3120_s28 }
 0x1be   :  { %v494_v2 = vpop.permute.xlu0 %493 }
 0x1bf   :  { %v585_v57 = vmul.f32 %v494_v2, %v3551_v16  ;;  %v496_v45 = vpop.permute.xlu1 %495 }
 0x1c0   :  { %659 = vrot.lane.b32.xlu1 %v588_v63, %s3120_s28  ;;  %v586_v55 = vmul.f32 %v496_v45, %v3554_v38 }
 0x1c1   :  { %653 = vrot.lane.b32.xlu0 %v585_v57, %s3120_s28 }
 0x1c2   :  { %v506_v6 = vpop.permute.xlu0 %505 }
 0x1c3   :  { %v591_v3 = vmul.f32 %v506_v6, %v3559_v42  ;;  %v508_v36 = vpop.permute.xlu1 %507 }
 0x1c4   :  { %655 = vrot.lane.b32.xlu1 %v586_v55, %s3120_s28  ;;  %v592_v59 = vmul.f32 %v508_v36, %v3564_v50 }
 0x1c5   :  { %665 = vrot.lane.b32.xlu0 %v591_v3, %s3120_s28 }
 0x1c6   :  { %v502_v14 = vpop.permute.xlu0 %501 }
 0x1c7   :  { %v589_v61 = vmul.f32 %v502_v14, %v3571_v52  ;;  %v504_v2 = vpop.permute.xlu1 %503 }
 0x1c8   :  { %667 = vrot.lane.b32.xlu1 %v592_v59, %s3120_s28  ;;  %v590_v45 = vmul.f32 %v504_v2, %v3574_v40  ;;  %v2965_v40 = vld [vmem:[#allocation9 + $0xe8] sm:$0xff] }
 0x1c9   :  { %661 = vrot.lane.b32.xlu0 %v589_v61, %s3120_s28 }
 0x1ca   :  { %v514_v63 = vpop.permute.xlu0 %513 }
 0x1cb   :  { %v595_v57 = vmul.f32 %v514_v63, %v3579_v47  ;;  %v516_v6 = vpop.permute.xlu1 %515 }
 0x1cc   :  { %663 = vrot.lane.b32.xlu1 %v590_v45, %s3120_s28  ;;  %v596_v55 = vmul.f32 %v516_v6, %v3584_v28 }
 0x1cd   :  { %673 = vrot.lane.b32.xlu0 %v595_v57, %s3120_s28 }
 0x1ce   :  { %v510_v3 = vpop.permute.xlu0 %509 }
 0x1cf   :  { %v593_v36 = vmul.f32 %v510_v3, %v3591_v49  ;;  %v512_v14 = vpop.permute.xlu1 %511 }
 0x1d0   :  { %675 = vrot.lane.b32.xlu1 %v596_v55, %s3120_s28  ;;  %v594_v59 = vmul.f32 %v512_v14, %v3594_v5 }
 0x1d1   :  { %669 = vrot.lane.b32.xlu0 %v593_v36, %s3120_s28 }
 0x1d2   :  { %v522_v61 = vpop.permute.xlu0 %521 }
 0x1d3   :  { %v599_v2 = vmul.f32 %v522_v61, %v3599_v34  ;;  %v524_v63 = vpop.permute.xlu1 %523 }
 0x1d4   :  { %671 = vrot.lane.b32.xlu1 %v594_v59, %s3120_s28  ;;  %v600_v45 = vmul.f32 %v524_v63, %v3604_v21 }
 0x1d5   :  { %681 = vrot.lane.b32.xlu0 %v599_v2, %s3120_s28 }
 0x1d6   :  { %v518_v57 = vpop.permute.xlu0 %517 }
 0x1d7   :  { %v597_v6 = vmul.f32 %v518_v57, %v3611_v44  ;;  %v520_v3 = vpop.permute.xlu1 %519 }
 0x1d8   :  { %683 = vrot.lane.b32.xlu1 %v600_v45, %s3120_s28  ;;  %v598_v55 = vmul.f32 %v520_v3, %v3614_v32 }
 0x1d9   :  { %677 = vrot.lane.b32.xlu0 %v597_v6, %s3120_s28 }
 0x1da   :  { %v530_v36 = vpop.permute.xlu0 %529 }
 0x1db   :  { %v603_v14 = vmul.f32 %v530_v36, %v3619_v27  ;;  %v532_v61 = vpop.permute.xlu1 %531 }
 0x1dc   :  { %679 = vrot.lane.b32.xlu1 %v598_v55, %s3120_s28  ;;  %v604_v59 = vmul.f32 %v532_v61, %v3624_v22 }
 0x1dd   :  { %689 = vrot.lane.b32.xlu0 %v603_v14, %s3120_s28 }
 0x1de   :  { %v526_v2 = vpop.permute.xlu0 %525 }
 0x1df   :  { %v601_v63 = vmul.f32 %v526_v2, %v3631_v33  ;;  %v528_v57 = vpop.permute.xlu1 %527 }
 0x1e0   :  { %691 = vrot.lane.b32.xlu1 %v604_v59, %s3120_s28  ;;  %v602_v45 = vmul.f32 %v528_v57, %v3634_v26 }
 0x1e1   :  { %685 = vrot.lane.b32.xlu0 %v601_v63, %s3120_s28 }
 0x1e2   :  { %v538_v6 = vpop.permute.xlu0 %537 }
 0x1e3   :  { %v607_v3 = vmul.f32 %v538_v6, %v3639_v15  ;;  %v540_v36 = vpop.permute.xlu1 %539 }
 0x1e4   :  { %687 = vrot.lane.b32.xlu1 %v602_v45, %s3120_s28  ;;  %v608_v55 = vmul.f32 %v540_v36, %v3644_v20 }
 0x1e5   :  { %697 = vrot.lane.b32.xlu0 %v607_v3, %s3120_s28 }
 0x1e6   :  { %v534_v14 = vpop.permute.xlu0 %533 }
 0x1e7   :  { %v605_v61 = vmul.f32 %v534_v14, %v3651_v30  ;;  %v536_v2 = vpop.permute.xlu1 %535 }
 0x1e8   :  { %699 = vrot.lane.b32.xlu1 %v608_v55, %s3120_s28  ;;  %v606_v59 = vmul.f32 %v536_v2, %v3654_v9 }
 0x1e9   :  { %693 = vrot.lane.b32.xlu0 %v605_v61, %s3120_s28 }
 0x1ea   :  { %v546_v63 = vpop.permute.xlu0 %545 }
 0x1eb   :  { %v611_v57 = vmul.f32 %v546_v63, %v3659_v1  ;;  %v548_v6 = vpop.permute.xlu1 %547 }
 0x1ec   :  { %695 = vrot.lane.b32.xlu1 %v606_v59, %s3120_s28  ;;  %v612_v45 = vmul.f32 %v548_v6, %v3664_v10 }
 0x1ed   :  { %705 = vrot.lane.b32.xlu0 %v611_v57, %s3120_s28 }
 0x1ee   :  { %v542_v3 = vpop.permute.xlu0 %541 }
 0x1ef   :  { %v609_v36 = vmul.f32 %v542_v3, %v3671_v24  ;;  %v544_v14 = vpop.permute.xlu1 %543 }
 0x1f0   :  { %707 = vrot.lane.b32.xlu1 %v612_v45, %s3120_s28  ;;  %v610_v55 = vmul.f32 %v544_v14, %v3674_v4 }
 0x1f1   :  { %701 = vrot.lane.b32.xlu0 %v609_v36, %s3120_s28 }
 0x1f4   :  { %703 = vrot.lane.b32.xlu1 %v610_v55, %s3120_s28 }
 0x226   :  { %v650_v61 = vpop.permute.xlu0 %649 }
 0x227   :  { %v748_v2 = vsel %vm4601_vm6, %v650_v61, 0.0 }
 0x228   :  { %749 = vadd.xlane.f32.xlu0 %v748_v2 }
 0x22a   :  { %v652_v59 = vpop.permute.xlu1 %651  ;;  %v646_v63 = vpop.permute.xlu0 %645 }
 0x22b   :  { %v742_v57 = vsel %vm4601_vm6, %v646_v63, 0.0  ;;  %v751_v36 = vsel %vm4601_vm6, %v652_v59, 0.0 }
 0x22c   :  { %743 = vadd.xlane.f32.xlu0 %v742_v57 }
 0x22e   :  { %v648_v6 = vpop.permute.xlu1 %647 }
 0x22f   :  { %v658_v3 = vpop.permute.xlu0 %657  ;;  %v745_v45 = vsel %vm4601_vm6, %v648_v6, 0.0 }
 0x230   :  { %746 = vadd.xlane.f32.xlu1 %v745_v45  ;;  %752 = vadd.xlane.f32.xlu0 %v751_v36  ;;  %v760_v61 = vsel %vm4601_vm6, %v658_v3, 0.0 }
 0x232   :  { %v660_v14 = vpop.permute.xlu1 %659 }
 0x233   :  { %v654_v55 = vpop.permute.xlu0 %653  ;;  %v763_v28 = vsel %vm4601_vm6, %v660_v14, 0.0 }
 0x234   :  { %764 = vadd.xlane.f32.xlu0 %v763_v28  ;;  %761 = vadd.xlane.f32.xlu1 %v760_v61  ;;  %v754_v57 = vsel %vm4601_vm6, %v654_v55, 0.0 }
 0x236   :  { %v656_v2 = vpop.permute.xlu1 %655 }
 0x237   :  { %v666_v10 = vpop.permute.xlu0 %665  ;;  %v757_v63 = vsel %vm4601_vm6, %v656_v2, 0.0 }
 0x238   :  { %758 = vadd.xlane.f32.xlu0 %v757_v63  ;;  %755 = vadd.xlane.f32.xlu1 %v754_v57  ;;  %v772_v36 = vsel %vm4601_vm6, %v666_v10, 0.0 }
 0x23a   :  { %v668_v6 = vpop.permute.xlu1 %667 }
 0x23b   :  { %v662_v59 = vpop.permute.xlu0 %661  ;;  %v775_v45 = vsel %vm4601_vm6, %v668_v6, 0.0 }
 0x23c   :  { %776 = vadd.xlane.f32.xlu0 %v775_v45  ;;  %773 = vadd.xlane.f32.xlu1 %v772_v36  ;;  %v766_v61 = vsel %vm4601_vm6, %v662_v59, 0.0 }
 0x23e   :  { %v664_v14 = vpop.permute.xlu1 %663 }
 0x23f   :  { %v674_v3 = vpop.permute.xlu0 %673  ;;  %v769_v28 = vsel %vm4601_vm6, %v664_v14, 0.0 }
 0x240   :  { %770 = vadd.xlane.f32.xlu0 %v769_v28  ;;  %767 = vadd.xlane.f32.xlu1 %v766_v61  ;;  %v784_v57 = vsel %vm4601_vm6, %v674_v3, 0.0 }
 0x242   :  { %v676_v2 = vpop.permute.xlu1 %675 }
 0x243   :  { %v670_v55 = vpop.permute.xlu0 %669  ;;  %v787_v63 = vsel %vm4601_vm6, %v676_v2, 0.0 }
 0x244   :  { %788 = vadd.xlane.f32.xlu0 %v787_v63  ;;  %785 = vadd.xlane.f32.xlu1 %v784_v57  ;;  %v778_v36 = vsel %vm4601_vm6, %v670_v55, 0.0 }
 0x246   :  { %v672_v6 = vpop.permute.xlu1 %671 }
 0x247   :  { %v682_v10 = vpop.permute.xlu0 %681  ;;  %v781_v45 = vsel %vm4601_vm6, %v672_v6, 0.0 }
 0x248   :  { %782 = vadd.xlane.f32.xlu0 %v781_v45  ;;  %779 = vadd.xlane.f32.xlu1 %v778_v36  ;;  %v796_v61 = vsel %vm4601_vm6, %v682_v10, 0.0 }
 0x24a   :  { %v684_v14 = vpop.permute.xlu1 %683 }
 0x24b   :  { %v678_v59 = vpop.permute.xlu0 %677  ;;  %v799_v28 = vsel %vm4601_vm6, %v684_v14, 0.0 }
 0x24c   :  { %800 = vadd.xlane.f32.xlu0 %v799_v28  ;;  %797 = vadd.xlane.f32.xlu1 %v796_v61  ;;  %v790_v57 = vsel %vm4601_vm6, %v678_v59, 0.0 }
 0x24e   :  { %v680_v2 = vpop.permute.xlu1 %679 }
 0x24f   :  { %v690_v3 = vpop.permute.xlu0 %689  ;;  %v793_v63 = vsel %vm4601_vm6, %v680_v2, 0.0 }
 0x250   :  { %794 = vadd.xlane.f32.xlu0 %v793_v63  ;;  %791 = vadd.xlane.f32.xlu1 %v790_v57  ;;  %v808_v36 = vsel %vm4601_vm6, %v690_v3, 0.0 }
 0x252   :  { %v692_v6 = vpop.permute.xlu1 %691 }
 0x253   :  { %v686_v55 = vpop.permute.xlu0 %685  ;;  %v811_v45 = vsel %vm4601_vm6, %v692_v6, 0.0 }
 0x254   :  { %812 = vadd.xlane.f32.xlu0 %v811_v45  ;;  %809 = vadd.xlane.f32.xlu1 %v808_v36  ;;  %v802_v61 = vsel %vm4601_vm6, %v686_v55, 0.0 }
 0x256   :  { %v688_v14 = vpop.permute.xlu1 %687 }
 0x257   :  { %v698_v10 = vpop.permute.xlu0 %697  ;;  %v805_v28 = vsel %vm4601_vm6, %v688_v14, 0.0 }
 0x258   :  { %806 = vadd.xlane.f32.xlu0 %v805_v28  ;;  %803 = vadd.xlane.f32.xlu1 %v802_v61  ;;  %v820_v57 = vsel %vm4601_vm6, %v698_v10, 0.0 }
 0x25a   :  { %v700_v2 = vpop.permute.xlu1 %699 }
 0x25b   :  { %v694_v59 = vpop.permute.xlu0 %693  ;;  %v823_v63 = vsel %vm4601_vm6, %v700_v2, 0.0 }
 0x25c   :  { %824 = vadd.xlane.f32.xlu0 %v823_v63  ;;  %821 = vadd.xlane.f32.xlu1 %v820_v57  ;;  %v814_v36 = vsel %vm4601_vm6, %v694_v59, 0.0  ;;  %v4604_v57 = vmov 0.0  }
 0x25d   :  { %95 = vst.msk [vmem:[#allocation5] sm:$0xff] %vm94_vm1, %v4604_v57  ;;  %96 = vst.msk [vmem:[#allocation5 + $0x8] sm:$0xff] %vm94_vm1, %v4604_v57 }
 0x25e   :  { %v696_v6 = vpop.permute.xlu1 %695 }
 0x25f   :  { %v706_v3 = vpop.permute.xlu0 %705  ;;  %v817_v45 = vsel %vm4601_vm6, %v696_v6, 0.0 }
 0x260   :  { %818 = vadd.xlane.f32.xlu0 %v817_v45  ;;  %815 = vadd.xlane.f32.xlu1 %v814_v36  ;;  %v832_v28 = vsel %vm4601_vm6, %v706_v3, 0.0 }
 0x262   :  { %v708_v14 = vpop.permute.xlu1 %707 }
 0x263   :  { %v835_v55 = vsel %vm4601_vm6, %v708_v14, 0.0  ;;  %v702_v61 = vpop.permute.xlu0 %701 }
 0x264   :  { %836 = vadd.xlane.f32.xlu0 %v835_v55  ;;  %833 = vadd.xlane.f32.xlu1 %v832_v28  ;;  %v826_v63 = vsel %vm4601_vm6, %v702_v61, 0.0 }
 0x266   :  { %v704_v2 = vpop.permute.xlu1 %703 }
 0x267   :  { %v829_v10 = vsel %vm4601_vm6, %v704_v2, 0.0  ;;  %vm905_vm6 = vcmp.lt.s32.totalorder %v3230_v13, 8 }
 0x268   :  { %830 = vadd.xlane.f32.xlu0 %v829_v10  ;;  %827 = vadd.xlane.f32.xlu1 %v826_v63 }
 0x2b5   :  { %v750_v59 = vpop.xlane.xlu0 %749 }
 0x2b6   :  { %v840_v6 = vmul.f32 0.25, %v750_v59 }
 0x2b8   :  { %v3781_v3 = vsel %vm904_vm5, %v840_v6, -1e+30  ;;  %vm908_vm5 = vcmp.lt.s32.totalorder %v3245_v23, 8 }
 0x2b9   :  { %4721 = vst [vmem:[#allocation77_spill] sm:$0xff] %v3781_v3  ;;  %1172 = vperm.xlu0 %2653, %v3781_v3   ;;  %v744_v45 = vpop.xlane.xlu0 %743 }
 0x2ba   :  { %v838_v36 = vmul.f32 0.25, %v744_v45 }
 0x2bc   :  { %v3785_v14 = vsel %vm902_vm0, %v838_v36, -1e+30  ;;  %vm906_vm0 = vcmp.lt.s32.totalorder %v3234_v17, 8 }
 0x2bd   :  { %v747_v55 = vpop.xlane.xlu1 %746  ;;  %1162 = vperm.xlu1 %2652, %v3785_v14   ;;  %v753_v28 = vpop.xlane.xlu0 %752 }
 0x2be   :  { %v841_v61 = vmul.f32 0.25, %v753_v28  ;;  %v839_v11 = vmul.f32 0.25, %v747_v55 }
 0x2c0   :  { %v3789_v2 = vsel %vm905_vm6, %v841_v61, -1e+30  ;;  %v3796_v13 = vsel %vm903_vm11, %v839_v11, -1e+30  ;;  %vm907_vm6 = vcmp.lt.s32.totalorder %v3241_v19, 8  ;;  %vm912_vm11 = vcmp.lt.s32.totalorder %v3236_v18, 8 }
 0x2c1   :  { %4722 = vst [vmem:[#allocation78_spill] sm:$0xff] %v3789_v2  ;;  %v762_v8 = vpop.xlane.xlu1 %761  ;;  %1177 = vperm.xlu1 %2652, %v3789_v2   ;;  %v765_v10 = vpop.xlane.xlu0 %764  ;;  %4724 = vst [vmem:[#allocation80_spill] sm:$0xff] %v3796_v13 }
 0x2c2   :  { %v844_v63 = vmul.f32 0.25, %v762_v8  ;;  %v845_v59 = vmul.f32 0.25, %v765_v10 }
 0x2c4   :  { %v3794_v6 = vsel %vm908_vm5, %v844_v63, -1e+30  ;;  %v3804_v28 = vsel %vm909_vm12, %v845_v59, -1e+30  ;;  %v2950_v63 = vld [vmem:[#allocation9 + $0x40] sm:$0xff]  ;;  %vm913_vm12 = vcmp.lt.s32.totalorder %v3258_v31, 8 }
 0x2c5   :  { %4723 = vst [vmem:[#allocation79_spill] sm:$0xff] %v3794_v6  ;;  %v756_v45 = vpop.xlane.xlu1 %755  ;;  %1192 = vperm.xlu0 %2653, %v3794_v6   ;;  %1167 = vperm.xlu1 %2652, %v3796_v13   ;;  %v759_v12 = vpop.xlane.xlu0 %758  ;;  %4726 = vst [vmem:[#allocation82_spill] sm:$0xff] %v3804_v28  ;;  %vm910_vm5 = vcmp.lt.s32.totalorder %v2950_v63, 8  ;;  %v4795_v13 = vld [vmem:[#allocation43_spill] sm:$0xff] }
 0x2c6   :  { %v842_v23 = vmul.f32 0.25, %v756_v45  ;;  %v843_v36 = vmul.f32 0.25, %v759_v12 }
 0x2c8   :  { %v3802_v55 = vsel %vm906_vm0, %v842_v23, -1e+30  ;;  %v3812_v10 = vsel %vm907_vm6, %v843_v36, -1e+30  ;;  %vm911_vm0 = vcmp.lt.s32.totalorder %v3253_v29, 8  ;;  %v2951_v36 = vld [vmem:[#allocation9 + $0x70] sm:$0xff] }
 0x2c9   :  { %4725 = vst [vmem:[#allocation81_spill] sm:$0xff] %v3802_v55  ;;  %v774_v61 = vpop.xlane.xlu1 %773  ;;  %1182 = vperm.xlu0 %2653, %v3802_v55   ;;  %1197 = vperm.xlu1 %2652, %v3804_v28   ;;  %v777_v17 = vpop.xlane.xlu0 %776  ;;  %4728 = vst [vmem:[#allocation84_spill] sm:$0xff] %v3812_v10  ;;  %vm916_vm6 = vcmp.lt.s32.totalorder %v2951_v36, 8  ;;  %v4778_v55 = vld [vmem:[#allocation33_spill] sm:$0xff] }
 0x2ca   :  { %v848_v25 = vmul.f32 0.25, %v774_v61  ;;  %v849_v11 = vmul.f32 0.25, %v777_v17 }
 0x2cc   :  { %v3810_v8 = vsel %vm912_vm11, %v848_v25, -1e+30  ;;  %v3819_v23 = vsel %vm913_vm12, %v849_v11, -1e+30  ;;  %vm915_vm12 = vcmp.lt.s32.totalorder %v3261_v35, 8 }
 0x2cd   :  { %4727 = vst [vmem:[#allocation83_spill] sm:$0xff] %v3810_v8  ;;  %v768_v59 = vpop.xlane.xlu1 %767  ;;  %1212 = vperm.xlu0 %2653, %v3810_v8   ;;  %1187 = vperm.xlu1 %2652, %v3812_v10   ;;  %v771_v18 = vpop.xlane.xlu0 %770  ;;  %4730 = vst [vmem:[#allocation86_spill] sm:$0xff] %v3819_v23  ;;  %v4754_v8 = vld [vmem:[#allocation20_spill] sm:$0xff]  ;;  %v4764_v10 = vld [vmem:[#allocation29_spill] sm:$0xff] }
 0x2ce   :  { %v846_v19 = vmul.f32 0.25, %v768_v59  ;;  %v847_v45 = vmul.f32 0.25, %v771_v18  ;;  %v2952_v18 = vld [vmem:[#allocation9 + $0x60] sm:$0xff] }
 0x2cf   :  { %vm914_vm11 = vcmp.lt.s32.totalorder %v2952_v18, 8 }
 0x2d0   :  { %v3817_v12 = vsel %vm910_vm5, %v846_v19, -1e+30  ;;  %v3826_v59 = vsel %vm911_vm0, %v847_v45, -1e+30  ;;  %vm917_vm5 = vcmp.lt.s32.totalorder %v3266_v37, 8  ;;  %v2953_v45 = vld [vmem:[#allocation9 + $0x90] sm:$0xff] }
 0x2d1   :  { %4729 = vst [vmem:[#allocation85_spill] sm:$0xff] %v3817_v12  ;;  %v786_v61 = vpop.xlane.xlu1 %785  ;;  %1202 = vperm.xlu0 %2653, %v3817_v12   ;;  %1217 = vperm.xlu1 %2652, %v3819_v23   ;;  %v789_v31 = vpop.xlane.xlu0 %788  ;;  %4732 = vst [vmem:[#allocation88_spill] sm:$0xff] %v3826_v59  ;;  %vm920_vm0 = vcmp.lt.s32.totalorder %v2953_v45, 8 }
 0x2d2   :  { %v852_v17 = vmul.f32 0.25, %v786_v61  ;;  %v853_v25 = vmul.f32 0.25, %v789_v31 }
 0x2d4   :  { %v3824_v63 = vsel %vm916_vm6, %v852_v17, -1e+30  ;;  %v3833_v61 = vsel %vm917_vm5, %v853_v25, -1e+30 }
 0x2d5   :  { %4731 = vst [vmem:[#allocation87_spill] sm:$0xff] %v3824_v63  ;;  %v780_v11 = vpop.xlane.xlu1 %779  ;;  %1232 = vperm.xlu0 %2653, %v3824_v63   ;;  %1207 = vperm.xlu1 %2652, %v3826_v59   ;;  %v783_v29 = vpop.xlane.xlu0 %782  ;;  %4734 = vst [vmem:[#allocation90_spill] sm:$0xff] %v3833_v61  ;;  %v4756_v59 = vld [vmem:[#allocation21_spill] sm:$0xff] }
 0x2d6   :  { %v850_v19 = vmul.f32 0.25, %v780_v11  ;;  %v851_v36 = vmul.f32 0.25, %v783_v29  ;;  %v2954_v29 = vld [vmem:[#allocation9 + $0x80] sm:$0xff] }
 0x2d7   :  { %vm918_vm6 = vcmp.lt.s32.totalorder %v2954_v29, 8 }
 0x2d8   :  { %v3831_v57 = vsel %vm914_vm11, %v850_v19, -1e+30  ;;  %v3840_v11 = vsel %vm915_vm12, %v851_v36, -1e+30  ;;  %vm921_vm11 = vcmp.lt.s32.totalorder %v3271_v43, 8  ;;  %v2956_v36 = vld [vmem:[#allocation9 + $0xb0] sm:$0xff] }
 0x2d9   :  { %4733 = vst [vmem:[#allocation89_spill] sm:$0xff] %v3831_v57  ;;  %v798_v31 = vpop.xlane.xlu1 %797  ;;  %1222 = vperm.xlu0 %2653, %v3831_v57   ;;  %1237 = vperm.xlu1 %2652, %v3833_v61   ;;  %v801_v37 = vpop.xlane.xlu0 %800  ;;  %4735 = vst [vmem:[#allocation91_spill] sm:$0xff] %v3840_v11  ;;  %vm924_vm12 = vcmp.lt.s32.totalorder %v2956_v36, 8  ;;  %v4752_v57 = vld [vmem:[#allocation27_spill] sm:$0xff] }
 0x2da   :  { %v856_v17 = vmul.f32 0.25, %v798_v31  ;;  %v857_v18 = vmul.f32 0.25, %v801_v37  ;;  %v2955_v37 = vld [vmem:[#allocation9 + $0x88] sm:$0xff] }
 0x2db   :  { %vm919_vm5 = vcmp.lt.s32.totalorder %v2955_v37, 8 }
 0x2dc   :  { %v3838_v47 = vsel %vm920_vm0, %v856_v17, -1e+30  ;;  %v3847_v31 = vsel %vm921_vm11, %v857_v18, -1e+30  ;;  %v2958_v18 = vld [vmem:[#allocation9 + $0xb8] sm:$0xff] }
 0x2dd   :  { %v792_v25 = vpop.xlane.xlu1 %791  ;;  %1252 = vperm.xlu0 %2653, %v3838_v47   ;;  %1227 = vperm.xlu1 %2652, %v3840_v11   ;;  %v795_v35 = vpop.xlane.xlu0 %794  ;;  %4736 = vst [vmem:[#allocation92_spill] sm:$0xff] %v3847_v31 }
 0x2de   :  { %v854_v19 = vmul.f32 0.25, %v792_v25  ;;  %v855_v45 = vmul.f32 0.25, %v795_v35  ;;  %v2957_v35 = vld [vmem:[#allocation9 + $0xa0] sm:$0xff] }
 0x2df   :  { %vm922_vm0 = vcmp.lt.s32.totalorder %v2957_v35, 8 }
 0x2e0   :  { %v3845_v1 = vsel %vm918_vm6, %v854_v19, -1e+30  ;;  %v3853_v25 = vsel %vm919_vm5, %v855_v45, -1e+30  ;;  %vm925_vm6 = vcmp.lt.s32.totalorder %v2958_v18, 8  ;;  %v2960_v45 = vld [vmem:[#allocation9 + $0xd0] sm:$0xff] }
 0x2e1   :  { %v810_v17 = vpop.xlane.xlu1 %809  ;;  %1242 = vperm.xlu0 %2653, %v3845_v1   ;;  %1257 = vperm.xlu1 %2652, %v3847_v31   ;;  %v813_v43 = vpop.xlane.xlu0 %812  ;;  %vm928_vm5 = vcmp.lt.s32.totalorder %v2960_v45, 8  ;;  %v4793_v31 = vld [vmem:[#allocation44_spill] sm:$0xff] }
 0x2e2   :  { %v860_v29 = vmul.f32 0.25, %v810_v17  ;;  %v861_v5 = vmul.f32 0.25, %v813_v43  ;;  %v2959_v43 = vld [vmem:[#allocation9 + $0xa8] sm:$0xff] }
 0x2e3   :  { %vm923_vm11 = vcmp.lt.s32.totalorder %v2959_v43, 8 }
 0x2e4   :  { %v3851_v4 = vsel %vm924_vm12, %v860_v29, -1e+30  ;;  %v3859_v17 = vsel %vm925_vm6, %v861_v5, -1e+30  ;;  %v2962_v5 = vld [vmem:[#allocation9 + $0xd8] sm:$0xff] }
 0x2e5   :  { %4737 = vst [vmem:[#allocation93_spill] sm:$0xff] %v3851_v4  ;;  %v804_v19 = vpop.xlane.xlu1 %803  ;;  %1272 = vperm.xlu0 %2653, %v3851_v4   ;;  %1247 = vperm.xlu1 %2652, %v3853_v25   ;;  %v807_v37 = vpop.xlane.xlu0 %806  ;;  %4739 = vst [vmem:[#allocation95_spill] sm:$0xff] %v3859_v17 }
 0x2e6   :  { %v858_v36 = vmul.f32 0.25, %v804_v19  ;;  %v859_v49 = vmul.f32 0.25, %v807_v37  ;;  %v2961_v37 = vld [vmem:[#allocation9 + $0xc0] sm:$0xff] }
 0x2e7   :  { %vm926_vm12 = vcmp.lt.s32.totalorder %v2961_v37, 8 }
 0x2e8   :  { %v3857_v24 = vsel %vm922_vm0, %v858_v36, -1e+30  ;;  %v3865_v19 = vsel %vm923_vm11, %v859_v49, -1e+30  ;;  %vm929_vm0 = vcmp.lt.s32.totalorder %v2962_v5, 8  ;;  %v2964_v5 = vld [vmem:[#allocation9 + $0xe0] sm:$0xff] }
 0x2e9   :  { %4738 = vst [vmem:[#allocation94_spill] sm:$0xff] %v3857_v24  ;;  %v822_v29 = vpop.xlane.xlu1 %821  ;;  %1262 = vperm.xlu0 %2653, %v3857_v24   ;;  %1277 = vperm.xlu1 %2652, %v3859_v17   ;;  %v825_v35 = vpop.xlane.xlu0 %824  ;;  %4741 = vst [vmem:[#allocation97_spill] sm:$0xff] %v3865_v19  ;;  %vm930_vm11 = vcmp.lt.s32.totalorder %v2964_v5, 8 }
 0x2ea   :  { %v864_v18 = vmul.f32 0.25, %v822_v29  ;;  %v865_v50 = vmul.f32 0.25, %v825_v35  ;;  %v2963_v35 = vld [vmem:[#allocation9 + $0xc8] sm:$0xff] }
 0x2eb   :  { %vm927_vm6 = vcmp.lt.s32.totalorder %v2963_v35, 8 }
 0x2ec   :  { %v3863_v20 = vsel %vm928_vm5, %v864_v18, -1e+30  ;;  %v3871_v29 = vsel %vm929_vm0, %v865_v50, -1e+30  ;;  %vm931_vm5 = vcmp.lt.s32.totalorder %v2965_v40, 8 }
 0x2ed   :  { %4740 = vst [vmem:[#allocation96_spill] sm:$0xff] %v3863_v20  ;;  %v816_v36 = vpop.xlane.xlu1 %815  ;;  %1292 = vperm.xlu0 %2653, %v3863_v20   ;;  %1267 = vperm.xlu1 %2652, %v3865_v19   ;;  %v819_v43 = vpop.xlane.xlu0 %818  ;;  %4743 = vst [vmem:[#allocation99_spill] sm:$0xff] %v3871_v29  ;;  %v4788_v19 = vld [vmem:[#allocation41_spill] sm:$0xff] }
 0x2ee   :  { %v862_v45 = vmul.f32 0.25, %v816_v36  ;;  %v863_v42 = vmul.f32 0.25, %v819_v43 }
 0x2f0   :  { %v3869_v15 = vsel %vm926_vm12, %v862_v45, -1e+30  ;;  %v3875_v37 = vsel %vm927_vm6, %v863_v42, -1e+30  ;;  %vm932_vm12 = vcmp.lt.s32.totalorder %v2966_v51, 8  ;;  %v2967_v42 = vld [vmem:[#allocation9 + $0xf8] sm:$0xff] }
 0x2f1   :  { %4742 = vst [vmem:[#allocation98_spill] sm:$0xff] %v3869_v15  ;;  %v834_v49 = vpop.xlane.xlu1 %833  ;;  %1282 = vperm.xlu0 %2653, %v3869_v15   ;;  %1297 = vperm.xlu1 %2652, %v3871_v29   ;;  %v837_v18 = vpop.xlane.xlu0 %836  ;;  %4744 = vst [vmem:[#allocation100_spill] sm:$0xff] %v3875_v37  ;;  %vm933_vm0 = vcmp.lt.s32.totalorder %v2967_v42, 8  ;;  %vm90_vm6 = vcmask 57344  }
 0x2f2   :  { %v868_v9 = vmul.f32 0.25, %v834_v49  ;;  %v869_v35 = vmul.f32 0.25, %v837_v18  ;;  %v3122_v49 = vmov -1e+30   ;;  %v4749_v18 = vmov 0.0  }
 0x2f3   :  { %91 = vst.msk [vmem:[#allocation2] sm:$0x1] %vm90_vm6, %v3122_v49  ;;  %92 = vst.msk [vmem:[#allocation3] sm:$0x1] %vm90_vm6, %v4749_v18  ;;  %v2441_v54 = vsel %vm1067_vm8, 1.0, %v4749_v18  ;;  %v2442_v56 = vsel %vm1068_vm13, 1.0, %v4749_v18 }
 0x2f4   :  { %v3884_v40 = vsel %vm932_vm12, %v868_v9, -1e+30  ;;  %v3886_v5 = vsel %vm933_vm0, %v869_v35, -1e+30  ;;  %93 = vst.msk [vmem:[#allocation4] sm:$0x1] %vm90_vm6, %v4749_v18  ;;  %vm4755_vm12 = vcmp.eq.s32.totalorder %v4754_v8, %v3310_v7  ;;  %vm4757_vm0 = vcmp.eq.s32.totalorder %v4756_v59, %v3310_v7 }
 0x2f5   :  { %v828_v36 = vpop.xlane.xlu1 %827  ;;  %1287 = vperm.xlu1 %2652, %v3875_v37   ;;  %v831_v43 = vpop.xlane.xlu0 %830  ;;  %4747 = vst [vmem:[#allocation103_spill] sm:$0xff] %v3884_v40  ;;  %4748 = vst [vmem:[#allocation104_spill] sm:$0xff] %v3886_v5  ;;  %v2443_v58 = vsel %vm1069_vm14, 1.0, %v4749_v18  ;;  %v2444_v60 = vsel %vm1070_vm9, 1.0, %v4749_v18  ;;  %v2445_v62 = vsel %vm1071_vm15, 1.0, %v4749_v18 }
 0x2f6   :  { %v866_v50 = vmul.f32 0.25, %v828_v36  ;;  %v867_v45 = vmul.f32 0.25, %v831_v43 }
 0x2f8   :  { %v3878_v52 = vsel %vm930_vm11, %v866_v50, -1e+30  ;;  %v3880_v30 = vsel %vm931_vm5, %v867_v45, -1e+30  ;;  %vm4753_vm5 = vcmp.eq.s32.totalorder %v4752_v57, %v3310_v7 }
 0x2f9   :  { %4745 = vst [vmem:[#allocation101_spill] sm:$0xff] %v3878_v52  ;;  %4746 = vst [vmem:[#allocation102_spill] sm:$0xff] %v3880_v30  ;;  %1302 = vperm.xlu0 %2653, %v3878_v52   ;;  %1307 = vperm.xlu1 %2652, %v3880_v30  }
 0x2fd   :  { %1312 = vperm.xlu0 %2653, %v3884_v40   ;;  %1317 = vperm.xlu1 %2652, %v3886_v5   ;;  %v4750_v40 = vld [vmem:[#allocation22_spill] sm:$0xff] }
 0x2fe   :  { %vm4751_vm11 = vcmp.eq.s32.totalorder %v4750_v40, %v3310_v7 }
 0x338   :  { %v1173_v36 = vpop.permute.xlu0 %1172 }
 0x339   :  { %v1322_v44 = vsel %vm1066_vm7, %v1173_v36, -1e+30 }
 0x33c   :  { %v1163_v51 = vpop.permute.xlu1 %1162 }
 0x33d   :  { %v1320_v61 = vsel %vm1064_vm2, %v1163_v51, -1e+30 }
 0x33e   :  { %v1353_v23 = vsel %vm94_vm1, %v1320_v61, -inf }
 0x340   :  { %v1178_v9 = vpop.permute.xlu1 %1177 }
 0x341   :  { %v1323_v63 = vsel %vm1067_vm8, %v1178_v9, -1e+30  ;;  %vm4805_vm8 = vcmp.eq.s32.totalorder %v4778_v55, %v3310_v7 }
 0x344   :  { %v1168_v43 = vpop.permute.xlu1 %1167  ;;  %v1193_v50 = vpop.permute.xlu0 %1192 }
 0x345   :  { %v1326_v46 = vsel %vm1070_vm9, %v1193_v50, -1e+30 }
 0x346   :  { %v1361_v50 = vsel %vm94_vm1, %v1326_v46, -inf  ;;  %v1355_v46 = vsel %vm94_vm1, %v1322_v44, -inf }
 0x347   :  { %v1362_v29 = vmax.f32 %v1355_v46, %v1361_v50 }
 0x348   :  { %v1198_v45 = vpop.permute.xlu1 %1197  ;;  %v1183_v35 = vpop.permute.xlu0 %1182 }
 0x349   :  { %v1327_v5 = vsel %vm1071_vm15, %v1198_v45, -1e+30  ;;  %v1324_v11 = vsel %vm1068_vm13, %v1183_v35, -1e+30  ;;  %v1356_v35 = vsel %vm94_vm1, %v1323_v63, -inf  ;;  %v4758_v63 = vld [vmem:[#allocation26_spill] sm:$0xff] }
 0x34a   :  { %v1363_v52 = vsel %vm94_vm1, %v1327_v5, -inf }
 0x34b   :  { %v1364_v12 = vmax.f32 %v1356_v35, %v1363_v52 }
 0x34c   :  { %v1188_v42 = vpop.permute.xlu1 %1187  ;;  %v1213_v22 = vpop.permute.xlu0 %1212 }
 0x34d   :  { %v1325_v36 = vsel %vm1069_vm14, %v1188_v42, -1e+30  ;;  %v1330_v51 = vsel %vm4751_vm11, %v1213_v22, -1e+30  ;;  %v1321_v42 = vsel %vm4755_vm12, %v1168_v43, -1e+30  ;;  %vm4759_vm11 = vcmp.eq.s32.totalorder %v4758_v63, %v3310_v7 }
 0x34e   :  { %v1357_v22 = vsel %vm94_vm1, %v1324_v11, -inf  ;;  %v1359_v20 = vsel %vm94_vm1, %v1325_v36, -inf  ;;  %v1369_v44 = vsel %vm94_vm1, %v1330_v51, -inf  ;;  %v4761_v11 = vld [vmem:[#allocation31_spill] sm:$0xff]  ;;  %vm4765_vm12 = vcmp.eq.s32.totalorder %v4764_v10, %v3310_v7 }
 0x34f   :  { %v1358_v28 = vmax.f32 %v1353_v23, %v1357_v22  ;;  %v1370_v35 = vmax.f32 %v1362_v29, %v1369_v44  ;;  %v4770_v29 = vld [vmem:[#allocation25_spill] sm:$0xff] }
 0x350   :  { %v1218_v48 = vpop.permute.xlu1 %1217  ;;  %v1203_v27 = vpop.permute.xlu0 %1202 }
 0x351   :  { %v1331_v9 = vsel %vm4753_vm5, %v1218_v48, -1e+30  ;;  %v1328_v48 = vsel %vm4757_vm0, %v1203_v27, -1e+30  ;;  %v4762_v27 = vld [vmem:[#allocation23_spill] sm:$0xff] }
 0x352   :  { %v1371_v61 = vsel %vm94_vm1, %v1331_v9, -inf  ;;  %vm4763_vm5 = vcmp.eq.s32.totalorder %v4762_v27, %v3310_v7  ;;  %v1354_v9 = vsel %vm94_vm1, %v1321_v42, -inf  ;;  %v4766_v42 = vld [vmem:[#allocation28_spill] sm:$0xff] }
 0x353   :  { %v1360_v52 = vmax.f32 %v1354_v9, %v1359_v20  ;;  %v1372_v15 = vmax.f32 %v1364_v12, %v1371_v61  ;;  %vm4767_vm0 = vcmp.eq.s32.totalorder %v4766_v42, %v3310_v7  ;;  %v4768_v20 = vld [vmem:[#allocation34_spill] sm:$0xff]  ;;  %v4772_v61 = vld [vmem:[#allocation32_spill] sm:$0xff] }
 0x354   :  { %v1208_v38 = vpop.permute.xlu1 %1207  ;;  %v1233_v26 = vpop.permute.xlu0 %1232 }
 0x355   :  { %v1329_v5 = vsel %vm4759_vm11, %v1208_v38, -1e+30  ;;  %v1334_v43 = vsel %vm1078_vm3, %v1233_v26, -1e+30  ;;  %v1365_v38 = vsel %vm94_vm1, %v1328_v48, -inf  ;;  %vm4769_vm11 = vcmp.eq.s32.totalorder %v4768_v20, %v3310_v7 }
 0x356   :  { %v1367_v26 = vsel %vm94_vm1, %v1329_v5, -inf  ;;  %v1377_v6 = vsel %vm94_vm1, %v1334_v43, -inf  ;;  %v1366_v4 = vmax.f32 %v1358_v28, %v1365_v38 }
 0x357   :  { %v1368_v44 = vmax.f32 %v1360_v52, %v1367_v26  ;;  %v1378_v43 = vmax.f32 %v1370_v35, %v1377_v6  ;;  %v4776_v52 = vld [vmem:[#allocation36_spill] sm:$0xff] }
 0x358   :  { %v1238_v49 = vpop.permute.xlu1 %1237  ;;  %v1223_v16 = vpop.permute.xlu0 %1222 }
 0x359   :  { %v1335_v50 = vsel %vm4656_vm10, %v1238_v49, -1e+30  ;;  %v1332_v36 = vsel %vm4763_vm5, %v1223_v16, -1e+30  ;;  %vm4771_vm5 = vcmp.eq.s32.totalorder %v4770_v29, %v3310_v7  ;;  %vm4773_vm10 = vcmp.eq.s32.totalorder %v4772_v61, %v3310_v7 }
 0x35a   :  { %v1379_v49 = vsel %vm94_vm1, %v1335_v50, -inf  ;;  %v1373_v17 = vsel %vm94_vm1, %v1332_v36, -inf }
 0x35b   :  { %v1374_v50 = vmax.f32 %v1366_v4, %v1373_v17  ;;  %v4780_v4 = vld [vmem:[#allocation37_spill] sm:$0xff] }
 0x35c   :  { %v1228_v33 = vpop.permute.xlu1 %1227  ;;  %v1253_v21 = vpop.permute.xlu0 %1252  ;;  %vm4806_vm13 = vcmp.eq.s32.totalorder %v4780_v4, %v3310_v7 }
 0x35d   :  { %v1333_v16 = vsel %vm4765_vm12, %v1228_v33, -1e+30  ;;  %v1338_v23 = vsel %vm4767_vm0, %v1253_v21, -1e+30  ;;  %v4774_v33 = vld [vmem:[#allocation30_spill] sm:$0xff]  ;;  %v1380_v21 = vmax.f32 %v1372_v15, %v1379_v49  ;;  %vm4777_vm0 = vcmp.eq.s32.totalorder %v4776_v52, %v3310_v7 }
 0x35e   :  { %vm4775_vm12 = vcmp.eq.s32.totalorder %v4774_v33, %v3310_v7  ;;  %v1375_v36 = vsel %vm94_vm1, %v1333_v16, -inf  ;;  %v1385_v9 = vsel %vm94_vm1, %v1338_v23, -inf  ;;  %v4782_v49 = vld [vmem:[#allocation38_spill] sm:$0xff]  ;;  %v4784_v23 = vld [vmem:[#allocation35_spill] sm:$0xff] }
 0x35f   :  { %v1376_v35 = vmax.f32 %v1368_v44, %v1375_v36  ;;  %vm4807_vm14 = vcmp.eq.s32.totalorder %v4784_v23, %v3310_v7  ;;  %vm4810_vm15 = vcmp.eq.s32.totalorder %v4782_v49, %v3310_v7 }
 0x360   :  { %v1258_v39 = vpop.permute.xlu1 %1257  ;;  %v1243_v34 = vpop.permute.xlu0 %1242 }
 0x361   :  { %v1339_v12 = vsel %vm4769_vm11, %v1258_v39, -1e+30  ;;  %v1336_v22 = vsel %vm4771_vm5, %v1243_v34, -1e+30  ;;  %vm4781_vm11 = vcmp.eq.s32.totalorder %v4780_v4, %v3310_v7  ;;  %vm4783_vm5 = vcmp.eq.s32.totalorder %v4782_v49, %v3310_v7 }
 0x362   :  { %v1387_v34 = vsel %vm94_vm1, %v1339_v12, -inf  ;;  %v1381_v38 = vsel %vm94_vm1, %v1336_v22, -inf  ;;  %v4786_v12 = vld [vmem:[#allocation39_spill] sm:$0xff]  ;;  %v1386_v22 = vmax.f32 %v1378_v43, %v1385_v9  ;;  %v2462_v4 = vsel %vm4807_vm14, 1.0, %v4749_v18 }
 0x363   :  { %vm4808_vm9 = vcmp.eq.s32.totalorder %v4786_v12, %v3310_v7  ;;  %vm4820_vm14 = vcmp.eq.s32.totalorder %v4761_v11, %v3310_v7 }
 0x364   :  { %v1248_v32 = vpop.permute.xlu1 %1247  ;;  %v1273_v41 = vpop.permute.xlu0 %1272 }
 0x365   :  { %v1337_v5 = vsel %vm4773_vm10, %v1248_v32, -1e+30  ;;  %vm4779_vm10 = vcmp.eq.s32.totalorder %v4778_v55, %v3310_v7  ;;  %v2461_v55 = vsel %vm4806_vm13, 1.0, %v4749_v18  ;;  %vm4819_vm13 = vcmp.eq.s32.totalorder %v4793_v31, %v3310_v7 }
 0x366   :  { %v1383_v26 = vsel %vm94_vm1, %v1337_v5, -inf  ;;  %v1342_v15 = vsel %vm4779_vm10, %v1273_v41, -1e+30  ;;  %v1382_v5 = vmax.f32 %v1374_v50, %v1381_v38  ;;  %vm4789_vm10 = vcmp.eq.s32.totalorder %v4788_v19, %v3310_v7 }
 0x367   :  { %v1384_v36 = vmax.f32 %v1376_v35, %v1383_v26 }
 0x368   :  { %v1278_v30 = vpop.permute.xlu1 %1277  ;;  %v1263_v45 = vpop.permute.xlu0 %1262 }
 0x369   :  { %v1340_v28 = vsel %vm4775_vm12, %v1263_v45, -1e+30  ;;  %v1343_v6 = vsel %vm4781_vm11, %v1278_v30, -1e+30  ;;  %vm4785_vm12 = vcmp.eq.s32.totalorder %v4784_v23, %v3310_v7  ;;  %v2463_v23 = vsel %vm4808_vm9, 1.0, %v4749_v18 }
 0x36a   :  { %v1389_v17 = vsel %vm94_vm1, %v1340_v28, -inf  ;;  %v1388_v28 = vmax.f32 %v1380_v21, %v1387_v34  ;;  %v1395_v2 = vsel %vm94_vm1, %v1343_v6, -inf  ;;  %v4791_v21 = vld [vmem:[#allocation40_spill] sm:$0xff]  ;;  %vm4881_vm9 = vcmask 130048  }
 0x36b   :  { %v1390_v24 = vmax.f32 %v1382_v5, %v1389_v17  ;;  %vm4792_vm11 = vcmp.eq.s32.totalorder %v4791_v21, %v3310_v7 }
 0x36c   :  { %v1268_v51 = vpop.permute.xlu1 %1267  ;;  %v1293_v46 = vpop.permute.xlu0 %1292 }
 0x36d   :  { %v1341_v32 = vsel %vm4777_vm0, %v1268_v51, -1e+30  ;;  %v1346_v16 = vsel %vm4783_vm5, %v1293_v46, -1e+30  ;;  %vm4787_vm0 = vcmp.eq.s32.totalorder %v4786_v12, %v3310_v7  ;;  %v1393_v46 = vsel %vm94_vm1, %v1342_v15, -inf }
 0x36e   :  { %v1391_v30 = vsel %vm94_vm1, %v1341_v32, -inf  ;;  %v1394_v26 = vmax.f32 %v1386_v22, %v1393_v46  ;;  %v1396_v15 = vmax.f32 %v1388_v28, %v1395_v2  ;;  %vm4794_vm5 = vcmp.eq.s32.totalorder %v4793_v31, %v3310_v7 }
 0x36f   :  { %v1392_v38 = vmax.f32 %v1384_v36, %v1391_v30  ;;  %v2464_v12 = vsel %vm4810_vm15, 1.0, %v4749_v18 }
 0x370   :  { %v1298_v48 = vpop.permute.xlu1 %1297  ;;  %v1283_v39 = vpop.permute.xlu0 %1282 }
 0x371   :  { %v1344_v51 = vsel %vm4785_vm12, %v1283_v39, -1e+30  ;;  %v1347_v44 = vsel %vm4789_vm10, %v1298_v48, -1e+30  ;;  %v1401_v39 = vsel %vm94_vm1, %v1346_v16, -inf  ;;  %vm4796_vm12 = vcmp.eq.s32.totalorder %v4795_v13, %v3310_v7 }
 0x372   :  { %v1397_v3 = vsel %vm94_vm1, %v1344_v51, -inf  ;;  %v1403_v32 = vsel %vm94_vm1, %v1347_v44, -inf  ;;  %v1402_v51 = vmax.f32 %v1394_v26, %v1401_v39  ;;  %vm4799_vm10 = vcmp.eq.s32.totalorder %v4772_v61, %v3310_v7 }
 0x373   :  { %v1398_v35 = vmax.f32 %v1390_v24, %v1397_v3 }
 0x374   :  { %v1288_v45 = vpop.permute.xlu1 %1287 }
 0x375   :  { %v1345_v41 = vsel %vm4787_vm0, %v1288_v45, -1e+30  ;;  %vm4798_vm0 = vcmp.eq.s32.totalorder %v4770_v29, %v3310_v7 }
 0x376   :  { %v1399_v43 = vsel %vm94_vm1, %v1345_v41, -inf  ;;  %v1404_v41 = vmax.f32 %v1396_v15, %v1403_v32 }
 0x377   :  { %v1400_v16 = vmax.f32 %v1392_v38, %v1399_v43 }
 0x378   :  { %v1308_v50 = vpop.permute.xlu1 %1307  ;;  %v1303_v9 = vpop.permute.xlu0 %1302 }
 0x379   :  { %v1349_v48 = vsel %vm1093_vm4, %v1308_v50, -1e+30  ;;  %v1348_v34 = vsel %vm4792_vm11, %v1303_v9, -1e+30  ;;  %vm4800_vm11 = vcmp.eq.s32.totalorder %v4766_v42, %v3310_v7 }
 0x37a   :  { %v1407_v6 = vsel %vm94_vm1, %v1349_v48, -inf  ;;  %v1405_v17 = vsel %vm94_vm1, %v1348_v34, -inf  ;;  %v4797_v48 = vlaneseq  ;;  %v2456_v53 = vsel %vm4800_vm11, 1.0, %v4749_v18 }
 0x37b   :  { %v1408_v44 = vmax.f32 %v1400_v16, %v1407_v6  ;;  %v1406_v36 = vmax.f32 %v1398_v35, %v1405_v17  ;;  %v4026_v6 = vld [vmem:[#allocation2] sm:$0x1]  ;;  %vm4812_vm11 = vcmp.eq.s32.totalorder %v4788_v19, %v3310_v7 }
 0x37c   :  { %v1318_v5 = vpop.permute.xlu1 %1317  ;;  %v1313_v30 = vpop.permute.xlu0 %1312  ;;  %v4024_v34 = vshrl.u32 %v4797_v48, 7  ;;  %v2465_v49 = vsel %vm4812_vm11, 1.0, %v4749_v18 }
 0x37d   :  { %v1351_v50 = vsel %vm4794_vm5, %v1318_v5, -1e+30  ;;  %v1350_v2 = vsel %vm4796_vm12, %v1313_v30, -1e+30  ;;  %v1413_v46 = vmax.f32 %v1406_v36, %v1408_v44  ;;  %v2438_v5 = vsel %vm1064_vm2, 1.0, %v4749_v18 }
 0x37e   :  { %v1411_v22 = vsel %vm94_vm1, %v1351_v50, -inf  ;;  %v1409_v28 = vsel %vm94_vm1, %v1350_v2, -inf  ;;  %v4029_v17 = vsub.s32 0, %v4024_v34  ;;  %v2454_v30 = vsel %vm4798_vm0, 1.0, %v4749_v18 }
 0x37f   :  { %v1412_v24 = vmax.f32 %v1404_v41, %v1411_v22  ;;  %v1410_v3 = vmax.f32 %v1402_v51, %v1409_v28  ;;  %v2455_v50 = vsel %vm4799_vm10, 1.0, %v4749_v18  ;;  %vm4801_vm2 = vcmp.eq.s32.totalorder %v4754_v8, %v3310_v7 }
 0x380   :  { %v2439_v61 = vsel %vm4801_vm2, 1.0, %v4749_v18  ;;  %vm4802_vm5 = vcmp.eq.s32.totalorder %v4768_v20, %v3310_v7  ;;  %v2440_v8 = vsel %vm1066_vm7, 1.0, %v4749_v18  ;;  %vm4803_vm12 = vcmp.eq.s32.totalorder %v4774_v33, %v3310_v7 }
 0x381   :  { %v1414_v39 = vmax.f32 %v1410_v3, %v1412_v24  ;;  %v2457_v42 = vsel %vm4802_vm5, 1.0, %v4749_v18  ;;  %v2458_v20 = vsel %vm4803_vm12, 1.0, %v4749_v18  ;;  %vm4804_vm7 = vcmp.eq.s32.totalorder %v4776_v52, %v3310_v7 }
 0x382   :  { %v2459_v33 = vsel %vm4804_vm7, 1.0, %v4749_v18  ;;  %v2460_v52 = vsel %vm4805_vm8, 1.0, %v4749_v18  ;;  %vm4809_vm0 = vcmp.eq.s32.totalorder %v4756_v59, %v3310_v7  ;;  %vm4811_vm10 = vcmp.eq.s32.totalorder %v4758_v63, %v3310_v7 }
 0x383   :  { %v1415_v43 = vmax.f32 %v1413_v46, %v1414_v39  ;;  %v2446_v0 = vsel %vm4809_vm0, 1.0, %v4749_v18  ;;  %v2447_v59 = vsel %vm4811_vm10, 1.0, %v4749_v18  ;;  %vm4813_vm2 = vcmp.eq.s32.totalorder %v4750_v40, %v3310_v7  ;;  %vm4882_vm0 = vmmov %vm4881_vm9 }
 0x384   :  { %v2448_v63 = vsel %vm4813_vm2, 1.0, %v4749_v18  ;;  %vm4814_vm5 = vcmp.eq.s32.totalorder %v4791_v21, %v3310_v7  ;;  %vm4815_vm12 = vcmp.eq.s32.totalorder %v4752_v57, %v3310_v7  ;;  %v2467_v21 = vsel %vm1093_vm4, 1.0, %v4749_v18  ;;  %vm4883_vm15 = vmmov %vm4882_vm0 }
 0x385   :  { %v1416_v9 = vrot.slane %v1415_v43, 4  ;;  %v2466_v19 = vsel %vm4814_vm5, 1.0, %v4749_v18  ;;  %v2449_v40 = vsel %vm4815_vm12, 1.0, %v4749_v18  ;;  %vm4816_vm7 = vcmp.eq.s32.totalorder %v4762_v27, %v3310_v7  ;;  %vm4884_vm10 = vmmov %vm4882_vm0 }
 0x386   :  { %v2450_v57 = vsel %vm4816_vm7, 1.0, %v4749_v18  ;;  %vm4817_vm8 = vcmp.eq.s32.totalorder %v4795_v13, %v3310_v7  ;;  %vm4818_vm4 = vcmp.eq.s32.totalorder %v4764_v10, %v3310_v7  ;;  %v2469_v13 = vsel %vm4819_vm13, 1.0, %v4749_v18  ;;  %vm4885_vm11 = vmmov %vm4882_vm0 }
 0x387   :  { %v1417_v38 = vmax.f32 %v1415_v43, %v1416_v9  ;;  %v2468_v45 = vsel %vm4817_vm8, 1.0, %v4749_v18  ;;  %v2451_v27 = vsel %vm4818_vm4, 1.0, %v4749_v18  ;;  %v2452_v10 = vsel %vm1078_vm3, 1.0, %v4749_v18  ;;  %vm4886_vm2 = vmmov %vm4882_vm0 }
 0x388   :  { %vm2107_vm3 = vcmask 138240   ;;  %vm4887_vm5 = vmmov %vm4882_vm0 }
 0x389   :  { %v1418_v32 = vrot.slane %v1417_v38, 2  ;;  %vm4888_vm12 = vmmov %vm4882_vm0 }
 0x38a   :  { %vm4889_vm7 = vmmov %vm4882_vm0 }
 0x38b   :  { %v1419_v26 = vmax.f32 %v1417_v38, %v1418_v32  ;;  %vm4890_vm8 = vmmov %vm4882_vm0 }
 0x38c   :  { %vm4891_vm4 = vmmov %vm4882_vm0 }
 0x38d   :  { %v1420_v15 = vrot.slane %v1419_v26, 1  ;;  %vm4892_vm13 = vmmov %vm4882_vm0 }
 0x38f   :  { %v1421_v35 = vmax.f32 %v1419_v26, %v1420_v15 }
 0x391   :  { %v4032_v16 = vmax.f32 %v4026_v6, %v1421_v35 }
 0x393   :  { %1428 = vst.msk [vmem:[#allocation2] sm:$0x1] %vm90_vm6, %v4032_v16  ;;  %v4038_v51 = vrot.slane %v4032_v16, %v4029_v17  ;;  %v1424_v41 = vsub.f32 %v4026_v6, %v4032_v16 }
 0x395   :  { %v1451_v44 = vmul.f32 %v2454_v30, %v4038_v51  ;;  %v1435_v36 = vmul.f32 %v2438_v5, %v4038_v51  ;;  %v1452_v29 = vmul.f32 %v2455_v50, %v4038_v51  ;;  %v1453_v28 = vmul.f32 %v2456_v53, %v4038_v51 }
 0x396   :  { %v1436_v46 = vmul.f32 %v2439_v61, %v4038_v51  ;;  %v1454_v39 = vmul.f32 %v2457_v42, %v4038_v51  ;;  %v1437_v38 = vmul.f32 %v2440_v8, %v4038_v51  ;;  %v1455_v32 = vmul.f32 %v2458_v20, %v4038_v51 }
 0x397   :  { %v1515_v2 = vsel %vm94_vm1, %v1451_v44, 0.0  ;;  %v1467_v22 = vsel %vm94_vm1, %v1435_v36, 0.0  ;;  %v1518_v24 = vsel %vm94_vm1, %v1452_v29, 0.0  ;;  %v1521_v3 = vsel %vm94_vm1, %v1453_v28, 0.0 }
 0x398   :  { %1516 = vadd.xlane.f32.xlu0 %v1515_v2  ;;  %1468 = vadd.xlane.f32.xlu1 %v1467_v22  ;;  %v1470_v43 = vsel %vm94_vm1, %v1436_v46, 0.0  ;;  %v1524_v9 = vsel %vm94_vm1, %v1454_v39, 0.0  ;;  %v1473_v48 = vsel %vm94_vm1, %v1437_v38, 0.0  ;;  %v1527_v26 = vsel %vm94_vm1, %v1455_v32, 0.0 }
 0x399   :  { %v1438_v15 = vmul.f32 %v2441_v54, %v4038_v51  ;;  %v1456_v35 = vmul.f32 %v2459_v33, %v4038_v51  ;;  %v1439_v44 = vmul.f32 %v2442_v56, %v4038_v51  ;;  %v1457_v36 = vmul.f32 %v2460_v52, %v4038_v51 }
 0x39a   :  { %v1440_v2 = vmul.f32 %v2443_v58, %v4038_v51  ;;  %v1458_v22 = vmul.f32 %v2461_v55, %v4038_v51  ;;  %v1441_v61 = vmul.f32 %v2444_v60, %v4038_v51  ;;  %v1459_v42 = vmul.f32 %v2462_v4, %v4038_v51 }
 0x39b   :  { %v1476_v5 = vsel %vm94_vm1, %v1438_v15, 0.0  ;;  %v1530_v30 = vsel %vm94_vm1, %v1456_v35, 0.0  ;;  %v1479_v50 = vsel %vm94_vm1, %v1439_v44, 0.0  ;;  %v1533_v53 = vsel %vm94_vm1, %v1457_v36, 0.0 }
 0x39c   :  { %1519 = vadd.xlane.f32.xlu0 %v1518_v24  ;;  %1522 = vadd.xlane.f32.xlu1 %v1521_v3  ;;  %v1482_v29 = vsel %vm94_vm1, %v1440_v2, 0.0  ;;  %v1536_v28 = vsel %vm94_vm1, %v1458_v22, 0.0  ;;  %v1485_v24 = vsel %vm94_vm1, %v1441_v61, 0.0  ;;  %v1539_v3 = vsel %vm94_vm1, %v1459_v42, 0.0 }
 0x39d   :  { %v1442_v46 = vmul.f32 %v2445_v62, %v4038_v51  ;;  %v1460_v39 = vmul.f32 %v2463_v23, %v4038_v51  ;;  %v1444_v54 = vmul.f32 %v2447_v59, %v4038_v51  ;;  %v1462_v33 = vmul.f32 %v2465_v49, %v4038_v51 }
 0x39e   :  { %v1445_v15 = vmul.f32 %v2448_v63, %v4038_v51  ;;  %v1463_v35 = vmul.f32 %v2466_v19, %v4038_v51  ;;  %v1447_v58 = vmul.f32 %v2450_v57, %v4038_v51  ;;  %v1465_v55 = vmul.f32 %v2468_v45, %v4038_v51 }
 0x39f   :  { %v1488_v8 = vsel %vm94_vm1, %v1442_v46, 0.0  ;;  %v1542_v20 = vsel %vm94_vm1, %v1460_v39, 0.0  ;;  %v1448_v2 = vmul.f32 %v2451_v27, %v4038_v51  ;;  %v1466_v22 = vmul.f32 %v2469_v13, %v4038_v51  ;;  %v4828_v27 = vld [vmem:[#allocation93_spill] sm:$0xff] }
 0x3a0   :  { %1471 = vadd.xlane.f32.xlu0 %v1470_v43  ;;  %1525 = vadd.xlane.f32.xlu1 %v1524_v9  ;;  %v1443_v43 = vmul.f32 %v2446_v0, %v4038_v51  ;;  %v1461_v9 = vmul.f32 %v2464_v12, %v4038_v51  ;;  %v1497_v56 = vsel %vm94_vm1, %v1445_v15, 0.0  ;;  %v1551_v52 = vsel %vm94_vm1, %v1463_v35, 0.0  ;;  %v4825_v35 = vld [vmem:[#allocation78_spill] sm:$0xff] }
 0x3a1   :  { %v1506_v60 = vsel %vm94_vm1, %v1448_v2, 0.0  ;;  %v1560_v31 = vsel %vm94_vm1, %v1466_v22, 0.0  ;;  %v1449_v4 = vmul.f32 %v2452_v10, %v4038_v51 }
 0x3a2   :  { %v1491_v38 = vsel %vm94_vm1, %v1443_v43, 0.0  ;;  %v1545_v32 = vsel %vm94_vm1, %v1461_v9, 0.0 }
 0x3a4   :  { %1474 = vadd.xlane.f32.xlu0 %v1473_v48  ;;  %1528 = vadd.xlane.f32.xlu1 %v1527_v26  ;;  %v1494_v48 = vsel %vm94_vm1, %v1444_v54, 0.0  ;;  %v1548_v26 = vsel %vm94_vm1, %v1462_v33, 0.0  ;;  %v4824_v54 = vld [vmem:[#allocation94_spill] sm:$0xff] }
 0x3a8   :  { %1477 = vadd.xlane.f32.xlu0 %v1476_v5  ;;  %1531 = vadd.xlane.f32.xlu1 %v1530_v30  ;;  %v1446_v5 = vmul.f32 %v2449_v40, %v4038_v51  ;;  %v1464_v30 = vmul.f32 %v2467_v21, %v4038_v51  ;;  %v4826_v21 = vld [vmem:[#allocation97_spill] sm:$0xff] }
 0x3aa   :  { %v1500_v44 = vsel %vm94_vm1, %v1446_v5, 0.0  ;;  %v1554_v36 = vsel %vm94_vm1, %v1464_v30, 0.0 }
 0x3ac   :  { %1480 = vadd.xlane.f32.xlu0 %v1479_v50  ;;  %1534 = vadd.xlane.f32.xlu1 %v1533_v53  ;;  %v1503_v50 = vsel %vm94_vm1, %v1447_v58, 0.0  ;;  %v1557_v53 = vsel %vm94_vm1, %v1465_v55, 0.0  ;;  %v4827_v58 = vld [vmem:[#allocation81_spill] sm:$0xff] }
 0x3b0   :  { %1483 = vadd.xlane.f32.xlu0 %v1482_v29  ;;  %1537 = vadd.xlane.f32.xlu1 %v1536_v28  ;;  %v2453_v29 = vsel %vm4820_vm14, 1.0, %v4749_v18  ;;  %v1509_v28 = vsel %vm94_vm1, %v1449_v4, 0.0  ;;  %v4829_v4 = vld [vmem:[#allocation84_spill] sm:$0xff]  ;;  %vm4893_vm14 = vmmov %vm4882_vm0 }
 0x3b1   :  { %v1450_v61 = vmul.f32 %v2453_v29, %v4038_v51 }
 0x3b3   :  { %v1512_v37 = vsel %vm94_vm1, %v1450_v61, 0.0 }
 0x3b4   :  { %1486 = vadd.xlane.f32.xlu0 %v1485_v24  ;;  %1540 = vadd.xlane.f32.xlu1 %v1539_v3 }
 0x3b8   :  { %1489 = vadd.xlane.f32.xlu0 %v1488_v8  ;;  %1543 = vadd.xlane.f32.xlu1 %v1542_v20  ;;  %v4821_v20 = vld [vmem:[#allocation80_spill] sm:$0xff] }
 0x3bc   :  { %1492 = vadd.xlane.f32.xlu0 %v1491_v38  ;;  %1546 = vadd.xlane.f32.xlu1 %v1545_v32  ;;  %v4823_v32 = vld [vmem:[#allocation77_spill] sm:$0xff] }
 0x3c0   :  { %1495 = vadd.xlane.f32.xlu0 %v1494_v48  ;;  %1549 = vadd.xlane.f32.xlu1 %v1548_v26 }
 0x3c4   :  { %1498 = vadd.xlane.f32.xlu0 %v1497_v56  ;;  %1552 = vadd.xlane.f32.xlu1 %v1551_v52 }
 0x3c8   :  { %1501 = vadd.xlane.f32.xlu0 %v1500_v44  ;;  %1555 = vadd.xlane.f32.xlu1 %v1554_v36 }
 0x3cc   :  { %1504 = vadd.xlane.f32.xlu0 %v1503_v50  ;;  %1558 = vadd.xlane.f32.xlu1 %v1557_v53 }
 0x3d0   :  { %1507 = vadd.xlane.f32.xlu0 %v1506_v60  ;;  %1561 = vadd.xlane.f32.xlu1 %v1560_v31 }
 0x3d4   :  { %1510 = vadd.xlane.f32.xlu0 %v1509_v28  ;;  %v4830_v28 = vld [vmem:[#allocation95_spill] sm:$0xff] }
 0x3d8   :  { %1513 = vadd.xlane.f32.xlu0 %v1512_v37 }
 0x425   :  { %v1517_v42 = vpop.xlane.xlu0 %1516  ;;  %v1469_v62 = vpop.xlane.xlu1 %1468 }
 0x426   :  { %v1579_v23 = vsub.f32 %v3845_v1, %v1517_v42  ;;  %v1563_v24 = vsub.f32 %v3785_v14, %v1469_v62  ;;  %v4822_v1 = vld [vmem:[#allocation92_spill] sm:$0xff] }
 0x428   :  { %v1627_v3 = vmul.f32 1.442695, %v1579_v23  ;;  %v1595_v46 = vmul.f32 1.442695, %v1563_v24 }
 0x429   :  { %v1520_v39 = vpop.xlane.xlu0 %1519  ;;  %v1523_v0 = vpop.xlane.xlu1 %1522 }
 0x42a   :  { %2880 = vpow2.f32 %v1627_v3  ;;  %v1580_v7 = vsub.f32 %v3853_v25, %v1520_v39  ;;  %v1581_v18 = vsub.f32 %v3838_v47, %v1523_v0  ;;  %v4831_v39 = vld [vmem:[#allocation79_spill] sm:$0xff] }
 0x42b   :  { %2882 = vpow2.f32 %v1595_v46 }
 0x42c   :  { %v1629_v11 = vmul.f32 1.442695, %v1580_v7  ;;  %v1631_v51 = vmul.f32 1.442695, %v1581_v18  ;;  %v4832_v7 = vld [vmem:[#allocation98_spill] sm:$0xff] }
 0x42d   :  { %v1472_v12 = vpop.xlane.xlu0 %1471  ;;  %v1526_v8 = vpop.xlane.xlu1 %1525 }
 0x42e   :  { %2884 = vpow2.f32 %v1629_v11  ;;  %v1564_v43 = vsub.f32 %v4821_v20, %v1472_v12  ;;  %v1582_v9 = vsub.f32 %v4822_v1, %v1526_v8 }
 0x42f   :  { %2886 = vpow2.f32 %v1631_v51 }
 0x430   :  { %v1597_v14 = vmul.f32 1.442695, %v1564_v43  ;;  %v1633_v59 = vmul.f32 1.442695, %v1582_v9  ;;  %v4833_v9 = vld [vmem:[#allocation82_spill] sm:$0xff] }
 0x431   :  { %v1475_v49 = vpop.xlane.xlu0 %1474  ;;  %v1529_v38 = vpop.xlane.xlu1 %1528 }
 0x432   :  { %2888 = vpow2.f32 %v1597_v14  ;;  %v1565_v25 = vsub.f32 %v4823_v32, %v1475_v49  ;;  %v1583_v47 = vsub.f32 %v4824_v54, %v1529_v38 }
 0x433   :  { %2890 = vpow2.f32 %v1633_v59  ;;  %v4834_v59 = vld [vmem:[#allocation100_spill] sm:$0xff] }
 0x434   :  { %v4242_v33 = vpop.eup %2880  ;;  %v1599_v63 = vmul.f32 1.442695, %v1565_v25  ;;  %v1635_v19 = vmul.f32 1.442695, %v1583_v47 }
 0x435   :  { %v4244_v48 = vpop.eup %2882  ;;  %v1478_v26 = vpop.xlane.xlu0 %1477  ;;  %1741 = vperm.xlu1 %2652, %v4242_v33  }
 0x436   :  { %v1532_v15 = vpop.xlane.xlu1 %1531  ;;  %2892 = vpow2.f32 %v1599_v63  ;;  %v1566_v40 = vsub.f32 %v4825_v35, %v1478_v26  ;;  %1661 = vperm.xlu0 %2653, %v4244_v48   ;;  %v2654_v52 = vpack.i.bf16 %v4244_v48, %v4242_v33  ;;  %v4835_v26 = vld [vmem:[#allocation85_spill] sm:$0xff]  ;;  %v4836_v35 = vld [vmem:[#allocation96_spill] sm:$0xff] }
 0x437   :  { %v1584_v56 = vsub.f32 %v4826_v21, %v1532_v15  ;;  %2894 = vpow2.f32 %v1635_v19 }
 0x438   :  { %v4252_v5 = vpop.eup %2884  ;;  %v1601_v30 = vmul.f32 1.442695, %v1566_v40 }
 0x439   :  { %v1637_v57 = vmul.f32 1.442695, %v1584_v56  ;;  %v4254_v45 = vpop.eup %2886  ;;  %v1481_v44 = vpop.xlane.xlu0 %1480  ;;  %1746 = vperm.xlu1 %2652, %v4252_v5  }
 0x43a   :  { %v1535_v36 = vpop.xlane.xlu1 %1534  ;;  %2896 = vpow2.f32 %v1601_v30  ;;  %v1567_v55 = vsub.f32 %v4827_v58, %v1481_v44  ;;  %1751 = vperm.xlu0 %2653, %v4254_v45  }
 0x43b   :  { %v1585_v13 = vsub.f32 %v4828_v27, %v1535_v36  ;;  %2898 = vpow2.f32 %v1637_v57 }
 0x43c   :  { %v4260_v50 = vpop.eup %2888  ;;  %v1603_v53 = vmul.f32 1.442695, %v1567_v55  ;;  %v4837_v55 = vld [vmem:[#allocation88_spill] sm:$0xff] }
 0x43d   :  { %v1639_v2 = vmul.f32 1.442695, %v1585_v13  ;;  %v4262_v22 = vpop.eup %2890  ;;  %v1484_v10 = vpop.xlane.xlu0 %1483  ;;  %1666 = vperm.xlu1 %2652, %v4260_v50   ;;  %v2659_v31 = vpack.i.bf16 %v4260_v50, %v4252_v5  ;;  %v4838_v13 = vld [vmem:[#allocation99_spill] sm:$0xff] }
 0x43e   :  { %v1538_v60 = vpop.xlane.xlu1 %1537  ;;  %2900 = vpow2.f32 %v1603_v53  ;;  %v1568_v29 = vsub.f32 %v4829_v4, %v1484_v10  ;;  %1756 = vperm.xlu0 %2653, %v4262_v22  }
 0x43f   :  { %v1586_v61 = vsub.f32 %v4830_v28, %v1538_v60  ;;  %2902 = vpow2.f32 %v1639_v2 }
 0x440   :  { %v4270_v37 = vpop.eup %2892  ;;  %v1605_v42 = vmul.f32 1.442695, %v1568_v29 }
 0x441   :  { %v1641_v62 = vmul.f32 1.442695, %v1586_v61  ;;  %v4272_v23 = vpop.eup %2894  ;;  %v1487_v24 = vpop.xlane.xlu0 %1486  ;;  %1671 = vperm.xlu1 %2652, %v4270_v37   ;;  %v2664_v46 = vpack.i.bf16 %v4270_v37, %v4254_v45  ;;  %v4850_v45 = vld [vmem:[#allocation46_spill] sm:$0xff] }
 0x442   :  { %v1541_v3 = vpop.xlane.xlu1 %1540  ;;  %2904 = vpow2.f32 %v1605_v42  ;;  %v1569_v0 = vsub.f32 %v4831_v39, %v1487_v24  ;;  %1761 = vperm.xlu0 %2653, %v4272_v23   ;;  %v4839_v42 = vld [vmem:[#allocation83_spill] sm:$0xff]  ;;  %v4840_v24 = vld [vmem:[#allocation101_spill] sm:$0xff] }
 0x443   :  { %v1587_v18 = vsub.f32 %v4832_v7, %v1541_v3  ;;  %2906 = vpow2.f32 %v1641_v62 }
 0x444   :  { %v4280_v11 = vpop.eup %2896  ;;  %v1607_v51 = vmul.f32 1.442695, %v1569_v0 }
 0x445   :  { %v1643_v12 = vmul.f32 1.442695, %v1587_v18  ;;  %v4282_v8 = vpop.eup %2898  ;;  %v1490_v20 = vpop.xlane.xlu0 %1489  ;;  %1676 = vperm.xlu1 %2652, %v4280_v11   ;;  %v2669_v1 = vpack.i.bf16 %v4280_v11, %v4262_v22 }
 0x446   :  { %v1544_v43 = vpop.xlane.xlu1 %1543  ;;  %2908 = vpow2.f32 %v1607_v51  ;;  %v1570_v14 = vsub.f32 %v4833_v9, %v1490_v20  ;;  %1766 = vperm.xlu0 %2653, %v4282_v8  }
 0x447   :  { %v1588_v49 = vsub.f32 %v4834_v59, %v1544_v43  ;;  %2910 = vpow2.f32 %v1643_v12  ;;  %v4841_v43 = vld [vmem:[#allocation86_spill] sm:$0xff] }
 0x448   :  { %v4290_v38 = vpop.eup %2900  ;;  %v1609_v32 = vmul.f32 1.442695, %v1570_v14  ;;  %v4842_v14 = vld [vmem:[#allocation102_spill] sm:$0xff] }
 0x449   :  { %v1645_v25 = vmul.f32 1.442695, %v1588_v49  ;;  %v4292_v54 = vpop.eup %2902  ;;  %v1493_v47 = vpop.xlane.xlu0 %1492  ;;  %1681 = vperm.xlu1 %2652, %v4290_v38   ;;  %v2674_v19 = vpack.i.bf16 %v4290_v38, %v4272_v23 }
 0x44a   :  { %v1547_v63 = vpop.xlane.xlu1 %1546  ;;  %2912 = vpow2.f32 %v1609_v32  ;;  %v1571_v15 = vsub.f32 %v4835_v26, %v1493_v47  ;;  %1771 = vperm.xlu0 %2653, %v4292_v54  }
 0x44b   :  { %v1589_v40 = vsub.f32 %v4836_v35, %v1547_v63  ;;  %2914 = vpow2.f32 %v1645_v25  ;;  %v4843_v35 = vld [vmem:[#allocation89_spill] sm:$0xff] }
 0x44c   :  { %v4300_v21 = vpop.eup %2904  ;;  %v1611_v56 = vmul.f32 1.442695, %v1571_v15 }
 0x44d   :  { %v1647_v30 = vmul.f32 1.442695, %v1589_v40  ;;  %v4302_v57 = vpop.eup %2906  ;;  %v1496_v44 = vpop.xlane.xlu0 %1495  ;;  %1686 = vperm.xlu1 %2652, %v4300_v21   ;;  %v2679_v58 = vpack.i.bf16 %v4300_v21, %v4282_v8  ;;  %v4853_v21 = vld [vmem:[#allocation61_spill] sm:$0xff] }
 0x44e   :  { %v1550_v36 = vpop.xlane.xlu1 %1549  ;;  %2916 = vpow2.f32 %v1611_v56  ;;  %v1572_v27 = vsub.f32 %v4837_v55, %v1496_v44  ;;  %1776 = vperm.xlu0 %2653, %v4302_v57   ;;  %v4844_v56 = vld [vmem:[#allocation103_spill] sm:$0xff] }
 0x44f   :  { %v1590_v53 = vsub.f32 %v4838_v13, %v1550_v36  ;;  %2918 = vpow2.f32 %v1647_v30 }
 0x450   :  { %v4310_v2 = vpop.eup %2908  ;;  %v1613_v10 = vmul.f32 1.442695, %v1572_v27 }
 0x451   :  { %v1649_v60 = vmul.f32 1.442695, %v1590_v53  ;;  %v4312_v4 = vpop.eup %2910  ;;  %v1499_v29 = vpop.xlane.xlu0 %1498  ;;  %1691 = vperm.xlu1 %2652, %v4310_v2   ;;  %v2684_v61 = vpack.i.bf16 %v4310_v2, %v4292_v54  ;;  %v4854_v2 = vld [vmem:[#allocation45_spill] sm:$0xff] }
 0x452   :  { %v1553_v28 = vpop.xlane.xlu1 %1552  ;;  %2920 = vpow2.f32 %v1613_v10  ;;  %v1573_v62 = vsub.f32 %v4839_v42, %v1499_v29  ;;  %1781 = vperm.xlu0 %2653, %v4312_v4  }
 0x453   :  { %v1591_v3 = vsub.f32 %v4840_v24, %v1553_v28  ;;  %2922 = vpow2.f32 %v1649_v60  ;;  %v4845_v60 = vld [vmem:[#allocation91_spill] sm:$0xff]  ;;  %v4846_v28 = vld [vmem:[#allocation104_spill] sm:$0xff] }
 0x454   :  { %v4320_v39 = vpop.eup %2912  ;;  %v1615_v0 = vmul.f32 1.442695, %v1573_v62 }
 0x455   :  { %v1651_v7 = vmul.f32 1.442695, %v1591_v3  ;;  %v4322_v18 = vpop.eup %2914  ;;  %v1502_v51 = vpop.xlane.xlu0 %1501  ;;  %1696 = vperm.xlu1 %2652, %v4320_v39   ;;  %v2689_v20 = vpack.i.bf16 %v4320_v39, %v4302_v57 }
 0x456   :  { %v1556_v12 = vpop.xlane.xlu1 %1555  ;;  %2924 = vpow2.f32 %v1615_v0  ;;  %v1574_v9 = vsub.f32 %v4841_v43, %v1502_v51  ;;  %1786 = vperm.xlu0 %2653, %v4322_v18  }
 0x457   :  { %v1592_v59 = vsub.f32 %v4842_v14, %v1556_v12  ;;  %2926 = vpow2.f32 %v1651_v7  ;;  %v4847_v12 = vld [vmem:[#allocation87_spill] sm:$0xff] }
 0x458   :  { %v4330_v49 = vpop.eup %2916  ;;  %v1617_v32 = vmul.f32 1.442695, %v1574_v9 }
 0x459   :  { %v1653_v25 = vmul.f32 1.442695, %v1592_v59  ;;  %v4332_v47 = vpop.eup %2918  ;;  %v1505_v63 = vpop.xlane.xlu0 %1504  ;;  %1701 = vperm.xlu1 %2652, %v4330_v49   ;;  %v2694_v15 = vpack.i.bf16 %v4330_v49, %v4312_v4 }
 0x45a   :  { %v1559_v26 = vpop.xlane.xlu1 %1558  ;;  %2928 = vpow2.f32 %v1617_v32  ;;  %v1575_v40 = vsub.f32 %v4843_v35, %v1505_v63  ;;  %1791 = vperm.xlu0 %2653, %v4332_v47  }
 0x45b   :  { %v1593_v30 = vsub.f32 %v4844_v56, %v1559_v26  ;;  %2930 = vpow2.f32 %v1653_v25  ;;  %v4848_v25 = vld [vmem:[#allocation90_spill] sm:$0xff] }
 0x45c   :  { %v2921_v44 = vpop.eup %2920  ;;  %v1619_v36 = vmul.f32 1.442695, %v1575_v40 }
 0x45d   :  { %v1655_v55 = vmul.f32 1.442695, %v1593_v30  ;;  %v2923_v27 = vpop.eup %2922  ;;  %v1508_v13 = vpop.xlane.xlu0 %1507  ;;  %1706 = vperm.xlu1 %2652, %v2921_v44   ;;  %v2699_v10 = vpack.i.bf16 %v2921_v44, %v4322_v18 }
 0x45e   :  { %v1562_v53 = vpop.xlane.xlu1 %1561  ;;  %2932 = vpow2.f32 %v1619_v36  ;;  %v1576_v29 = vsub.f32 %v4845_v60, %v1508_v13  ;;  %1796 = vperm.xlu0 %2653, %v2923_v27  }
 0x45f   :  { %v1594_v42 = vsub.f32 %v4846_v28, %v1562_v53  ;;  %2934 = vpow2.f32 %v1655_v55  ;;  %v4856_v53 = vld [vmem:[#allocation47_spill] sm:$0xff] }
 0x460   :  { %v2925_v62 = vpop.eup %2924  ;;  %v1621_v24 = vmul.f32 1.442695, %v1576_v29  ;;  %v4857_v28 = vld [vmem:[#allocation67_spill] sm:$0xff] }
 0x461   :  { %v1657_v3 = vmul.f32 1.442695, %v1594_v42  ;;  %v2927_v0 = vpop.eup %2926  ;;  %v1511_v7 = vpop.xlane.xlu0 %1510  ;;  %1711 = vperm.xlu1 %2652, %v2925_v62   ;;  %v2704_v51 = vpack.i.bf16 %v2925_v62, %v4332_v47 }
 0x462   :  { %2936 = vpow2.f32 %v1621_v24  ;;  %v1577_v43 = vsub.f32 %v4847_v12, %v1511_v7  ;;  %1801 = vperm.xlu0 %2653, %v2927_v0   ;;  %v4858_v24 = vld [vmem:[#allocation51_spill] sm:$0xff] }
 0x463   :  { %2938 = vpow2.f32 %v1657_v3 }
 0x464   :  { %v2929_v18 = vpop.eup %2928  ;;  %v1623_v9 = vmul.f32 1.442695, %v1577_v43 }
 0x465   :  { %v2931_v14 = vpop.eup %2930  ;;  %v1514_v59 = vpop.xlane.xlu0 %1513  ;;  %1716 = vperm.xlu1 %2652, %v2929_v18   ;;  %v2709_v32 = vpack.i.bf16 %v2929_v18, %v2923_v27  ;;  %v4860_v18 = vld [vmem:[#allocation52_spill] sm:$0xff] }
 0x466   :  { %2940 = vpow2.f32 %v1623_v9  ;;  %v1578_v63 = vsub.f32 %v4848_v25, %v1514_v59  ;;  %1806 = vperm.xlu0 %2653, %v2931_v14  }
 0x468   :  { %v2933_v26 = vpop.eup %2932  ;;  %v1625_v35 = vmul.f32 1.442695, %v1578_v63 }
 0x469   :  { %v2935_v40 = vpop.eup %2934  ;;  %1721 = vperm.xlu1 %2652, %v2933_v26   ;;  %v2714_v47 = vpack.i.bf16 %v2933_v26, %v2927_v0  ;;  %v4862_v26 = vld [vmem:[#allocation49_spill] sm:$0xff] }
 0x46a   :  { %2942 = vpow2.f32 %v1625_v35  ;;  %1811 = vperm.xlu0 %2653, %v2935_v40  }
 0x46c   :  { %v2937_v56 = vpop.eup %2936 }
 0x46d   :  { %v2939_v30 = vpop.eup %2938  ;;  %1726 = vperm.xlu1 %2652, %v2937_v56   ;;  %v2719_v44 = vpack.i.bf16 %v2937_v56, %v2931_v14  ;;  %v4863_v56 = vld [vmem:[#allocation66_spill] sm:$0xff] }
 0x46e   :  { %1816 = vperm.xlu0 %2653, %v2939_v30  }
 0x470   :  { %v2941_v36 = vpop.eup %2940 }
 0x471   :  { %1731 = vperm.xlu1 %2652, %v2941_v36   ;;  %v2724_v55 = vpack.i.bf16 %v2941_v36, %v2935_v40  ;;  %v4864_v36 = vld [vmem:[#allocation50_spill] sm:$0xff] }
 0x474   :  { %v2943_v27 = vpop.eup %2942 }
 0x475   :  { %1736 = vperm.xlu1 %2652, %v2943_v27   ;;  %v2729_v13 = vpack.i.bf16 %v2943_v27, %v2939_v30 }
 0x479   :  { %2655 = vrot.lane.b32.xlu1 %v2654_v52, %s3123_s29  ;;  %v4849_v52 = vld [vmem:[#allocation63_spill] sm:$0xff] }
 0x47d   :  { %2660 = vrot.lane.b32.xlu1 %v2659_v31, %s3123_s29 }
 0x481   :  { %2665 = vrot.lane.b32.xlu1 %v2664_v46, %s3123_s29  ;;  %v4851_v46 = vld [vmem:[#allocation64_spill] sm:$0xff] }
 0x485   :  { %2670 = vrot.lane.b32.xlu1 %v2669_v1, %s3123_s29  ;;  %v4852_v1 = vld [vmem:[#allocation48_spill] sm:$0xff] }
 0x489   :  { %2675 = vrot.lane.b32.xlu1 %v2674_v19, %s3123_s29 }
 0x48d   :  { %2680 = vrot.lane.b32.xlu1 %v2679_v58, %s3123_s29 }
 0x491   :  { %2685 = vrot.lane.b32.xlu1 %v2684_v61, %s3123_s29 }
 0x495   :  { %2690 = vrot.lane.b32.xlu1 %v2689_v20, %s3123_s29  ;;  %v4855_v20 = vld [vmem:[#allocation62_spill] sm:$0xff] }
 0x499   :  { %2695 = vrot.lane.b32.xlu1 %v2694_v15, %s3123_s29 }
 0x49d   :  { %2700 = vrot.lane.b32.xlu1 %v2699_v10, %s3123_s29 }
 0x4a1   :  { %2705 = vrot.lane.b32.xlu1 %v2704_v51, %s3123_s29  ;;  %v4859_v51 = vld [vmem:[#allocation68_spill] sm:$0xff] }
 0x4a5   :  { %2710 = vrot.lane.b32.xlu1 %v2709_v32, %s3123_s29  ;;  %v4861_v32 = vld [vmem:[#allocation65_spill] sm:$0xff] }
 0x4a9   :  { %2715 = vrot.lane.b32.xlu1 %v2714_v47, %s3123_s29 }
 0x4ad   :  { %2720 = vrot.lane.b32.xlu1 %v2719_v44, %s3123_s29 }
 0x4b1   :  { %2725 = vrot.lane.b32.xlu1 %v2724_v55, %s3123_s29 }
 0x4b4   :  { %v1742_v33 = vpop.permute.xlu1 %1741 }
 0x4b5   :  { %v1662_v48 = vpop.permute.xlu0 %1661  ;;  %v1835_v5 = vmul.f32 %v1742_v33, %v4849_v52  ;;  %2730 = vrot.lane.b32.xlu1 %v2729_v13, %s3123_s29  ;;  %v4865_v33 = vld [vmem:[#allocation71_spill] sm:$0xff] }
 0x4b6   :  { %v1819_v50 = vmul.f32 %v1662_v48, %v4850_v45 }
 0x4b8   :  { %v2734_v22 = vpack.i.bf16 %v1819_v50, %v1835_v5  ;;  %v1747_v31 = vpop.permute.xlu1 %1746  ;;  %v4866_v5 = vld [vmem:[#allocation55_spill] sm:$0xff] }
 0x4b9   :  { %v1752_v37 = vpop.permute.xlu0 %1751  ;;  %v1836_v11 = vmul.f32 %v1747_v31, %v4851_v46  ;;  %v4867_v31 = vld [vmem:[#allocation72_spill] sm:$0xff] }
 0x4ba   :  { %2735 = vrot.lane.b32.xlu0 %v2734_v22, %s3124_s3  ;;  %v1837_v57 = vmul.f32 %v1752_v37, %v4853_v21  ;;  %v4868_v46 = vld [vmem:[#allocation56_spill] sm:$0xff]  ;;  %v4870_v21 = vld [vmem:[#allocation53_spill] sm:$0xff] }
 0x4bc   :  { %v1667_v23 = vpop.permute.xlu1 %1666 }
 0x4bd   :  { %v1757_v8 = vpop.permute.xlu0 %1756  ;;  %v1820_v38 = vmul.f32 %v1667_v23, %v4852_v1 }
 0x4be   :  { %v1838_v49 = vmul.f32 %v1757_v8, %v4855_v20 }
 0x4bf   :  { %v2739_v54 = vpack.i.bf16 %v1820_v38, %v1836_v11  ;;  %v4869_v38 = vld [vmem:[#allocation69_spill] sm:$0xff] }
 0x4c0   :  { %v1672_v19 = vpop.permute.xlu1 %1671 }
 0x4c1   :  { %v1762_v58 = vpop.permute.xlu0 %1761  ;;  %v1821_v4 = vmul.f32 %v1672_v19, %v4854_v2  ;;  %2740 = vrot.lane.b32.xlu0 %v2739_v54, %s3124_s3 }
 0x4c2   :  { %v1839_v42 = vmul.f32 %v1762_v58, %v4857_v28 }
 0x4c3   :  { %v2744_v61 = vpack.i.bf16 %v1821_v4, %v1837_v57  ;;  %v4871_v4 = vld [vmem:[#allocation70_spill] sm:$0xff] }
 0x4c4   :  { %v1677_v39 = vpop.permute.xlu1 %1676 }
 0x4c5   :  { %v1767_v15 = vpop.permute.xlu0 %1766  ;;  %v1822_v10 = vmul.f32 %v1677_v39, %v4856_v53  ;;  %2745 = vrot.lane.b32.xlu0 %v2744_v61, %s3124_s3  ;;  %v4872_v39 = vld [vmem:[#allocation54_spill] sm:$0xff] }
 0x4c6   :  { %v1840_v12 = vmul.f32 %v1767_v15, %v4859_v51 }
 0x4c7   :  { %v2749_v60 = vpack.i.bf16 %v1822_v10, %v1838_v49  ;;  %v4873_v10 = vld [vmem:[#allocation75_spill] sm:$0xff] }
 0x4c8   :  { %v1682_v29 = vpop.permute.xlu1 %1681 }
 0x4c9   :  { %v1772_v62 = vpop.permute.xlu0 %1771  ;;  %v1823_v3 = vmul.f32 %v1682_v29, %v4858_v24  ;;  %2750 = vrot.lane.b32.xlu0 %v2749_v60, %s3124_s3  ;;  %v4874_v29 = vld [vmem:[#allocation59_spill] sm:$0xff] }
 0x4ca   :  { %v1841_v25 = vmul.f32 %v1772_v62, %v4861_v32 }
 0x4cb   :  { %v2754_v0 = vpack.i.bf16 %v1823_v3, %v1839_v42  ;;  %v4875_v3 = vld [vmem:[#allocation76_spill] sm:$0xff] }
 0x4cc   :  { %v1687_v7 = vpop.permute.xlu1 %1686 }
 0x4cd   :  { %v1777_v43 = vpop.permute.xlu0 %1776  ;;  %v1824_v9 = vmul.f32 %v1687_v7, %v4860_v18  ;;  %2755 = vrot.lane.b32.xlu0 %v2754_v0, %s3124_s3  ;;  %v4876_v7 = vld [vmem:[#allocation60_spill] sm:$0xff]  ;;  %v4877_v18 = vld [vmem:[#allocation73_spill] sm:$0xff] }
 0x4ce   :  { %v1842_v30 = vmul.f32 %v1777_v43, %v4863_v56 }
 0x4cf   :  { %v2759_v14 = vpack.i.bf16 %v1824_v9, %v1840_v12 }
 0x4d0   :  { %v1692_v59 = vpop.permute.xlu1 %1691 }
 0x4d1   :  { %v1782_v63 = vpop.permute.xlu0 %1781  ;;  %v1825_v35 = vmul.f32 %v1692_v59, %v4862_v26  ;;  %2760 = vrot.lane.b32.xlu0 %v2759_v14, %s3124_s3  ;;  %v4878_v14 = vld [vmem:[#allocation57_spill] sm:$0xff]  ;;  %v4879_v26 = vld [vmem:[#allocation74_spill] sm:$0xff] }
 0x4d2   :  { %v1843_v48 = vmul.f32 %v1782_v63, %v4865_v33 }
 0x4d3   :  { %v2764_v40 = vpack.i.bf16 %v1825_v35, %v1841_v25 }
 0x4d4   :  { %v1697_v47 = vpop.permute.xlu1 %1696 }
 0x4d5   :  { %v1787_v44 = vpop.permute.xlu0 %1786  ;;  %v1826_v55 = vmul.f32 %v1697_v47, %v4864_v36  ;;  %2765 = vrot.lane.b32.xlu0 %v2764_v40, %s3124_s3  ;;  %v4880_v40 = vld [vmem:[#allocation58_spill] sm:$0xff] }
 0x4d6   :  { %v1844_v37 = vmul.f32 %v1787_v44, %v4867_v31 }
 0x4d7   :  { %v2769_v27 = vpack.i.bf16 %v1826_v55, %v1842_v30 }
 0x4d8   :  { %v1702_v13 = vpop.permute.xlu1 %1701 }
 0x4d9   :  { %v1792_v52 = vpop.permute.xlu0 %1791  ;;  %v1827_v45 = vmul.f32 %v1702_v13, %v4866_v5  ;;  %2770 = vrot.lane.b32.xlu0 %v2769_v27, %s3124_s3 }
 0x4da   :  { %v1845_v54 = vmul.f32 %v1792_v52, %v4869_v38 }
 0x4db   :  { %v2774_v50 = vpack.i.bf16 %v1827_v45, %v1843_v48 }
 0x4dc   :  { %v1707_v22 = vpop.permute.xlu1 %1706 }
 0x4dd   :  { %v1797_v23 = vpop.permute.xlu0 %1796  ;;  %v1828_v11 = vmul.f32 %v1707_v22, %v4868_v46  ;;  %2775 = vrot.lane.b32.xlu0 %v2774_v50, %s3124_s3 }
 0x4de   :  { %v1846_v61 = vmul.f32 %v1797_v23, %v4871_v4 }
 0x4df   :  { %v2779_v8 = vpack.i.bf16 %v1828_v11, %v1844_v37 }
 0x4e0   :  { %v1712_v1 = vpop.permute.xlu1 %1711 }
 0x4e1   :  { %v1802_v19 = vpop.permute.xlu0 %1801  ;;  %v1829_v57 = vmul.f32 %v1712_v1, %v4870_v21  ;;  %2780 = vrot.lane.b32.xlu0 %v2779_v8, %s3124_s3 }
 0x4e2   :  { %v1847_v60 = vmul.f32 %v1802_v19, %v4873_v10 }
 0x4e3   :  { %v2784_v58 = vpack.i.bf16 %v1829_v57, %v1845_v54 }
 0x4e4   :  { %v1717_v2 = vpop.permute.xlu1 %1716 }
 0x4e5   :  { %v1830_v20 = vmul.f32 %v1717_v2, %v4872_v39  ;;  %2785 = vrot.lane.b32.xlu0 %v2784_v58, %s3124_s3  ;;  %v1807_v49 = vpop.permute.xlu0 %1806 }
 0x4e6   :  { %v1848_v0 = vmul.f32 %v1807_v49, %v4875_v3 }
 0x4e7   :  { %v2789_v15 = vpack.i.bf16 %v1830_v20, %v1846_v61 }
 0x4e8   :  { %v1722_v53 = vpop.permute.xlu1 %1721 }
 0x4e9   :  { %v1831_v28 = vmul.f32 %v1722_v53, %v4874_v29  ;;  %2790 = vrot.lane.b32.xlu0 %v2789_v15, %s3124_s3  ;;  %v1812_v62 = vpop.permute.xlu0 %1811 }
 0x4ea   :  { %v1849_v9 = vmul.f32 %v1812_v62, %v4877_v18 }
 0x4eb   :  { %v2794_v42 = vpack.i.bf16 %v1831_v28, %v1847_v60 }
 0x4ec   :  { %v1727_v24 = vpop.permute.xlu1 %1726 }
 0x4ed   :  { %v1832_v51 = vmul.f32 %v1727_v24, %v4876_v7  ;;  %2795 = vrot.lane.b32.xlu0 %v2794_v42, %s3124_s3  ;;  %v1817_v32 = vpop.permute.xlu0 %1816 }
 0x4ee   :  { %v1850_v35 = vmul.f32 %v1817_v32, %v4879_v26 }
 0x4ef   :  { %v2799_v12 = vpack.i.bf16 %v1832_v51, %v1848_v0 }
 0x4f0   :  { %v1732_v43 = vpop.permute.xlu1 %1731 }
 0x4f1   :  { %v1833_v59 = vmul.f32 %v1732_v43, %v4878_v14  ;;  %2800 = vrot.lane.b32.xlu0 %v2799_v12, %s3124_s3 }
 0x4f3   :  { %v2804_v25 = vpack.i.bf16 %v1833_v59, %v1849_v9 }
 0x4f4   :  { %v1737_v63 = vpop.permute.xlu1 %1736 }
 0x4f5   :  { %v1834_v47 = vmul.f32 %v1737_v63, %v4880_v40  ;;  %2805 = vrot.lane.b32.xlu0 %v2804_v25, %s3124_s3 }
 0x4f7   :  { %v2809_v56 = vpack.i.bf16 %v1834_v47, %v1850_v35 }
 0x4f8   :  { %v2656_v30 = vpop.permute.xlu1 %2655 }
 0x4f9   :  { %2810 = vrot.lane.b32.xlu0 %v2809_v56, %s3124_s3  ;;  %v2658_v48 = vunpack.i.h.bf16 %v2656_v30  ;;  %v2657_v52 = vunpack.i.l.bf16 %v2656_v30 }
 0x4fc   :  { %v2661_v44 = vpop.permute.xlu1 %2660 }
 0x4fd   :  { %v2663_v8 = vunpack.i.h.bf16 %v2661_v44  ;;  %v2662_v1 = vunpack.i.l.bf16 %v2661_v44 }
 0x500   :  { %v2666_v36 = vpop.permute.xlu1 %2665 }
 0x501   :  { %v2668_v57 = vunpack.i.h.bf16 %v2666_v36  ;;  %v2667_v61 = vunpack.i.l.bf16 %v2666_v36 }
 0x504   :  { %v2671_v55 = vpop.permute.xlu1 %2670 }
 0x505   :  { %v2673_v60 = vunpack.i.h.bf16 %v2671_v55  ;;  %v2672_v62 = vunpack.i.l.bf16 %v2671_v55 }
 0x508   :  { %v2676_v27 = vpop.permute.xlu1 %2675 }
 0x509   :  { %v2678_v43 = vunpack.i.h.bf16 %v2676_v27  ;;  %v2677_v59 = vunpack.i.l.bf16 %v2676_v27 }
 0x50c   :  { %v4421_v13 = vpop.permute.xlu1 %2680 }
 0x50d   :  { %v2683_v40 = vunpack.i.h.bf16 %v4421_v13  ;;  %v2682_v44 = vunpack.i.l.bf16 %v4421_v13 }
 0x510   :  { %v4427_v46 = vpop.permute.xlu1 %2685 }
 0x514   :  { %v4433_v39 = vpop.permute.xlu1 %2690 }
 0x518   :  { %v2696_v7 = vpop.permute.xlu1 %2695 }
 0x51c   :  { %v2701_v36 = vpop.permute.xlu1 %2700 }
 0x52c   :  { %v2736_v33 = vpop.permute.xlu0 %2735 }
 0x52d   :  { %v2738_v5 = vunpack.i.h.bf16 %v2736_v33  ;;  %v2737_v45 = vunpack.i.l.bf16 %v2736_v33 }
 0x52f   :  { %v2075_v50 = vsel %vm4881_vm9, %v2738_v5, %v2658_v48  ;;  %v2091_v22 = vsel %vm4882_vm0, %v2737_v45, %v2657_v52  ;;  %v2688_v5 = vunpack.i.h.bf16 %v4427_v46  ;;  %vm4894_vm9 = vmmov %vm4882_vm0 }
 0x530   :  { %v2108_v31 = vsel %vm2107_vm3, %v2075_v50, 1.0  ;;  %v2124_v37 = vsel %vm2107_vm3, %v2091_v22, 1.0 }
 0x531   :  { %v2814_v23 = vpack.i.bf16 %v2108_v31, %v2124_v37  ;;  %v2687_v31 = vunpack.i.l.bf16 %v4427_v46 }
 0x533   :  { %2815 = vxpose.xlu0.b32.start [1/16] (narrow) %v2814_v23, 24  ;;  %v2741_v11 = vpop.permute.xlu0 %2740 }
 0x534   :  { %v2743_v38 = vunpack.i.h.bf16 %v2741_v11  ;;  %v2742_v54 = vunpack.i.l.bf16 %v2741_v11  ;;  %v2706_v11 = vpop.permute.xlu1 %2705 }
 0x536   :  { %v2076_v19 = vsel %vm4883_vm15, %v2743_v38, %v2663_v8  ;;  %v2092_v21 = vsel %vm4884_vm10, %v2742_v54, %v2662_v1  ;;  %v2693_v38 = vunpack.i.h.bf16 %v4433_v39  ;;  %vm4895_vm15 = vmmov %vm4882_vm0 }
 0x537   :  { %v2109_v58 = vsel %vm2107_vm3, %v2076_v19, 1.0  ;;  %v2125_v2 = vsel %vm2107_vm3, %v2092_v21, 1.0  ;;  %v2746_v4 = vpop.permute.xlu0 %2745  ;;  %vm4896_vm10 = vmmov %vm4882_vm0 }
 0x538   :  { %v2748_v20 = vunpack.i.h.bf16 %v2746_v4  ;;  %v2747_v49 = vunpack.i.l.bf16 %v2746_v4  ;;  %v2816_v15 = vpack.i.bf16 %v2109_v58, %v2125_v2 }
 0x53a   :  { %v2077_v53 = vsel %vm4885_vm11, %v2748_v20, %v2668_v57  ;;  %v2093_v10 = vsel %vm4886_vm2, %v2747_v49, %v2667_v61  ;;  %2817 = vxpose.xlu0.b32.cont [2/16] (narrow) %v2816_v15, 24  ;;  %v2692_v57 = vunpack.i.l.bf16 %v4433_v39  ;;  %v2698_v20 = vunpack.i.h.bf16 %v2696_v7  ;;  %vm4897_vm11 = vmmov %vm4882_vm0 }
 0x53b   :  { %v2110_v29 = vsel %vm2107_vm3, %v2077_v53, 1.0  ;;  %v2126_v28 = vsel %vm2107_vm3, %v2093_v10, 1.0  ;;  %v2751_v42 = vpop.permute.xlu0 %2750  ;;  %v2697_v10 = vunpack.i.l.bf16 %v2696_v7  ;;  %vm4898_vm2 = vmmov %vm4882_vm0 }
 0x53c   :  { %v2753_v24 = vunpack.i.h.bf16 %v2751_v42  ;;  %v2752_v3 = vunpack.i.l.bf16 %v2751_v42  ;;  %v2818_v0 = vpack.i.bf16 %v2110_v29, %v2126_v28 }
 0x53e   :  { %v2078_v51 = vsel %vm4887_vm5, %v2753_v24, %v2673_v60  ;;  %v2094_v12 = vsel %vm4888_vm12, %v2752_v3, %v2672_v62  ;;  %2819 = vxpose.xlu0.b32.cont [3/16] (narrow) %v2818_v0, 24  ;;  %v2711_v60 = vpop.permute.xlu1 %2710  ;;  %v2703_v24 = vunpack.i.h.bf16 %v2701_v36  ;;  %vm4899_vm5 = vmmov %vm4882_vm0 }
 0x53f   :  { %v2111_v18 = vsel %vm2107_vm3, %v2078_v51, 1.0  ;;  %v2127_v9 = vsel %vm2107_vm3, %v2094_v12, 1.0  ;;  %v2756_v14 = vpop.permute.xlu0 %2755  ;;  %v2702_v12 = vunpack.i.l.bf16 %v2701_v36  ;;  %vm4900_vm12 = vmmov %vm4882_vm0  ;;  %v2713_v36 = vunpack.i.h.bf16 %v2711_v60 }
 0x540   :  { %v2758_v32 = vunpack.i.h.bf16 %v2756_v14  ;;  %v2757_v25 = vunpack.i.l.bf16 %v2756_v14  ;;  %v2820_v63 = vpack.i.bf16 %v2111_v18, %v2127_v9 }
 0x542   :  { %v2079_v26 = vsel %vm4889_vm7, %v2758_v32, %v2678_v43  ;;  %v2095_v35 = vsel %vm4890_vm8, %v2757_v25, %v2677_v59  ;;  %2821 = vxpose.xlu0.b32.cont [4/16] (narrow) %v2820_v63, 24  ;;  %v2716_v7 = vpop.permute.xlu1 %2715  ;;  %v2708_v32 = vunpack.i.h.bf16 %v2706_v11  ;;  %vm4901_vm7 = vmmov %vm4882_vm0 }
 0x543   :  { %v2112_v47 = vsel %vm2107_vm3, %v2079_v26, 1.0  ;;  %v2128_v56 = vsel %vm2107_vm3, %v2095_v35, 1.0  ;;  %v2761_v30 = vpop.permute.xlu0 %2760  ;;  %v2707_v35 = vunpack.i.l.bf16 %v2706_v11  ;;  %vm4902_vm8 = vmmov %vm4882_vm0 }
 0x544   :  { %v2763_v55 = vunpack.i.h.bf16 %v2761_v30  ;;  %v2762_v27 = vunpack.i.l.bf16 %v2761_v30  ;;  %v2822_v33 = vpack.i.bf16 %v2112_v47, %v2128_v56 }
 0x546   :  { %v2080_v48 = vsel %vm4891_vm4, %v2763_v55, %v2683_v40  ;;  %v2096_v52 = vsel %vm4892_vm13, %v2762_v27, %v2682_v44  ;;  %2823 = vxpose.xlu0.b32.cont [5/16] (narrow) %v2822_v33, 24  ;;  %vm4903_vm4 = vmmov %vm4882_vm0 }
 0x547   :  { %v2113_v45 = vsel %vm2107_vm3, %v2080_v48, 1.0  ;;  %v2129_v50 = vsel %vm2107_vm3, %v2096_v52, 1.0  ;;  %v2766_v22 = vpop.permute.xlu0 %2765  ;;  %v2712_v48 = vunpack.i.l.bf16 %v2711_v60  ;;  %v2721_v52 = vpop.permute.xlu1 %2720  ;;  %vm4904_vm13 = vmmov %vm4882_vm0 }
 0x548   :  { %v2768_v37 = vunpack.i.h.bf16 %v2766_v22  ;;  %v2767_v13 = vunpack.i.l.bf16 %v2766_v22  ;;  %v2824_v23 = vpack.i.bf16 %v2113_v45, %v2129_v50 }
 0x54a   :  { %v2081_v8 = vsel %vm4893_vm14, %v2768_v37, %v2688_v5  ;;  %v2097_v1 = vsel %vm4894_vm9, %v2767_v13, %v2687_v31  ;;  %2825 = vxpose.xlu0.b32.cont [6/16] (narrow) %v2824_v23, 24  ;;  %v2718_v37 = vunpack.i.h.bf16 %v2716_v7  ;;  %vm4905_vm14 = vmmov %vm4882_vm0 }
 0x54b   :  { %v2114_v54 = vsel %vm2107_vm3, %v2081_v8, 1.0  ;;  %v2130_v19 = vsel %vm2107_vm3, %v2097_v1, 1.0  ;;  %v2771_v21 = vpop.permute.xlu0 %2770  ;;  %v2717_v8 = vunpack.i.l.bf16 %v2716_v7  ;;  %vm4906_vm9 = vmmov %vm4882_vm0 }
 0x54c   :  { %v2773_v58 = vunpack.i.h.bf16 %v2771_v21  ;;  %v2772_v46 = vunpack.i.l.bf16 %v2771_v21  ;;  %v2826_v2 = vpack.i.bf16 %v2114_v54, %v2130_v19  ;;  %v2726_v19 = vpop.permute.xlu1 %2725 }
 0x54d   :  { %v2728_v60 = vunpack.i.h.bf16 %v2726_v19 }
 0x54e   :  { %v2082_v4 = vsel %vm4882_vm0, %v2773_v58, %v2693_v38  ;;  %v2098_v61 = vsel %vm4895_vm15, %v2772_v46, %v2692_v57  ;;  %2827 = vxpose.xlu0.b32.cont [7/16] (narrow) %v2826_v2, 24  ;;  %v2723_v58 = vunpack.i.h.bf16 %v2721_v52  ;;  %vm4907_vm15 = vmmov %vm4882_vm0 }
 0x54f   :  { %v2115_v49 = vsel %vm2107_vm3, %v2082_v4, 1.0  ;;  %v2131_v15 = vsel %vm2107_vm3, %v2098_v61, 1.0  ;;  %v2776_v53 = vpop.permute.xlu0 %2775  ;;  %v2722_v61 = vunpack.i.l.bf16 %v2721_v52 }
 0x550   :  { %v2778_v29 = vunpack.i.h.bf16 %v2776_v53  ;;  %v2777_v28 = vunpack.i.l.bf16 %v2776_v53  ;;  %v2828_v42 = vpack.i.bf16 %v2115_v49, %v2131_v15 }
 0x552   :  { %v2083_v39 = vsel %vm4896_vm10, %v2778_v29, %v2698_v20  ;;  %v2099_v62 = vsel %vm4897_vm11, %v2777_v28, %v2697_v10  ;;  %2829 = vxpose.xlu0.b32.cont [8/16] (narrow) %v2828_v42, 24  ;;  %vm4908_vm10 = vmmov %vm4882_vm0 }
 0x553   :  { %v2116_v3 = vsel %vm2107_vm3, %v2083_v39, 1.0  ;;  %v2132_v0 = vsel %vm2107_vm3, %v2099_v62, 1.0  ;;  %v2781_v51 = vpop.permute.xlu0 %2780  ;;  %v2727_v39 = vunpack.i.l.bf16 %v2726_v19  ;;  %v2731_v62 = vpop.permute.xlu1 %2730  ;;  %vm4909_vm11 = vmmov %vm4882_vm0 }
 0x554   :  { %v2783_v43 = vunpack.i.h.bf16 %v2781_v51  ;;  %v2782_v18 = vunpack.i.l.bf16 %v2781_v51  ;;  %v2830_v9 = vpack.i.bf16 %v2116_v3, %v2132_v0 }
 0x556   :  { %v2084_v14 = vsel %vm4898_vm2, %v2783_v43, %v2703_v24  ;;  %v2100_v59 = vsel %vm4899_vm5, %v2782_v18, %v2702_v12  ;;  %2831 = vxpose.xlu0.b32.cont [9/16] (narrow) %v2830_v9, 24  ;;  %v2733_v43 = vunpack.i.h.bf16 %v2731_v62  ;;  %vm4910_vm2 = vmmov %vm4882_vm0 }
 0x557   :  { %v2117_v25 = vsel %vm2107_vm3, %v2084_v14, 1.0  ;;  %v2133_v63 = vsel %vm2107_vm3, %v2100_v59, 1.0  ;;  %v2786_v26 = vpop.permute.xlu0 %2785  ;;  %v2732_v14 = vunpack.i.l.bf16 %v2731_v62 }
 0x558   :  { %v2788_v40 = vunpack.i.h.bf16 %v2786_v26  ;;  %v2787_v47 = vunpack.i.l.bf16 %v2786_v26  ;;  %v2832_v56 = vpack.i.bf16 %v2117_v25, %v2133_v63 }
 0x55a   :  { %v2085_v30 = vsel %vm4900_vm12, %v2788_v40, %v2708_v32  ;;  %v2101_v44 = vsel %vm4901_vm7, %v2787_v47, %v2707_v35  ;;  %2833 = vxpose.xlu0.b32.cont [10/16] (narrow) %v2832_v56, 24 }
 0x55b   :  { %v2118_v55 = vsel %vm2107_vm3, %v2085_v30, 1.0  ;;  %v2134_v27 = vsel %vm2107_vm3, %v2101_v44, 1.0  ;;  %v2791_v33 = vpop.permute.xlu0 %2790 }
 0x55c   :  { %v2793_v5 = vunpack.i.h.bf16 %v2791_v33  ;;  %v2792_v45 = vunpack.i.l.bf16 %v2791_v33  ;;  %v2834_v50 = vpack.i.bf16 %v2118_v55, %v2134_v27 }
 0x55e   :  { %v2086_v22 = vsel %vm4902_vm8, %v2793_v5, %v2713_v36  ;;  %v2102_v31 = vsel %vm4903_vm4, %v2792_v45, %v2712_v48  ;;  %2835 = vxpose.xlu0.b32.cont [11/16] (narrow) %v2834_v50, 24  ;;  %v1425_v5 = vmul.f32 1.442695, %v1424_v41  ;;  %v2298_v41 = vld [vmem:[#allocation3] sm:$0x1] }
 0x55f   :  { %v2119_v13 = vsel %vm2107_vm3, %v2086_v22, 1.0  ;;  %v2135_v23 = vsel %vm2107_vm3, %v2102_v31, 1.0  ;;  %v2796_v11 = vpop.permute.xlu0 %2795  ;;  %v2284_v22 = vld [vmem:[#allocation5] sm:$0xff] }
 0x560   :  { %v2798_v1 = vunpack.i.h.bf16 %v2796_v11  ;;  %v2797_v38 = vunpack.i.l.bf16 %v2796_v11  ;;  %v2836_v54 = vpack.i.bf16 %v2119_v13, %v2135_v23  ;;  %2944 = vpow2.f32 %v1425_v5 }
 0x562   :  { %v2087_v21 = vsel %vm4904_vm13, %v2798_v1, %v2718_v37  ;;  %v2103_v57 = vsel %vm4905_vm14, %v2797_v38, %v2717_v8  ;;  %2837 = vxpose.xlu0.b32.cont [12/16] (narrow) %v2836_v54, 24  ;;  %v3125_v37 = vmov 1966171168   ;;  %v2285_v1 = vld [vmem:[#allocation5 + $0x8] sm:$0xff] }
 0x563   :  { %v2120_v46 = vsel %vm2107_vm3, %v2087_v21, 1.0  ;;  %v2136_v2 = vsel %vm2107_vm3, %v2103_v57, 1.0  ;;  %v2801_v4 = vpop.permute.xlu0 %2800  ;;  %v2305_v13 = vunpack.c.l.s4 %v3125_v37 }
 0x564   :  { %v2803_v20 = vunpack.i.h.bf16 %v2801_v4  ;;  %v2802_v49 = vunpack.i.l.bf16 %v2801_v4  ;;  %v2838_v15 = vpack.i.bf16 %v2120_v46, %v2136_v2 }
 0x565   :  { %v2306_v19 = vunpack.c.0.s8 %v2305_v13 }
 0x566   :  { %v2088_v53 = vsel %vm4906_vm9, %v2803_v20, %v2723_v58  ;;  %v2104_v10 = vsel %vm4882_vm0, %v2802_v49, %v2722_v61  ;;  %2839 = vxpose.xlu0.b32.cont [13/16] (narrow) %v2838_v15, 24 }
 0x567   :  { %v2121_v29 = vsel %vm2107_vm3, %v2088_v53, 1.0  ;;  %v2137_v28 = vsel %vm2107_vm3, %v2104_v10, 1.0  ;;  %v2806_v42 = vpop.permute.xlu0 %2805  ;;  %v2309_v46 = vsub.s32 %v2306_v19, %v4024_v34  ;;  %v2302_v53 = vld [vmem:[#allocation4] sm:$0x1] }
 0x568   :  { %v2808_v24 = vunpack.i.h.bf16 %v2806_v42  ;;  %v2807_v3 = vunpack.i.l.bf16 %v2806_v42  ;;  %v2840_v0 = vpack.i.bf16 %v2121_v29, %v2137_v28 }
 0x56a   :  { %v2089_v51 = vsel %vm4907_vm15, %v2808_v24, %v2728_v60  ;;  %v2105_v12 = vsel %vm4908_vm10, %v2807_v3, %v2727_v39  ;;  %2841 = vxpose.xlu0.b32.cont [14/16] (narrow) %v2840_v0, 24  ;;  %v2945_v45 = vpop.eup %2944 }
 0x56b   :  { %v2122_v18 = vsel %vm2107_vm3, %v2089_v51, 1.0  ;;  %v2138_v9 = vsel %vm2107_vm3, %v2105_v12, 1.0  ;;  %v2811_v7 = vpop.permute.xlu0 %2810  ;;  %v2290_v50 = vrot.slane %v2945_v45, %v4029_v17  ;;  %v2299_v61 = vmul.f32 %v2945_v45, %v2298_v41 }
 0x56c   :  { %v2813_v59 = vunpack.i.h.bf16 %v2811_v7  ;;  %v2812_v32 = vunpack.i.l.bf16 %v2811_v7  ;;  %v2842_v25 = vpack.i.bf16 %v2122_v18, %v2138_v9  ;;  %v2381_v7 = vld [vmem:[#allocation11] sm:$0xff] }
 0x56d   :  { %v2292_v8 = vmul.f32 %v2290_v50, %v2284_v22  ;;  %v2293_v16 = vmul.f32 %v2290_v50, %v2285_v1 }
 0x56e   :  { %v2090_v63 = vsel %vm4909_vm11, %v2813_v59, %v2733_v43  ;;  %v2106_v26 = vsel %vm4910_vm2, %v2812_v32, %v2732_v14  ;;  %2843 = vxpose.xlu0.b32.cont [15/16] (narrow) %v2842_v25, 24 }
 0x56f   :  { %v2123_v35 = vsel %vm2107_vm3, %v2090_v63, 1.0  ;;  %v2139_v40 = vsel %vm2107_vm3, %v2106_v26, 1.0 }
 0x570   :  { %v2844_v47 = vpack.i.bf16 %v2123_v35, %v2139_v40 }
 0x572   :  { %2845 = vxpose.xlu0.b32.end [16/16] (narrow) %v2844_v47, 24 }
 0x5b6   :  { %v2846_v56 = vpop.trf.xlu0 }
 0x5b7   :  { %v2847_v30 = vunpack.i.l.bf16 %v2846_v56  ;;  %v2850_v44 = vunpack.i.h.bf16 %v2846_v56 }
 0x5b9   :  { %2268 = vmatprep.mubr.f32.mxu1 %v2847_v30 }
 0x5ba   :  { %v2851_v36 = vpop.trf.xlu0  ;;  %2269 = vmatmul.mubr.f32.vlgmr.msra.gmra.mrb[0].mxu1 %v2850_v44 }
 0x5bb   :  { %v2852_v55 = vunpack.i.l.bf16 %v2851_v36  ;;  %v2855_v27 = vunpack.i.h.bf16 %v2851_v36 }
 0x5bd   :  { %2273 = vmatprep.mubr.f32.mxu1 %v2852_v55 }
 0x5be   :  { %v2856_v33 = vpop.trf.xlu0  ;;  %2274 = vmatmul.mubr.f32.gmra.mrb[2].mxu1 %v2855_v27 }
 0x5bf   :  { %v2860_v48 = vunpack.i.h.bf16 %v2856_v33  ;;  %v2857_v52 = vunpack.i.l.bf16 %v2856_v33 }
 0x5c1   :  { %2278 = vmatprep.mubr.f32.mxu1 %v2857_v52 }
 0x5c2   :  { %2279 = vmatmul.mubr.f32.gmra.mrb[4].mxu1 %v2860_v48 }
 0x68d   :  { %v2553_v31 = vpop.f32.mrb[0].mxu1 }
 0x68e   :  { %v2554_v23 = vpop.f32.mrb[1].mxu1 }
 0x68f   :  { %v2555_v11 = vadd.f32 %v2554_v23, %v2553_v31 }
 0x691   :  { %v2294_v38 = vadd.f32 %v2555_v11, %v2292_v8  ;;  %v2556_v54 = vpop.f32.mrb[2].mxu1 }
 0x692   :  { %v2557_v21 = vpop.f32.mrb[3].mxu1 }
 0x693   :  { %2296 = vst.msk [vmem:[#allocation5] sm:$0xff] %vm94_vm1, %v2294_v38  ;;  %v2558_v6 = vadd.f32 %v2557_v21, %v2556_v54 }
 0x695   :  { %v2295_v57 = vadd.f32 %v2558_v6, %v2293_v16  ;;  %v2559_v58 = vpop.f32.mrb[4].mxu1 }
 0x696   :  { %v2560_v2 = vpop.f32.mrb[5].mxu1 }
 0x697   :  { %2297 = vst.msk [vmem:[#allocation5 + $0x8] sm:$0xff] %vm94_vm1, %v2295_v57  ;;  %v2561_v4 = vadd.f32 %v2560_v2, %v2559_v58  ;;  %vm4911_vm1 = vmmov %vm4882_vm0 }
 0x699   :  { %v2300_v20 = vadd.f32 %v2561_v4, %v2299_v61  ;;  %v2310_v49 = vrot.slane %v2561_v4, %v2309_v46 }
 0x69a   :  { %v2331_v3 = vld [vmem:[#allocation5] sm:$0xff] }
 0x69b   :  { %2301 = vst.msk [vmem:[#allocation3] sm:$0x1] %vm90_vm6, %v2300_v20  ;;  %v2311_v15 = vcombine.high %v2310_v49, %v2310_v49 }
 0x69d   :  { %v2318_v10 = vrot.slane %v2311_v15, %v2309_v46 }
 0x69e   :  { %v2332_v43 = vld [vmem:[#allocation5 + $0x8] sm:$0xff] }
 0x69f   :  { %v2320_v60 = vadd.f32 %v2318_v10, %v2302_v53 }
 0x6a1   :  { %2321 = vst.msk [vmem:[#allocation4] sm:$0x1] %vm90_vm6, %v2320_v60 }
 0x6a2   :  { %v2325_v29 = vld [vmem:[#allocation3] sm:$0x1] }
 0x6a3   :  { %v2326_v28 = vadd.f32 1e-16, %v2325_v29 }
 0x6a5   :  { %2946 = vrcp.f32 %v2326_v28 }
 0x6a8   :  { %v2328_v42 = vld [vmem:[#allocation4] sm:$0x1] }
 0x6a9   :  { %v2329_v34 = vmax.f32 %v2328_v42, 1.0 }
 0x6ab   :  { %2948 = vrcp.f32 %v2329_v34 }
 0x6af   :  { %v2947_v39 = vpop.eup %2946 }
 0x6b0   :  { %v2337_v62 = vrot.slane %v2947_v39, %v4029_v17 }
 0x6b2   :  { %v2339_v0 = vmul.f32 %v2337_v62, %v2331_v3  ;;  %v2340_v18 = vmul.f32 %v2337_v62, %v2332_v43 }
 0x6b5   :  { %v2949_v24 = vpop.eup %2948 }
 0x6b6   :  { %v2345_v51 = vrot.slane %v2949_v24, %v4029_v17 }
 0x6b8   :  { %v2347_v12 = vmul.f32 %v2345_v51, %v2339_v0  ;;  %v2348_v9 = vmul.f32 %v2345_v51, %v2340_v18 }
 0x6ba   :  { %2349 = vxpose.xlu1.b32.start [1/2] (short) (narrow) %v2347_v12, 8 }
 0x6be   :  { %2350 = vxpose.xlu1.b32.end [2/2] (short) (narrow) %v2348_v9, 8 }
 0x73a   :  { %v2365_v14 = vpop.trf.xlu1 }
 0x73b   :  { %v2382_v59 = vadd.f32 %v2381_v7, %v2365_v14 }
 0x73d   :  { %v2383_v32 = vmax.f32 %v2382_v59, 0.0 }
 0x73f   :  { %2384 = vst.msk [vmem:[#allocation15] sm:$0xff] %vm4911_vm1, %v2383_v32 }
 0x740   :  { %3089 = shalt.err (!%p3086_p2)
}
 0x741   :  { %s3090_s11 = scalar_lea.hbm %s4526_s5, 128 }
 0x742   :  { %p3091_p3 = scmp.ne.s32.totalorder %s4526_s5, %s3090_s11  ;;  %p3094_p4 = scmp.lt.u32.totalorder %s3090_s11, %s4526_s5 }
 0x744   :  { %p3096_p5 = pnand %p3094_p4, %p3091_p3 }
 0x746   :  { %3099 = shalt.err (!%p3096_p5)
}
 0x747   :  { %2394 = dma.vmem_to_hbm [thread:$0]  %s2392_s6, 128, %s4526_s5, [#allocation8]  }
 0x748   :  { %3106 = dma.done.wait [#allocation8], 128  }
 0x749   :  { %3107 = vsyncadd [#allocation8], 4294967168 }
 0x74a   :  { %2398 = vsyncpa [#allocation7], 1 }
 0x74b   :  { %2399 = vsyncpa [#allocation10], 1 }
 0x74c   :  { %2400 = vsyncpa [#allocation13], 1 }
 0x74d   :  { %2401 = vsyncpa [#allocation8], 1 }

</bundles_post_ra>
